<compile_context>
chip_gen: v7x
topology: tpu7x:2x2x1
jax: 0.10.0
libtpu: 0.0.40
codegen_flags: <defaults>
</compile_context>

<pallas_src>
import functools

import jax
import jax.numpy as jnp
from jax.experimental import pallas as pl
from jax.experimental.pallas import tpu as pltpu


# ----------------------------------------------------------------------------
# Fused Pallas kernel: whole ResidualGroup per grid step (one image)
# ----------------------------------------------------------------------------
def _residual_group_kernel(x_ref, w1_ref, b1_ref, w2_ref, b2_ref,
                           wd_ref, bd_ref, wu_ref, bu_ref, wf_ref, bf_ref,
                           o_ref, xp_ref, *, n_resblocks, H, W, C):
    # x_ref : (1, H*W, C)                input image (flattened spatial)
    # w1/w2 : (n_resblocks, 9*C, C)      im2col 3x3 conv weights per block
    # b1/b2 : (n_resblocks, 1, C)
    # wd/bd : (n_resblocks, C, Cr) / (n_resblocks, 1, Cr)   CA squeeze 1x1
    # wu/bu : (n_resblocks, Cr, C) / (n_resblocks, 1, C)    CA excite  1x1
    # wf/bf : (9*C, C) / (1, C)          final group conv
    # o_ref : (1, H*W, C)
    # xp_ref: (H+2, W+2, C) f32 VMEM scratch (zero-padded conv input)
    HW = H * W

    # Zero the padded scratch once per invocation: the halo stays zero for all
    # convs, the interior is fully rewritten before each conv.
    xp_ref[...] = jnp.zeros_like(xp_ref)

    def conv3x3(act, w, b):
        # act: (HW, C) f32.  One im2col matmul on the MXU: (HW, 9C) @ (9C, C).
        xp_ref[1:H + 1, 1:W + 1, :] = act.reshape(H, W, C)
        taps = [xp_ref[dy:dy + H, dx:dx + W, :].reshape(HW, C)
                for dy in range(3) for dx in range(3)]
        patches = jnp.concatenate(taps, axis=-1)          # (HW, 9C)
        return jnp.dot(patches, w, preferred_element_type=jnp.float32) + b

    gin = x_ref[0].astype(jnp.float32)                    # (HW, C) group input
    h = gin
    for blk in range(n_resblocks):                        # unrolled at trace time
        blk_in = h
        # conv3x3 + ReLU
        t = jnp.maximum(
            conv3x3(blk_in,
                    w1_ref[blk].astype(jnp.float32),
                    b1_ref[blk].astype(jnp.float32)), 0.0)
        # conv3x3
        r = conv3x3(t,
                    w2_ref[blk].astype(jnp.float32),
                    b2_ref[blk].astype(jnp.float32))
        # channel attention (squeeze-excite) + RCAB residual, all VMEM-resident
        pooled = jnp.sum(r, axis=0, keepdims=True) * (1.0 / float(HW))   # (1, C)
        hid = jnp.maximum(
            jnp.dot(pooled, wd_ref[blk].astype(jnp.float32),
                    preferred_element_type=jnp.float32)
            + bd_ref[blk].astype(jnp.float32), 0.0)                      # (1, Cr)
        gate = jax.nn.sigmoid(
            jnp.dot(hid, wu_ref[blk].astype(jnp.float32),
                    preferred_element_type=jnp.float32)
            + bu_ref[blk].astype(jnp.float32))                           # (1, C)
        h = r * gate + blk_in
    # final conv of the group + group residual
    out = conv3x3(h, wf_ref[...].astype(jnp.float32),
                  bf_ref[...].astype(jnp.float32)) + gin
    o_ref[0] = out.astype(o_ref.dtype)


# ----------------------------------------------------------------------------
# Python wrapper: pack weights, single pallas_call for the whole group
# ----------------------------------------------------------------------------
def residual_group_forward(x, params):
    """Full ResidualGroup forward (NHWC input) in one fused Pallas kernel."""
    N, H, W, C = x.shape
    n_resblocks = len(params["blocks"])
    Cr = params["blocks"][0]["wd"].shape[1]

    # Pack per-block weights into stacked arrays; 3x3 convs in im2col form.
    blocks = params["blocks"]
    w1s = jnp.stack([b["w1"].reshape(9 * C, C) for b in blocks])
    b1s = jnp.stack([b["b1"].reshape(1, C) for b in blocks])
    w2s = jnp.stack([b["w2"].reshape(9 * C, C) for b in blocks])
    b2s = jnp.stack([b["b2"].reshape(1, C) for b in blocks])
    wds = jnp.stack([b["wd"] for b in blocks])
    bds = jnp.stack([b["bd"].reshape(1, Cr) for b in blocks])
    wus = jnp.stack([b["wu"] for b in blocks])
    bus = jnp.stack([b["bu"].reshape(1, C) for b in blocks])
    wf = params["wf"].reshape(9 * C, C)
    bf = params["bf"].reshape(1, C)

    # Present activations as (N, H*W, C) slabs (free metadata reshape in HBM).
    x_slab = x.reshape(N, H * W, C)

    def full_spec(shape):
        return pl.BlockSpec(shape, lambda n: (0,) * len(shape))

    in_specs = [
        pl.BlockSpec((1, H * W, C), lambda n: (n, 0, 0)),      # x
        full_spec((n_resblocks, 9 * C, C)),                    # w1s
        full_spec((n_resblocks, 1, C)),                        # b1s
        full_spec((n_resblocks, 9 * C, C)),                    # w2s
        full_spec((n_resblocks, 1, C)),                        # b2s
        full_spec((n_resblocks, C, Cr)),                       # wds
        full_spec((n_resblocks, 1, Cr)),                       # bds
        full_spec((n_resblocks, Cr, C)),                       # wus
        full_spec((n_resblocks, 1, C)),                        # bus
        full_spec((9 * C, C)),                                 # wf
        full_spec((1, C)),                                     # bf
    ]
    out_spec = pl.BlockSpec((1, H * W, C), lambda n: (n, 0, 0))

    kernel = functools.partial(_residual_group_kernel,
                               n_resblocks=n_resblocks, H=H, W=W, C=C)

    out_slab = pl.pallas_call(
        kernel,
        out_shape=jax.ShapeDtypeStruct((N, H * W, C), x.dtype),
        grid=(N,),
        in_specs=in_specs,
        out_specs=out_spec,
        scratch_shapes=[pltpu.VMEM((H + 2, W + 2, C), jnp.float32)],
        compiler_params=pltpu.CompilerParams(
            dimension_semantics=("parallel",)),   # shards across TCs on v7x
    )(x_slab, w1s, b1s, w2s, b2s, wds, bds, wus, bus, wf, bf)

    return out_slab.reshape(N, H, W, C)


# ----------------------------------------------------------------------------
# Pure-JAX reference (correctness check only)
# ----------------------------------------------------------------------------
def _conv3x3_ref(x, w, b):
    y = jax.lax.conv_general_dilated(
        x, w, window_strides=(1, 1), padding="SAME",
        dimension_numbers=("NHWC", "HWIO", "NHWC"))
    return y + b.reshape(1, 1, 1, -1)


def _residual_group_ref(x, params):
    group_in = x
    h = x
    for blk in params["blocks"]:
        blk_in = h
        h = jnp.maximum(_conv3x3_ref(blk_in, blk["w1"], blk["b1"]), 0.0)
        h = _conv3x3_ref(h, blk["w2"], blk["b2"])
        pooled = jnp.mean(h, axis=(1, 2))                               # (N, C)
        hid = jnp.maximum(pooled @ blk["wd"] + blk["bd"], 0.0)
        gate = jax.nn.sigmoid(hid @ blk["wu"] + blk["bu"])              # (N, C)
        h = h * gate[:, None, None, :] + blk_in
    return _conv3x3_ref(h, params["wf"], params["bf"]) + group_in


# ----------------------------------------------------------------------------
# Deterministic parameter construction
# ----------------------------------------------------------------------------
def make_params(key, n_feat, reduction, n_resblocks):
    cr = n_feat // reduction
    blocks = []
    for _ in range(n_resblocks):
        key, *ks = jax.random.split(key, 9)
        blocks.append({
            "w1": jax.random.normal(ks[0], (3, 3, n_feat, n_feat), jnp.float32) * 0.1,
            "b1": jax.random.normal(ks[1], (n_feat,), jnp.float32) * 0.1,
            "w2": jax.random.normal(ks[2], (3, 3, n_feat, n_feat), jnp.float32) * 0.1,
            "b2": jax.random.normal(ks[3], (n_feat,), jnp.float32) * 0.1,
            "wd": jax.random.normal(ks[4], (n_feat, cr), jnp.float32) * 0.1,
            "bd": jax.random.normal(ks[5], (cr,), jnp.float32) * 0.1,
            "wu": jax.random.normal(ks[6], (cr, n_feat), jnp.float32) * 0.1,
            "bu": jax.random.normal(ks[7], (n_feat,), jnp.float32) * 0.1,
        })
    key, k1, k2 = jax.random.split(key, 3)
    return {
        "blocks": blocks,
        "wf": jax.random.normal(k1, (3, 3, n_feat, n_feat), jnp.float32) * 0.1,
        "bf": jax.random.normal(k2, (n_feat,), jnp.float32) * 0.1,
    }


# ----------------------------------------------------------------------------
# Main
# ----------------------------------------------------------------------------
if __name__ == "__main__":
    # Small shapes consistent with the module: batch=2, n_feat=16, 16x16
    # spatial, reduction=4 (squeezed channels = 4), n_resblocks=2, k=3.
    N, H, W, C = 2, 16, 16, 16
    reduction = 4
    n_resblocks = 2

    key = jax.random.PRNGKey(0)
    key, kx = jax.random.split(key)
    x = jax.random.normal(kx, (N, H, W, C), jnp.float32)
    params = make_params(key, C, reduction, n_resblocks)

    out = residual_group_forward(x, params)
    out = jax.block_until_ready(out)

    ref = _residual_group_ref(x, params)
    assert out.shape == (N, H, W, C)
    assert jnp.allclose(out, ref, atol=1e-4, rtol=1e-4), (
        "Pallas output does not match JAX reference")

    print("KERNEL_OK")
</pallas_src>

<mosaic_0001>
module attributes {stable_mosaic.version = 11 : i64} {
  func.func @_residual_group_kernel(%arg0: i32, %arg1: memref<1x256x16xf32, #tpu.memory_space<vmem>>, %arg2: memref<2x144x16xf32, #tpu.memory_space<vmem>>, %arg3: memref<2x1x16xf32, #tpu.memory_space<vmem>>, %arg4: memref<2x144x16xf32, #tpu.memory_space<vmem>>, %arg5: memref<2x1x16xf32, #tpu.memory_space<vmem>>, %arg6: memref<2x16x4xf32, #tpu.memory_space<vmem>>, %arg7: memref<2x1x4xf32, #tpu.memory_space<vmem>>, %arg8: memref<2x4x16xf32, #tpu.memory_space<vmem>>, %arg9: memref<2x1x16xf32, #tpu.memory_space<vmem>>, %arg10: memref<144x16xf32, #tpu.memory_space<vmem>>, %arg11: memref<1x16xf32, #tpu.memory_space<vmem>>, %arg12: memref<1x256x16xf32, #tpu.memory_space<vmem>>, %arg13: memref<18x18x16xf32, #tpu.memory_space<vmem>>) attributes {dimension_semantics = [#tpu.dimension_semantics<parallel>], iteration_bounds = array<i64: 2>, scalar_prefetch = 0 : i64, scratch_operands = 1 : i64, tpu.core_type = #tpu.core_type<tc>, window_params = [{transform_indices = @transform_0, window_bounds = array<i64: 1, 256, 16>}, {pipeline_mode = #tpu.pipeline_mode<synchronous>, transform_indices = @transform_1, window_bounds = array<i64: 2, 144, 16>}, {pipeline_mode = #tpu.pipeline_mode<synchronous>, transform_indices = @transform_2, window_bounds = array<i64: 2, 1, 16>}, {pipeline_mode = #tpu.pipeline_mode<synchronous>, transform_indices = @transform_3, window_bounds = array<i64: 2, 144, 16>}, {pipeline_mode = #tpu.pipeline_mode<synchronous>, transform_indices = @transform_4, window_bounds = array<i64: 2, 1, 16>}, {pipeline_mode = #tpu.pipeline_mode<synchronous>, transform_indices = @transform_5, window_bounds = array<i64: 2, 16, 4>}, {pipeline_mode = #tpu.pipeline_mode<synchronous>, transform_indices = @transform_6, window_bounds = array<i64: 2, 1, 4>}, {pipeline_mode = #tpu.pipeline_mode<synchronous>, transform_indices = @transform_7, window_bounds = array<i64: 2, 4, 16>}, {pipeline_mode = #tpu.pipeline_mode<synchronous>, transform_indices = @transform_8, window_bounds = array<i64: 2, 1, 16>}, {pipeline_mode = #tpu.pipeline_mode<synchronous>, transform_indices = @transform_9, window_bounds = array<i64: 144, 16>}, {pipeline_mode = #tpu.pipeline_mode<synchronous>, transform_indices = @transform_10, window_bounds = array<i64: 1, 16>}, {transform_indices = @transform_11, window_bounds = array<i64: 1, 256, 16>}]} {
    %cst = arith.constant 0.000000e+00 : f32
    %0 = vector.broadcast %cst : f32 to vector<18x18x16xf32>
    %c0 = arith.constant 0 : index
    %c0_0 = arith.constant 0 : index
    %c0_1 = arith.constant 0 : index
    %1 = vector.load %arg13[%c0, %c0_0, %c0_1] : memref<18x18x16xf32, #tpu.memory_space<vmem>>, vector<18x18x16xf32>
    tpu.vector_store %arg13[%c0, %c0_0, %c0_1], %0 {strides = array<i32>} : memref<18x18x16xf32, #tpu.memory_space<vmem>>, vector<18x18x16xf32>,
    %c0_2 = arith.constant 0 : index
    %c0_3 = arith.constant 0 : index
    %c0_4 = arith.constant 0 : index
    %2 = vector.load %arg1[%c0_2, %c0_3, %c0_4] : memref<1x256x16xf32, #tpu.memory_space<vmem>>, vector<1x256x16xf32>
    %3 = vector.shape_cast %2 : vector<1x256x16xf32> to vector<256x16xf32>
    %c0_5 = arith.constant 0 : index
    %c0_6 = arith.constant 0 : index
    %c0_7 = arith.constant 0 : index
    %4 = vector.load %arg2[%c0_5, %c0_6, %c0_7] : memref<2x144x16xf32, #tpu.memory_space<vmem>>, vector<1x144x16xf32>
    %5 = vector.shape_cast %4 : vector<1x144x16xf32> to vector<144x16xf32>
    %c0_8 = arith.constant 0 : index
    %c0_9 = arith.constant 0 : index
    %c0_10 = arith.constant 0 : index
    %6 = vector.load %arg3[%c0_8, %c0_9, %c0_10] : memref<2x1x16xf32, #tpu.memory_space<vmem>>, vector<1x1x16xf32>
    %7 = vector.shape_cast %6 : vector<1x1x16xf32> to vector<1x16xf32>
    %8 = vector.shape_cast %3 : vector<256x16xf32> to vector<16x16x16xf32>
    %c1 = arith.constant 1 : index
    %c1_11 = arith.constant 1 : index
    %c0_12 = arith.constant 0 : index
    %9 = vector.load %arg13[%c1, %c1_11, %c0_12] : memref<18x18x16xf32, #tpu.memory_space<vmem>>, vector<16x16x16xf32>
    tpu.vector_store %arg13[%c1, %c1_11, %c0_12], %8 {strides = array<i32>} : memref<18x18x16xf32, #tpu.memory_space<vmem>>, vector<16x16x16xf32>,
    %c0_13 = arith.constant 0 : index
    %c0_14 = arith.constant 0 : index
    %c0_15 = arith.constant 0 : index
    %10 = vector.load %arg13[%c0_13, %c0_14, %c0_15] : memref<18x18x16xf32, #tpu.memory_space<vmem>>, vector<16x16x16xf32>
    %11 = vector.shape_cast %10 : vector<16x16x16xf32> to vector<256x16xf32>
    %c0_16 = arith.constant 0 : index
    %c1_17 = arith.constant 1 : index
    %c0_18 = arith.constant 0 : index
    %12 = vector.load %arg13[%c0_16, %c1_17, %c0_18] : memref<18x18x16xf32, #tpu.memory_space<vmem>>, vector<16x16x16xf32>
    %13 = vector.shape_cast %12 : vector<16x16x16xf32> to vector<256x16xf32>
    %c0_19 = arith.constant 0 : index
    %c2 = arith.constant 2 : index
    %c0_20 = arith.constant 0 : index
    %14 = vector.load %arg13[%c0_19, %c2, %c0_20] : memref<18x18x16xf32, #tpu.memory_space<vmem>>, vector<16x16x16xf32>
    %15 = vector.shape_cast %14 : vector<16x16x16xf32> to vector<256x16xf32>
    %c1_21 = arith.constant 1 : index
    %c0_22 = arith.constant 0 : index
    %c0_23 = arith.constant 0 : index
    %16 = vector.load %arg13[%c1_21, %c0_22, %c0_23] : memref<18x18x16xf32, #tpu.memory_space<vmem>>, vector<16x16x16xf32>
    %17 = vector.shape_cast %16 : vector<16x16x16xf32> to vector<256x16xf32>
    %c1_24 = arith.constant 1 : index
    %c1_25 = arith.constant 1 : index
    %c0_26 = arith.constant 0 : index
    %18 = vector.load %arg13[%c1_24, %c1_25, %c0_26] : memref<18x18x16xf32, #tpu.memory_space<vmem>>, vector<16x16x16xf32>
    %19 = vector.shape_cast %18 : vector<16x16x16xf32> to vector<256x16xf32>
    %c1_27 = arith.constant 1 : index
    %c2_28 = arith.constant 2 : index
    %c0_29 = arith.constant 0 : index
    %20 = vector.load %arg13[%c1_27, %c2_28, %c0_29] : memref<18x18x16xf32, #tpu.memory_space<vmem>>, vector<16x16x16xf32>
    %21 = vector.shape_cast %20 : vector<16x16x16xf32> to vector<256x16xf32>
    %c2_30 = arith.constant 2 : index
    %c0_31 = arith.constant 0 : index
    %c0_32 = arith.constant 0 : index
    %22 = vector.load %arg13[%c2_30, %c0_31, %c0_32] : memref<18x18x16xf32, #tpu.memory_space<vmem>>, vector<16x16x16xf32>
    %23 = vector.shape_cast %22 : vector<16x16x16xf32> to vector<256x16xf32>
    %c2_33 = arith.constant 2 : index
    %c1_34 = arith.constant 1 : index
    %c0_35 = arith.constant 0 : index
    %24 = vector.load %arg13[%c2_33, %c1_34, %c0_35] : memref<18x18x16xf32, #tpu.memory_space<vmem>>, vector<16x16x16xf32>
    %25 = vector.shape_cast %24 : vector<16x16x16xf32> to vector<256x16xf32>
    %c2_36 = arith.constant 2 : index
    %c2_37 = arith.constant 2 : index
    %c0_38 = arith.constant 0 : index
    %26 = vector.load %arg13[%c2_36, %c2_37, %c0_38] : memref<18x18x16xf32, #tpu.memory_space<vmem>>, vector<16x16x16xf32>
    %27 = vector.shape_cast %26 : vector<16x16x16xf32> to vector<256x16xf32>
    %28 = tpu.concatenate %11, %13, %15, %17, %19, %21, %23, %25, %27 in 1 : vector<256x16xf32>, vector<256x16xf32>, vector<256x16xf32>, vector<256x16xf32>, vector<256x16xf32>, vector<256x16xf32>, vector<256x16xf32>, vector<256x16xf32>, vector<256x16xf32> -> vector<256x144xf32>
    %cst_39 = arith.constant dense<0.000000e+00> : vector<256x16xf32>
    %29 = tpu.matmul %28, %5, %cst_39 {dimension_numbers = #tpu.dot_dimension_numbers<[1], [0], [0], [1], [0, 0, 1, 1], [], []>} : vector<256x144xf32>, vector<144x16xf32>, vector<256x16xf32> -> vector<256x16xf32>
    %30 = vector.broadcast %7 : vector<1x16xf32> to vector<256x16xf32>
    %31 = arith.addf %29, %30 : vector<256x16xf32>
    %cst_40 = arith.constant 0.000000e+00 : f32
    %32 = vector.broadcast %cst_40 : f32 to vector<256x16xf32>
    %33 = arith.maximumf %31, %32 : vector<256x16xf32>
    %c0_41 = arith.constant 0 : index
    %c0_42 = arith.constant 0 : index
    %c0_43 = arith.constant 0 : index
    %34 = vector.load %arg4[%c0_41, %c0_42, %c0_43] : memref<2x144x16xf32, #tpu.memory_space<vmem>>, vector<1x144x16xf32>
    %35 = vector.shape_cast %34 : vector<1x144x16xf32> to vector<144x16xf32>
    %c0_44 = arith.constant 0 : index
    %c0_45 = arith.constant 0 : index
    %c0_46 = arith.constant 0 : index
    %36 = vector.load %arg5[%c0_44, %c0_45, %c0_46] : memref<2x1x16xf32, #tpu.memory_space<vmem>>, vector<1x1x16xf32>
    %37 = vector.shape_cast %36 : vector<1x1x16xf32> to vector<1x16xf32>
    %38 = vector.shape_cast %33 : vector<256x16xf32> to vector<16x16x16xf32>
    %c1_47 = arith.constant 1 : index
    %c1_48 = arith.constant 1 : index
    %c0_49 = arith.constant 0 : index
    %39 = vector.load %arg13[%c1_47, %c1_48, %c0_49] : memref<18x18x16xf32, #tpu.memory_space<vmem>>, vector<16x16x16xf32>
    tpu.vector_store %arg13[%c1_47, %c1_48, %c0_49], %38 {strides = array<i32>} : memref<18x18x16xf32, #tpu.memory_space<vmem>>, vector<16x16x16xf32>,
    %c0_50 = arith.constant 0 : index
    %c0_51 = arith.constant 0 : index
    %c0_52 = arith.constant 0 : index
    %40 = vector.load %arg13[%c0_50, %c0_51, %c0_52] : memref<18x18x16xf32, #tpu.memory_space<vmem>>, vector<16x16x16xf32>
    %41 = vector.shape_cast %40 : vector<16x16x16xf32> to vector<256x16xf32>
    %c0_53 = arith.constant 0 : index
    %c1_54 = arith.constant 1 : index
    %c0_55 = arith.constant 0 : index
    %42 = vector.load %arg13[%c0_53, %c1_54, %c0_55] : memref<18x18x16xf32, #tpu.memory_space<vmem>>, vector<16x16x16xf32>
    %43 = vector.shape_cast %42 : vector<16x16x16xf32> to vector<256x16xf32>
    %c0_56 = arith.constant 0 : index
    %c2_57 = arith.constant 2 : index
    %c0_58 = arith.constant 0 : index
    %44 = vector.load %arg13[%c0_56, %c2_57, %c0_58] : memref<18x18x16xf32, #tpu.memory_space<vmem>>, vector<16x16x16xf32>
    %45 = vector.shape_cast %44 : vector<16x16x16xf32> to vector<256x16xf32>
    %c1_59 = arith.constant 1 : index
    %c0_60 = arith.constant 0 : index
    %c0_61 = arith.constant 0 : index
    %46 = vector.load %arg13[%c1_59, %c0_60, %c0_61] : memref<18x18x16xf32, #tpu.memory_space<vmem>>, vector<16x16x16xf32>
    %47 = vector.shape_cast %46 : vector<16x16x16xf32> to vector<256x16xf32>
    %c1_62 = arith.constant 1 : index
    %c1_63 = arith.constant 1 : index
    %c0_64 = arith.constant 0 : index
    %48 = vector.load %arg13[%c1_62, %c1_63, %c0_64] : memref<18x18x16xf32, #tpu.memory_space<vmem>>, vector<16x16x16xf32>
    %49 = vector.shape_cast %48 : vector<16x16x16xf32> to vector<256x16xf32>
    %c1_65 = arith.constant 1 : index
    %c2_66 = arith.constant 2 : index
    %c0_67 = arith.constant 0 : index
    %50 = vector.load %arg13[%c1_65, %c2_66, %c0_67] : memref<18x18x16xf32, #tpu.memory_space<vmem>>, vector<16x16x16xf32>
    %51 = vector.shape_cast %50 : vector<16x16x16xf32> to vector<256x16xf32>
    %c2_68 = arith.constant 2 : index
    %c0_69 = arith.constant 0 : index
    %c0_70 = arith.constant 0 : index
    %52 = vector.load %arg13[%c2_68, %c0_69, %c0_70] : memref<18x18x16xf32, #tpu.memory_space<vmem>>, vector<16x16x16xf32>
    %53 = vector.shape_cast %52 : vector<16x16x16xf32> to vector<256x16xf32>
    %c2_71 = arith.constant 2 : index
    %c1_72 = arith.constant 1 : index
    %c0_73 = arith.constant 0 : index
    %54 = vector.load %arg13[%c2_71, %c1_72, %c0_73] : memref<18x18x16xf32, #tpu.memory_space<vmem>>, vector<16x16x16xf32>
    %55 = vector.shape_cast %54 : vector<16x16x16xf32> to vector<256x16xf32>
    %c2_74 = arith.constant 2 : index
    %c2_75 = arith.constant 2 : index
    %c0_76 = arith.constant 0 : index
    %56 = vector.load %arg13[%c2_74, %c2_75, %c0_76] : memref<18x18x16xf32, #tpu.memory_space<vmem>>, vector<16x16x16xf32>
    %57 = vector.shape_cast %56 : vector<16x16x16xf32> to vector<256x16xf32>
    %58 = tpu.concatenate %41, %43, %45, %47, %49, %51, %53, %55, %57 in 1 : vector<256x16xf32>, vector<256x16xf32>, vector<256x16xf32>, vector<256x16xf32>, vector<256x16xf32>, vector<256x16xf32>, vector<256x16xf32>, vector<256x16xf32>, vector<256x16xf32> -> vector<256x144xf32>
    %cst_77 = arith.constant dense<0.000000e+00> : vector<256x16xf32>
    %59 = tpu.matmul %58, %35, %cst_77 {dimension_numbers = #tpu.dot_dimension_numbers<[1], [0], [0], [1], [0, 0, 1, 1], [], []>} : vector<256x144xf32>, vector<144x16xf32>, vector<256x16xf32> -> vector<256x16xf32>
    %60 = vector.broadcast %37 : vector<1x16xf32> to vector<256x16xf32>
    %61 = arith.addf %59, %60 : vector<256x16xf32>
    %cst_78 = arith.constant dense<0.000000e+00> : vector<16xf32>
    %62 = vector.multi_reduction <add>, %61, %cst_78 [0] : vector<256x16xf32> to vector<16xf32>
    %63 = vector.shape_cast %62 : vector<16xf32> to vector<1x16xf32>
    %cst_79 = arith.constant 3.906250e-03 : f32
    %64 = vector.broadcast %cst_79 : f32 to vector<1x16xf32>
    %65 = arith.mulf %63, %64 : vector<1x16xf32>
    %c0_80 = arith.constant 0 : index
    %c0_81 = arith.constant 0 : index
    %c0_82 = arith.constant 0 : index
    %66 = vector.load %arg6[%c0_80, %c0_81, %c0_82] : memref<2x16x4xf32, #tpu.memory_space<vmem>>, vector<1x16x4xf32>
    %67 = vector.shape_cast %66 : vector<1x16x4xf32> to vector<16x4xf32>
    %cst_83 = arith.constant dense<0.000000e+00> : vector<1x4xf32>
    %68 = tpu.matmul %65, %67, %cst_83 {dimension_numbers = #tpu.dot_dimension_numbers<[1], [0], [0], [1], [0, 0, 1, 1], [], []>} : vector<1x16xf32>, vector<16x4xf32>, vector<1x4xf32> -> vector<1x4xf32>
    %c0_84 = arith.constant 0 : index
    %c0_85 = arith.constant 0 : index
    %c0_86 = arith.constant 0 : index
    %69 = vector.load %arg7[%c0_84, %c0_85, %c0_86] : memref<2x1x4xf32, #tpu.memory_space<vmem>>, vector<1x1x4xf32>
    %70 = vector.shape_cast %69 : vector<1x1x4xf32> to vector<1x4xf32>
    %71 = arith.addf %68, %70 : vector<1x4xf32>
    %cst_87 = arith.constant 0.000000e+00 : f32
    %72 = vector.broadcast %cst_87 : f32 to vector<1x4xf32>
    %73 = arith.maximumf %71, %72 : vector<1x4xf32>
    %c0_88 = arith.constant 0 : index
    %c0_89 = arith.constant 0 : index
    %c0_90 = arith.constant 0 : index
    %74 = vector.load %arg8[%c0_88, %c0_89, %c0_90] : memref<2x4x16xf32, #tpu.memory_space<vmem>>, vector<1x4x16xf32>
    %75 = vector.shape_cast %74 : vector<1x4x16xf32> to vector<4x16xf32>
    %cst_91 = arith.constant dense<0.000000e+00> : vector<1x16xf32>
    %76 = tpu.matmul %73, %75, %cst_91 {dimension_numbers = #tpu.dot_dimension_numbers<[1], [0], [0], [1], [0, 0, 1, 1], [], []>} : vector<1x4xf32>, vector<4x16xf32>, vector<1x16xf32> -> vector<1x16xf32>
    %c0_92 = arith.constant 0 : index
    %c0_93 = arith.constant 0 : index
    %c0_94 = arith.constant 0 : index
    %77 = vector.load %arg9[%c0_92, %c0_93, %c0_94] : memref<2x1x16xf32, #tpu.memory_space<vmem>>, vector<1x1x16xf32>
    %78 = vector.shape_cast %77 : vector<1x1x16xf32> to vector<1x16xf32>
    %79 = arith.addf %76, %78 : vector<1x16xf32>
    %80 = arith.negf %79 : vector<1x16xf32>
    %81 = math.exp %80 : vector<1x16xf32>
    %cst_95 = arith.constant 1.000000e+00 : f32
    %82 = vector.broadcast %cst_95 : f32 to vector<1x16xf32>
    %83 = arith.addf %82, %81 : vector<1x16xf32>
    %84 = arith.divf %82, %83 : vector<1x16xf32>
    %85 = vector.broadcast %84 : vector<1x16xf32> to vector<256x16xf32>
    %86 = arith.mulf %61, %85 : vector<256x16xf32>
    %87 = arith.addf %86, %3 : vector<256x16xf32>
    %c1_96 = arith.constant 1 : index
    %c0_97 = arith.constant 0 : index
    %c0_98 = arith.constant 0 : index
    %88 = vector.load %arg2[%c1_96, %c0_97, %c0_98] : memref<2x144x16xf32, #tpu.memory_space<vmem>>, vector<1x144x16xf32>
    %89 = vector.shape_cast %88 : vector<1x144x16xf32> to vector<144x16xf32>
    %c1_99 = arith.constant 1 : index
    %c0_100 = arith.constant 0 : index
    %c0_101 = arith.constant 0 : index
    %90 = vector.load %arg3[%c1_99, %c0_100, %c0_101] : memref<2x1x16xf32, #tpu.memory_space<vmem>>, vector<1x1x16xf32>
    %91 = vector.shape_cast %90 : vector<1x1x16xf32> to vector<1x16xf32>
    %92 = vector.shape_cast %87 : vector<256x16xf32> to vector<16x16x16xf32>
    %c1_102 = arith.constant 1 : index
    %c1_103 = arith.constant 1 : index
    %c0_104 = arith.constant 0 : index
    %93 = vector.load %arg13[%c1_102, %c1_103, %c0_104] : memref<18x18x16xf32, #tpu.memory_space<vmem>>, vector<16x16x16xf32>
    tpu.vector_store %arg13[%c1_102, %c1_103, %c0_104], %92 {strides = array<i32>} : memref<18x18x16xf32, #tpu.memory_space<vmem>>, vector<16x16x16xf32>,
    %c0_105 = arith.constant 0 : index
    %c0_106 = arith.constant 0 : index
    %c0_107 = arith.constant 0 : index
    %94 = vector.load %arg13[%c0_105, %c0_106, %c0_107] : memref<18x18x16xf32, #tpu.memory_space<vmem>>, vector<16x16x16xf32>
    %95 = vector.shape_cast %94 : vector<16x16x16xf32> to vector<256x16xf32>
    %c0_108 = arith.constant 0 : index
    %c1_109 = arith.constant 1 : index
    %c0_110 = arith.constant 0 : index
    %96 = vector.load %arg13[%c0_108, %c1_109, %c0_110] : memref<18x18x16xf32, #tpu.memory_space<vmem>>, vector<16x16x16xf32>
    %97 = vector.shape_cast %96 : vector<16x16x16xf32> to vector<256x16xf32>
    %c0_111 = arith.constant 0 : index
    %c2_112 = arith.constant 2 : index
    %c0_113 = arith.constant 0 : index
    %98 = vector.load %arg13[%c0_111, %c2_112, %c0_113] : memref<18x18x16xf32, #tpu.memory_space<vmem>>, vector<16x16x16xf32>
    %99 = vector.shape_cast %98 : vector<16x16x16xf32> to vector<256x16xf32>
    %c1_114 = arith.constant 1 : index
    %c0_115 = arith.constant 0 : index
    %c0_116 = arith.constant 0 : index
    %100 = vector.load %arg13[%c1_114, %c0_115, %c0_116] : memref<18x18x16xf32, #tpu.memory_space<vmem>>, vector<16x16x16xf32>
    %101 = vector.shape_cast %100 : vector<16x16x16xf32> to vector<256x16xf32>
    %c1_117 = arith.constant 1 : index
    %c1_118 = arith.constant 1 : index
    %c0_119 = arith.constant 0 : index
    %102 = vector.load %arg13[%c1_117, %c1_118, %c0_119] : memref<18x18x16xf32, #tpu.memory_space<vmem>>, vector<16x16x16xf32>
    %103 = vector.shape_cast %102 : vector<16x16x16xf32> to vector<256x16xf32>
    %c1_120 = arith.constant 1 : index
    %c2_121 = arith.constant 2 : index
    %c0_122 = arith.constant 0 : index
    %104 = vector.load %arg13[%c1_120, %c2_121, %c0_122] : memref<18x18x16xf32, #tpu.memory_space<vmem>>, vector<16x16x16xf32>
    %105 = vector.shape_cast %104 : vector<16x16x16xf32> to vector<256x16xf32>
    %c2_123 = arith.constant 2 : index
    %c0_124 = arith.constant 0 : index
    %c0_125 = arith.constant 0 : index
    %106 = vector.load %arg13[%c2_123, %c0_124, %c0_125] : memref<18x18x16xf32, #tpu.memory_space<vmem>>, vector<16x16x16xf32>
    %107 = vector.shape_cast %106 : vector<16x16x16xf32> to vector<256x16xf32>
    %c2_126 = arith.constant 2 : index
    %c1_127 = arith.constant 1 : index
    %c0_128 = arith.constant 0 : index
    %108 = vector.load %arg13[%c2_126, %c1_127, %c0_128] : memref<18x18x16xf32, #tpu.memory_space<vmem>>, vector<16x16x16xf32>
    %109 = vector.shape_cast %108 : vector<16x16x16xf32> to vector<256x16xf32>
    %c2_129 = arith.constant 2 : index
    %c2_130 = arith.constant 2 : index
    %c0_131 = arith.constant 0 : index
    %110 = vector.load %arg13[%c2_129, %c2_130, %c0_131] : memref<18x18x16xf32, #tpu.memory_space<vmem>>, vector<16x16x16xf32>
    %111 = vector.shape_cast %110 : vector<16x16x16xf32> to vector<256x16xf32>
    %112 = tpu.concatenate %95, %97, %99, %101, %103, %105, %107, %109, %111 in 1 : vector<256x16xf32>, vector<256x16xf32>, vector<256x16xf32>, vector<256x16xf32>, vector<256x16xf32>, vector<256x16xf32>, vector<256x16xf32>, vector<256x16xf32>, vector<256x16xf32> -> vector<256x144xf32>
    %cst_132 = arith.constant dense<0.000000e+00> : vector<256x16xf32>
    %113 = tpu.matmul %112, %89, %cst_132 {dimension_numbers = #tpu.dot_dimension_numbers<[1], [0], [0], [1], [0, 0, 1, 1], [], []>} : vector<256x144xf32>, vector<144x16xf32>, vector<256x16xf32> -> vector<256x16xf32>
    %114 = vector.broadcast %91 : vector<1x16xf32> to vector<256x16xf32>
    %115 = arith.addf %113, %114 : vector<256x16xf32>
    %cst_133 = arith.constant 0.000000e+00 : f32
    %116 = vector.broadcast %cst_133 : f32 to vector<256x16xf32>
    %117 = arith.maximumf %115, %116 : vector<256x16xf32>
    %c1_134 = arith.constant 1 : index
    %c0_135 = arith.constant 0 : index
    %c0_136 = arith.constant 0 : index
    %118 = vector.load %arg4[%c1_134, %c0_135, %c0_136] : memref<2x144x16xf32, #tpu.memory_space<vmem>>, vector<1x144x16xf32>
    %119 = vector.shape_cast %118 : vector<1x144x16xf32> to vector<144x16xf32>
    %c1_137 = arith.constant 1 : index
    %c0_138 = arith.constant 0 : index
    %c0_139 = arith.constant 0 : index
    %120 = vector.load %arg5[%c1_137, %c0_138, %c0_139] : memref<2x1x16xf32, #tpu.memory_space<vmem>>, vector<1x1x16xf32>
    %121 = vector.shape_cast %120 : vector<1x1x16xf32> to vector<1x16xf32>
    %122 = vector.shape_cast %117 : vector<256x16xf32> to vector<16x16x16xf32>
    %c1_140 = arith.constant 1 : index
    %c1_141 = arith.constant 1 : index
    %c0_142 = arith.constant 0 : index
    %123 = vector.load %arg13[%c1_140, %c1_141, %c0_142] : memref<18x18x16xf32, #tpu.memory_space<vmem>>, vector<16x16x16xf32>
    tpu.vector_store %arg13[%c1_140, %c1_141, %c0_142], %122 {strides = array<i32>} : memref<18x18x16xf32, #tpu.memory_space<vmem>>, vector<16x16x16xf32>,
    %c0_143 = arith.constant 0 : index
    %c0_144 = arith.constant 0 : index
    %c0_145 = arith.constant 0 : index
    %124 = vector.load %arg13[%c0_143, %c0_144, %c0_145] : memref<18x18x16xf32, #tpu.memory_space<vmem>>, vector<16x16x16xf32>
    %125 = vector.shape_cast %124 : vector<16x16x16xf32> to vector<256x16xf32>
    %c0_146 = arith.constant 0 : index
    %c1_147 = arith.constant 1 : index
    %c0_148 = arith.constant 0 : index
    %126 = vector.load %arg13[%c0_146, %c1_147, %c0_148] : memref<18x18x16xf32, #tpu.memory_space<vmem>>, vector<16x16x16xf32>
    %127 = vector.shape_cast %126 : vector<16x16x16xf32> to vector<256x16xf32>
    %c0_149 = arith.constant 0 : index
    %c2_150 = arith.constant 2 : index
    %c0_151 = arith.constant 0 : index
    %128 = vector.load %arg13[%c0_149, %c2_150, %c0_151] : memref<18x18x16xf32, #tpu.memory_space<vmem>>, vector<16x16x16xf32>
    %129 = vector.shape_cast %128 : vector<16x16x16xf32> to vector<256x16xf32>
    %c1_152 = arith.constant 1 : index
    %c0_153 = arith.constant 0 : index
    %c0_154 = arith.constant 0 : index
    %130 = vector.load %arg13[%c1_152, %c0_153, %c0_154] : memref<18x18x16xf32, #tpu.memory_space<vmem>>, vector<16x16x16xf32>
    %131 = vector.shape_cast %130 : vector<16x16x16xf32> to vector<256x16xf32>
    %c1_155 = arith.constant 1 : index
    %c1_156 = arith.constant 1 : index
    %c0_157 = arith.constant 0 : index
    %132 = vector.load %arg13[%c1_155, %c1_156, %c0_157] : memref<18x18x16xf32, #tpu.memory_space<vmem>>, vector<16x16x16xf32>
    %133 = vector.shape_cast %132 : vector<16x16x16xf32> to vector<256x16xf32>
    %c1_158 = arith.constant 1 : index
    %c2_159 = arith.constant 2 : index
    %c0_160 = arith.constant 0 : index
    %134 = vector.load %arg13[%c1_158, %c2_159, %c0_160] : memref<18x18x16xf32, #tpu.memory_space<vmem>>, vector<16x16x16xf32>
    %135 = vector.shape_cast %134 : vector<16x16x16xf32> to vector<256x16xf32>
    %c2_161 = arith.constant 2 : index
    %c0_162 = arith.constant 0 : index
    %c0_163 = arith.constant 0 : index
    %136 = vector.load %arg13[%c2_161, %c0_162, %c0_163] : memref<18x18x16xf32, #tpu.memory_space<vmem>>, vector<16x16x16xf32>
    %137 = vector.shape_cast %136 : vector<16x16x16xf32> to vector<256x16xf32>
    %c2_164 = arith.constant 2 : index
    %c1_165 = arith.constant 1 : index
    %c0_166 = arith.constant 0 : index
    %138 = vector.load %arg13[%c2_164, %c1_165, %c0_166] : memref<18x18x16xf32, #tpu.memory_space<vmem>>, vector<16x16x16xf32>
    %139 = vector.shape_cast %138 : vector<16x16x16xf32> to vector<256x16xf32>
    %c2_167 = arith.constant 2 : index
    %c2_168 = arith.constant 2 : index
    %c0_169 = arith.constant 0 : index
    %140 = vector.load %arg13[%c2_167, %c2_168, %c0_169] : memref<18x18x16xf32, #tpu.memory_space<vmem>>, vector<16x16x16xf32>
    %141 = vector.shape_cast %140 : vector<16x16x16xf32> to vector<256x16xf32>
    %142 = tpu.concatenate %125, %127, %129, %131, %133, %135, %137, %139, %141 in 1 : vector<256x16xf32>, vector<256x16xf32>, vector<256x16xf32>, vector<256x16xf32>, vector<256x16xf32>, vector<256x16xf32>, vector<256x16xf32>, vector<256x16xf32>, vector<256x16xf32> -> vector<256x144xf32>
    %cst_170 = arith.constant dense<0.000000e+00> : vector<256x16xf32>
    %143 = tpu.matmul %142, %119, %cst_170 {dimension_numbers = #tpu.dot_dimension_numbers<[1], [0], [0], [1], [0, 0, 1, 1], [], []>} : vector<256x144xf32>, vector<144x16xf32>, vector<256x16xf32> -> vector<256x16xf32>
    %144 = vector.broadcast %121 : vector<1x16xf32> to vector<256x16xf32>
    %145 = arith.addf %143, %144 : vector<256x16xf32>
    %cst_171 = arith.constant dense<0.000000e+00> : vector<16xf32>
    %146 = vector.multi_reduction <add>, %145, %cst_171 [0] : vector<256x16xf32> to vector<16xf32>
    %147 = vector.shape_cast %146 : vector<16xf32> to vector<1x16xf32>
    %cst_172 = arith.constant 3.906250e-03 : f32
    %148 = vector.broadcast %cst_172 : f32 to vector<1x16xf32>
    %149 = arith.mulf %147, %148 : vector<1x16xf32>
    %c1_173 = arith.constant 1 : index
    %c0_174 = arith.constant 0 : index
    %c0_175 = arith.constant 0 : index
    %150 = vector.load %arg6[%c1_173, %c0_174, %c0_175] : memref<2x16x4xf32, #tpu.memory_space<vmem>>, vector<1x16x4xf32>
    %151 = vector.shape_cast %150 : vector<1x16x4xf32> to vector<16x4xf32>
    %cst_176 = arith.constant dense<0.000000e+00> : vector<1x4xf32>
    %152 = tpu.matmul %149, %151, %cst_176 {dimension_numbers = #tpu.dot_dimension_numbers<[1], [0], [0], [1], [0, 0, 1, 1], [], []>} : vector<1x16xf32>, vector<16x4xf32>, vector<1x4xf32> -> vector<1x4xf32>
    %c1_177 = arith.constant 1 : index
    %c0_178 = arith.constant 0 : index
    %c0_179 = arith.constant 0 : index
    %153 = vector.load %arg7[%c1_177, %c0_178, %c0_179] : memref<2x1x4xf32, #tpu.memory_space<vmem>>, vector<1x1x4xf32>
    %154 = vector.shape_cast %153 : vector<1x1x4xf32> to vector<1x4xf32>
    %155 = arith.addf %152, %154 : vector<1x4xf32>
    %cst_180 = arith.constant 0.000000e+00 : f32
    %156 = vector.broadcast %cst_180 : f32 to vector<1x4xf32>
    %157 = arith.maximumf %155, %156 : vector<1x4xf32>
    %c1_181 = arith.constant 1 : index
    %c0_182 = arith.constant 0 : index
    %c0_183 = arith.constant 0 : index
    %158 = vector.load %arg8[%c1_181, %c0_182, %c0_183] : memref<2x4x16xf32, #tpu.memory_space<vmem>>, vector<1x4x16xf32>
    %159 = vector.shape_cast %158 : vector<1x4x16xf32> to vector<4x16xf32>
    %cst_184 = arith.constant dense<0.000000e+00> : vector<1x16xf32>
    %160 = tpu.matmul %157, %159, %cst_184 {dimension_numbers = #tpu.dot_dimension_numbers<[1], [0], [0], [1], [0, 0, 1, 1], [], []>} : vector<1x4xf32>, vector<4x16xf32>, vector<1x16xf32> -> vector<1x16xf32>
    %c1_185 = arith.constant 1 : index
    %c0_186 = arith.constant 0 : index
    %c0_187 = arith.constant 0 : index
    %161 = vector.load %arg9[%c1_185, %c0_186, %c0_187] : memref<2x1x16xf32, #tpu.memory_space<vmem>>, vector<1x1x16xf32>
    %162 = vector.shape_cast %161 : vector<1x1x16xf32> to vector<1x16xf32>
    %163 = arith.addf %160, %162 : vector<1x16xf32>
    %164 = arith.negf %163 : vector<1x16xf32>
    %165 = math.exp %164 : vector<1x16xf32>
    %cst_188 = arith.constant 1.000000e+00 : f32
    %166 = vector.broadcast %cst_188 : f32 to vector<1x16xf32>
    %167 = arith.addf %166, %165 : vector<1x16xf32>
    %168 = arith.divf %166, %167 : vector<1x16xf32>
    %169 = vector.broadcast %168 : vector<1x16xf32> to vector<256x16xf32>
    %170 = arith.mulf %145, %169 : vector<256x16xf32>
    %171 = arith.addf %170, %87 : vector<256x16xf32>
    %c0_189 = arith.constant 0 : index
    %c0_190 = arith.constant 0 : index
    %172 = vector.load %arg10[%c0_189, %c0_190] : memref<144x16xf32, #tpu.memory_space<vmem>>, vector<144x16xf32>
    %c0_191 = arith.constant 0 : index
    %c0_192 = arith.constant 0 : index
    %173 = vector.load %arg11[%c0_191, %c0_192] : memref<1x16xf32, #tpu.memory_space<vmem>>, vector<1x16xf32>
    %174 = vector.shape_cast %171 : vector<256x16xf32> to vector<16x16x16xf32>
    %c1_193 = arith.constant 1 : index
    %c1_194 = arith.constant 1 : index
    %c0_195 = arith.constant 0 : index
    %175 = vector.load %arg13[%c1_193, %c1_194, %c0_195] : memref<18x18x16xf32, #tpu.memory_space<vmem>>, vector<16x16x16xf32>
    tpu.vector_store %arg13[%c1_193, %c1_194, %c0_195], %174 {strides = array<i32>} : memref<18x18x16xf32, #tpu.memory_space<vmem>>, vector<16x16x16xf32>,
    %c0_196 = arith.constant 0 : index
    %c0_197 = arith.constant 0 : index
    %c0_198 = arith.constant 0 : index
    %176 = vector.load %arg13[%c0_196, %c0_197, %c0_198] : memref<18x18x16xf32, #tpu.memory_space<vmem>>, vector<16x16x16xf32>
    %177 = vector.shape_cast %176 : vector<16x16x16xf32> to vector<256x16xf32>
    %c0_199 = arith.constant 0 : index
    %c1_200 = arith.constant 1 : index
    %c0_201 = arith.constant 0 : index
    %178 = vector.load %arg13[%c0_199, %c1_200, %c0_201] : memref<18x18x16xf32, #tpu.memory_space<vmem>>, vector<16x16x16xf32>
    %179 = vector.shape_cast %178 : vector<16x16x16xf32> to vector<256x16xf32>
    %c0_202 = arith.constant 0 : index
    %c2_203 = arith.constant 2 : index
    %c0_204 = arith.constant 0 : index
    %180 = vector.load %arg13[%c0_202, %c2_203, %c0_204] : memref<18x18x16xf32, #tpu.memory_space<vmem>>, vector<16x16x16xf32>
    %181 = vector.shape_cast %180 : vector<16x16x16xf32> to vector<256x16xf32>
    %c1_205 = arith.constant 1 : index
    %c0_206 = arith.constant 0 : index
    %c0_207 = arith.constant 0 : index
    %182 = vector.load %arg13[%c1_205, %c0_206, %c0_207] : memref<18x18x16xf32, #tpu.memory_space<vmem>>, vector<16x16x16xf32>
    %183 = vector.shape_cast %182 : vector<16x16x16xf32> to vector<256x16xf32>
    %c1_208 = arith.constant 1 : index
    %c1_209 = arith.constant 1 : index
    %c0_210 = arith.constant 0 : index
    %184 = vector.load %arg13[%c1_208, %c1_209, %c0_210] : memref<18x18x16xf32, #tpu.memory_space<vmem>>, vector<16x16x16xf32>
    %185 = vector.shape_cast %184 : vector<16x16x16xf32> to vector<256x16xf32>
    %c1_211 = arith.constant 1 : index
    %c2_212 = arith.constant 2 : index
    %c0_213 = arith.constant 0 : index
    %186 = vector.load %arg13[%c1_211, %c2_212, %c0_213] : memref<18x18x16xf32, #tpu.memory_space<vmem>>, vector<16x16x16xf32>
    %187 = vector.shape_cast %186 : vector<16x16x16xf32> to vector<256x16xf32>
    %c2_214 = arith.constant 2 : index
    %c0_215 = arith.constant 0 : index
    %c0_216 = arith.constant 0 : index
    %188 = vector.load %arg13[%c2_214, %c0_215, %c0_216] : memref<18x18x16xf32, #tpu.memory_space<vmem>>, vector<16x16x16xf32>
    %189 = vector.shape_cast %188 : vector<16x16x16xf32> to vector<256x16xf32>
    %c2_217 = arith.constant 2 : index
    %c1_218 = arith.constant 1 : index
    %c0_219 = arith.constant 0 : index
    %190 = vector.load %arg13[%c2_217, %c1_218, %c0_219] : memref<18x18x16xf32, #tpu.memory_space<vmem>>, vector<16x16x16xf32>
    %191 = vector.shape_cast %190 : vector<16x16x16xf32> to vector<256x16xf32>
    %c2_220 = arith.constant 2 : index
    %c2_221 = arith.constant 2 : index
    %c0_222 = arith.constant 0 : index
    %192 = vector.load %arg13[%c2_220, %c2_221, %c0_222] : memref<18x18x16xf32, #tpu.memory_space<vmem>>, vector<16x16x16xf32>
    %193 = vector.shape_cast %192 : vector<16x16x16xf32> to vector<256x16xf32>
    %194 = tpu.concatenate %177, %179, %181, %183, %185, %187, %189, %191, %193 in 1 : vector<256x16xf32>, vector<256x16xf32>, vector<256x16xf32>, vector<256x16xf32>, vector<256x16xf32>, vector<256x16xf32>, vector<256x16xf32>, vector<256x16xf32>, vector<256x16xf32> -> vector<256x144xf32>
    %cst_223 = arith.constant dense<0.000000e+00> : vector<256x16xf32>
    %195 = tpu.matmul %194, %172, %cst_223 {dimension_numbers = #tpu.dot_dimension_numbers<[1], [0], [0], [1], [0, 0, 1, 1], [], []>} : vector<256x144xf32>, vector<144x16xf32>, vector<256x16xf32> -> vector<256x16xf32>
    %196 = vector.broadcast %173 : vector<1x16xf32> to vector<256x16xf32>
    %197 = arith.addf %195, %196 : vector<256x16xf32>
    %198 = arith.addf %197, %3 : vector<256x16xf32>
    %c0_224 = arith.constant 0 : index
    %c0_225 = arith.constant 0 : index
    %c0_226 = arith.constant 0 : index
    %199 = vector.load %arg12[%c0_224, %c0_225, %c0_226] : memref<1x256x16xf32, #tpu.memory_space<vmem>>, vector<1x256x16xf32>
    %200 = vector.shape_cast %199 : vector<1x256x16xf32> to vector<256x16xf32>
    %201 = vector.shape_cast %198 : vector<256x16xf32> to vector<1x256x16xf32>
    tpu.vector_store %arg12[%c0_224, %c0_225, %c0_226], %201 {strides = array<i32>} : memref<1x256x16xf32, #tpu.memory_space<vmem>>, vector<1x256x16xf32>,
    return
  }
  func.func @transform_0(%arg0: i32) -> (i32, i32, i32) {
    %c0_i32 = arith.constant 0 : i32
    %c0_i32_0 = arith.constant 0 : i32
    %c0_i32_1 = arith.constant 0 : i32
    return %arg0, %c0_i32, %c0_i32_0 : i32, i32, i32
  }
  func.func @transform_1(%arg0: i32) -> (i32, i32, i32) {
    %c0_i32 = arith.constant 0 : i32
    %c0_i32_0 = arith.constant 0 : i32
    %c0_i32_1 = arith.constant 0 : i32
    %c0_i32_2 = arith.constant 0 : i32
    return %c0_i32, %c0_i32_0, %c0_i32_1 : i32, i32, i32
  }
  func.func @transform_2(%arg0: i32) -> (i32, i32, i32) {
    %c0_i32 = arith.constant 0 : i32
    %c0_i32_0 = arith.constant 0 : i32
    %c0_i32_1 = arith.constant 0 : i32
    %c0_i32_2 = arith.constant 0 : i32
    return %c0_i32, %c0_i32_0, %c0_i32_1 : i32, i32, i32
  }
  func.func @transform_3(%arg0: i32) -> (i32, i32, i32) {
    %c0_i32 = arith.constant 0 : i32
    %c0_i32_0 = arith.constant 0 : i32
    %c0_i32_1 = arith.constant 0 : i32
    %c0_i32_2 = arith.constant 0 : i32
    return %c0_i32, %c0_i32_0, %c0_i32_1 : i32, i32, i32
  }
  func.func @transform_4(%arg0: i32) -> (i32, i32, i32) {
    %c0_i32 = arith.constant 0 : i32
    %c0_i32_0 = arith.constant 0 : i32
    %c0_i32_1 = arith.constant 0 : i32
    %c0_i32_2 = arith.constant 0 : i32
    return %c0_i32, %c0_i32_0, %c0_i32_1 : i32, i32, i32
  }
  func.func @transform_5(%arg0: i32) -> (i32, i32, i32) {
    %c0_i32 = arith.constant 0 : i32
    %c0_i32_0 = arith.constant 0 : i32
    %c0_i32_1 = arith.constant 0 : i32
    %c0_i32_2 = arith.constant 0 : i32
    return %c0_i32, %c0_i32_0, %c0_i32_1 : i32, i32, i32
  }
  func.func @transform_6(%arg0: i32) -> (i32, i32, i32) {
    %c0_i32 = arith.constant 0 : i32
    %c0_i32_0 = arith.constant 0 : i32
    %c0_i32_1 = arith.constant 0 : i32
    %c0_i32_2 = arith.constant 0 : i32
    return %c0_i32, %c0_i32_0, %c0_i32_1 : i32, i32, i32
  }
  func.func @transform_7(%arg0: i32) -> (i32, i32, i32) {
    %c0_i32 = arith.constant 0 : i32
    %c0_i32_0 = arith.constant 0 : i32
    %c0_i32_1 = arith.constant 0 : i32
    %c0_i32_2 = arith.constant 0 : i32
    return %c0_i32, %c0_i32_0, %c0_i32_1 : i32, i32, i32
  }
  func.func @transform_8(%arg0: i32) -> (i32, i32, i32) {
    %c0_i32 = arith.constant 0 : i32
    %c0_i32_0 = arith.constant 0 : i32
    %c0_i32_1 = arith.constant 0 : i32
    %c0_i32_2 = arith.constant 0 : i32
    return %c0_i32, %c0_i32_0, %c0_i32_1 : i32, i32, i32
  }
  func.func @transform_9(%arg0: i32) -> (i32, i32) {
    %c0_i32 = arith.constant 0 : i32
    %c0_i32_0 = arith.constant 0 : i32
    %c0_i32_1 = arith.constant 0 : i32
    return %c0_i32, %c0_i32_0 : i32, i32
  }
  func.func @transform_10(%arg0: i32) -> (i32, i32) {
    %c0_i32 = arith.constant 0 : i32
    %c0_i32_0 = arith.constant 0 : i32
    %c0_i32_1 = arith.constant 0 : i32
    return %c0_i32, %c0_i32_0 : i32, i32
  }
  func.func @transform_11(%arg0: i32) -> (i32, i32, i32) {
    %c0_i32 = arith.constant 0 : i32
    %c0_i32_0 = arith.constant 0 : i32
    %c0_i32_1 = arith.constant 0 : i32
    return %arg0, %c0_i32, %c0_i32_0 : i32, i32, i32
  }
}

</mosaic_0001>

<bundles_post_ra>
// kernel: tpu_custom_call.1
= control target key start
LH: loop header
LB: loop body
LE: loop exit
PB: predicated region body
PF: predicated region fallthrough
CT: control target
= control target key end

     0   :  { %s13502_s17 = smov 0   ;;  %s18237_s0 = inlined_call_operand.vmem [shape: f32[2,256,16], index: 0, kind: input, shape index: {}]   ;;  %s18238_s1 = inlined_call_operand.vmem [shape: f32[2,144,16], index: 1, kind: input, shape index: {}]   ;;  %s18239_s2 = inlined_call_operand.vmem [shape: f32[2,1,16], index: 2, kind: input, shape index: {}]   ;;  %s18240_s3 = inlined_call_operand.vmem [shape: f32[2,144,16], index: 3, kind: input, shape index: {}]   ;;  %s18241_s4 = inlined_call_operand.vmem [shape: f32[2,1,16], index: 4, kind: input, shape index: {}]   ;;  %s18242_s5 = inlined_call_operand.vmem [shape: f32[2,16,4], index: 5, kind: input, shape index: {}]   ;;  %s18243_s6 = inlined_call_operand.vmem [shape: f32[2,1,4], index: 6, kind: input, shape index: {}]   ;;  %s18244_s7 = inlined_call_operand.vmem [shape: f32[2,4,16], index: 7, kind: input, shape index: {}]   ;;  %s18245_s8 = inlined_call_operand.vmem [shape: f32[2,1,16], index: 8, kind: input, shape index: {}]   ;;  %s18246_s9 = inlined_call_operand.vmem [shape: f32[144,16], index: 9, kind: input, shape index: {}]   ;;  %s18247_s10 = inlined_call_operand.vmem [shape: f32[1,16], index: 10, kind: input, shape index: {}]   ;;  %s18248_s11 = inlined_call_operand.vmem [shape: f32[2,256,16], index: 11, kind: output, shape index: {}]  }
   0x1 LB: > { %s10204_s18 = sadd.s32 4294967295, %s13430_s17   ;;  %p10208_p0 = scmp.ge.s32.totalorder %s13430_s17, 1  ;;  %s13430_s17 = sphi %s13502_s17, %s21_s17  }
   0x2   : > { %p337_p1 = scmp.lt.s32.totalorder %s13430_s17, 3 }
   0x4   : > { %p338_p2 = pnand %p10208_p0, %p337_p1 }
   0x6   : > { %341 = sbr.rel (%p338_p2) target bundleno = 3506 (0xdb2), region = 64 }
   0xd   : > { %vm387_vm0 = vcmask 130048   ;;  %vm390_vm1 = vcmask 123904   ;;  %v18249_v0 = vmov 0.0   ;;  %p377_p3 = scmp.lt.s32.totalorder %s10204_s18, 1  ;;  %v18251_v1 = vmov 0.0|0.0   ;;  %v475_v2 = vld [vmem:[%s18238_s1] sm:$0xff] }
   0xe   : > { %388 = vst.msk [vmem:[#allocation2] sm:$0xff] %vm387_vm0, %v18249_v0  ;;  %389 = vst.msk [vmem:[#allocation2 + $0x8] sm:$0xff] %vm387_vm0, %v18249_v0  ;;  %10467 = vmatprep.subr.bf16.mxu0 %v18251_v1  ;;  %v476_v3 = vld [vmem:[%s18238_s1 + $0x8] sm:$0xff]  ;;  %v477_v4 = vld [vmem:[%s18238_s1 + $0x10] sm:$0xff]  ;;  %10608 = vmatprep.subr.bf16.mxu1 %v18251_v1  ;;  %s13434_s22 = smov 16   ;;  %s13435_s28 = smov 32  }
   0xf   : > { %391 = vst.msk [vmem:[#allocation2 + $0x10] sm:$0x3] %vm390_vm1, %v18249_v0  ;;  %394 = vst.msk [vmem:[#allocation2 + $0x28] sm:$0x3] %vm390_vm1, %v18249_v0  ;;  %v10468_v5 = vpack.c.bf16 %v476_v3, %v475_v2  ;;  %v478_v6 = vld [vmem:[%s18238_s1 + $0x18] sm:$0xff]  ;;  %s18483_s18 = smov (!%p377_p3, %s10204_s18), 1 }
  0x10   : > { %392 = vst.msk [vmem:[#allocation2 + $0x18] sm:$0xff] %vm387_vm0, %v18249_v0  ;;  %393 = vst.msk [vmem:[#allocation2 + $0x20] sm:$0xff] %vm387_vm0, %v18249_v0  ;;  %v10471_v7 = vpack.c.bf16 %v478_v6, %v477_v4  ;;  %s10431_s27 = sshll.u32 %s18483_s18, 8  ;;  %v479_v8 = vld [vmem:[%s18238_s1 + $0x20] sm:$0xff]  ;;  %v480_v9 = vld [vmem:[%s18238_s1 + $0x28] sm:$0xff]  ;;  %s13436_s14 = smov 48  }
  0x11   : > { %395 = vst.msk [vmem:[#allocation2 + $0x30] sm:$0xff] %vm387_vm0, %v18249_v0  ;;  %396 = vst.msk [vmem:[#allocation2 + $0x38] sm:$0xff] %vm387_vm0, %v18249_v0  ;;  %10469 = vmatpush1.bf16.msra.mxu0 %v10468_v5  ;;  %10617 = vmatpush1.bf16.msra.mxu1 %v10468_v5  ;;  %s13652_s15 = scalar_lea.vmem %s18237_s0, %s10431_s27  ;;  %v481_v13 = vld [vmem:[%s18238_s1 + $0x30] sm:$0xff]  ;;  %v482_v14 = vld [vmem:[%s18238_s1 + $0x38] sm:$0xff]  ;;  %v10474_v18 = vpack.c.bf16 %v480_v9, %v479_v8  ;;  %s13437_s16 = smov 80   ;;  %vm1744_vm2 = vcmask 261120  }
  0x12   : > { %397 = vst.msk [vmem:[#allocation2 + $0x40] sm:$0x3] %vm390_vm1, %v18249_v0  ;;  %400 = vst.msk [vmem:[#allocation2 + $0x58] sm:$0x3] %vm390_vm1, %v18249_v0  ;;  %10470 = vmatprep.subr.bf16.mxu0 %v18251_v1  ;;  %10609 = vmatprep.subr.bf16.mxu1 %v18251_v1  ;;  %v13655_v10 = vld [vmem:[%s13652_s15] sm:$0xff]  ;;  %v13658_v11 = vld [vmem:[%s13652_s15 + $0x8] sm:$0xff]  ;;  %v10477_v34 = vpack.c.bf16 %v482_v14, %v481_v13 }
  0x13   : > { %398 = vst.msk [vmem:[#allocation2 + $0x48] sm:$0xff] %vm387_vm0, %v18249_v0  ;;  %399 = vst.msk [vmem:[#allocation2 + $0x50] sm:$0xff] %vm387_vm0, %v18249_v0  ;;  %v13661_v12 = vld [vmem:[%s13652_s15 + $0x10] sm:$0xff]  ;;  %v13676_v21 = vld [vmem:[%s13652_s15 + $0x18] sm:$0xff]  ;;  %s13438_s24 = smov 64   ;;  %s13439_s25 = smov 112  }
  0x14   : > { %401 = vst.msk [vmem:[#allocation2 + $0x60] sm:$0xff] %vm387_vm0, %v18249_v0  ;;  %402 = vst.msk [vmem:[#allocation2 + $0x68] sm:$0xff] %vm387_vm0, %v18249_v0  ;;  %v13679_v22 = vld [vmem:[%s13652_s15 + $0x20] sm:$0xff]  ;;  %v13686_v23 = vld [vmem:[%s13652_s15 + $0x28] sm:$0xff]  ;;  %s13440_s26 = smov 96   ;;  %vm1777_vm3 = vcmask 392192  }
  0x15   : > { %403 = vst.msk [vmem:[#allocation2 + $0x70] sm:$0x3] %vm390_vm1, %v18249_v0  ;;  %406 = vst.msk [vmem:[#allocation2 + $0x88] sm:$0x3] %vm390_vm1, %v18249_v0  ;;  %v559_v15 = vld [vmem:[#allocation2 + $0x1] sm:$0xff]  ;;  %10472 = vmatpush1.bf16.msra.mxu0 %v10471_v7  ;;  %10618 = vmatpush1.bf16.msra.mxu1 %v10471_v7  ;;  %v13691_v24 = vld [vmem:[%s13652_s15 + $0x30] sm:$0xff] }
  0x16   : > { %404 = vst.msk [vmem:[#allocation2 + $0x78] sm:$0xff] %vm387_vm0, %v18249_v0  ;;  %405 = vst.msk [vmem:[#allocation2 + $0x80] sm:$0xff] %vm387_vm0, %v18249_v0  ;;  %v560_v16 = vld [vmem:[#allocation2 + $0x9] sm:$0xff]  ;;  %10473 = vmatprep.subr.bf16.mxu0 %v18251_v1  ;;  %10610 = vmatprep.subr.bf16.mxu1 %v18251_v1  ;;  %v13694_v25 = vld [vmem:[%s13652_s15 + $0x38] sm:$0xff]  ;;  %vm1810_vm4 = vcmask 523264   ;;  %vm1843_vm5 = vcmask 654336  }
  0x17   : > { %407 = vst.msk [vmem:[#allocation2 + $0x90] sm:$0xff] %vm387_vm0, %v18249_v0  ;;  %408 = vst.msk [vmem:[#allocation2 + $0x98] sm:$0xff] %vm387_vm0, %v18249_v0  ;;  %v591_v17 = vld [vmem:[#allocation2 + $0x2] sm:$0xff]  ;;  %v10644_v19 = vpack.i.bf16 %v560_v16, %v559_v15  ;;  %v592_v20 = vld [vmem:[#allocation2 + $0xa] sm:$0xff]  ;;  %vm1876_vm6 = vcmask 785408   ;;  %vm1909_vm7 = vcmask 916480  }
  0x18   : > { %409 = vst.msk [vmem:[#allocation2 + $0xa0] sm:$0x3] %vm390_vm1, %v18249_v0  ;;  %412 = vst.msk [vmem:[#allocation2 + $0xb8] sm:$0x3] %vm390_vm1, %v18249_v0  ;;  %v10649_v26 = vpack.i.bf16 %v592_v20, %v591_v17  ;;  %v13704_v27 = vld [vmem:[%s13652_s15 + $0x40] sm:$0xff]  ;;  %v13707_v28 = vld [vmem:[%s13652_s15 + $0x48] sm:$0xff] }
  0x19   : > { %410 = vst.msk [vmem:[#allocation2 + $0xa8] sm:$0xff] %vm387_vm0, %v18249_v0  ;;  %411 = vst.msk [vmem:[#allocation2 + $0xb0] sm:$0xff] %vm387_vm0, %v18249_v0  ;;  %10645 = vrot.lane.b32.xlu0 %v10644_v19, %s13434_s22  ;;  %v13710_v29 = vld [vmem:[%s13652_s15 + $0x50] sm:$0xff]  ;;  %v483_v30 = vld [vmem:[%s18238_s1 + $0x40] sm:$0xff]  ;;  %10475 = vmatpush1.bf16.msra.mxu0 %v10474_v18  ;;  %vm13441_vm8 = vmmov 0   ;;  %vm4240_vm9 = vcmask 1043456  }
  0x1a   : > { %413 = vst.msk [vmem:[#allocation2 + $0xc0] sm:$0xff] %vm387_vm0, %v18249_v0  ;;  %414 = vst.msk [vmem:[#allocation2 + $0xc8] sm:$0xff] %vm387_vm0, %v18249_v0  ;;  %v13720_v31 = vld [vmem:[%s13652_s15 + $0x58] sm:$0xff]  ;;  %v13725_v32 = vld [vmem:[%s13652_s15 + $0x60] sm:$0xff]  ;;  %10619 = vmatpush1.bf16.msra.mxu1 %v10474_v18  ;;  %10476 = vmatprep.subr.bf16.mxu0 %v18251_v1  ;;  %vm4236_vm10 = vcmask 31744  }
  0x1b   : > { %415 = vst.msk [vmem:[#allocation2 + $0xd0] sm:$0x3] %vm390_vm1, %v18249_v0  ;;  %418 = vst.msk [vmem:[#allocation2 + $0xe8] sm:$0x3] %vm390_vm1, %v18249_v0  ;;  %v13728_v33 = vld [vmem:[%s13652_s15 + $0x68] sm:$0xff]  ;;  %v13737_v35 = vld [vmem:[%s13652_s15 + $0x70] sm:$0xff]  ;;  %10611 = vmatprep.subr.bf16.mxu1 %v18251_v1 }
  0x1c   : > { %416 = vst.msk [vmem:[#allocation2 + $0xd8] sm:$0xff] %vm387_vm0, %v18249_v0  ;;  %417 = vst.msk [vmem:[#allocation2 + $0xe0] sm:$0xff] %vm387_vm0, %v18249_v0  ;;  %v13740_v36 = vld [vmem:[%s13652_s15 + $0x78] sm:$0xff]  ;;  %v484_v37 = vld [vmem:[%s18238_s1 + $0x48] sm:$0xff] }
  0x1d   : > { %419 = vst.msk [vmem:[#allocation2 + $0xf0] sm:$0xff] %vm387_vm0, %v18249_v0  ;;  %420 = vst.msk [vmem:[#allocation2 + $0xf8] sm:$0xff] %vm387_vm0, %v18249_v0  ;;  %v13752_v38 = vld [vmem:[%s13652_s15 + $0x80] sm:$0xff]  ;;  %v13755_v39 = vld [vmem:[%s13652_s15 + $0x88] sm:$0xff]  ;;  %10650 = vrot.lane.b32.xlu0 %v10649_v26, %s13435_s28  ;;  %10478 = vmatpush1.bf16.msra.mxu0 %v10477_v34  ;;  %v10480_v47 = vpack.c.bf16 %v484_v37, %v483_v30 }
  0x1e   : > { %421 = vst.msk [vmem:[#allocation2 + $0x100] sm:$0x3] %vm390_vm1, %v18249_v0  ;;  %424 = vst.msk [vmem:[#allocation2 + $0x118] sm:$0x3] %vm390_vm1, %v18249_v0  ;;  %10620 = vmatpush1.bf16.msra.mxu1 %v10477_v34  ;;  %10479 = vmatprep.subr.bf16.mxu0 %v18251_v1  ;;  %v485_v50 = vld [vmem:[%s18238_s1 + $0x50] sm:$0xff]  ;;  %v486_v51 = vld [vmem:[%s18238_s1 + $0x58] sm:$0xff] }
  0x1f   : > { %422 = vst.msk [vmem:[#allocation2 + $0x108] sm:$0xff] %vm387_vm0, %v18249_v0  ;;  %423 = vst.msk [vmem:[#allocation2 + $0x110] sm:$0xff] %vm387_vm0, %v18249_v0  ;;  %10612 = vmatprep.subr.bf16.mxu1 %v18251_v1  ;;  %v10483_v58 = vpack.c.bf16 %v486_v51, %v485_v50  ;;  %v487_v59 = vld [vmem:[%s18238_s1 + $0x60] sm:$0xff]  ;;  %v488_v60 = vld [vmem:[%s18238_s1 + $0x68] sm:$0xff] }
  0x20   : > { %425 = vst.msk [vmem:[#allocation2 + $0x120] sm:$0xff] %vm387_vm0, %v18249_v0  ;;  %426 = vst.msk [vmem:[#allocation2 + $0x128] sm:$0xff] %vm387_vm0, %v18249_v0  ;;  %v10486_v62 = vpack.c.bf16 %v488_v60, %v487_v59  ;;  %v489_v5 = vld [vmem:[%s18238_s1 + $0x70] sm:$0xff]  ;;  %v490_v6 = vld [vmem:[%s18238_s1 + $0x78] sm:$0xff] }
  0x21   : > { %427 = vst.msk [vmem:[#allocation2 + $0x130] sm:$0x3] %vm390_vm1, %v18249_v0  ;;  %430 = vst.msk [vmem:[#allocation2 + $0x148] sm:$0x3] %vm390_vm1, %v18249_v0  ;;  %10481 = vmatpush1.bf16.msra.mxu0 %v10480_v47  ;;  %v10489_v7 = vpack.c.bf16 %v490_v6, %v489_v5  ;;  %v491_v8 = vld [vmem:[%s18238_s1 + $0x80] sm:$0xff]  ;;  %v492_v9 = vld [vmem:[%s18238_s1 + $0x88] sm:$0xff] }
  0x22   : > { %428 = vst.msk [vmem:[#allocation2 + $0x138] sm:$0xff] %vm387_vm0, %v18249_v0  ;;  %429 = vst.msk [vmem:[#allocation2 + $0x140] sm:$0xff] %vm387_vm0, %v18249_v0  ;;  %10621 = vmatpush1.bf16.msra.mxu1 %v10480_v47  ;;  %10482 = vmatprep.subr.bf16.mxu0 %v18251_v1  ;;  %v13826_v14 = vld [vmem:[%s13652_s15 + $0x90] sm:$0xff]  ;;  %v13829_v15 = vld [vmem:[%s13652_s15 + $0x98] sm:$0xff]  ;;  %v10492_v18 = vpack.c.bf16 %v492_v9, %v491_v8 }
  0x23   : > { %431 = vst.msk [vmem:[#allocation2 + $0x150] sm:$0xff] %vm387_vm0, %v18249_v0  ;;  %432 = vst.msk [vmem:[#allocation2 + $0x158] sm:$0xff] %vm387_vm0, %v18249_v0  ;;  %10613 = vmatprep.subr.bf16.mxu1 %v18251_v1  ;;  %v13846_v30 = vld [vmem:[%s13652_s15 + $0xa0] sm:$0xff]  ;;  %v13849_v34 = vld [vmem:[%s13652_s15 + $0xa8] sm:$0xff] }
  0x24   : > { %433 = vst.msk [vmem:[#allocation2 + $0x160] sm:$0x3] %vm390_vm1, %v18249_v0  ;;  %436 = vst.msk [vmem:[#allocation2 + $0x178] sm:$0x3] %vm390_vm1, %v18249_v0  ;;  %v13908_v5 = vld [vmem:[%s13652_s15 + $0xc8] sm:$0xff] }
  0x25   : > { %434 = vst.msk [vmem:[#allocation2 + $0x168] sm:$0xff] %vm387_vm0, %v18249_v0  ;;  %435 = vst.msk [vmem:[#allocation2 + $0x170] sm:$0xff] %vm387_vm0, %v18249_v0  ;;  %10484 = vmatpush1.bf16.msra.mxu0 %v10483_v58 }
  0x26   : > { %437 = vst.msk [vmem:[#allocation2 + $0x180] sm:$0xff] %vm387_vm0, %v18249_v0  ;;  %438 = vst.msk [vmem:[#allocation2 + $0x188] sm:$0xff] %vm387_vm0, %v18249_v0  ;;  %10622 = vmatpush1.bf16.msra.mxu1 %v10483_v58  ;;  %10485 = vmatprep.subr.bf16.mxu0 %v18251_v1 }
  0x27   : > { %439 = vst.msk [vmem:[#allocation2 + $0x190] sm:$0x3] %vm390_vm1, %v18249_v0  ;;  %442 = vst.msk [vmem:[#allocation2 + $0x1a8] sm:$0x3] %vm390_vm1, %v18249_v0  ;;  %10614 = vmatprep.subr.bf16.mxu1 %v18251_v1 }
  0x28   : > { %440 = vst.msk [vmem:[#allocation2 + $0x198] sm:$0xff] %vm387_vm0, %v18249_v0  ;;  %441 = vst.msk [vmem:[#allocation2 + $0x1a0] sm:$0xff] %vm387_vm0, %v18249_v0 }
  0x29   : > { %18339 = vst [vmem:[#allocation3_spill] sm:$0xff] %v13655_v10  ;;  %18340 = vst [vmem:[#allocation4_spill] sm:$0xff] %v13658_v11  ;;  %10487 = vmatpush1.bf16.msra.mxu0 %v10486_v62 }
  0x2a   : > { %18341 = vst [vmem:[#allocation5_spill] sm:$0xff] %v13661_v12  ;;  %495 = vst.msk [vmem:[#allocation2 + $0x19] sm:$0xff] %vm387_vm0, %v13655_v10  ;;  %10623 = vmatpush1.bf16.msra.mxu1 %v10486_v62  ;;  %10488 = vmatprep.subr.bf16.mxu0 %v18251_v1 }
  0x2b   : > { %496 = vst.msk [vmem:[#allocation2 + $0x21] sm:$0xff] %vm387_vm0, %v13658_v11  ;;  %497 = vst.msk [vmem:[#allocation2 + $0x31] sm:$0xff] %vm387_vm0, %v13661_v12  ;;  %10615 = vmatprep.subr.bf16.mxu1 %v18251_v1 }
  0x2c   : > { %18342 = vst [vmem:[#allocation6_spill] sm:$0xff] %v13676_v21  ;;  %18343 = vst [vmem:[#allocation7_spill] sm:$0xff] %v13679_v22 }
  0x2d   : > { %498 = vst.msk [vmem:[#allocation2 + $0x39] sm:$0xff] %vm387_vm0, %v13676_v21  ;;  %18344 = vst [vmem:[#allocation8_spill] sm:$0xff] %v13686_v23  ;;  %10490 = vmatpush1.bf16.msra.mxu0 %v10489_v7 }
  0x2e   : > { %499 = vst.msk [vmem:[#allocation2 + $0x49] sm:$0xff] %vm387_vm0, %v13679_v22  ;;  %18345 = vst [vmem:[#allocation9_spill] sm:$0xff] %v13691_v24  ;;  %10491 = vmatprep.subr.bf16.mxu0 %v18251_v1  ;;  %10624 = vmatpush1.bf16.msra.mxu1 %v10489_v7 }
  0x2f   : > { %18346 = vst [vmem:[#allocation10_spill] sm:$0xff] %v13694_v25  ;;  %500 = vst.msk [vmem:[#allocation2 + $0x51] sm:$0xff] %vm387_vm0, %v13686_v23  ;;  %10616 = vmatprep.subr.bf16.mxu1 %v18251_v1 }
  0x30   : > { %501 = vst.msk [vmem:[#allocation2 + $0x61] sm:$0xff] %vm387_vm0, %v13691_v24  ;;  %502 = vst.msk [vmem:[#allocation2 + $0x69] sm:$0xff] %vm387_vm0, %v13694_v25 }
  0x31   : > { %18347 = vst [vmem:[#allocation11_spill] sm:$0xff] %v13704_v27  ;;  %18348 = vst [vmem:[#allocation12_spill] sm:$0xff] %v13707_v28  ;;  %v13758_v40 = vld [vmem:[#allocation2 + $0x18] sm:$0xff]  ;;  %10493 = vmatpush1.bf16.msra.mxu0 %v10492_v18 }
  0x32   : > { %18349 = vst [vmem:[#allocation13_spill] sm:$0xff] %v13710_v29  ;;  %503 = vst.msk [vmem:[#allocation2 + $0x79] sm:$0xff] %vm387_vm0, %v13704_v27  ;;  %v13760_v41 = vld [vmem:[#allocation2 + $0x20] sm:$0xff]  ;;  %v752_v49 = vld [vmem:[#allocation2 + $0x31] sm:$0xff]  ;;  %10625 = vmatpush1.bf16.msra.mxu1 %v10492_v18  ;;  %10521 = vmatprep.subr.bf16.mxu0 %v18251_v1 }
  0x33   : > { %504 = vst.msk [vmem:[#allocation2 + $0x81] sm:$0xff] %vm387_vm0, %v13707_v28  ;;  %18350 = vst [vmem:[#allocation14_spill] sm:$0xff] %v13720_v31  ;;  %v655_v42 = vld [vmem:[#allocation2 + $0x19] sm:$0xff]  ;;  %v10654_v43 = vpack.i.bf16 %v13760_v41, %v13758_v40  ;;  %v656_v44 = vld [vmem:[#allocation2 + $0x21] sm:$0xff]  ;;  %10494 = vmatprep.subr.bf16.mxu1 %v18251_v1 }
  0x34   : > { %505 = vst.msk [vmem:[#allocation2 + $0x91] sm:$0xff] %vm387_vm0, %v13710_v29  ;;  %18351 = vst [vmem:[#allocation15_spill] sm:$0xff] %v13725_v32  ;;  %v687_v45 = vld [vmem:[#allocation2 + $0x1a] sm:$0xff]  ;;  %v688_v46 = vld [vmem:[#allocation2 + $0x22] sm:$0xff]  ;;  %v10659_v52 = vpack.i.bf16 %v656_v44, %v655_v42 }
  0x35   : > { %18352 = vst [vmem:[#allocation16_spill] sm:$0xff] %v13728_v33  ;;  %506 = vst.msk [vmem:[#allocation2 + $0x99] sm:$0xff] %vm387_vm0, %v13720_v31  ;;  %v10664_v48 = vpack.i.bf16 %v688_v46, %v687_v45  ;;  %10655 = vrot.lane.b32.xlu1 %v10654_v43, %s13436_s14  ;;  %v753_v53 = vld [vmem:[#allocation2 + $0x39] sm:$0xff]  ;;  %v13778_v55 = vld [vmem:[#allocation2 + $0x30] sm:$0xff] }
  0x36   : > { %507 = vst.msk [vmem:[#allocation2 + $0xa9] sm:$0xff] %vm387_vm0, %v13725_v32  ;;  %508 = vst.msk [vmem:[#allocation2 + $0xb1] sm:$0xff] %vm387_vm0, %v13728_v33  ;;  %v689_v54 = vld [vmem:[#allocation2 + $0x32] sm:$0xff]  ;;  %v10674_v57 = vpack.i.bf16 %v753_v53, %v752_v49  ;;  %v13799_v63 = vld [vmem:[#allocation2 + $0x48] sm:$0xff] }
  0x37   : > { %18353 = vst [vmem:[#allocation17_spill] sm:$0xff] %v13737_v35  ;;  %18354 = vst [vmem:[#allocation18_spill] sm:$0xff] %v13740_v36  ;;  %10665 = vrot.lane.b32.xlu0 %v10664_v48, %s13437_s16  ;;  %v13780_v56 = vld [vmem:[#allocation2 + $0x38] sm:$0xff]  ;;  %10214 = vmatprep.mubr.msk.f32.mxu0 %vm387_vm0, %v689_v54  ;;  %v13801_v2 = vld [vmem:[#allocation2 + $0x50] sm:$0xff] }
  0x38   : > { %509 = vst.msk [vmem:[#allocation2 + $0xc1] sm:$0xff] %vm387_vm0, %v13737_v35  ;;  %510 = vst.msk [vmem:[#allocation2 + $0xc9] sm:$0xff] %vm387_vm0, %v13740_v36  ;;  %v10669_v61 = vpack.i.bf16 %v13780_v56, %v13778_v55  ;;  %v13807_v3 = vld [vmem:[#allocation2 + $0x3a] sm:$0xff]  ;;  %v10704_v4 = vpack.i.bf16 %v13801_v2, %v13799_v63  ;;  %v754_v16 = vld [vmem:[#allocation2 + $0x49] sm:$0xff] }
  0x39   : > { %18355 = vst [vmem:[#allocation19_spill] sm:$0xff] %v13752_v38  ;;  %18356 = vst [vmem:[#allocation20_spill] sm:$0xff] %v13755_v39  ;;  %10660 = vrot.lane.b32.xlu1 %v10659_v52, %s13438_s24  ;;  %v10699_v13 = vpack.i.bf16 %v13807_v3, %v689_v54  ;;  %v755_v17 = vld [vmem:[#allocation2 + $0x51] sm:$0xff]  ;;  %v756_v42 = vld [vmem:[#allocation2 + $0x61] sm:$0xff] }
  0x3a   : > { %511 = vst.msk [vmem:[#allocation2 + $0xd9] sm:$0xff] %vm387_vm0, %v13752_v38  ;;  %512 = vst.msk [vmem:[#allocation2 + $0xe1] sm:$0xff] %vm387_vm0, %v13755_v39  ;;  %v10709_v19 = vpack.i.bf16 %v755_v17, %v754_v16  ;;  %v13840_v20 = vld [vmem:[#allocation2 + $0x4a] sm:$0xff]  ;;  %v13842_v26 = vld [vmem:[#allocation2 + $0x52] sm:$0xff] }
  0x3b   : > { %10675 = vrot.lane.b32.xlu0 %v10674_v57, %s13439_s25  ;;  %18357 = vst [vmem:[#allocation21_spill] sm:$0xff] %v13826_v14  ;;  %18358 = vst [vmem:[#allocation22_spill] sm:$0xff] %v13829_v15  ;;  %v10734_v37 = vpack.i.bf16 %v13842_v26, %v13840_v20  ;;  %v757_v43 = vld [vmem:[#allocation2 + $0x69] sm:$0xff]  ;;  %v13862_v44 = vld [vmem:[#allocation2 + $0x60] sm:$0xff] }
  0x3c   : > { %513 = vst.msk [vmem:[#allocation2 + $0xf1] sm:$0xff] %vm387_vm0, %v13826_v14  ;;  %514 = vst.msk [vmem:[#allocation2 + $0xf9] sm:$0xff] %vm387_vm0, %v13829_v15  ;;  %v13864_v45 = vld [vmem:[#allocation2 + $0x68] sm:$0xff]  ;;  %v10744_v46 = vpack.i.bf16 %v757_v43, %v756_v42  ;;  %v13875_v49 = vld [vmem:[%s13652_s15 + $0xb8] sm:$0xff] }
  0x3d   : > { %10670 = vrot.lane.b32.xlu1 %v10669_v61, %s13440_s26  ;;  %18359 = vst [vmem:[#allocation23_spill] sm:$0xff] %v13846_v30  ;;  %18360 = vst [vmem:[#allocation24_spill] sm:$0xff] %v13849_v34  ;;  %v10739_v47 = vpack.i.bf16 %v13864_v45, %v13862_v44  ;;  %v13882_v50 = vld [vmem:[#allocation2 + $0x78] sm:$0xff]  ;;  %v13884_v51 = vld [vmem:[#allocation2 + $0x80] sm:$0xff] }
  0x3e   : > { %515 = vst.msk [vmem:[#allocation2 + $0x109] sm:$0xff] %vm387_vm0, %v13846_v30  ;;  %516 = vst.msk [vmem:[#allocation2 + $0x111] sm:$0xff] %vm387_vm0, %v13849_v34  ;;  %v13890_v53 = vld [vmem:[#allocation2 + $0x6a] sm:$0xff]  ;;  %v10774_v54 = vpack.i.bf16 %v13884_v51, %v13882_v50  ;;  %v758_v58 = vld [vmem:[#allocation2 + $0x79] sm:$0xff] }
  0x3f   : > { %10685 = vrot.lane.b32.xlu0 %v10664_v48, %s13435_s28  ;;  %v13872_v48 = vld [vmem:[%s13652_s15 + $0xb0] sm:$0xff]  ;;  %18362 = vst [vmem:[#allocation26_spill] sm:$0xff] %v13875_v49  ;;  %518 = vst.msk [vmem:[#allocation2 + $0x129] sm:$0xff] %vm387_vm0, %v13875_v49  ;;  %v759_v59 = vld [vmem:[#allocation2 + $0x81] sm:$0xff] }
  0x40   : > { %18361 = vst [vmem:[#allocation25_spill] sm:$0xff] %v13872_v48  ;;  %517 = vst.msk [vmem:[#allocation2 + $0x121] sm:$0xff] %vm387_vm0, %v13872_v48  ;;  %v10779_v60 = vpack.i.bf16 %v759_v59, %v758_v58  ;;  %v13902_v62 = vld [vmem:[#allocation2 + $0x82] sm:$0xff]  ;;  %v760_v7 = vld [vmem:[#allocation2 + $0x91] sm:$0xff] }
  0x41   : > { %10680 = vrot.lane.b32.xlu1 %v10659_v52, %s13434_s22  ;;  %v13888_v52 = vld [vmem:[#allocation2 + $0x62] sm:$0xff]  ;;  %18364 = vst [vmem:[#allocation28_spill] sm:$0xff] %v13908_v5  ;;  %520 = vst.msk [vmem:[#allocation2 + $0x141] sm:$0xff] %vm387_vm0, %v13908_v5  ;;  %v761_v8 = vld [vmem:[#allocation2 + $0x99] sm:$0xff] }
  0x42   : > { %v728_v9 = vld [vmem:[#allocation2 + $0x90] sm:$0xff]  ;;  %v10814_v16 = vpack.i.bf16 %v761_v8, %v760_v7  ;;  %v796_v7 = vld [vmem:[#allocation2 + $0xc2] sm:$0xff] }
  0x43   : > { %10695 = vrot.lane.b32.xlu0 %v10674_v57, %s13438_s24  ;;  %v13924_v18 = vld [vmem:[%s13652_s15 + $0xd0] sm:$0xff]  ;;  %v13949_v8 = vld [vmem:[%s13652_s15 + $0xe0] sm:$0xff]  ;;  %10226 = vmatprep.mubr.msk.f32.mxu1 %vm387_vm0, %v796_v7 }
  0x44   : > { %18365 = vst [vmem:[#allocation29_spill] sm:$0xff] %v13924_v18  ;;  %521 = vst.msk [vmem:[#allocation2 + $0x151] sm:$0xff] %vm387_vm0, %v13924_v18  ;;  %v731_v42 = vld [vmem:[#allocation2 + $0xb0] sm:$0xff]  ;;  %v767_v0 = vld [vmem:[#allocation2 + $0xe1] sm:$0xff] }
  0x45   : > { %10690 = vrot.lane.b32.xlu1 %v10669_v61, %s13436_s14  ;;  %v13900_v61 = vld [vmem:[#allocation2 + $0x7a] sm:$0xff]  ;;  %v13936_v43 = vld [vmem:[#allocation2 + $0x92] sm:$0xff]  ;;  %18367 = vst [vmem:[#allocation31_spill] sm:$0xff] %v13949_v8  ;;  %523 = vst.msk [vmem:[#allocation2 + $0x169] sm:$0xff] %vm387_vm0, %v13949_v8 }
  0x46   : > { %v10804_v6 = vpack.i.bf16 %v13902_v62, %v13900_v61  ;;  %v763_v58 = vld [vmem:[#allocation2 + $0xb1] sm:$0xff] }
  0x47   : > { %10705 = vrot.lane.b32.xlu0 %v10704_v4, %s13440_s26  ;;  %v13968_v7 = vld [vmem:[%s13652_s15 + $0xf0] sm:$0xff] }
  0x48   : > { %18369 = vst [vmem:[#allocation33_spill] sm:$0xff] %v13968_v7  ;;  %525 = vst.msk [vmem:[#allocation2 + $0x181] sm:$0xff] %vm387_vm0, %v13968_v7  ;;  %v736_v8 = vld [vmem:[#allocation2 + $0xf0] sm:$0xff] }
  0x49   : > { %10700 = vrot.lane.b32.xlu1 %v10699_v13, %s13437_s16  ;;  %v795_v36 = vld [vmem:[#allocation2 + $0xb2] sm:$0xff] }
  0x4b   : > { %10715 = vrot.lane.b32.xlu0 %v10674_v57, %s13434_s22  ;;  %v10769_v57 = vpack.i.bf16 %v13890_v53, %v13888_v52 }
  0x4d   : > { %10710 = vrot.lane.b32.xlu1 %v10709_v19, %s13439_s25 }
  0x4f   : > { %10725 = vrot.lane.b32.xlu0 %v10704_v4, %s13436_s14  ;;  %v13905_v4 = vld [vmem:[%s13652_s15 + $0xc0] sm:$0xff] }
  0x50   : > { %18363 = vst [vmem:[#allocation27_spill] sm:$0xff] %v13905_v4  ;;  %519 = vst.msk [vmem:[#allocation2 + $0x139] sm:$0xff] %vm387_vm0, %v13905_v4 }
  0x51   : > { %10720 = vrot.lane.b32.xlu1 %v10699_v13, %s13435_s28  ;;  %v729_v13 = vld [vmem:[#allocation2 + $0x98] sm:$0xff] }
  0x52   : > { %v10809_v17 = vpack.i.bf16 %v729_v13, %v728_v9  ;;  %v13952_v9 = vld [vmem:[%s13652_s15 + $0xe8] sm:$0xff] }
  0x53   : > { %10735 = vrot.lane.b32.xlu0 %v10734_v37, %s13437_s16  ;;  %18368 = vst [vmem:[#allocation32_spill] sm:$0xff] %v13952_v9  ;;  %524 = vst.msk [vmem:[#allocation2 + $0x171] sm:$0xff] %vm387_vm0, %v13952_v9 }
  0x55   : > { %10730 = vrot.lane.b32.xlu1 %v10709_v19, %s13438_s24 }
  0x57   : > { %10745 = vrot.lane.b32.xlu0 %v10744_v46, %s13439_s25 }
  0x59   : > { %10740 = vrot.lane.b32.xlu1 %v10739_v47, %s13440_s26 }
  0x5b   : > { %10755 = vrot.lane.b32.xlu0 %v10734_v37, %s13435_s28  ;;  %v730_v37 = vld [vmem:[#allocation2 + $0xa8] sm:$0xff] }
  0x5d   : > { %10750 = vrot.lane.b32.xlu1 %v10709_v19, %s13434_s22  ;;  %v13927_v19 = vld [vmem:[%s13652_s15 + $0xd8] sm:$0xff] }
  0x5e   : > { %18366 = vst [vmem:[#allocation30_spill] sm:$0xff] %v13927_v19  ;;  %522 = vst.msk [vmem:[#allocation2 + $0x159] sm:$0xff] %vm387_vm0, %v13927_v19  ;;  %v737_v19 = vld [vmem:[#allocation2 + $0xf8] sm:$0xff] }
  0x5f   : > { %10765 = vrot.lane.b32.xlu0 %v10744_v46, %s13438_s24 }
  0x61   : > { %10760 = vrot.lane.b32.xlu1 %v10739_v47, %s13436_s14  ;;  %v10844_v47 = vpack.i.bf16 %v731_v42, %v730_v37  ;;  %v732_v37 = vld [vmem:[#allocation2 + $0xc0] sm:$0xff]  ;;  %v733_v42 = vld [vmem:[#allocation2 + $0xc8] sm:$0xff] }
  0x63   : > { %10775 = vrot.lane.b32.xlu0 %v10774_v54, %s13440_s26 }
  0x65   : > { %10770 = vrot.lane.b32.xlu1 %v10769_v57, %s13437_s16 }
  0x67   : > { %10785 = vrot.lane.b32.xlu0 %v10744_v46, %s13434_s22  ;;  %v13938_v46 = vld [vmem:[#allocation2 + $0x9a] sm:$0xff] }
  0x69   : > { %10780 = vrot.lane.b32.xlu1 %v10779_v60, %s13439_s25 }
  0x6b   : > { %10795 = vrot.lane.b32.xlu0 %v10774_v54, %s13436_s14  ;;  %v10839_v54 = vpack.i.bf16 %v13938_v46, %v13936_v43 }
  0x6d   : > { %10790 = vrot.lane.b32.xlu1 %v10769_v57, %s13435_s28  ;;  %v762_v57 = vld [vmem:[#allocation2 + $0xa9] sm:$0xff] }
  0x6e   : > { %v10849_v59 = vpack.i.bf16 %v763_v58, %v762_v57  ;;  %v10879_v58 = vpack.i.bf16 %v733_v42, %v732_v37 }
  0x6f   : > { %10805 = vrot.lane.b32.xlu0 %v10804_v6, %s13437_s16 }
  0x71   : > { %10800 = vrot.lane.b32.xlu1 %v10779_v60, %s13438_s24 }
  0x73   : > { %10815 = vrot.lane.b32.xlu0 %v10814_v16, %s13439_s25 }
  0x75   : > { %10810 = vrot.lane.b32.xlu1 %v10809_v17, %s13440_s26 }
  0x77   : > { %10825 = vrot.lane.b32.xlu0 %v10804_v6, %s13435_s28  ;;  %v700_v6 = vld [vmem:[#allocation2 + $0xb2] sm:$0xff] }
  0x79   : > { %10820 = vrot.lane.b32.xlu1 %v10779_v60, %s13434_s22  ;;  %v13946_v60 = vld [vmem:[#allocation2 + $0xaa] sm:$0xff] }
  0x7a   : > { %v10874_v13 = vpack.i.bf16 %v700_v6, %v13946_v60  ;;  %v735_v6 = vld [vmem:[#allocation2 + $0xe0] sm:$0xff] }
  0x7b   : > { %10835 = vrot.lane.b32.xlu0 %v10814_v16, %s13438_s24 }
  0x7d   : > { %10830 = vrot.lane.b32.xlu1 %v10809_v17, %s13436_s14  ;;  %v765_v17 = vld [vmem:[#allocation2 + $0xc9] sm:$0xff] }
  0x7f   : > { %10845 = vrot.lane.b32.xlu0 %v10844_v47, %s13440_s26 }
  0x81   : > { %10840 = vrot.lane.b32.xlu1 %v10839_v54, %s13437_s16 }
  0x83   : > { %10855 = vrot.lane.b32.xlu0 %v10814_v16, %s13434_s22  ;;  %v764_v16 = vld [vmem:[#allocation2 + $0xc1] sm:$0xff] }
  0x84   : > { %v10884_v57 = vpack.i.bf16 %v765_v17, %v764_v16  ;;  %v701_v16 = vld [vmem:[#allocation2 + $0xc2] sm:$0xff]  ;;  %v702_v17 = vld [vmem:[#allocation2 + $0xca] sm:$0xff] }
  0x85   : > { %10850 = vrot.lane.b32.xlu1 %v10849_v59, %s13439_s25  ;;  %v10909_v42 = vpack.i.bf16 %v702_v17, %v701_v16  ;;  %v769_v16 = vld [vmem:[#allocation2 + $0xf9] sm:$0xff] }
  0x86   : > { %v527_v17 = vld [vmem:[#allocation2] sm:$0xff] }
  0x87   : > { %10865 = vrot.lane.b32.xlu0 %v10844_v47, %s13436_s14  ;;  %v13971_v47 = vld [vmem:[%s13652_s15 + $0xf8] sm:$0xff] }
  0x88   : > { %18370 = vst [vmem:[#allocation34_spill] sm:$0xff] %v13971_v47  ;;  %526 = vst.msk [vmem:[#allocation2 + $0x189] sm:$0xff] %vm387_vm0, %v13971_v47  ;;  %v13984_v47 = vld [vmem:[#allocation2 + $0xda] sm:$0xff] }
  0x89   : > { %10860 = vrot.lane.b32.xlu1 %v10839_v54, %s13435_s28  ;;  %v734_v54 = vld [vmem:[#allocation2 + $0xd8] sm:$0xff] }
  0x8a   : > { %v10914_v37 = vpack.i.bf16 %v735_v6, %v734_v54  ;;  %v768_v6 = vld [vmem:[#allocation2 + $0xf1] sm:$0xff] }
  0x8b   : > { %10875 = vrot.lane.b32.xlu0 %v10874_v13, %s13437_s16  ;;  %v10646_v7 = vpop.permute.xlu0 %10645  ;;  %v13994_v18 = vpack.i.bf16 %v769_v16, %v768_v6 }
  0x8c   : > { %v10647_v54 = vunpack.i.l.bf16 %v10646_v7 }
  0x8d   : > { %10870 = vrot.lane.b32.xlu1 %v10849_v59, %s13438_s24 }
  0x8f   : > { %10885 = vrot.lane.b32.xlu0 %v10884_v57, %s13439_s25  ;;  %v10651_v9 = vpop.permute.xlu0 %10650 }
  0x90   : > { %v10653_v4 = vunpack.i.h.bf16 %v10651_v9 }
  0x91   : > { %10880 = vrot.lane.b32.xlu1 %v10879_v58, %s13440_s26 }
  0x93   : > { %10895 = vrot.lane.b32.xlu0 %v10874_v13, %s13435_s28  ;;  %v766_v13 = vld [vmem:[#allocation2 + $0xd9] sm:$0xff] }
  0x94   : > { %v10919_v1 = vpack.i.bf16 %v767_v0, %v766_v13  ;;  %v10648_v0 = vunpack.i.h.bf16 %v10646_v7  ;;  %v10652_v13 = vunpack.i.l.bf16 %v10651_v9  ;;  %v10949_v7 = vpack.i.bf16 %v737_v19, %v736_v8 }
  0x95   : > { %10890 = vrot.lane.b32.xlu1 %v10849_v59, %s13434_s22  ;;  %v13986_v59 = vld [vmem:[#allocation2 + $0xe2] sm:$0xff] }
  0x97   : > { %10905 = vrot.lane.b32.xlu0 %v10884_v57, %s13438_s24 }
  0x99   : > { %10900 = vrot.lane.b32.xlu1 %v10879_v58, %s13436_s14  ;;  %v10944_v58 = vpack.i.bf16 %v13986_v59, %v13984_v47 }
  0x9b   : > { %10915 = vrot.lane.b32.xlu0 %v10914_v37, %s13440_s26 }
  0x9d   : > { %10910 = vrot.lane.b32.xlu1 %v10909_v42, %s13437_s16 }
  0x9f   : > { %10925 = vrot.lane.b32.xlu0 %v10884_v57, %s13434_s22  ;;  %v528_v57 = vld [vmem:[#allocation2 + $0x8] sm:$0xff] }
  0xa0   : > { %v1713_v48 = vsel %vm387_vm0, %v528_v57, %v10648_v0 }
  0xa1   : > { %10920 = vrot.lane.b32.xlu1 %v10919_v1, %s13439_s25 }
  0xa3   : > { %10935 = vrot.lane.b32.xlu0 %v10914_v37, %s13436_s14  ;;  %v1712_v37 = vsel %vm387_vm0, %v527_v17, %v10647_v54  ;;  %v1746_v54 = vsel %vm1744_vm2, %v1713_v48, %v10653_v4  ;;  %v738_v48 = vld [vmem:[#allocation2 + $0x108] sm:$0xff]  ;;  %v739_v4 = vld [vmem:[#allocation2 + $0x110] sm:$0xff] }
  0xa5   : > { %10930 = vrot.lane.b32.xlu1 %v10909_v42, %s13435_s28  ;;  %v1745_v42 = vsel %vm1744_vm2, %v1712_v37, %v10652_v13 }
  0xa7   : > { %10945 = vrot.lane.b32.xlu0 %v10944_v58, %s13437_s16  ;;  %v10656_v5 = vpop.permute.xlu1 %10655 }
  0xa8   : > { %v10657_v34 = vunpack.i.l.bf16 %v10656_v5  ;;  %v10658_v6 = vunpack.i.h.bf16 %v10656_v5 }
  0xa9   : > { %v10666_v49 = vpop.permute.xlu0 %10665  ;;  %10940 = vrot.lane.b32.xlu1 %v10919_v1, %s13438_s24 }
  0xaa   : > { %v1778_v0 = vsel %vm1777_vm3, %v1745_v42, %v10657_v34  ;;  %v10667_v57 = vunpack.i.l.bf16 %v10666_v49  ;;  %v1779_v8 = vsel %vm1777_vm3, %v1746_v54, %v10658_v6  ;;  %v10668_v5 = vunpack.i.h.bf16 %v10666_v49  ;;  %v14014_v49 = vld [vmem:[#allocation2 + $0xf2] sm:$0xff]  ;;  %v14016_v6 = vld [vmem:[#allocation2 + $0xfa] sm:$0xff] }
  0xab   : > { %10955 = vrot.lane.b32.xlu0 %v13994_v18, %s13439_s25  ;;  %v10661_v16 = vpop.permute.xlu1 %10660  ;;  %v10984_v54 = vpack.i.bf16 %v739_v4, %v738_v48  ;;  %v771_v48 = vld [vmem:[#allocation2 + $0x111] sm:$0xff] }
  0xac   : > { %v10663_v17 = vunpack.i.h.bf16 %v10661_v16  ;;  %v10662_v9 = vunpack.i.l.bf16 %v10661_v16 }
  0xad   : > { %v10676_v30 = vpop.permute.xlu0 %10675  ;;  %10950 = vrot.lane.b32.xlu1 %v10949_v7, %s13440_s26 }
  0xae   : > { %v1811_v19 = vsel %vm1810_vm4, %v1778_v0, %v10662_v9  ;;  %v10677_v37 = vunpack.i.l.bf16 %v10676_v30  ;;  %v1812_v16 = vsel %vm1810_vm4, %v1779_v8, %v10663_v17  ;;  %v10678_v9 = vunpack.i.h.bf16 %v10676_v30 }
  0xaf   : > { %10965 = vrot.lane.b32.xlu0 %v10944_v58, %s13435_s28  ;;  %v10671_v13 = vpop.permute.xlu1 %10670  ;;  %v1844_v14 = vsel %vm1843_vm5, %v1811_v19, %v10667_v57  ;;  %v1845_v8 = vsel %vm1843_vm5, %v1812_v16, %v10668_v5  ;;  %v10979_v19 = vpack.i.bf16 %v14016_v6, %v14014_v49  ;;  %v770_v5 = vld [vmem:[#allocation2 + $0x109] sm:$0xff] }
  0xb0   : > { %v10673_v15 = vunpack.i.h.bf16 %v10671_v13  ;;  %v10672_v34 = vunpack.i.l.bf16 %v10671_v13 }
  0xb1   : > { %v10686_v42 = vpop.permute.xlu0 %10685  ;;  %10960 = vrot.lane.b32.xlu1 %v10919_v1, %s13434_s22 }
  0xb2   : > { %v1877_v58 = vsel %vm1876_vm6, %v1844_v14, %v10672_v34  ;;  %v1878_v1 = vsel %vm1876_vm6, %v1845_v8, %v10673_v15  ;;  %v10687_v14 = vunpack.i.l.bf16 %v10686_v42  ;;  %v14041_v8 = vld [vmem:[#allocation2 + $0x10a] sm:$0xff] }
  0xb3   : > { %10975 = vrot.lane.b32.xlu0 %v13994_v18, %s13438_s24  ;;  %v10681_v17 = vpop.permute.xlu1 %10680  ;;  %v1910_v0 = vsel %vm1909_vm7, %v1877_v58, %v10677_v37  ;;  %v1911_v15 = vsel %vm1909_vm7, %v1878_v1, %v10678_v9 }
  0xb4   : > { %v10682_v13 = vunpack.i.l.bf16 %v10681_v17  ;;  %2109 = vmatmul.mubr.f32.vlgmr.msra.gmra.mrb[0].mxu0 %v1910_v0  ;;  %v10683_v30 = vunpack.i.h.bf16 %v10681_v17 }
  0xb5   : > { %v10696_v57 = vpop.permute.xlu0 %10695  ;;  %10215 = vmatprep.mubr.msk.f32.mxu0 %vm387_vm0, %v13807_v3  ;;  %10970 = vrot.lane.b32.xlu1 %v10949_v7, %s13436_s14  ;;  %v10688_v3 = vunpack.i.h.bf16 %v10686_v42 }
  0xb6   : > { %v1714_v37 = vsel %vm387_vm0, %v13758_v40, %v10682_v13  ;;  %v10697_v58 = vunpack.i.l.bf16 %v10696_v57  ;;  %v14034_v40 = vpack.i.bf16 %v771_v48, %v770_v5  ;;  %v1715_v17 = vsel %vm387_vm0, %v13760_v41, %v10683_v30  ;;  %v14043_v13 = vld [vmem:[#allocation2 + $0x112] sm:$0xff] }
  0xb7   : > { %10985 = vrot.lane.b32.xlu0 %v10984_v54, %s13440_s26  ;;  %v10691_v4 = vpop.permute.xlu1 %10690  ;;  %v1747_v7 = vsel %vm1744_vm2, %v1714_v37, %v10687_v14  ;;  %v1748_v14 = vsel %vm1744_vm2, %v1715_v17, %v10688_v3  ;;  %v10698_v37 = vunpack.i.h.bf16 %v10696_v57  ;;  %v773_v3 = vld [vmem:[#allocation2 + $0x129] sm:$0xff] }
  0xb8   : > { %v10692_v16 = vunpack.i.l.bf16 %v10691_v4  ;;  %2114 = vmatmul.mubr.f32.gmra.mrb[2].mxu0 %v1911_v15  ;;  %v10693_v0 = vunpack.i.h.bf16 %v10691_v4  ;;  %v11014_v4 = vpack.i.bf16 %v14043_v13, %v14041_v8 }
  0xb9   : > { %v10706_v34 = vpop.permute.xlu0 %10705  ;;  %10216 = vmatprep.mubr.msk.f32.mxu0 %vm387_vm0, %v13840_v20  ;;  %10980 = vrot.lane.b32.xlu1 %v10979_v19, %s13437_s16 }
  0xba   : > { %v1780_v9 = vsel %vm1777_vm3, %v1747_v7, %v10692_v16  ;;  %v10707_v48 = vunpack.i.l.bf16 %v10706_v34  ;;  %v1781_v41 = vsel %vm1777_vm3, %v1748_v14, %v10693_v0  ;;  %v772_v16 = vld [vmem:[#allocation2 + $0x121] sm:$0xff]  ;;  %v10708_v17 = vunpack.i.h.bf16 %v10706_v34 }
  0xbb   : > { %10995 = vrot.lane.b32.xlu0 %v13994_v18, %s13434_s22  ;;  %v10701_v42 = vpop.permute.xlu1 %10700  ;;  %v1813_v5 = vsel %vm1810_vm4, %v1780_v9, %v10697_v58  ;;  %v1814_v58 = vsel %vm1810_vm4, %v1781_v41, %v10698_v37  ;;  %v14062_v14 = vld [vmem:[#allocation2 + $0x128] sm:$0xff] }
  0xbc   : > { %v10702_v1 = vunpack.i.l.bf16 %v10701_v42  ;;  %v10703_v30 = vunpack.i.h.bf16 %v10701_v42 }
  0xbd   : > { %v10716_v20 = vpop.permute.xlu0 %10715  ;;  %10990 = vrot.lane.b32.xlu1 %v14034_v40, %s13439_s25 }
  0xbe   : > { %v1846_v18 = vsel %vm1843_vm5, %v1813_v5, %v10702_v1  ;;  %v10717_v9 = vunpack.i.l.bf16 %v10716_v20  ;;  %v14060_v1 = vld [vmem:[#allocation2 + $0x120] sm:$0xff]  ;;  %v14064_v5 = vpack.i.bf16 %v773_v3, %v772_v16  ;;  %v10718_v37 = vunpack.i.h.bf16 %v10716_v20 }
  0xbf   : > { %11005 = vrot.lane.b32.xlu0 %v10984_v54, %s13436_s14  ;;  %v10711_v15 = vpop.permute.xlu1 %10710  ;;  %v1879_v39 = vsel %vm1876_vm6, %v1846_v18, %v10707_v48  ;;  %v1847_v54 = vsel %vm1843_vm5, %v1814_v58, %v10703_v30  ;;  %v11019_v20 = vpack.i.bf16 %v14062_v14, %v14060_v1 }
  0xc0   : > { %v10712_v57 = vunpack.i.l.bf16 %v10711_v15  ;;  %v10713_v0 = vunpack.i.h.bf16 %v10711_v15  ;;  %v1880_v18 = vsel %vm1876_vm6, %v1847_v54, %v10708_v17 }
  0xc1   : > { %v10726_v7 = vpop.permute.xlu0 %10725  ;;  %11000 = vrot.lane.b32.xlu1 %v10979_v19, %s13435_s28 }
  0xc2   : > { %v1912_v42 = vsel %vm1909_vm7, %v1879_v39, %v10712_v57  ;;  %v1716_v39 = vsel %vm387_vm0, %v13778_v55, %v10717_v9  ;;  %v10727_v30 = vunpack.i.l.bf16 %v10726_v7  ;;  %v1913_v16 = vsel %vm1909_vm7, %v1880_v18, %v10713_v0 }
  0xc3   : > { %11015 = vrot.lane.b32.xlu0 %v11014_v4, %s13437_s16  ;;  %v10721_v34 = vpop.permute.xlu1 %10720  ;;  %2119 = vmatmul.mubr.f32.gmra.mrb[4].mxu0 %v1912_v42  ;;  %v10728_v55 = vunpack.i.h.bf16 %v10726_v7 }
  0xc4   : > { %v10723_v41 = vunpack.i.h.bf16 %v10721_v34  ;;  %v10722_v48 = vunpack.i.l.bf16 %v10721_v34  ;;  %10217 = vmatprep.mubr.msk.f32.mxu0 %vm387_vm0, %v13842_v26  ;;  %v1717_v26 = vsel %vm387_vm0, %v13780_v56, %v10718_v37 }
  0xc5   : > { %v10736_v19 = vpop.permute.xlu0 %10735  ;;  %11010 = vrot.lane.b32.xlu1 %v14034_v40, %s13438_s24 }
  0xc6   : > { %v1749_v15 = vsel %vm1744_vm2, %v1716_v39, %v10722_v48  ;;  %v1750_v57 = vsel %vm1744_vm2, %v1717_v26, %v10723_v41  ;;  %v10737_v0 = vunpack.i.l.bf16 %v10736_v19  ;;  %v10738_v7 = vunpack.i.h.bf16 %v10736_v19  ;;  %v14089_v41 = vld [vmem:[#allocation2 + $0x138] sm:$0xff]  ;;  %v14091_v48 = vld [vmem:[#allocation2 + $0x140] sm:$0xff] }
  0xc7   : > { %11025 = vrot.lane.b32.xlu0 %v14064_v5, %s13439_s25  ;;  %v10731_v3 = vpop.permute.xlu1 %10730  ;;  %2124 = vmatmul.mubr.f32.gmra.mrb[6].mxu0 %v1913_v16  ;;  %v1782_v42 = vsel %vm1777_vm3, %v1749_v15, %v10727_v30  ;;  %v1783_v56 = vsel %vm1777_vm3, %v1750_v57, %v10728_v55  ;;  %v14100_v19 = vld [vmem:[#allocation2 + $0x122] sm:$0xff]  ;;  %v14102_v16 = vld [vmem:[#allocation2 + $0x12a] sm:$0xff]  ;;  %v11054_v26 = vpack.i.bf16 %v14091_v48, %v14089_v41 }
  0xc8   : > { %v10733_v58 = vunpack.i.h.bf16 %v10731_v3  ;;  %v10732_v17 = vunpack.i.l.bf16 %v10731_v3  ;;  %10218 = vmatprep.mubr.msk.f32.mxu0 %vm387_vm0, %v13888_v52 }
  0xc9   : > { %v10746_v9 = vpop.permute.xlu0 %10745  ;;  %11020 = vrot.lane.b32.xlu1 %v11019_v20, %s13440_s26 }
  0xca   : > { %v1815_v54 = vsel %vm1810_vm4, %v1782_v42, %v10732_v17  ;;  %v10747_v34 = vunpack.i.l.bf16 %v10746_v9  ;;  %v1816_v52 = vsel %vm1810_vm4, %v1783_v56, %v10733_v58  ;;  %v10748_v55 = vunpack.i.h.bf16 %v10746_v9 }
  0xcb   : > { %11035 = vrot.lane.b32.xlu0 %v11014_v4, %s13435_s28  ;;  %v10741_v37 = vpop.permute.xlu1 %10740  ;;  %v1848_v15 = vsel %vm1843_vm5, %v1815_v54, %v10737_v0  ;;  %v1849_v58 = vsel %vm1843_vm5, %v1816_v52, %v10738_v7  ;;  %v11049_v54 = vpack.i.bf16 %v14102_v16, %v14100_v19  ;;  %v774_v7 = vld [vmem:[#allocation2 + $0x139] sm:$0xff] }
  0xcc   : > { %v10743_v39 = vunpack.i.h.bf16 %v10741_v37  ;;  %v10742_v30 = vunpack.i.l.bf16 %v10741_v37  ;;  %v775_v37 = vld [vmem:[#allocation2 + $0x141] sm:$0xff] }
  0xcd   : > { %v10756_v18 = vpop.permute.xlu0 %10755  ;;  %11030 = vrot.lane.b32.xlu1 %v14034_v40, %s13434_s22 }
  0xce   : > { %v1881_v4 = vsel %vm1876_vm6, %v1848_v15, %v10742_v30  ;;  %v1882_v42 = vsel %vm1876_vm6, %v1849_v58, %v10743_v39  ;;  %v10757_v0 = vunpack.i.l.bf16 %v10756_v18  ;;  %v14131_v58 = vld [vmem:[#allocation2 + $0x142] sm:$0xff] }
  0xcf   : > { %11045 = vrot.lane.b32.xlu0 %v14064_v5, %s13438_s24  ;;  %v10751_v3 = vpop.permute.xlu1 %10750  ;;  %v1914_v57 = vsel %vm1909_vm7, %v1881_v4, %v10747_v34  ;;  %v1915_v52 = vsel %vm1909_vm7, %v1882_v42, %v10748_v55 }
  0xd0   : > { %v10752_v17 = vunpack.i.l.bf16 %v10751_v3  ;;  %2129 = vmatmul.mubr.f32.gmra.mrb[8].mxu0 %v1914_v57  ;;  %v10753_v9 = vunpack.i.h.bf16 %v10751_v3  ;;  %v14129_v57 = vld [vmem:[#allocation2 + $0x13a] sm:$0xff] }
  0xd1   : > { %v10766_v40 = vpop.permute.xlu0 %10765  ;;  %10219 = vmatprep.mubr.msk.f32.mxu0 %vm387_vm0, %v13890_v53  ;;  %11040 = vrot.lane.b32.xlu1 %v11019_v20, %s13436_s14  ;;  %v10758_v53 = vunpack.i.h.bf16 %v10756_v18 }
  0xd2   : > { %v1718_v56 = vsel %vm387_vm0, %v13799_v63, %v10752_v17  ;;  %v10767_v15 = vunpack.i.l.bf16 %v10766_v40  ;;  %v14122_v63 = vpack.i.bf16 %v775_v37, %v774_v7  ;;  %v1719_v4 = vsel %vm387_vm0, %v13801_v2, %v10753_v9 }
  0xd3   : > { %11055 = vrot.lane.b32.xlu0 %v11054_v26, %s13440_s26  ;;  %v10761_v34 = vpop.permute.xlu1 %10760  ;;  %v1751_v20 = vsel %vm1744_vm2, %v1718_v56, %v10757_v0  ;;  %v1752_v42 = vsel %vm1744_vm2, %v1719_v4, %v10758_v53  ;;  %v10768_v0 = vunpack.i.h.bf16 %v10766_v40  ;;  %v11084_v37 = vpack.i.bf16 %v14131_v58, %v14129_v57 }
  0xd4   : > { %v10762_v39 = vunpack.i.l.bf16 %v10761_v34  ;;  %2134 = vmatmul.mubr.f32.gmra.mrb[10].mxu0 %v1915_v52  ;;  %v10763_v3 = vunpack.i.h.bf16 %v10761_v34  ;;  %v776_v52 = vld [vmem:[#allocation2 + $0x151] sm:$0xff] }
  0xd5   : > { %v10776_v30 = vpop.permute.xlu0 %10775  ;;  %10220 = vmatprep.mubr.msk.f32.mxu0 %vm387_vm0, %v13900_v61  ;;  %11050 = vrot.lane.b32.xlu1 %v11049_v54, %s13437_s16 }
  0xd6   : > { %v1784_v55 = vsel %vm1777_vm3, %v1751_v20, %v10762_v39  ;;  %v10777_v7 = vunpack.i.l.bf16 %v10776_v30  ;;  %v1785_v2 = vsel %vm1777_vm3, %v1752_v42, %v10763_v3  ;;  %v777_v39 = vld [vmem:[#allocation2 + $0x159] sm:$0xff] }
  0xd7   : > { %11065 = vrot.lane.b32.xlu0 %v14064_v5, %s13434_s22  ;;  %v10771_v18 = vpop.permute.xlu1 %10770  ;;  %v1817_v56 = vsel %vm1810_vm4, %v1784_v55, %v10767_v15  ;;  %v1818_v20 = vsel %vm1810_vm4, %v1785_v2, %v10768_v0  ;;  %v10778_v15 = vunpack.i.h.bf16 %v10776_v30  ;;  %v14150_v42 = vld [vmem:[#allocation2 + $0x158] sm:$0xff] }
  0xd8   : > { %v10772_v17 = vunpack.i.l.bf16 %v10771_v18  ;;  %v10773_v9 = vunpack.i.h.bf16 %v10771_v18 }
  0xd9   : > { %v10786_v61 = vpop.permute.xlu0 %10785  ;;  %11060 = vrot.lane.b32.xlu1 %v14122_v63, %s13439_s25 }
  0xda   : > { %v1850_v5 = vsel %vm1843_vm5, %v1817_v56, %v10772_v17  ;;  %v10787_v4 = vunpack.i.l.bf16 %v10786_v61  ;;  %v14148_v17 = vld [vmem:[#allocation2 + $0x150] sm:$0xff]  ;;  %v14152_v56 = vpack.i.bf16 %v777_v39, %v776_v52  ;;  %v10788_v0 = vunpack.i.h.bf16 %v10786_v61 }
  0xdb   : > { %11075 = vrot.lane.b32.xlu0 %v11054_v26, %s13436_s14  ;;  %v10781_v34 = vpop.permute.xlu1 %10780  ;;  %v1883_v55 = vsel %vm1876_vm6, %v1850_v5, %v10777_v7  ;;  %v1851_v26 = vsel %vm1843_vm5, %v1818_v20, %v10773_v9  ;;  %v11089_v61 = vpack.i.bf16 %v14150_v42, %v14148_v17 }
  0xdc   : > { %v10782_v40 = vunpack.i.l.bf16 %v10781_v34  ;;  %v10783_v3 = vunpack.i.h.bf16 %v10781_v34  ;;  %v1720_v9 = vsel %vm387_vm0, %v13862_v44, %v10787_v4  ;;  %v1884_v34 = vsel %vm1876_vm6, %v1851_v26, %v10778_v15 }
  0xdd   : > { %v10796_v53 = vpop.permute.xlu0 %10795  ;;  %11070 = vrot.lane.b32.xlu1 %v11049_v54, %s13435_s28 }
  0xde   : > { %v1916_v18 = vsel %vm1909_vm7, %v1883_v55, %v10782_v40  ;;  %v10797_v5 = vunpack.i.l.bf16 %v10796_v53  ;;  %v1917_v39 = vsel %vm1909_vm7, %v1884_v34, %v10783_v3  ;;  %v10798_v44 = vunpack.i.h.bf16 %v10796_v53 }
  0xdf   : > { %11085 = vrot.lane.b32.xlu0 %v11084_v37, %s13437_s16  ;;  %v10791_v30 = vpop.permute.xlu1 %10790  ;;  %2139 = vmatmul.mubr.f32.gmra.mrb[12].mxu0 %v1916_v18 }
  0xe0   : > { %v10793_v2 = vunpack.i.h.bf16 %v10791_v30  ;;  %v10792_v7 = vunpack.i.l.bf16 %v10791_v30  ;;  %10221 = vmatprep.mubr.msk.f32.mxu0 %vm387_vm0, %v13902_v62  ;;  %v1721_v62 = vsel %vm387_vm0, %v13864_v45, %v10788_v0 }
  0xe1   : > { %v10806_v54 = vpop.permute.xlu0 %10805  ;;  %11080 = vrot.lane.b32.xlu1 %v14122_v63, %s13438_s24 }
  0xe2   : > { %v1753_v52 = vsel %vm1744_vm2, %v1720_v9, %v10792_v7  ;;  %v1754_v20 = vsel %vm1744_vm2, %v1721_v62, %v10793_v2  ;;  %v10807_v3 = vunpack.i.l.bf16 %v10806_v54  ;;  %v10808_v53 = vunpack.i.h.bf16 %v10806_v54  ;;  %v14177_v2 = vld [vmem:[#allocation2 + $0x168] sm:$0xff]  ;;  %v14179_v7 = vld [vmem:[#allocation2 + $0x170] sm:$0xff] }
  0xe3   : > { %11095 = vrot.lane.b32.xlu0 %v14152_v56, %s13439_s25  ;;  %v10801_v40 = vpop.permute.xlu1 %10800  ;;  %2144 = vmatmul.mubr.f32.gmra.mrb[14].mxu0 %v1917_v39  ;;  %v1786_v18 = vsel %vm1777_vm3, %v1753_v52, %v10797_v5  ;;  %v1787_v45 = vsel %vm1777_vm3, %v1754_v20, %v10798_v44  ;;  %v14188_v54 = vld [vmem:[#allocation2 + $0x152] sm:$0xff]  ;;  %v14190_v39 = vld [vmem:[#allocation2 + $0x15a] sm:$0xff]  ;;  %v11124_v62 = vpack.i.bf16 %v14179_v7, %v14177_v2 }
  0xe4   : > { %v10803_v15 = vunpack.i.h.bf16 %v10801_v40  ;;  %v10802_v4 = vunpack.i.l.bf16 %v10801_v40  ;;  %10222 = vmatprep.mubr.msk.f32.mxu0 %vm387_vm0, %v13936_v43 }
  0xe5   : > { %v10816_v55 = vpop.permute.xlu0 %10815  ;;  %11090 = vrot.lane.b32.xlu1 %v11089_v61, %s13440_s26 }
  0xe6   : > { %v1819_v26 = vsel %vm1810_vm4, %v1786_v18, %v10802_v4  ;;  %v10817_v30 = vunpack.i.l.bf16 %v10816_v55  ;;  %v1820_v43 = vsel %vm1810_vm4, %v1787_v45, %v10803_v15  ;;  %v10818_v44 = vunpack.i.h.bf16 %v10816_v55 }
  0xe7   : > { %11105 = vrot.lane.b32.xlu0 %v11084_v37, %s13435_s28  ;;  %v10811_v0 = vpop.permute.xlu1 %10810  ;;  %v1852_v52 = vsel %vm1843_vm5, %v1819_v26, %v10807_v3  ;;  %v1853_v15 = vsel %vm1843_vm5, %v1820_v43, %v10808_v53  ;;  %v11119_v26 = vpack.i.bf16 %v14190_v39, %v14188_v54  ;;  %v778_v53 = vld [vmem:[#allocation2 + $0x169] sm:$0xff] }
  0xe8   : > { %v10813_v9 = vunpack.i.h.bf16 %v10811_v0  ;;  %v10812_v5 = vunpack.i.l.bf16 %v10811_v0  ;;  %v779_v0 = vld [vmem:[#allocation2 + $0x171] sm:$0xff] }
  0xe9   : > { %v10826_v34 = vpop.permute.xlu0 %10825  ;;  %11100 = vrot.lane.b32.xlu1 %v14122_v63, %s13434_s22 }
  0xea   : > { %v1885_v37 = vsel %vm1876_vm6, %v1852_v52, %v10812_v5  ;;  %v1886_v18 = vsel %vm1876_vm6, %v1853_v15, %v10813_v9  ;;  %v10827_v3 = vunpack.i.l.bf16 %v10826_v34  ;;  %v14219_v15 = vld [vmem:[#allocation2 + $0x172] sm:$0xff] }
  0xeb   : > { %11115 = vrot.lane.b32.xlu0 %v14152_v56, %s13438_s24  ;;  %v10821_v40 = vpop.permute.xlu1 %10820  ;;  %v1918_v20 = vsel %vm1909_vm7, %v1885_v37, %v10817_v30  ;;  %v1919_v43 = vsel %vm1909_vm7, %v1886_v18, %v10818_v44 }
  0xec   : > { %v10822_v4 = vunpack.i.l.bf16 %v10821_v40  ;;  %2149 = vmatmul.mubr.f32.gmra.mrb[16].mxu0 %v1918_v20  ;;  %v10823_v55 = vunpack.i.h.bf16 %v10821_v40  ;;  %v14217_v20 = vld [vmem:[#allocation2 + $0x16a] sm:$0xff] }
  0xed   : > { %v10836_v63 = vpop.permute.xlu0 %10835  ;;  %10223 = vmatprep.mubr.msk.f32.mxu0 %vm387_vm0, %v13938_v46  ;;  %11110 = vrot.lane.b32.xlu1 %v11089_v61, %s13436_s14  ;;  %v10828_v46 = vunpack.i.h.bf16 %v10826_v34 }
  0xee   : > { %v1722_v45 = vsel %vm387_vm0, %v13882_v50, %v10822_v4  ;;  %v10837_v52 = vunpack.i.l.bf16 %v10836_v63  ;;  %v14210_v50 = vpack.i.bf16 %v779_v0, %v778_v53  ;;  %v1723_v37 = vsel %vm387_vm0, %v13884_v51, %v10823_v55  ;;  %v780_v51 = vld [vmem:[#allocation2 + $0x181] sm:$0xff]  ;;  %v781_v55 = vld [vmem:[#allocation2 + $0x189] sm:$0xff] }
  0xef   : > { %11125 = vrot.lane.b32.xlu0 %v11124_v62, %s13440_s26  ;;  %v10831_v30 = vpop.permute.xlu1 %10830  ;;  %v1755_v61 = vsel %vm1744_vm2, %v1722_v45, %v10827_v3  ;;  %v1756_v18 = vsel %vm1744_vm2, %v1723_v37, %v10828_v46  ;;  %v10838_v3 = vunpack.i.h.bf16 %v10836_v63 }
  0xf0   : > { %v10832_v9 = vunpack.i.l.bf16 %v10831_v30  ;;  %2154 = vmatmul.mubr.f32.gmra.mrb[18].mxu0 %v1919_v43  ;;  %v10833_v40 = vunpack.i.h.bf16 %v10831_v30  ;;  %v11154_v43 = vpack.i.bf16 %v14219_v15, %v14217_v20 }
  0xf1   : > { %v10846_v5 = vpop.permute.xlu0 %10845  ;;  %10224 = vmatprep.mubr.msk.f32.mxu0 %vm387_vm0, %v13946_v60  ;;  %11120 = vrot.lane.b32.xlu1 %v11119_v26, %s13437_s16 }
  0xf2   : > { %v1788_v44 = vsel %vm1777_vm3, %v1755_v61, %v10832_v9  ;;  %v10847_v53 = vunpack.i.l.bf16 %v10846_v5  ;;  %v11164_v61 = vpack.i.bf16 %v781_v55, %v780_v51  ;;  %v10848_v37 = vunpack.i.h.bf16 %v10846_v5  ;;  %v749_v51 = vld [vmem:[#allocation2 + $0x188] sm:$0xff]  ;;  %v540_v55 = vld [vmem:[#allocation2 + $0x98] sm:$0xff] }
  0xf3   : > { %11135 = vrot.lane.b32.xlu0 %v14152_v56, %s13434_s22  ;;  %v10841_v34 = vpop.permute.xlu1 %10840  ;;  %v1821_v45 = vsel %vm1810_vm4, %v1788_v44, %v10837_v52  ;;  %v1789_v56 = vsel %vm1777_vm3, %v1756_v18, %v10833_v40 }
  0xf4   : > { %v10842_v4 = vunpack.i.l.bf16 %v10841_v34  ;;  %v10843_v0 = vunpack.i.h.bf16 %v10841_v34  ;;  %v1822_v52 = vsel %vm1810_vm4, %v1789_v56, %v10838_v3  ;;  %v539_v34 = vld [vmem:[#allocation2 + $0x90] sm:$0xff] }
  0xf5   : > { %v10856_v60 = vpop.permute.xlu0 %10855  ;;  %11130 = vrot.lane.b32.xlu1 %v14210_v50, %s13439_s25 }
  0xf6   : > { %v1854_v30 = vsel %vm1843_vm5, %v1821_v45, %v10842_v4  ;;  %v10857_v44 = vunpack.i.l.bf16 %v10856_v60  ;;  %v10858_v4 = vunpack.i.h.bf16 %v10856_v60  ;;  %v1855_v18 = vsel %vm1843_vm5, %v1822_v52, %v10843_v0  ;;  %v748_v45 = vld [vmem:[#allocation2 + $0x180] sm:$0xff] }
  0xf7   : > { %11145 = vrot.lane.b32.xlu0 %v11124_v62, %s13436_s14  ;;  %v10851_v9 = vpop.permute.xlu1 %10850  ;;  %v1887_v38 = vsel %vm1876_vm6, %v1854_v30, %v10847_v53  ;;  %v1888_v60 = vsel %vm1876_vm6, %v1855_v18, %v10848_v37 }
  0xf8   : > { %v10852_v63 = vunpack.i.l.bf16 %v10851_v9  ;;  %v10853_v40 = vunpack.i.h.bf16 %v10851_v9  ;;  %v1725_v0 = vsel %vm387_vm0, %v540_v55, %v10858_v4 }
  0xf9   : > { %v10866_v46 = vpop.permute.xlu0 %10865  ;;  %11140 = vrot.lane.b32.xlu1 %v11119_v26, %s13435_s28  ;;  %v1724_v26 = vsel %vm387_vm0, %v539_v34, %v10857_v44 }
  0xfa   : > { %v1920_v62 = vsel %vm1909_vm7, %v1887_v38, %v10852_v63  ;;  %v10867_v30 = vunpack.i.l.bf16 %v10866_v46  ;;  %v11159_v38 = vpack.i.bf16 %v749_v51, %v748_v45  ;;  %v10868_v63 = vunpack.i.h.bf16 %v10866_v46 }
  0xfb   : > { %11155 = vrot.lane.b32.xlu0 %v11154_v43, %s13437_s16  ;;  %v10861_v3 = vpop.permute.xlu1 %10860  ;;  %2159 = vmatmul.mubr.f32.gmra.mrb[20].mxu0 %v1920_v62  ;;  %v1921_v52 = vsel %vm1909_vm7, %v1888_v60, %v10853_v40 }
  0xfc   : > { %v10863_v5 = vunpack.i.h.bf16 %v10861_v3  ;;  %v10862_v56 = vunpack.i.l.bf16 %v10861_v3  ;;  %10225 = vmatprep.mubr.msk.f32.mxu0 %vm387_vm0, %v795_v36 }
  0xfd   : > { %v10876_v53 = vpop.permute.xlu0 %10875  ;;  %11150 = vrot.lane.b32.xlu1 %v14210_v50, %s13438_s24 }
  0xfe   : > { %v1757_v9 = vsel %vm1744_vm2, %v1724_v26, %v10862_v56  ;;  %v1758_v36 = vsel %vm1744_vm2, %v1725_v0, %v10863_v5  ;;  %v10877_v3 = vunpack.i.l.bf16 %v10876_v53  ;;  %v10878_v45 = vunpack.i.h.bf16 %v10876_v53  ;;  %v750_v5 = vld [vmem:[#allocation2 + $0x198] sm:$0xff]  ;;  %v751_v56 = vld [vmem:[#allocation2 + $0x1a0] sm:$0xff]  ;;  %v797_v53 = vld [vmem:[#allocation2 + $0xca] sm:$0xff] }
  0xff   : > { %11165 = vrot.lane.b32.xlu0 %v11164_v61, %s13439_s25  ;;  %v10871_v62 = vpop.permute.xlu1 %10870  ;;  %2164 = vmatmul.mubr.f32.gmra.mrb[22].mxu0 %v1921_v52  ;;  %v1790_v18 = vsel %vm1777_vm3, %v1757_v9, %v10867_v30  ;;  %v1791_v4 = vsel %vm1777_vm3, %v1758_v36, %v10868_v63  ;;  %v14258_v52 = vld [vmem:[#allocation2 + $0x182] sm:$0xff]  ;;  %v14260_v36 = vld [vmem:[#allocation2 + $0x18a] sm:$0xff] }
 0x100   : > { %v10873_v44 = vunpack.i.h.bf16 %v10871_v62  ;;  %v10872_v34 = vunpack.i.l.bf16 %v10871_v62  ;;  %v11194_v62 = vpack.i.bf16 %v751_v56, %v750_v5  ;;  %v782_v56 = vld [vmem:[#allocation2 + $0x199] sm:$0xff] }
 0x101   : > { %v10886_v37 = vpop.permute.xlu0 %10885  ;;  %11160 = vrot.lane.b32.xlu1 %v11159_v38, %s13440_s26 }
 0x102   : > { %v1823_v46 = vsel %vm1810_vm4, %v1790_v18, %v10872_v34  ;;  %v1824_v40 = vsel %vm1810_vm4, %v1791_v4, %v10873_v44  ;;  %v10887_v55 = vunpack.i.l.bf16 %v10886_v37  ;;  %v10888_v9 = vunpack.i.h.bf16 %v10886_v37  ;;  %v541_v34 = vld [vmem:[#allocation2 + $0xa8] sm:$0xff]  ;;  %v542_v18 = vld [vmem:[#allocation2 + $0xb0] sm:$0xff] }
 0x103   : > { %11175 = vrot.lane.b32.xlu0 %v11154_v43, %s13435_s28  ;;  %v10881_v51 = vpop.permute.xlu1 %10880  ;;  %v1856_v30 = vsel %vm1843_vm5, %v1823_v46, %v10877_v3  ;;  %v1857_v43 = vsel %vm1843_vm5, %v1824_v40, %v10878_v45 }
 0x104   : > { %v10883_v26 = vunpack.i.h.bf16 %v10881_v51  ;;  %v10882_v60 = vunpack.i.l.bf16 %v10881_v51 }
 0x105   : > { %v10896_v0 = vpop.permute.xlu0 %10895  ;;  %11170 = vrot.lane.b32.xlu1 %v14210_v50, %s13434_s22 }
 0x106   : > { %v1889_v63 = vsel %vm1876_vm6, %v1856_v30, %v10882_v60  ;;  %v10898_v4 = vunpack.i.h.bf16 %v10896_v0  ;;  %v10897_v50 = vunpack.i.l.bf16 %v10896_v0  ;;  %v1890_v37 = vsel %vm1876_vm6, %v1857_v43, %v10883_v26  ;;  %v783_v26 = vld [vmem:[#allocation2 + $0x1a1] sm:$0xff] }
 0x107   : > { %11185 = vrot.lane.b32.xlu0 %v11164_v61, %s13438_s24  ;;  %v1922_v44 = vsel %vm1909_vm7, %v1889_v63, %v10887_v55  ;;  %v10891_v3 = vpop.permute.xlu1 %10890  ;;  %v11189_v61 = vpack.i.bf16 %v14260_v36, %v14258_v52  ;;  %v1923_v5 = vsel %vm1909_vm7, %v1890_v37, %v10888_v9  ;;  %v11199_v9 = vpack.i.bf16 %v783_v26, %v782_v56 }
 0x108   : > { %2169 = vmatmul.mubr.f32.vlgmr.msra.gmra.mrb[0].mxu1 %v1922_v44  ;;  %v10893_v46 = vunpack.i.h.bf16 %v10891_v3  ;;  %v10892_v51 = vunpack.i.l.bf16 %v10891_v3 }
 0x109   : > { %v10906_v45 = vpop.permute.xlu0 %10905  ;;  %10227 = vmatprep.mubr.msk.f32.mxu1 %vm387_vm0, %v797_v53  ;;  %11180 = vrot.lane.b32.xlu1 %v11159_v38, %s13436_s14 }
 0x10a   : > { %v1727_v40 = vsel %vm387_vm0, %v542_v18, %v10893_v46  ;;  %v1726_v55 = vsel %vm387_vm0, %v541_v34, %v10892_v51  ;;  %v10908_v63 = vunpack.i.h.bf16 %v10906_v45  ;;  %v10907_v38 = vunpack.i.l.bf16 %v10906_v45  ;;  %v2384_v45 = vld [vmem:[#allocation2 + $0x1] sm:$0xff] }
 0x10b   : > { %11195 = vrot.lane.b32.xlu0 %v11194_v62, %s13440_s26  ;;  %v1759_v60 = vsel %vm1744_vm2, %v1726_v55, %v10897_v50  ;;  %v1760_v0 = vsel %vm1744_vm2, %v1727_v40, %v10898_v4  ;;  %v10901_v30 = vpop.permute.xlu1 %10900  ;;  %v2385_v40 = vld [vmem:[#allocation2 + $0x9] sm:$0xff] }
 0x10c   : > { %2174 = vmatmul.mubr.f32.gmra.mrb[2].mxu1 %v1923_v5  ;;  %v10903_v53 = vunpack.i.h.bf16 %v10901_v30  ;;  %v10902_v43 = vunpack.i.l.bf16 %v10901_v30  ;;  %v2416_v55 = vld [vmem:[#allocation2 + $0x2] sm:$0xff]  ;;  %v2417_v5 = vld [vmem:[#allocation2 + $0xa] sm:$0xff] }
 0x10d   : > { %v10916_v44 = vpop.permute.xlu0 %10915  ;;  %10228 = vmatprep.mubr.msk.f32.mxu1 %vm387_vm0, %v13984_v47  ;;  %11190 = vrot.lane.b32.xlu1 %v11189_v61, %s13437_s16  ;;  %v11204_v61 = vpack.i.bf16 %v2385_v40, %v2384_v45 }
 0x10e   : > { %v1792_v62 = vsel %vm1777_vm3, %v1759_v60, %v10902_v43  ;;  %v1793_v34 = vsel %vm1777_vm3, %v1760_v0, %v10903_v53  ;;  %v10917_v50 = vunpack.i.l.bf16 %v10916_v44  ;;  %v10918_v47 = vunpack.i.h.bf16 %v10916_v44  ;;  %v544_v44 = vld [vmem:[#allocation2 + $0xc8] sm:$0xff] }
 0x10f   : > { %v1825_v18 = vsel %vm1810_vm4, %v1792_v62, %v10907_v38  ;;  %v1826_v3 = vsel %vm1810_vm4, %v1793_v34, %v10908_v63  ;;  %v10911_v4 = vpop.permute.xlu1 %10910  ;;  %v11209_v60 = vpack.i.bf16 %v2417_v5, %v2416_v55  ;;  %11205 = vrot.lane.b32.xlu0 %v11204_v61, %s13434_s22  ;;  %v543_v62 = vld [vmem:[#allocation2 + $0xc0] sm:$0xff] }
 0x110   : > { %v10913_v37 = vunpack.i.h.bf16 %v10911_v4  ;;  %v10912_v46 = vunpack.i.l.bf16 %v10911_v4 }
 0x111   : > { %v10926_v51 = vpop.permute.xlu0 %10925  ;;  %11200 = vrot.lane.b32.xlu1 %v11199_v9, %s13439_s25 }
 0x112   : > { %v1858_v56 = vsel %vm1843_vm5, %v1825_v18, %v10912_v46  ;;  %v1859_v26 = vsel %vm1843_vm5, %v1826_v3, %v10913_v37  ;;  %v10928_v63 = vunpack.i.h.bf16 %v10926_v51  ;;  %v10927_v38 = vunpack.i.l.bf16 %v10926_v51 }
 0x113   : > { %v10921_v0 = vpop.permute.xlu1 %10920  ;;  %v1891_v30 = vsel %vm1876_vm6, %v1858_v56, %v10917_v50  ;;  %v1892_v9 = vsel %vm1876_vm6, %v1859_v26, %v10918_v47 }
 0x114   : > { %v10923_v53 = vunpack.i.h.bf16 %v10921_v0  ;;  %v10922_v43 = vunpack.i.l.bf16 %v10921_v0  ;;  %v1729_v3 = vsel %vm387_vm0, %v544_v44, %v10928_v63  ;;  %v1728_v4 = vsel %vm387_vm0, %v543_v62, %v10927_v38 }
 0x115   : > { %v10936_v34 = vpop.permute.xlu0 %10935  ;;  %11210 = vrot.lane.b32.xlu1 %v11209_v60, %s13435_s28 }
 0x116   : > { %v1924_v18 = vsel %vm1909_vm7, %v1891_v30, %v10922_v43  ;;  %v10938_v37 = vunpack.i.h.bf16 %v10936_v34  ;;  %v10937_v46 = vunpack.i.l.bf16 %v10936_v34  ;;  %v1925_v51 = vsel %vm1909_vm7, %v1892_v9, %v10923_v53 }
 0x117   : > { %2179 = vmatmul.mubr.f32.gmra.mrb[4].mxu1 %v1924_v18  ;;  %v10931_v50 = vpop.permute.xlu1 %10930 }
 0x118   : > { %10229 = vmatprep.mubr.msk.f32.mxu1 %vm387_vm0, %v13986_v59  ;;  %v10933_v45 = vunpack.i.h.bf16 %v10931_v50  ;;  %v10932_v40 = vunpack.i.l.bf16 %v10931_v50 }
 0x119   : > { %v10946_v55 = vpop.permute.xlu0 %10945 }
 0x11a   : > { %v1762_v47 = vsel %vm1744_vm2, %v1729_v3, %v10933_v45  ;;  %v1761_v61 = vsel %vm1744_vm2, %v1728_v4, %v10932_v40  ;;  %v10948_v60 = vunpack.i.h.bf16 %v10946_v55  ;;  %v10947_v0 = vunpack.i.l.bf16 %v10946_v55 }
 0x11b   : > { %2184 = vmatmul.mubr.f32.gmra.mrb[6].mxu1 %v1925_v51  ;;  %v1794_v5 = vsel %vm1777_vm3, %v1761_v61, %v10937_v46  ;;  %v1795_v56 = vsel %vm1777_vm3, %v1762_v47, %v10938_v37  ;;  %v10941_v26 = vpop.permute.xlu1 %10940  ;;  %v545_v46 = vld [vmem:[#allocation2 + $0xd8] sm:$0xff]  ;;  %v546_v51 = vld [vmem:[#allocation2 + $0xe0] sm:$0xff] }
 0x11c   : > { %v10943_v30 = vunpack.i.h.bf16 %v10941_v26  ;;  %v10942_v63 = vunpack.i.l.bf16 %v10941_v26  ;;  %10230 = vmatprep.mubr.msk.f32.mxu1 %vm387_vm0, %v14014_v49 }
 0x11d   : > { %v10956_v59 = vpop.permute.xlu0 %10955 }
 0x11e   : > { %v1827_v38 = vsel %vm1810_vm4, %v1794_v5, %v10942_v63  ;;  %v1828_v53 = vsel %vm1810_vm4, %v1795_v56, %v10943_v30  ;;  %v10957_v62 = vunpack.i.l.bf16 %v10956_v59  ;;  %v10958_v4 = vunpack.i.h.bf16 %v10956_v59 }
 0x11f   : > { %v10951_v43 = vpop.permute.xlu1 %10950  ;;  %v1860_v44 = vsel %vm1843_vm5, %v1827_v38, %v10947_v0  ;;  %v1861_v34 = vsel %vm1843_vm5, %v1828_v53, %v10948_v60 }
 0x120   : > { %v10953_v9 = vunpack.i.h.bf16 %v10951_v43  ;;  %v10952_v18 = vunpack.i.l.bf16 %v10951_v43 }
 0x121   : > { %v10966_v3 = vpop.permute.xlu0 %10965 }
 0x122   : > { %v1893_v50 = vsel %vm1876_vm6, %v1860_v44, %v10952_v18  ;;  %v1894_v37 = vsel %vm1876_vm6, %v1861_v34, %v10953_v9  ;;  %v10968_v40 = vunpack.i.h.bf16 %v10966_v3  ;;  %v10967_v55 = vunpack.i.l.bf16 %v10966_v3 }
 0x123   : > { %v1926_v49 = vsel %vm1909_vm7, %v1893_v50, %v10957_v62  ;;  %v10961_v45 = vpop.permute.xlu1 %10960  ;;  %v1927_v56 = vsel %vm1909_vm7, %v1894_v37, %v10958_v4 }
 0x124   : > { %2189 = vmatmul.mubr.f32.gmra.mrb[8].mxu1 %v1926_v49  ;;  %v10963_v47 = vunpack.i.h.bf16 %v10961_v45  ;;  %v10962_v61 = vunpack.i.l.bf16 %v10961_v45 }
 0x125   : > { %v10976_v5 = vpop.permute.xlu0 %10975  ;;  %10231 = vmatprep.mubr.msk.f32.mxu1 %vm387_vm0, %v14016_v6 }
 0x126   : > { %v1731_v26 = vsel %vm387_vm0, %v546_v51, %v10963_v47  ;;  %v1730_v60 = vsel %vm387_vm0, %v545_v46, %v10962_v61  ;;  %v10978_v59 = vunpack.i.h.bf16 %v10976_v5  ;;  %v10977_v38 = vunpack.i.l.bf16 %v10976_v5  ;;  %v547_v5 = vld [vmem:[#allocation2 + $0xf0] sm:$0xff] }
 0x127   : > { %v1763_v0 = vsel %vm1744_vm2, %v1730_v60, %v10967_v55  ;;  %v1764_v30 = vsel %vm1744_vm2, %v1731_v26, %v10968_v40  ;;  %v10971_v63 = vpop.permute.xlu1 %10970 }
 0x128   : > { %2194 = vmatmul.mubr.f32.gmra.mrb[10].mxu1 %v1927_v56  ;;  %v10973_v53 = vunpack.i.h.bf16 %v10971_v63  ;;  %v10972_v43 = vunpack.i.l.bf16 %v10971_v63  ;;  %v548_v56 = vld [vmem:[#allocation2 + $0xf8] sm:$0xff] }
 0x129   : > { %v10986_v62 = vpop.permute.xlu0 %10985  ;;  %10232 = vmatprep.mubr.msk.f32.mxu1 %vm387_vm0, %v14041_v8 }
 0x12a   : > { %v1796_v6 = vsel %vm1777_vm3, %v1763_v0, %v10972_v43  ;;  %v1797_v44 = vsel %vm1777_vm3, %v1764_v30, %v10973_v53  ;;  %v10987_v3 = vunpack.i.l.bf16 %v10986_v62  ;;  %v10988_v49 = vunpack.i.h.bf16 %v10986_v62 }
 0x12b   : > { %v1829_v34 = vsel %vm1810_vm4, %v1796_v6, %v10977_v38  ;;  %v1830_v9 = vsel %vm1810_vm4, %v1797_v44, %v10978_v59  ;;  %v10981_v18 = vpop.permute.xlu1 %10980 }
 0x12c   : > { %v10983_v4 = vunpack.i.h.bf16 %v10981_v18  ;;  %v10982_v50 = vunpack.i.l.bf16 %v10981_v18 }
 0x12d   : > { %v10996_v37 = vpop.permute.xlu0 %10995 }
 0x12e   : > { %v1862_v46 = vsel %vm1843_vm5, %v1829_v34, %v10982_v50  ;;  %v1863_v51 = vsel %vm1843_vm5, %v1830_v9, %v10983_v4  ;;  %v10998_v8 = vunpack.i.h.bf16 %v10996_v37  ;;  %v10997_v40 = vunpack.i.l.bf16 %v10996_v37 }
 0x12f   : > { %v10991_v45 = vpop.permute.xlu1 %10990  ;;  %v1895_v55 = vsel %vm1876_vm6, %v1862_v46, %v10987_v3  ;;  %v1896_v60 = vsel %vm1876_vm6, %v1863_v51, %v10988_v49 }
 0x130   : > { %v10993_v47 = vunpack.i.h.bf16 %v10991_v45  ;;  %v10992_v61 = vunpack.i.l.bf16 %v10991_v45  ;;  %v1733_v30 = vsel %vm387_vm0, %v548_v56, %v10998_v8  ;;  %v1732_v63 = vsel %vm387_vm0, %v547_v5, %v10997_v40 }
 0x131   : > { %v11006_v26 = vpop.permute.xlu0 %11005 }
 0x132   : > { %v1928_v0 = vsel %vm1909_vm7, %v1895_v55, %v10992_v61  ;;  %v11008_v38 = vunpack.i.h.bf16 %v11006_v26  ;;  %v11007_v53 = vunpack.i.l.bf16 %v11006_v26  ;;  %v1929_v44 = vsel %vm1909_vm7, %v1896_v60, %v10993_v47 }
 0x133   : > { %v11001_v59 = vpop.permute.xlu1 %11000  ;;  %2199 = vmatmul.mubr.f32.gmra.mrb[12].mxu1 %v1928_v0 }
 0x134   : > { %v11003_v43 = vunpack.i.h.bf16 %v11001_v59  ;;  %v11002_v62 = vunpack.i.l.bf16 %v11001_v59  ;;  %10233 = vmatprep.mubr.msk.f32.mxu1 %vm387_vm0, %v14043_v13 }
 0x135   : > { %v11016_v6 = vpop.permute.xlu0 %11015 }
 0x136   : > { %v1766_v34 = vsel %vm1744_vm2, %v1733_v30, %v11003_v43  ;;  %v1765_v9 = vsel %vm1744_vm2, %v1732_v63, %v11002_v62  ;;  %v11018_v50 = vunpack.i.h.bf16 %v11016_v6  ;;  %v11017_v37 = vunpack.i.l.bf16 %v11016_v6  ;;  %v549_v30 = vld [vmem:[#allocation2 + $0x108] sm:$0xff] }
 0x137   : > { %v1798_v18 = vsel %vm1777_vm3, %v1765_v9, %v11007_v53  ;;  %v1799_v3 = vsel %vm1777_vm3, %v1766_v34, %v11008_v38  ;;  %v11011_v4 = vpop.permute.xlu1 %11010  ;;  %2204 = vmatmul.mubr.f32.gmra.mrb[14].mxu1 %v1929_v44 }
 0x138   : > { %v11013_v49 = vunpack.i.h.bf16 %v11011_v4  ;;  %v11012_v46 = vunpack.i.l.bf16 %v11011_v4  ;;  %10234 = vmatprep.mubr.msk.f32.mxu1 %vm387_vm0, %v14100_v19  ;;  %v550_v19 = vld [vmem:[#allocation2 + $0x110] sm:$0xff] }
 0x139   : > { %v11026_v51 = vpop.permute.xlu0 %11025 }
 0x13a   : > { %v1831_v13 = vsel %vm1810_vm4, %v1798_v18, %v11012_v46  ;;  %v1832_v45 = vsel %vm1810_vm4, %v1799_v3, %v11013_v49  ;;  %v11027_v40 = vunpack.i.l.bf16 %v11026_v51  ;;  %v11028_v26 = vunpack.i.h.bf16 %v11026_v51 }
 0x13b   : > { %v11021_v8 = vpop.permute.xlu1 %11020  ;;  %v1864_v55 = vsel %vm1843_vm5, %v1831_v13, %v11017_v37  ;;  %v1865_v47 = vsel %vm1843_vm5, %v1832_v45, %v11018_v50 }
 0x13c   : > { %v11023_v61 = vunpack.i.h.bf16 %v11021_v8  ;;  %v11022_v5 = vunpack.i.l.bf16 %v11021_v8 }
 0x13d   : > { %v11036_v56 = vpop.permute.xlu0 %11035 }
 0x13e   : > { %v1897_v60 = vsel %vm1876_vm6, %v1864_v55, %v11022_v5  ;;  %v1898_v0 = vsel %vm1876_vm6, %v1865_v47, %v11023_v61  ;;  %v11038_v59 = vunpack.i.h.bf16 %v11036_v56  ;;  %v11037_v38 = vunpack.i.l.bf16 %v11036_v56 }
 0x13f   : > { %v11031_v63 = vpop.permute.xlu1 %11030  ;;  %v1930_v53 = vsel %vm1909_vm7, %v1897_v60, %v11027_v40  ;;  %v1931_v44 = vsel %vm1909_vm7, %v1898_v0, %v11028_v26 }
 0x140   : > { %v11033_v43 = vunpack.i.h.bf16 %v11031_v63  ;;  %v11032_v62 = vunpack.i.l.bf16 %v11031_v63  ;;  %2209 = vmatmul.mubr.f32.gmra.mrb[16].mxu1 %v1930_v53 }
 0x141   : > { %v11046_v6 = vpop.permute.xlu0 %11045  ;;  %10235 = vmatprep.mubr.msk.f32.mxu1 %vm387_vm0, %v14102_v16 }
 0x142   : > { %v1735_v34 = vsel %vm387_vm0, %v550_v19, %v11033_v43  ;;  %v1734_v9 = vsel %vm387_vm0, %v549_v30, %v11032_v62  ;;  %v11048_v50 = vunpack.i.h.bf16 %v11046_v6  ;;  %v11047_v37 = vunpack.i.l.bf16 %v11046_v6 }
 0x143   : > { %v1767_v18 = vsel %vm1744_vm2, %v1734_v9, %v11037_v38  ;;  %v1768_v3 = vsel %vm1744_vm2, %v1735_v34, %v11038_v59  ;;  %v11041_v4 = vpop.permute.xlu1 %11040 }
 0x144   : > { %v11043_v49 = vunpack.i.h.bf16 %v11041_v4  ;;  %v11042_v46 = vunpack.i.l.bf16 %v11041_v4  ;;  %2214 = vmatmul.mubr.f32.gmra.mrb[18].mxu1 %v1931_v44 }
 0x145   : > { %v11056_v51 = vpop.permute.xlu0 %11055  ;;  %10236 = vmatprep.mubr.msk.f32.mxu1 %vm387_vm0, %v14129_v57 }
 0x146   : > { %v1800_v16 = vsel %vm1777_vm3, %v1767_v18, %v11042_v46  ;;  %v1801_v13 = vsel %vm1777_vm3, %v1768_v3, %v11043_v49  ;;  %v11057_v55 = vunpack.i.l.bf16 %v11056_v51  ;;  %v11058_v56 = vunpack.i.h.bf16 %v11056_v51 }
 0x147   : > { %v1833_v45 = vsel %vm1810_vm4, %v1800_v16, %v11047_v37  ;;  %v1834_v8 = vsel %vm1810_vm4, %v1801_v13, %v11048_v50  ;;  %v11051_v40 = vpop.permute.xlu1 %11050 }
 0x148   : > { %v11053_v47 = vunpack.i.h.bf16 %v11051_v40  ;;  %v11052_v61 = vunpack.i.l.bf16 %v11051_v40 }
 0x149   : > { %v11066_v5 = vpop.permute.xlu0 %11065 }
 0x14a   : > { %v1866_v26 = vsel %vm1843_vm5, %v1833_v45, %v11052_v61  ;;  %v1867_v60 = vsel %vm1843_vm5, %v1834_v8, %v11053_v47  ;;  %v11068_v57 = vunpack.i.h.bf16 %v11066_v5  ;;  %v11067_v30 = vunpack.i.l.bf16 %v11066_v5 }
 0x14b   : > { %v11061_v0 = vpop.permute.xlu1 %11060  ;;  %v1899_v19 = vsel %vm1876_vm6, %v1866_v26, %v11057_v55  ;;  %v1900_v53 = vsel %vm1876_vm6, %v1867_v60, %v11058_v56 }
 0x14c   : > { %v11063_v63 = vunpack.i.h.bf16 %v11061_v0  ;;  %v11062_v59 = vunpack.i.l.bf16 %v11061_v0  ;;  %v1737_v62 = vsel %vm387_vm0, %v14062_v14, %v11068_v57  ;;  %v1736_v6 = vsel %vm387_vm0, %v14060_v1, %v11067_v30 }
 0x14d   : > { %v11076_v38 = vpop.permute.xlu0 %11075 }
 0x14e   : > { %v1932_v43 = vsel %vm1909_vm7, %v1899_v19, %v11062_v59  ;;  %v11078_v34 = vunpack.i.h.bf16 %v11076_v38  ;;  %v11077_v9 = vunpack.i.l.bf16 %v11076_v38  ;;  %v1933_v50 = vsel %vm1909_vm7, %v1900_v53, %v11063_v63 }
 0x14f   : > { %v11071_v44 = vpop.permute.xlu1 %11070  ;;  %2219 = vmatmul.mubr.f32.gmra.mrb[20].mxu1 %v1932_v43 }
 0x150   : > { %v11073_v18 = vunpack.i.h.bf16 %v11071_v44  ;;  %v11072_v3 = vunpack.i.l.bf16 %v11071_v44  ;;  %10237 = vmatprep.mubr.msk.f32.mxu1 %vm387_vm0, %v14131_v58 }
 0x151   : > { %v11086_v4 = vpop.permute.xlu0 %11085 }
 0x152   : > { %v1770_v37 = vsel %vm1744_vm2, %v1737_v62, %v11073_v18  ;;  %v1769_v49 = vsel %vm1744_vm2, %v1736_v6, %v11072_v3  ;;  %v11088_v51 = vunpack.i.h.bf16 %v11086_v4  ;;  %v11087_v16 = vunpack.i.l.bf16 %v11086_v4 }
 0x153   : > { %v1802_v14 = vsel %vm1777_vm3, %v1769_v49, %v11077_v9  ;;  %v1803_v1 = vsel %vm1777_vm3, %v1770_v37, %v11078_v34  ;;  %v11081_v46 = vpop.permute.xlu1 %11080  ;;  %2224 = vmatmul.mubr.f32.gmra.mrb[22].mxu1 %v1933_v50 }
 0x154   : > { %v11083_v13 = vunpack.i.h.bf16 %v11081_v46  ;;  %v11082_v45 = vunpack.i.l.bf16 %v11081_v46  ;;  %10238 = vmatprep.mubr.msk.f32.mxu1 %vm387_vm0, %v14188_v54 }
 0x155   : > { %v11096_v8 = vpop.permute.xlu0 %11095 }
 0x156   : > { %v1835_v58 = vsel %vm1810_vm4, %v1802_v14, %v11082_v45  ;;  %v1836_v40 = vsel %vm1810_vm4, %v1803_v1, %v11083_v13  ;;  %v11097_v47 = vunpack.i.l.bf16 %v11096_v8  ;;  %v11098_v0 = vunpack.i.h.bf16 %v11096_v8 }
 0x157   : > { %v11091_v55 = vpop.permute.xlu1 %11090  ;;  %v1868_v61 = vsel %vm1843_vm5, %v1835_v58, %v11087_v16  ;;  %v1869_v5 = vsel %vm1843_vm5, %v1836_v40, %v11088_v51 }
 0x158   : > { %v11093_v56 = vunpack.i.h.bf16 %v11091_v55  ;;  %v11092_v26 = vunpack.i.l.bf16 %v11091_v55 }
 0x159   : > { %v11106_v60 = vpop.permute.xlu0 %11105 }
 0x15a   : > { %v1901_v57 = vsel %vm1876_vm6, %v1868_v61, %v11092_v26  ;;  %v1902_v30 = vsel %vm1876_vm6, %v1869_v5, %v11093_v56  ;;  %v11108_v54 = vunpack.i.h.bf16 %v11106_v60  ;;  %v11107_v63 = vunpack.i.l.bf16 %v11106_v60 }
 0x15b   : > { %v11101_v19 = vpop.permute.xlu1 %11100  ;;  %v1934_v59 = vsel %vm1909_vm7, %v1901_v57, %v11097_v47  ;;  %v1935_v62 = vsel %vm1909_vm7, %v1902_v30, %v11098_v0 }
 0x15c   : > { %v11103_v38 = vunpack.i.h.bf16 %v11101_v19  ;;  %v11102_v53 = vunpack.i.l.bf16 %v11101_v19  ;;  %2229 = vmatmul.mubr.f32.gmra.mrb[24].mxu1 %v1934_v59 }
 0x15d   : > { %v11116_v43 = vpop.permute.xlu0 %11115  ;;  %10239 = vmatprep.mubr.msk.f32.mxu1 %vm387_vm0, %v14190_v39 }
 0x15e   : > { %v1739_v6 = vsel %vm387_vm0, %v14091_v48, %v11103_v38  ;;  %v1738_v44 = vsel %vm387_vm0, %v14089_v41, %v11102_v53  ;;  %v11118_v3 = vunpack.i.h.bf16 %v11116_v43  ;;  %v11117_v4 = vunpack.i.l.bf16 %v11116_v43 }
 0x15f   : > { %v1771_v34 = vsel %vm1744_vm2, %v1738_v44, %v11107_v63  ;;  %v1772_v9 = vsel %vm1744_vm2, %v1739_v6, %v11108_v54  ;;  %v11111_v18 = vpop.permute.xlu1 %11110 }
 0x160   : > { %v11113_v50 = vunpack.i.h.bf16 %v11111_v18  ;;  %v11112_v37 = vunpack.i.l.bf16 %v11111_v18  ;;  %2234 = vmatmul.mubr.f32.gmra.mrb[26].mxu1 %v1935_v62 }
 0x161   : > { %v11126_v49 = vpop.permute.xlu0 %11125  ;;  %10240 = vmatprep.mubr.msk.f32.mxu1 %vm387_vm0, %v14217_v20 }
 0x162   : > { %v1804_v39 = vsel %vm1777_vm3, %v1771_v34, %v11112_v37  ;;  %v1805_v48 = vsel %vm1777_vm3, %v1772_v9, %v11113_v50  ;;  %v11127_v46 = vunpack.i.l.bf16 %v11126_v49  ;;  %v11128_v45 = vunpack.i.h.bf16 %v11126_v49 }
 0x163   : > { %v1837_v41 = vsel %vm1810_vm4, %v1804_v39, %v11117_v4  ;;  %v1838_v14 = vsel %vm1810_vm4, %v1805_v48, %v11118_v3  ;;  %v11121_v1 = vpop.permute.xlu1 %11120 }
 0x164   : > { %v11123_v51 = vunpack.i.h.bf16 %v11121_v1  ;;  %v11122_v16 = vunpack.i.l.bf16 %v11121_v1 }
 0x165   : > { %v11136_v13 = vpop.permute.xlu0 %11135 }
 0x166   : > { %v1870_v8 = vsel %vm1843_vm5, %v1837_v41, %v11122_v16  ;;  %v1871_v58 = vsel %vm1843_vm5, %v1838_v14, %v11123_v51  ;;  %v11138_v20 = vunpack.i.h.bf16 %v11136_v13  ;;  %v11137_v55 = vunpack.i.l.bf16 %v11136_v13 }
 0x167   : > { %v11131_v40 = vpop.permute.xlu1 %11130  ;;  %v1903_v47 = vsel %vm1876_vm6, %v1870_v8, %v11127_v46  ;;  %v1904_v26 = vsel %vm1876_vm6, %v1871_v58, %v11128_v45 }
 0x168   : > { %v11133_v61 = vunpack.i.h.bf16 %v11131_v40  ;;  %v11132_v5 = vunpack.i.l.bf16 %v11131_v40  ;;  %v1741_v0 = vsel %vm387_vm0, %v14150_v42, %v11138_v20  ;;  %v1740_v57 = vsel %vm387_vm0, %v14148_v17, %v11137_v55 }
 0x169   : > { %v11146_v56 = vpop.permute.xlu0 %11145 }
 0x16a   : > { %v1936_v60 = vsel %vm1909_vm7, %v1903_v47, %v11132_v5  ;;  %v11148_v19 = vunpack.i.h.bf16 %v11146_v56  ;;  %v11147_v54 = vunpack.i.l.bf16 %v11146_v56  ;;  %v1937_v53 = vsel %vm1909_vm7, %v1904_v26, %v11133_v61  ;;  %v814_v61 = vld [vmem:[#allocation2 + $0x19a] sm:$0xff] }
 0x16b   : > { %v11141_v30 = vpop.permute.xlu1 %11140  ;;  %2239 = vmatmul.mubr.f32.gmra.mrb[28].mxu1 %v1936_v60 }
 0x16c   : > { %v11143_v63 = vunpack.i.h.bf16 %v11141_v30  ;;  %v11142_v59 = vunpack.i.l.bf16 %v11141_v30  ;;  %10241 = vmatprep.mubr.msk.f32.mxu1 %vm387_vm0, %v14219_v15 }
 0x16d   : > { %v11156_v38 = vpop.permute.xlu0 %11155 }
 0x16e   : > { %v1774_v43 = vsel %vm1744_vm2, %v1741_v0, %v11143_v63  ;;  %v1773_v62 = vsel %vm1744_vm2, %v1740_v57, %v11142_v59  ;;  %v11158_v44 = vunpack.i.h.bf16 %v11156_v38  ;;  %v11157_v34 = vunpack.i.l.bf16 %v11156_v38 }
 0x16f   : > { %v1806_v42 = vsel %vm1777_vm3, %v1773_v62, %v11147_v54  ;;  %v1807_v17 = vsel %vm1777_vm3, %v1774_v43, %v11148_v19  ;;  %v11151_v6 = vpop.permute.xlu1 %11150  ;;  %2244 = vmatmul.mubr.f32.gmra.mrb[30].mxu1 %v1937_v53 }
 0x170   : > { %v11153_v9 = vunpack.i.h.bf16 %v11151_v6  ;;  %v11152_v18 = vunpack.i.l.bf16 %v11151_v6  ;;  %10242 = vmatprep.mubr.msk.f32.mxu1 %vm387_vm0, %v14258_v52 }
 0x171   : > { %v11166_v3 = vpop.permute.xlu0 %11165 }
 0x172   : > { %v1839_v15 = vsel %vm1810_vm4, %v1806_v42, %v11152_v18  ;;  %v1840_v4 = vsel %vm1810_vm4, %v1807_v17, %v11153_v9  ;;  %v11167_v37 = vunpack.i.l.bf16 %v11166_v3  ;;  %v11168_v1 = vunpack.i.h.bf16 %v11166_v3  ;;  %v14441_v9 = vld [vmem:[%s18239_s2] ss:$0 sm:$0xff]  ;;  %v815_v18 = vld [vmem:[#allocation2 + $0x1a2] sm:$0xff] }
 0x173   : > { %v11161_v50 = vpop.permute.xlu1 %11160  ;;  %v1872_v49 = vsel %vm1843_vm5, %v1839_v15, %v11157_v34  ;;  %v1873_v39 = vsel %vm1843_vm5, %v1840_v4, %v11158_v44 }
 0x174   : > { %v11163_v48 = vunpack.i.h.bf16 %v11161_v50  ;;  %v11162_v41 = vunpack.i.l.bf16 %v11161_v50 }
 0x175   : > { %v11176_v14 = vpop.permute.xlu0 %11175 }
 0x176   : > { %v1905_v46 = vsel %vm1876_vm6, %v1872_v49, %v11162_v41  ;;  %v1906_v51 = vsel %vm1876_vm6, %v1873_v39, %v11163_v48  ;;  %v11178_v52 = vunpack.i.h.bf16 %v11176_v14  ;;  %v11177_v13 = vunpack.i.l.bf16 %v11176_v14 }
 0x177   : > { %v11171_v16 = vpop.permute.xlu1 %11170  ;;  %v1938_v45 = vsel %vm1909_vm7, %v1905_v46, %v11167_v37  ;;  %v1939_v20 = vsel %vm1909_vm7, %v1906_v51, %v11168_v1 }
 0x178   : > { %v11173_v8 = vunpack.i.h.bf16 %v11171_v16  ;;  %v11172_v58 = vunpack.i.l.bf16 %v11171_v16  ;;  %2249 = vmatmul.mubr.f32.gmra.mrb[32].mxu1 %v1938_v45 }
 0x179   : > { %v11186_v40 = vpop.permute.xlu0 %11185  ;;  %10243 = vmatprep.mubr.msk.f32.mxu1 %vm387_vm0, %v14260_v36 }
 0x17a   : > { %v1743_v55 = vsel %vm387_vm0, %v14179_v7, %v11173_v8  ;;  %v1742_v47 = vsel %vm387_vm0, %v14177_v2, %v11172_v58  ;;  %v11188_v60 = vunpack.i.h.bf16 %v11186_v40  ;;  %v11187_v0 = vunpack.i.l.bf16 %v11186_v40 }
 0x17b   : > { %v1775_v5 = vsel %vm1744_vm2, %v1742_v47, %v11177_v13  ;;  %v1776_v56 = vsel %vm1744_vm2, %v1743_v55, %v11178_v52  ;;  %v11181_v26 = vpop.permute.xlu1 %11180 }
 0x17c   : > { %v11183_v57 = vunpack.i.h.bf16 %v11181_v26  ;;  %v11182_v30 = vunpack.i.l.bf16 %v11181_v26  ;;  %2254 = vmatmul.mubr.f32.gmra.mrb[34].mxu1 %v1939_v20 }
 0x17d   : > { %v11196_v19 = vpop.permute.xlu0 %11195  ;;  %10244 = vmatprep.mubr.msk.f32.mxu1 %vm387_vm0, %v814_v61 }
 0x17e   : > { %v1808_v36 = vsel %vm1777_vm3, %v1775_v5, %v11182_v30  ;;  %v1809_v7 = vsel %vm1777_vm3, %v1776_v56, %v11183_v57  ;;  %v11197_v59 = vunpack.i.l.bf16 %v11196_v19  ;;  %v11198_v43 = vunpack.i.h.bf16 %v11196_v19 }
 0x17f   : > { %v1841_v2 = vsel %vm1810_vm4, %v1808_v36, %v11187_v0  ;;  %v1842_v54 = vsel %vm1810_vm4, %v1809_v7, %v11188_v60  ;;  %v11191_v63 = vpop.permute.xlu1 %11190 }
 0x180   : > { %v11193_v38 = vunpack.i.h.bf16 %v11191_v63  ;;  %v11192_v53 = vunpack.i.l.bf16 %v11191_v63 }
 0x182   : > { %v1874_v62 = vsel %vm1843_vm5, %v1841_v2, %v11192_v53  ;;  %v1875_v42 = vsel %vm1843_vm5, %v1842_v54, %v11193_v38 }
 0x183   : > { %v11201_v17 = vpop.permute.xlu1 %11200  ;;  %v1907_v6 = vsel %vm1876_vm6, %v1874_v62, %v11197_v59  ;;  %v1908_v3 = vsel %vm1876_vm6, %v1875_v42, %v11198_v43 }
 0x184   : > { %v11203_v44 = vunpack.i.h.bf16 %v11201_v17  ;;  %v11202_v34 = vunpack.i.l.bf16 %v11201_v17 }
 0x186   : > { %v1940_v15 = vsel %vm1909_vm7, %v1907_v6, %v11202_v34  ;;  %v1941_v49 = vsel %vm1909_vm7, %v1908_v3, %v11203_v44 }
 0x187   : > { %v2110_v4 = vpop.f32.mrb[0].mxu0  ;;  %2259 = vmatmul.mubr.f32.gmra.mrb[36].mxu1 %v1940_v15 }
 0x188   : > { %v2111_v50 = vadd.f32 %v14441_v9, %v2110_v4  ;;  %v2112_v37 = vpop.f32.mrb[1].mxu0  ;;  %10245 = vmatprep.mubr.msk.f32.mxu1 %vm387_vm0, %v815_v18 }
 0x18a   : > { %v2269_v39 = vmax.f32 %v2111_v50, 0.0 }
 0x18b   : > { %v2115_v48 = vpop.f32.mrb[2].mxu0  ;;  %2264 = vmatmul.mubr.f32.gmra.mrb[38].mxu1 %v1941_v49 }
 0x18c   : > { %2320 = vst.msk [vmem:[#allocation2 + $0x19] sm:$0xff] %vm387_vm0, %v2269_v39  ;;  %v2116_v41 = vadd.f32 %v14441_v9, %v2115_v48  ;;  %v2117_v14 = vpop.f32.mrb[3].mxu0  ;;  %v2301_v39 = vld [vmem:[%s18240_s3] sm:$0xff]  ;;  %v2302_v48 = vld [vmem:[%s18240_s3 + $0x8] sm:$0xff] }
 0x18e   : > { %v2270_v1 = vmax.f32 %v2116_v41, 0.0 }
 0x190   : > { %2321 = vst.msk [vmem:[#allocation2 + $0x21] sm:$0xff] %vm387_vm0, %v2270_v1  ;;  %v10495_v1 = vpack.c.bf16 %v2302_v48, %v2301_v39  ;;  %v2315_v48 = vld [vmem:[%s18240_s3 + $0x70] sm:$0xff] }
 0x192   : > { %10496 = vmatpush1.bf16.msra.mxu1 %v10495_v1 }
 0x193   : > { %v2480_v51 = vld [vmem:[#allocation2 + $0x19] sm:$0xff] }
 0x194   : > { %v14452_v45 = vld [vmem:[#allocation2 + $0x18] sm:$0xff] }
 0x196   : > { %v2120_v46 = vpop.f32.mrb[4].mxu0 }
 0x197   : > { %v2121_v16 = vadd.f32 %v14441_v9, %v2120_v46  ;;  %v2122_v52 = vpop.f32.mrb[5].mxu0  ;;  %v2481_v13 = vld [vmem:[#allocation2 + $0x21] sm:$0xff] }
 0x198   : > { %v14454_v8 = vld [vmem:[#allocation2 + $0x20] sm:$0xff]  ;;  %v11219_v58 = vpack.i.bf16 %v2481_v13, %v2480_v51  ;;  %v2303_v52 = vld [vmem:[%s18240_s3 + $0x10] sm:$0xff]  ;;  %v2304_v13 = vld [vmem:[%s18240_s3 + $0x18] sm:$0xff] }
 0x199   : > { %v11214_v40 = vpack.i.bf16 %v14454_v8, %v14452_v45  ;;  %v2271_v20 = vmax.f32 %v2121_v16, 0.0  ;;  %v2512_v55 = vld [vmem:[#allocation2 + $0x1a] sm:$0xff]  ;;  %v2513_v47 = vld [vmem:[#allocation2 + $0x22] sm:$0xff]  ;;  %v18371_v16 = vmov 0.0|0.0  }
 0x19a   : > { %11220 = vrot.lane.b32.xlu1 %v11219_v58, %s13438_s24  ;;  %v2125_v61 = vpop.f32.mrb[6].mxu0  ;;  %v11224_v26 = vpack.i.bf16 %v2513_v47, %v2512_v55  ;;  %10497 = vmatprep.subr.bf16.mxu1 %v18371_v16  ;;  %v2305_v47 = vld [vmem:[%s18240_s3 + $0x20] sm:$0xff] }
 0x19b   : > { %11215 = vrot.lane.b32.xlu0 %v11214_v40, %s13436_s14  ;;  %2322 = vst.msk [vmem:[#allocation2 + $0x31] sm:$0xff] %vm387_vm0, %v2271_v20  ;;  %v2126_v5 = vadd.f32 %v14441_v9, %v2125_v61  ;;  %v2127_v56 = vpop.f32.mrb[7].mxu0  ;;  %v10498_v20 = vpack.c.bf16 %v2304_v13, %v2303_v52  ;;  %v2306_v61 = vld [vmem:[%s18240_s3 + $0x28] sm:$0xff]  ;;  %v2317_v13 = vld [vmem:[%s18240_s3 + $0x80] sm:$0xff] }
 0x19c   : > { %v2307_v56 = vld [vmem:[%s18240_s3 + $0x30] sm:$0xff] }
 0x19d   : > { %v2272_v60 = vmax.f32 %v2126_v5, 0.0  ;;  %10499 = vmatpush1.bf16.msra.mxu1 %v10498_v20  ;;  %v10501_v5 = vpack.c.bf16 %v2306_v61, %v2305_v47 }
 0x19e   : > { %11230 = vrot.lane.b32.xlu1 %v11219_v58, %s13434_s22  ;;  %10500 = vmatprep.subr.bf16.mxu1 %v18371_v16 }
 0x19f   : > { %11225 = vrot.lane.b32.xlu0 %v11224_v26, %s13437_s16  ;;  %2323 = vst.msk [vmem:[#allocation2 + $0x39] sm:$0xff] %vm387_vm0, %v2272_v60 }
 0x1a1   : > { %10502 = vmatpush1.bf16.msra.mxu1 %v10501_v5  ;;  %v18372_v5 = vmov 0.0  }
 0x1a2   : > { %10503 = vmatprep.subr.bf16.mxu1 %v18371_v16 }
 0x1a3   : > { %11235 = vrot.lane.b32.xlu0 %v11224_v26, %s13435_s28  ;;  %v2130_v0 = vpop.f32.mrb[8].mxu0  ;;  %v2308_v26 = vld [vmem:[%s18240_s3 + $0x38] sm:$0xff] }
 0x1a4   : > { %v2131_v57 = vadd.f32 %v14441_v9, %v2130_v0  ;;  %v2132_v30 = vpop.f32.mrb[9].mxu0  ;;  %v10504_v0 = vpack.c.bf16 %v2308_v26, %v2307_v56  ;;  %v14565_v26 = vld [vmem:[#allocation2 + $0x30] sm:$0xff] }
 0x1a6   : > { %v2273_v19 = vmax.f32 %v2131_v57, 0.0  ;;  %v14467_v36 = vld [vmem:[#allocation2 + $0x32] sm:$0xff]  ;;  %10505 = vmatpush1.bf16.msra.mxu1 %v10504_v0 }
 0x1a7   : > { %v2135_v7 = vpop.f32.mrb[10].mxu0  ;;  %10247 = vmatprep.mubr.msk.f32.mxu1 %vm387_vm0, %v14467_v36  ;;  %10506 = vmatprep.subr.bf16.mxu1 %v18371_v16  ;;  %v14561_v56 = vld [vmem:[#allocation2 + $0x38] sm:$0xff] }
 0x1a8   : > { %2324 = vst.msk [vmem:[#allocation2 + $0x49] sm:$0xff] %vm387_vm0, %v2273_v19  ;;  %v2136_v2 = vadd.f32 %v14441_v9, %v2135_v7  ;;  %v2137_v54 = vpop.f32.mrb[11].mxu0  ;;  %v11274_v0 = vpack.i.bf16 %v14561_v56, %v14565_v26 }
 0x1a9   : > { %v2310_v54 = vld [vmem:[%s18240_s3 + $0x48] sm:$0xff] }
 0x1aa   : > { %v2274_v63 = vmax.f32 %v2136_v2, 0.0  ;;  %v2309_v2 = vld [vmem:[%s18240_s3 + $0x40] sm:$0xff] }
 0x1ac   : > { %2325 = vst.msk [vmem:[#allocation2 + $0x51] sm:$0xff] %vm387_vm0, %v2274_v63 }
 0x1b2   : > { %v2140_v59 = vpop.f32.mrb[12].mxu0 }
 0x1b3   : > { %v2141_v38 = vadd.f32 %v14441_v9, %v2140_v59  ;;  %v2142_v53 = vpop.f32.mrb[13].mxu0 }
 0x1b5   : > { %v2275_v43 = vmax.f32 %v2141_v38, 0.0  ;;  %v10507_v38 = vpack.c.bf16 %v2310_v54, %v2309_v2  ;;  %v2576_v2 = vld [vmem:[#allocation2 + $0x31] sm:$0xff] }
 0x1b6   : > { %v2145_v62 = vpop.f32.mrb[14].mxu0 }
 0x1b7   : > { %2326 = vst.msk [vmem:[#allocation2 + $0x61] sm:$0xff] %vm387_vm0, %v2275_v43  ;;  %v2146_v42 = vadd.f32 %v14441_v9, %v2145_v62  ;;  %v2147_v17 = vpop.f32.mrb[15].mxu0  ;;  %10508 = vmatpush1.bf16.msra.mxu1 %v10507_v38  ;;  %v2311_v43 = vld [vmem:[%s18240_s3 + $0x50] sm:$0xff]  ;;  %v2312_v62 = vld [vmem:[%s18240_s3 + $0x58] sm:$0xff] }
 0x1b8   : > { %10509 = vmatprep.subr.bf16.mxu1 %v18371_v16  ;;  %v2313_v17 = vld [vmem:[%s18240_s3 + $0x60] sm:$0xff] }
 0x1b9   : > { %v2276_v6 = vmax.f32 %v2146_v42, 0.0  ;;  %v10510_v42 = vpack.c.bf16 %v2312_v62, %v2311_v43 }
 0x1bb   : > { %2327 = vst.msk [vmem:[#allocation2 + $0x69] sm:$0xff] %vm387_vm0, %v2276_v6  ;;  %10511 = vmatpush1.bf16.msra.mxu1 %v10510_v42  ;;  %v2314_v6 = vld [vmem:[%s18240_s3 + $0x68] sm:$0xff] }
 0x1bc   : > { %10512 = vmatprep.subr.bf16.mxu1 %v18371_v16 }
 0x1bf   : > { %v2150_v44 = vpop.f32.mrb[16].mxu0 }
 0x1c0   : > { %v2151_v34 = vadd.f32 %v14441_v9, %v2150_v44  ;;  %v2152_v18 = vpop.f32.mrb[17].mxu0  ;;  %v10513_v44 = vpack.c.bf16 %v2314_v6, %v2313_v17 }
 0x1c2   : > { %v2277_v3 = vmax.f32 %v2151_v34, 0.0  ;;  %10514 = vmatpush1.bf16.msra.mxu1 %v10513_v44 }
 0x1c3   : > { %v2155_v15 = vpop.f32.mrb[18].mxu0  ;;  %10515 = vmatprep.subr.bf16.mxu1 %v18371_v16 }
 0x1c4   : > { %2328 = vst.msk [vmem:[#allocation2 + $0x79] sm:$0xff] %vm387_vm0, %v2277_v3  ;;  %v2156_v4 = vadd.f32 %v14441_v9, %v2155_v15  ;;  %v2157_v50 = vpop.f32.mrb[19].mxu0 }
 0x1c6   : > { %v2278_v37 = vmax.f32 %v2156_v4, 0.0 }
 0x1c8   : > { %2329 = vst.msk [vmem:[#allocation2 + $0x81] sm:$0xff] %vm387_vm0, %v2278_v37 }
 0x1ce   : > { %v2160_v49 = vpop.f32.mrb[20].mxu0 }
 0x1cf   : > { %v2161_v41 = vadd.f32 %v14441_v9, %v2160_v49  ;;  %v2162_v14 = vpop.f32.mrb[21].mxu0 }
 0x1d1   : > { %v2279_v46 = vmax.f32 %v2161_v41, 0.0  ;;  %v2316_v41 = vld [vmem:[%s18240_s3 + $0x78] sm:$0xff] }
 0x1d2   : > { %v2165_v51 = vpop.f32.mrb[22].mxu0  ;;  %v10516_v1 = vpack.c.bf16 %v2316_v41, %v2315_v48 }
 0x1d3   : > { %2330 = vst.msk [vmem:[#allocation2 + $0x91] sm:$0xff] %vm387_vm0, %v2279_v46  ;;  %v2166_v58 = vadd.f32 %v14441_v9, %v2165_v51  ;;  %v2167_v40 = vpop.f32.mrb[23].mxu0 }
 0x1d4   : > { %10517 = vmatpush1.bf16.msra.mxu1 %v10516_v1  ;;  %v14593_v1 = vld [vmem:[#allocation2 + $0x50] sm:$0xff] }
 0x1d5   : > { %v2280_v55 = vmax.f32 %v2166_v58, 0.0  ;;  %v2318_v58 = vld [vmem:[%s18240_s3 + $0x88] sm:$0xff]  ;;  %10518 = vmatprep.subr.bf16.mxu1 %v18371_v16 }
 0x1d6   : > { %v10519_v40 = vpack.c.bf16 %v2318_v58, %v2317_v13 }
 0x1d7   : > { %2331 = vst.msk [vmem:[#allocation2 + $0x99] sm:$0xff] %vm387_vm0, %v2280_v55 }
 0x1d8   : > { %10520 = vmatpush1.bf16.msra.mxu1 %v10519_v40  ;;  %v2579_v40 = vld [vmem:[#allocation2 + $0x51] sm:$0xff] }
 0x1d9   : > { %10450 = vmatprep.subr.mxu1 %v18372_v5 }
 0x1db   : > { %v2170_v60 = vpop.f32.mrb[0].mxu1 }
 0x1dc   : > { %v2171_v57 = vadd.f32 %v14441_v9, %v2170_v60  ;;  %v2172_v30 = vpop.f32.mrb[1].mxu1 }
 0x1de   : > { %v2281_v19 = vmax.f32 %v2171_v57, 0.0 }
 0x1df   : > { %v2175_v7 = vpop.f32.mrb[2].mxu1 }
 0x1e0   : > { %2332 = vst.msk [vmem:[#allocation2 + $0xa9] sm:$0xff] %vm387_vm0, %v2281_v19  ;;  %v2176_v63 = vadd.f32 %v14441_v9, %v2175_v7  ;;  %v2177_v59 = vpop.f32.mrb[3].mxu1  ;;  %v2577_v19 = vld [vmem:[#allocation2 + $0x39] sm:$0xff] }
 0x1e2   : > { %v2282_v53 = vmax.f32 %v2176_v63, 0.0  ;;  %v11279_v63 = vpack.i.bf16 %v2577_v19, %v2576_v2 }
 0x1e4   : > { %2333 = vst.msk [vmem:[#allocation2 + $0xb1] sm:$0xff] %vm387_vm0, %v2282_v53  ;;  %v14574_v53 = vld [vmem:[#allocation2 + $0x3a] sm:$0xff] }
 0x1e5   : > { %v11294_v62 = vpack.i.bf16 %v14574_v53, %v14467_v36 }
 0x1e7   : > { %v2554_v18 = vld [vmem:[#allocation2 + $0xa8] sm:$0xff] }
 0x1e8   : > { %v2586_v4 = vld [vmem:[#allocation2 + $0xa9] sm:$0xff] }
 0x1ea   : > { %v2180_v34 = vpop.f32.mrb[4].mxu1 }
 0x1eb   : > { %v2181_v3 = vadd.f32 %v14441_v9, %v2180_v34  ;;  %v2555_v15 = vld [vmem:[#allocation2 + $0xb0] sm:$0xff]  ;;  %v2182_v37 = vpop.f32.mrb[5].mxu1 }
 0x1ec   : > { %v2587_v50 = vld [vmem:[#allocation2 + $0xb1] sm:$0xff]  ;;  %v11239_v49 = vpack.i.bf16 %v2555_v15, %v2554_v18 }
 0x1ed   : > { %v11244_v39 = vpack.i.bf16 %v2587_v50, %v2586_v4  ;;  %v2283_v14 = vmax.f32 %v2181_v3, 0.0  ;;  %v2524_v55 = vld [vmem:[#allocation2 + $0xaa] sm:$0xff]  ;;  %v2525_v47 = vld [vmem:[#allocation2 + $0xb2] sm:$0xff] }
 0x1ee   : > { %11240 = vrot.lane.b32.xlu0 %v11239_v49, %s13440_s26  ;;  %v2185_v46 = vpop.f32.mrb[6].mxu1  ;;  %v11259_v61 = vpack.i.bf16 %v2525_v47, %v2524_v55  ;;  %v2578_v55 = vld [vmem:[#allocation2 + $0x49] sm:$0xff] }
 0x1ef   : > { %11245 = vrot.lane.b32.xlu1 %v11244_v39, %s13439_s25  ;;  %2334 = vst.msk [vmem:[#allocation2 + $0xc1] sm:$0xff] %vm387_vm0, %v2283_v14  ;;  %v2186_v51 = vadd.f32 %v14441_v9, %v2185_v46  ;;  %v2187_v52 = vpop.f32.mrb[7].mxu1  ;;  %v14597_v46 = vld [vmem:[#allocation2 + $0x48] sm:$0xff] }
 0x1f0   : > { %v11344_v52 = vpack.i.bf16 %v14593_v1, %v14597_v46 }
 0x1f1   : > { %v2284_v20 = vmax.f32 %v2186_v51, 0.0 }
 0x1f2   : > { %11250 = vrot.lane.b32.xlu0 %v11239_v49, %s13436_s14 }
 0x1f3   : > { %11255 = vrot.lane.b32.xlu1 %v11244_v39, %s13438_s24  ;;  %2335 = vst.msk [vmem:[#allocation2 + $0xc9] sm:$0xff] %vm387_vm0, %v2284_v20 }
 0x1f6   : > { %11260 = vrot.lane.b32.xlu0 %v11259_v61, %s13437_s16  ;;  %v2556_v42 = vld [vmem:[#allocation2 + $0xc0] sm:$0xff] }
 0x1f7   : > { %11265 = vrot.lane.b32.xlu1 %v11244_v39, %s13434_s22  ;;  %v2190_v60 = vpop.f32.mrb[8].mxu1  ;;  %v2588_v6 = vld [vmem:[#allocation2 + $0xc1] sm:$0xff] }
 0x1f8   : > { %v2191_v57 = vadd.f32 %v14441_v9, %v2190_v60  ;;  %v2192_v30 = vpop.f32.mrb[9].mxu1 }
 0x1f9   : > { %v14608_v30 = vld [vmem:[#allocation2 + $0x52] sm:$0xff] }
 0x1fa   : > { %11270 = vrot.lane.b32.xlu0 %v11259_v61, %s13435_s28  ;;  %v2285_v7 = vmax.f32 %v2191_v57, 0.0  ;;  %v2557_v17 = vld [vmem:[#allocation2 + $0xc8] sm:$0xff]  ;;  %v11349_v61 = vpack.i.bf16 %v2579_v40, %v2578_v55 }
 0x1fb   : > { %11275 = vrot.lane.b32.xlu1 %v11274_v0, %s13440_s26  ;;  %v2195_v54 = vpop.f32.mrb[10].mxu1  ;;  %v2589_v44 = vld [vmem:[#allocation2 + $0xc9] sm:$0xff]  ;;  %v11309_v15 = vpack.i.bf16 %v2557_v17, %v2556_v42 }
 0x1fc   : > { %2336 = vst.msk [vmem:[#allocation2 + $0xd9] sm:$0xff] %vm387_vm0, %v2285_v7  ;;  %v2196_v59 = vadd.f32 %v14441_v9, %v2195_v54  ;;  %v2197_v38 = vpop.f32.mrb[11].mxu1  ;;  %v11314_v36 = vpack.i.bf16 %v2589_v44, %v2588_v6  ;;  %v2526_v39 = vld [vmem:[#allocation2 + $0xc2] sm:$0xff]  ;;  %v2527_v48 = vld [vmem:[#allocation2 + $0xca] sm:$0xff] }
 0x1fd   : > { %v11329_v14 = vpack.i.bf16 %v2527_v48, %v2526_v39  ;;  %v14606_v57 = vld [vmem:[#allocation2 + $0x4a] sm:$0xff]  ;;  %v14634_v55 = vld [vmem:[#allocation2 + $0x62] sm:$0xff] }
 0x1fe   : > { %11280 = vrot.lane.b32.xlu0 %v11279_v63, %s13439_s25  ;;  %v2286_v43 = vmax.f32 %v2196_v59, 0.0  ;;  %v11364_v7 = vpack.i.bf16 %v14608_v30, %v14606_v57 }
 0x1ff   : > { %11285 = vrot.lane.b32.xlu1 %v11274_v0, %s13436_s14 }
 0x200   : > { %2337 = vst.msk [vmem:[#allocation2 + $0xe1] sm:$0xff] %vm387_vm0, %v2286_v43 }
 0x202   : > { %11290 = vrot.lane.b32.xlu0 %v11279_v63, %s13438_s24 }
 0x203   : > { %11295 = vrot.lane.b32.xlu1 %v11294_v62, %s13437_s16  ;;  %v2590_v2 = vld [vmem:[#allocation2 + $0xd9] sm:$0xff] }
 0x206   : > { %11300 = vrot.lane.b32.xlu0 %v11279_v63, %s13434_s22  ;;  %v2200_v34 = vpop.f32.mrb[12].mxu1  ;;  %v2558_v63 = vld [vmem:[#allocation2 + $0xd8] sm:$0xff] }
 0x207   : > { %11305 = vrot.lane.b32.xlu1 %v11294_v62, %s13435_s28  ;;  %v2201_v18 = vadd.f32 %v14441_v9, %v2200_v34  ;;  %v2202_v3 = vpop.f32.mrb[13].mxu1  ;;  %v2591_v54 = vld [vmem:[#allocation2 + $0xe1] sm:$0xff] }
 0x208   : > { %v2559_v59 = vld [vmem:[#allocation2 + $0xe0] sm:$0xff]  ;;  %v11384_v42 = vpack.i.bf16 %v2591_v54, %v2590_v2 }
 0x209   : > { %v2287_v4 = vmax.f32 %v2201_v18, 0.0  ;;  %v11379_v17 = vpack.i.bf16 %v2559_v59, %v2558_v63  ;;  %v2528_v3 = vld [vmem:[#allocation2 + $0xda] sm:$0xff] }
 0x20a   : > { %11315 = vrot.lane.b32.xlu0 %v11314_v36, %s13439_s25  ;;  %v2205_v50 = vpop.f32.mrb[14].mxu1 }
 0x20b   : > { %11310 = vrot.lane.b32.xlu1 %v11309_v15, %s13440_s26  ;;  %2338 = vst.msk [vmem:[#allocation2 + $0xf1] sm:$0xff] %vm387_vm0, %v2287_v4  ;;  %v2206_v37 = vadd.f32 %v14441_v9, %v2205_v50  ;;  %v2207_v49 = vpop.f32.mrb[15].mxu1  ;;  %v2549_v50 = vld [vmem:[#allocation2 + $0x68] sm:$0xff] }
 0x20d   : > { %v2288_v41 = vmax.f32 %v2206_v37, 0.0  ;;  %v2548_v37 = vld [vmem:[#allocation2 + $0x60] sm:$0xff] }
 0x20e   : > { %11325 = vrot.lane.b32.xlu0 %v11314_v36, %s13438_s24  ;;  %v11414_v39 = vpack.i.bf16 %v2549_v50, %v2548_v37 }
 0x20f   : > { %11320 = vrot.lane.b32.xlu1 %v11309_v15, %s13436_s14  ;;  %2339 = vst.msk [vmem:[#allocation2 + $0xf9] sm:$0xff] %vm387_vm0, %v2288_v41  ;;  %v2529_v15 = vld [vmem:[#allocation2 + $0xe2] sm:$0xff] }
 0x210   : > { %v11399_v4 = vpack.i.bf16 %v2529_v15, %v2528_v3  ;;  %v2551_v15 = vld [vmem:[#allocation2 + $0x80] sm:$0xff] }
 0x212   : > { %11335 = vrot.lane.b32.xlu0 %v11314_v36, %s13434_s22 }
 0x213   : > { %11330 = vrot.lane.b32.xlu1 %v11329_v14, %s13437_s16  ;;  %v2210_v51 = vpop.f32.mrb[16].mxu1 }
 0x214   : > { %v2211_v13 = vadd.f32 %v14441_v9, %v2210_v51  ;;  %v2212_v58 = vpop.f32.mrb[17].mxu1 }
 0x216   : > { %11345 = vrot.lane.b32.xlu0 %v11344_v52, %s13440_s26  ;;  %v2289_v20 = vmax.f32 %v2211_v13, 0.0  ;;  %v2593_v2 = vld [vmem:[#allocation2 + $0xf9] sm:$0xff] }
 0x217   : > { %11340 = vrot.lane.b32.xlu1 %v11329_v14, %s13435_s28  ;;  %v2215_v47 = vpop.f32.mrb[18].mxu1  ;;  %v2581_v14 = vld [vmem:[#allocation2 + $0x69] sm:$0xff] }
 0x218   : > { %2340 = vst.msk [vmem:[#allocation2 + $0x109] sm:$0xff] %vm387_vm0, %v2289_v20  ;;  %v2216_v60 = vadd.f32 %v14441_v9, %v2215_v47  ;;  %v2217_v0 = vpop.f32.mrb[19].mxu1  ;;  %v2519_v47 = vld [vmem:[#allocation2 + $0x6a] sm:$0xff] }
 0x219   : > { %v2560_v0 = vld [vmem:[#allocation2 + $0xf0] sm:$0xff] }
 0x21a   : > { %11355 = vrot.lane.b32.xlu0 %v11344_v52, %s13436_s14  ;;  %v2290_v19 = vmax.f32 %v2216_v60, 0.0  ;;  %v2580_v52 = vld [vmem:[#allocation2 + $0x61] sm:$0xff]  ;;  %v11434_v60 = vpack.i.bf16 %v2519_v47, %v14634_v55 }
 0x21b   : > { %11350 = vrot.lane.b32.xlu1 %v11349_v61, %s13439_s25  ;;  %v11419_v58 = vpack.i.bf16 %v2581_v14, %v2580_v52  ;;  %v14659_v14 = vpop.permute.xlu1 %11210  ;;  %v14665_v47 = vld [vmem:[#allocation2 + $0x7a] sm:$0xff] }
 0x21c   : > { %2341 = vst.msk [vmem:[#allocation2 + $0x111] sm:$0xff] %vm387_vm0, %v2290_v19  ;;  %v2561_v19 = vld [vmem:[#allocation2 + $0xf8] sm:$0xff] }
 0x21e   : > { %11365 = vrot.lane.b32.xlu0 %v11364_v7, %s13437_s16 }
 0x21f   : > { %11360 = vrot.lane.b32.xlu1 %v11349_v61, %s13438_s24 }
 0x222   : > { %11375 = vrot.lane.b32.xlu0 %v11364_v7, %s13435_s28  ;;  %v2220_v38 = vpop.f32.mrb[20].mxu1  ;;  %v2592_v7 = vld [vmem:[#allocation2 + $0xf1] sm:$0xff] }
 0x223   : > { %11370 = vrot.lane.b32.xlu1 %v11349_v61, %s13434_s22  ;;  %v2221_v43 = vadd.f32 %v14441_v9, %v2220_v38  ;;  %v2222_v62 = vpop.f32.mrb[21].mxu1  ;;  %v11449_v38 = vpack.i.bf16 %v2561_v19, %v2560_v0  ;;  %v14671_v19 = vpop.permute.xlu1 %11220 }
 0x225   : > { %v2291_v6 = vmax.f32 %v2221_v43, 0.0  ;;  %v11454_v43 = vpack.i.bf16 %v2593_v2, %v2592_v7  ;;  %v2594_v2 = vld [vmem:[#allocation2 + $0x109] sm:$0xff] }
 0x226   : > { %11380 = vrot.lane.b32.xlu0 %v11379_v17, %s13440_s26  ;;  %v2225_v44 = vpop.f32.mrb[22].mxu1 }
 0x227   : > { %11385 = vrot.lane.b32.xlu1 %v11384_v42, %s13439_s25  ;;  %2342 = vst.msk [vmem:[#allocation2 + $0x121] sm:$0xff] %vm387_vm0, %v2291_v6  ;;  %v2226_v34 = vadd.f32 %v14441_v9, %v2225_v44  ;;  %v2227_v18 = vpop.f32.mrb[23].mxu1  ;;  %v2530_v44 = vld [vmem:[#allocation2 + $0xf2] sm:$0xff] }
 0x229   : > { %v2292_v36 = vmax.f32 %v2226_v34, 0.0  ;;  %v2531_v34 = vld [vmem:[#allocation2 + $0xfa] sm:$0xff] }
 0x22a   : > { %11390 = vrot.lane.b32.xlu0 %v11379_v17, %s13436_s14  ;;  %v11469_v3 = vpack.i.bf16 %v2531_v34, %v2530_v44  ;;  %v2553_v34 = vld [vmem:[#allocation2 + $0x98] sm:$0xff] }
 0x22b   : > { %11395 = vrot.lane.b32.xlu1 %v11384_v42, %s13438_s24  ;;  %2343 = vst.msk [vmem:[#allocation2 + $0x129] sm:$0xff] %vm387_vm0, %v2292_v36  ;;  %v14652_v36 = vpop.permute.xlu0 %11205 }
 0x22e   : > { %11400 = vrot.lane.b32.xlu0 %v11399_v4, %s13437_s16 }
 0x22f   : > { %11405 = vrot.lane.b32.xlu1 %v11384_v42, %s13434_s22  ;;  %v2230_v49 = vpop.f32.mrb[24].mxu1 }
 0x230   : > { %v2231_v48 = vadd.f32 %v14441_v9, %v2230_v49  ;;  %v2232_v41 = vpop.f32.mrb[25].mxu1 }
 0x232   : > { %11410 = vrot.lane.b32.xlu0 %v11399_v4, %s13435_s28  ;;  %v2293_v51 = vmax.f32 %v2231_v48, 0.0  ;;  %v2550_v4 = vld [vmem:[#allocation2 + $0x78] sm:$0xff]  ;;  %v2583_v48 = vld [vmem:[#allocation2 + $0x81] sm:$0xff] }
 0x233   : > { %11415 = vrot.lane.b32.xlu1 %v11414_v39, %s13440_s26  ;;  %v2235_v13 = vpop.f32.mrb[26].mxu1  ;;  %v11484_v37 = vpack.i.bf16 %v2551_v15, %v2550_v4  ;;  %v2552_v15 = vld [vmem:[#allocation2 + $0x90] sm:$0xff] }
 0x234   : > { %2344 = vst.msk [vmem:[#allocation2 + $0x139] sm:$0xff] %vm387_vm0, %v2293_v51  ;;  %v2236_v40 = vadd.f32 %v14441_v9, %v2235_v13  ;;  %v2237_v20 = vpop.f32.mrb[27].mxu1  ;;  %v2582_v51 = vld [vmem:[#allocation2 + $0x79] sm:$0xff]  ;;  %v14661_v13 = vpop.permute.xlu0 %11215 }
 0x236   : > { %11420 = vrot.lane.b32.xlu0 %v11419_v58, %s13439_s25  ;;  %v2294_v61 = vmax.f32 %v2236_v40, 0.0 }
 0x237   : > { %11425 = vrot.lane.b32.xlu1 %v11414_v39, %s13436_s14 }
 0x238   : > { %2345 = vst.msk [vmem:[#allocation2 + $0x141] sm:$0xff] %vm387_vm0, %v2294_v61  ;;  %v2521_v61 = vld [vmem:[#allocation2 + $0x82] sm:$0xff]  ;;  %v14673_v7 = vpop.permute.xlu0 %11225 }
 0x239   : > { %v11504_v0 = vpack.i.bf16 %v2521_v61, %v14665_v47  ;;  %v14703_v61 = vld [vmem:[#allocation2 + $0x92] sm:$0xff] }
 0x23a   : > { %11430 = vrot.lane.b32.xlu0 %v11419_v58, %s13438_s24 }
 0x23b   : > { %11435 = vrot.lane.b32.xlu1 %v11434_v60, %s13437_s16 }
 0x23e   : > { %11440 = vrot.lane.b32.xlu0 %v11419_v58, %s13434_s22  ;;  %v2240_v54 = vpop.f32.mrb[28].mxu1  ;;  %v11489_v58 = vpack.i.bf16 %v2583_v48, %v2582_v51  ;;  %v2585_v48 = vld [vmem:[#allocation2 + $0x99] sm:$0xff]  ;;  %v11207_v51 = vunpack.i.l.bf16 %v14652_v36 }
 0x23f   : > { %11445 = vrot.lane.b32.xlu1 %v11434_v60, %s13435_s28  ;;  %v2241_v63 = vadd.f32 %v14441_v9, %v2240_v54  ;;  %v2242_v59 = vpop.f32.mrb[29].mxu1  ;;  %v2595_v54 = vld [vmem:[#allocation2 + $0x111] sm:$0xff]  ;;  %v2536_v35 = vld [vmem:[#allocation2 + $0x13a] sm:$0xff]  ;;  %v2537_v33 = vld [vmem:[#allocation2 + $0x142] sm:$0xff] }
 0x240   : > { %v2563_v59 = vld [vmem:[#allocation2 + $0x110] sm:$0xff] }
 0x241   : > { %v2295_v62 = vmax.f32 %v2241_v63, 0.0  ;;  %v2562_v63 = vld [vmem:[#allocation2 + $0x108] sm:$0xff] }
 0x242   : > { %11455 = vrot.lane.b32.xlu0 %v11454_v43, %s13439_s25  ;;  %v2245_v42 = vpop.f32.mrb[30].mxu1  ;;  %v11519_v44 = vpack.i.bf16 %v2563_v59, %v2562_v63  ;;  %v2353_v63 = vld [vmem:[#allocation2 + $0x8] sm:$0xff] }
 0x243   : > { %11450 = vrot.lane.b32.xlu1 %v11449_v38, %s13440_s26  ;;  %2346 = vst.msk [vmem:[#allocation2 + $0x151] sm:$0xff] %vm387_vm0, %v2295_v62  ;;  %v2246_v17 = vadd.f32 %v14441_v9, %v2245_v42  ;;  %v2247_v6 = vpop.f32.mrb[31].mxu1  ;;  %v14680_v42 = vpop.permute.xlu1 %11230 }
 0x244   : > { %v14684_v6 = vpack.i.bf16 %v2595_v54, %v2594_v2  ;;  %v11208_v2 = vunpack.i.h.bf16 %v14652_v36 }
 0x245   : > { %v2296_v18 = vmax.f32 %v2246_v17, 0.0  ;;  %v14682_v17 = vpop.permute.xlu0 %11235 }
 0x246   : > { %11465 = vrot.lane.b32.xlu0 %v11454_v43, %s13438_s24  ;;  %v3537_v36 = vsel %vm387_vm0, %v2353_v63, %v11208_v2 }
 0x247   : > { %11460 = vrot.lane.b32.xlu1 %v11449_v38, %s13436_s14  ;;  %2347 = vst.msk [vmem:[#allocation2 + $0x159] sm:$0xff] %vm387_vm0, %v2296_v18 }
 0x24a   : > { %11475 = vrot.lane.b32.xlu0 %v11454_v43, %s13434_s22 }
 0x24b   : > { %11470 = vrot.lane.b32.xlu1 %v11469_v3, %s13437_s16  ;;  %v2250_v50 = vpop.f32.mrb[32].mxu1 }
 0x24c   : > { %v2251_v49 = vadd.f32 %v14441_v9, %v2250_v50  ;;  %v2252_v39 = vpop.f32.mrb[33].mxu1 }
 0x24d   : > { %v11534_v39 = vpack.i.bf16 %v2553_v34, %v2552_v15 }
 0x24e   : > { %11485 = vrot.lane.b32.xlu0 %v11484_v37, %s13440_s26  ;;  %v2297_v41 = vmax.f32 %v2251_v49, 0.0 }
 0x24f   : > { %11480 = vrot.lane.b32.xlu1 %v11469_v3, %s13435_s28  ;;  %v2255_v52 = vpop.f32.mrb[34].mxu1 }
 0x250   : > { %2348 = vst.msk [vmem:[#allocation2 + $0x169] sm:$0xff] %vm387_vm0, %v2297_v41  ;;  %v2256_v40 = vadd.f32 %v14441_v9, %v2255_v52  ;;  %v2257_v20 = vpop.f32.mrb[35].mxu1  ;;  %v2584_v52 = vld [vmem:[#allocation2 + $0x91] sm:$0xff] }
 0x252   : > { %11495 = vrot.lane.b32.xlu0 %v11484_v37, %s13436_s14  ;;  %v2298_v60 = vmax.f32 %v2256_v40, 0.0 }
 0x253   : > { %11490 = vrot.lane.b32.xlu1 %v11489_v58, %s13439_s25 }
 0x254   : > { %2349 = vst.msk [vmem:[#allocation2 + $0x171] sm:$0xff] %vm387_vm0, %v2298_v60  ;;  %v2523_v60 = vld [vmem:[#allocation2 + $0x9a] sm:$0xff] }
 0x256   : > { %11505 = vrot.lane.b32.xlu0 %v11504_v0, %s13437_s16 }
 0x257   : > { %11500 = vrot.lane.b32.xlu1 %v11489_v58, %s13438_s24 }
 0x25a   : > { %11515 = vrot.lane.b32.xlu0 %v11504_v0, %s13435_s28  ;;  %v2260_v38 = vpop.f32.mrb[36].mxu1  ;;  %v11212_v0 = vunpack.i.l.bf16 %v14659_v14 }
 0x25b   : > { %11510 = vrot.lane.b32.xlu1 %v11489_v58, %s13434_s22  ;;  %v2261_v43 = vadd.f32 %v14441_v9, %v2260_v38  ;;  %v2262_v62 = vpop.f32.mrb[37].mxu1  ;;  %v2352_v58 = vld [vmem:[#allocation2] sm:$0xff]  ;;  %v14873_v29 = vld [vmem:[#allocation2 + $0x172] sm:$0xff] }
 0x25c   : > { %v3536_v54 = vsel %vm387_vm0, %v2352_v58, %v11207_v51  ;;  %v11217_v62 = vunpack.i.l.bf16 %v14661_v13 }
 0x25d   : > { %v2299_v18 = vmax.f32 %v2261_v43, 0.0  ;;  %v11554_v43 = vpack.i.bf16 %v2523_v60, %v14703_v61  ;;  %v3568_v34 = vsel %vm1744_vm2, %v3536_v54, %v11212_v0  ;;  %v11228_v54 = vunpack.i.h.bf16 %v14673_v7 }
 0x25e   : > { %11520 = vrot.lane.b32.xlu0 %v11519_v44, %s13440_s26  ;;  %v2265_v3 = vpop.f32.mrb[38].mxu1 }
 0x25f   : > { %11525 = vrot.lane.b32.xlu1 %v14684_v6, %s13439_s25  ;;  %2350 = vst.msk [vmem:[#allocation2 + $0x181] sm:$0xff] %vm387_vm0, %v2299_v18  ;;  %v2266_v4 = vadd.f32 %v14441_v9, %v2265_v3  ;;  %v2267_v50 = vpop.f32.mrb[39].mxu1  ;;  %v11539_v9 = vpack.i.bf16 %v2585_v48, %v2584_v52  ;;  %v11222_v18 = vunpack.i.l.bf16 %v14671_v19  ;;  %v2533_v48 = vld [vmem:[#allocation2 + $0x112] sm:$0xff]  ;;  %v11223_v52 = vunpack.i.h.bf16 %v14671_v19 }
 0x260   : > { %v14691_v37 = vpop.permute.xlu0 %11240  ;;  %v3600_v50 = vsel %vm1777_vm3, %v3568_v34, %v11217_v62 }
 0x261   : > { %v14693_v49 = vpop.permute.xlu1 %11245  ;;  %v2300_v41 = vmax.f32 %v2266_v4, 0.0  ;;  %v11218_v4 = vunpack.i.h.bf16 %v14661_v13  ;;  %v3632_v58 = vsel %vm1810_vm4, %v3600_v50, %v11222_v18  ;;  %v2596_v50 = vld [vmem:[#allocation2 + $0x121] sm:$0xff] }
 0x262   : > { %11530 = vrot.lane.b32.xlu0 %v11519_v44, %s13436_s14  ;;  %v11213_v44 = vunpack.i.h.bf16 %v14659_v14  ;;  %v2532_v14 = vld [vmem:[#allocation2 + $0x10a] sm:$0xff] }
 0x263   : > { %11535 = vrot.lane.b32.xlu1 %v11534_v39, %s13440_s26  ;;  %2351 = vst.msk [vmem:[#allocation2 + $0x189] sm:$0xff] %vm387_vm0, %v2300_v41  ;;  %v11569_v0 = vpack.i.bf16 %v2533_v48, %v2532_v14 }
 0x264   : > { %v14698_v40 = vpop.permute.xlu0 %11250  ;;  %v3569_v41 = vsel %vm1744_vm2, %v3537_v36, %v11213_v44 }
 0x265   : > { %v14700_v20 = vpop.permute.xlu1 %11255  ;;  %v3601_v2 = vsel %vm1777_vm3, %v3569_v41, %v11218_v4  ;;  %v2564_v4 = vld [vmem:[#allocation2 + $0x120] sm:$0xff] }
 0x266   : > { %11540 = vrot.lane.b32.xlu0 %v11539_v9, %s13439_s25 }
 0x267   : > { %11545 = vrot.lane.b32.xlu1 %v11534_v39, %s13436_s14  ;;  %v11227_v39 = vunpack.i.l.bf16 %v14673_v7  ;;  %v3633_v7 = vsel %vm1810_vm4, %v3601_v2, %v11223_v52 }
 0x268   : > { %v14710_v59 = vpop.permute.xlu0 %11260 }
 0x269   : > { %v14712_v38 = vpop.permute.xlu1 %11265  ;;  %v3664_v63 = vsel %vm1843_vm5, %v3632_v58, %v11227_v39  ;;  %v2597_v39 = vld [vmem:[#allocation2 + $0x129] sm:$0xff] }
 0x26a   : > { %11550 = vrot.lane.b32.xlu0 %v11539_v9, %s13438_s24  ;;  %v11594_v52 = vpack.i.bf16 %v2597_v39, %v2596_v50  ;;  %v11233_v39 = vunpack.i.h.bf16 %v14680_v42 }
 0x26b   : > { %11555 = vrot.lane.b32.xlu1 %v11554_v43, %s13437_s16 }
 0x26c   : > { %v14722_v3 = vpop.permute.xlu0 %11270 }
 0x26d   : > { %v11276_v15 = vpop.permute.xlu1 %11275 }
 0x26e   : > { %v11277_v51 = vunpack.i.l.bf16 %v11276_v15  ;;  %11565 = vrot.lane.b32.xlu0 %v11539_v9, %s13434_s22  ;;  %v11278_v44 = vunpack.i.h.bf16 %v11276_v15  ;;  %v2565_v15 = vld [vmem:[#allocation2 + $0x128] sm:$0xff] }
 0x26f   : > { %11560 = vrot.lane.b32.xlu1 %v14684_v6, %s13438_s24 }
 0x270   : > { %v11281_v60 = vpop.permute.xlu0 %11280  ;;  %v3696_v19 = vsel %vm1876_vm6, %v3664_v63, %v11277_v51 }
 0x271   : > { %v14733_v13 = vpop.permute.xlu1 %11285  ;;  %v11282_v62 = vunpack.i.l.bf16 %v11281_v60  ;;  %v11283_v9 = vunpack.i.h.bf16 %v11281_v60  ;;  %v2534_v60 = vld [vmem:[#allocation2 + $0x122] sm:$0xff] }
 0x272   : > { %11570 = vrot.lane.b32.xlu0 %v11569_v0, %s13437_s16 }
 0x273   : > { %11575 = vrot.lane.b32.xlu1 %v11554_v43, %s13435_s28  ;;  %v3728_v34 = vsel %vm1909_vm7, %v3696_v19, %v11282_v62  ;;  %v3665_v43 = vsel %vm1843_vm5, %v3633_v7, %v11228_v54  ;;  %v2567_v62 = vld [vmem:[#allocation2 + $0x140] sm:$0xff]  ;;  %v11237_v19 = vunpack.i.l.bf16 %v14682_v17 }
 0x274   : > { %3927 = vmatmul.mubr.f32.vlgmr.msra.gmra.mrb[40].mxu1 %v3728_v34  ;;  %v14742_v36 = vpop.permute.xlu0 %11290  ;;  %v3697_v14 = vsel %vm1876_vm6, %v3665_v43, %v11278_v44  ;;  %v11232_v44 = vunpack.i.l.bf16 %v14680_v42  ;;  %v2598_v43 = vld [vmem:[#allocation2 + $0x139] sm:$0xff] }
 0x275   : > { %v14744_v18 = vpop.permute.xlu1 %11295  ;;  %10248 = vmatprep.mubr.msk.f32.mxu1 %vm387_vm0, %v14574_v53  ;;  %v3729_v48 = vsel %vm1909_vm7, %v3697_v14, %v11283_v9  ;;  %v11589_v53 = vpack.i.bf16 %v2565_v15, %v2564_v4  ;;  %v11287_v4 = vunpack.i.l.bf16 %v14733_v13  ;;  %v2599_v15 = vld [vmem:[#allocation2 + $0x141] sm:$0xff]  ;;  %v11292_v50 = vunpack.i.l.bf16 %v14742_v36 }
 0x276   : > { %11585 = vrot.lane.b32.xlu0 %v11569_v0, %s13435_s28  ;;  %v2535_v0 = vld [vmem:[#allocation2 + $0x12a] sm:$0xff]  ;;  %v3538_v14 = vsel %vm387_vm0, %v14452_v45, %v11232_v44  ;;  %v11293_v42 = vunpack.i.h.bf16 %v14742_v36  ;;  %v11298_v36 = vunpack.i.h.bf16 %v14744_v18 }
 0x277   : > { %11580 = vrot.lane.b32.xlu1 %v14684_v6, %s13434_s22  ;;  %v11609_v63 = vpack.i.bf16 %v2535_v0, %v2534_v60  ;;  %v11629_v0 = vpack.i.bf16 %v2599_v15, %v2598_v43  ;;  %v11644_v43 = vpack.i.bf16 %v2537_v33, %v2536_v35 }
 0x278   : > { %3932 = vmatmul.mubr.f32.gmra.mrb[42].mxu1 %v3729_v48  ;;  %v14757_v51 = vpop.permute.xlu0 %11300  ;;  %v11238_v48 = vunpack.i.h.bf16 %v14682_v17  ;;  %v3539_v17 = vsel %vm387_vm0, %v14454_v8, %v11233_v39 }
 0x279   : > { %v14755_v41 = vpop.permute.xlu1 %11305  ;;  %10249 = vmatprep.mubr.msk.f32.mxu1 %vm387_vm0, %v14606_v57  ;;  %v2566_v57 = vld [vmem:[#allocation2 + $0x138] sm:$0xff] }
 0x27a   : > { %11595 = vrot.lane.b32.xlu0 %v11594_v52, %s13439_s25  ;;  %v11624_v7 = vpack.i.bf16 %v2567_v62, %v2566_v57  ;;  %v11288_v57 = vunpack.i.h.bf16 %v14733_v13  ;;  %v3571_v13 = vsel %vm1744_vm2, %v3539_v17, %v11238_v48 }
 0x27b   : > { %11590 = vrot.lane.b32.xlu1 %v11589_v53, %s13440_s26 }
 0x27c   : > { %v14765_v58 = vpop.permute.xlu0 %11315  ;;  %v3603_v15 = vsel %vm1777_vm3, %v3571_v13, %v11288_v57  ;;  %v2600_v57 = vld [vmem:[#allocation2 + $0x151] sm:$0xff] }
 0x27d   : > { %v14763_v6 = vpop.permute.xlu1 %11310 }
 0x27e   : > { %11605 = vrot.lane.b32.xlu0 %v11594_v52, %s13438_s24 }
 0x27f   : > { %11600 = vrot.lane.b32.xlu1 %v11589_v53, %s13436_s14  ;;  %v3570_v53 = vsel %vm1744_vm2, %v3538_v14, %v11237_v19 }
 0x280   : > { %v14771_v54 = vpop.permute.xlu0 %11325  ;;  %v3602_v62 = vsel %vm1777_vm3, %v3570_v53, %v11287_v4  ;;  %v3635_v53 = vsel %vm1810_vm4, %v3603_v15, %v11293_v42  ;;  %v14837_v15 = vld [vmem:[#allocation2 + $0x15a] sm:$0xff] }
 0x281   : > { %v14769_v2 = vpop.permute.xlu1 %11320  ;;  %v3634_v45 = vsel %vm1810_vm4, %v3602_v62, %v11292_v50  ;;  %v3667_v48 = vsel %vm1843_vm5, %v3635_v53, %v11298_v36  ;;  %v2570_v53 = vld [vmem:[#allocation2 + $0x168] sm:$0xff] }
 0x282   : > { %11615 = vrot.lane.b32.xlu0 %v11594_v52, %s13434_s22 }
 0x283   : > { %11610 = vrot.lane.b32.xlu1 %v11609_v63, %s13437_s16 }
 0x284   : > { %v14779_v34 = vpop.permute.xlu0 %11335 }
 0x285   : > { %v14777_v9 = vpop.permute.xlu1 %11330 }
 0x286   : > { %11625 = vrot.lane.b32.xlu0 %v11624_v7, %s13440_s26 }
 0x287   : > { %11620 = vrot.lane.b32.xlu1 %v11609_v63, %s13435_s28  ;;  %v11297_v63 = vunpack.i.l.bf16 %v14744_v18  ;;  %v2568_v18 = vld [vmem:[#allocation2 + $0x150] sm:$0xff] }
 0x288   : > { %v11346_v60 = vpop.permute.xlu0 %11345 }
 0x289   : > { %v14790_v52 = vpop.permute.xlu1 %11340  ;;  %v11347_v44 = vunpack.i.l.bf16 %v11346_v60  ;;  %v3666_v50 = vsel %vm1843_vm5, %v3634_v45, %v11297_v63  ;;  %v11348_v62 = vunpack.i.h.bf16 %v11346_v60  ;;  %v2569_v60 = vld [vmem:[#allocation2 + $0x158] sm:$0xff] }
 0x28a   : > { %11635 = vrot.lane.b32.xlu0 %v11624_v7, %s13436_s14  ;;  %v2601_v63 = vld [vmem:[#allocation2 + $0x159] sm:$0xff]  ;;  %v11659_v13 = vpack.i.bf16 %v2569_v60, %v2568_v18 }
 0x28b   : > { %11630 = vrot.lane.b32.xlu1 %v11629_v0, %s13439_s25  ;;  %v3698_v8 = vsel %vm1876_vm6, %v3666_v50, %v11347_v44  ;;  %v3699_v42 = vsel %vm1876_vm6, %v3667_v48, %v11348_v62  ;;  %v11302_v50 = vunpack.i.l.bf16 %v14757_v51  ;;  %v2571_v62 = vld [vmem:[#allocation2 + $0x170] sm:$0xff]  ;;  %v11303_v48 = vunpack.i.h.bf16 %v14757_v51 }
 0x28c   : > { %v14802_v4 = vpop.permute.xlu0 %11355  ;;  %v11694_v18 = vpack.i.bf16 %v2571_v62, %v2570_v53 }
 0x28d   : > { %v11351_v19 = vpop.permute.xlu1 %11350  ;;  %v3540_v60 = vsel %vm387_vm0, %v14565_v26, %v11302_v50  ;;  %v3541_v26 = vsel %vm387_vm0, %v14561_v56, %v11303_v48  ;;  %v11358_v50 = vunpack.i.h.bf16 %v14802_v4 }
 0x28e   : > { %v11352_v14 = vunpack.i.l.bf16 %v11351_v19  ;;  %11645 = vrot.lane.b32.xlu0 %v11644_v43, %s13437_s16  ;;  %v11353_v7 = vunpack.i.h.bf16 %v11351_v19 }
 0x28f   : > { %11640 = vrot.lane.b32.xlu1 %v11629_v0, %s13438_s24 }
 0x290   : > { %v3730_v39 = vsel %vm1909_vm7, %v3698_v8, %v11352_v14  ;;  %v14814_v35 = vpop.permute.xlu0 %11365  ;;  %v3731_v45 = vsel %vm1909_vm7, %v3699_v42, %v11353_v7  ;;  %v11307_v8 = vunpack.i.l.bf16 %v14755_v41  ;;  %v2603_v42 = vld [vmem:[#allocation2 + $0x171] sm:$0xff] }
 0x291   : > { %v14812_v33 = vpop.permute.xlu1 %11360  ;;  %3937 = vmatmul.mubr.f32.gmra.mrb[44].mxu1 %v3730_v39  ;;  %v11367_v31 = vunpack.i.l.bf16 %v14814_v35 }
 0x292   : > { %10250 = vmatprep.mubr.msk.f32.mxu1 %vm387_vm0, %v14608_v30  ;;  %11655 = vrot.lane.b32.xlu0 %v11644_v43, %s13435_s28  ;;  %v11664_v30 = vpack.i.bf16 %v2601_v63, %v2600_v57  ;;  %v14835_v43 = vld [vmem:[#allocation2 + $0x152] sm:$0xff]  ;;  %v11357_v57 = vunpack.i.l.bf16 %v14802_v4  ;;  %v2602_v63 = vld [vmem:[#allocation2 + $0x169] sm:$0xff] }
 0x293   : > { %11650 = vrot.lane.b32.xlu1 %v11629_v0, %s13434_s22  ;;  %v11699_v51 = vpack.i.bf16 %v2603_v42, %v2602_v63  ;;  %v11368_v42 = vunpack.i.h.bf16 %v14814_v35  ;;  %v2613_v35 = vld [vmem:[#allocation2 + $0x6a] sm:$0xff] }
 0x294   : > { %v14825_v17 = vpop.permute.xlu0 %11375 }
 0x295   : > { %v14823_v44 = vpop.permute.xlu1 %11370  ;;  %3942 = vmatmul.mubr.f32.gmra.mrb[46].mxu1 %v3731_v45  ;;  %v11362_v45 = vunpack.i.l.bf16 %v14812_v33 }
 0x296   : > { %10251 = vmatprep.mubr.msk.f32.mxu1 %vm387_vm0, %v14634_v55  ;;  %11665 = vrot.lane.b32.xlu0 %v11664_v30, %s13439_s25  ;;  %v11679_v55 = vpack.i.bf16 %v14837_v15, %v14835_v43 }
 0x297   : > { %11660 = vrot.lane.b32.xlu1 %v11659_v13, %s13440_s26 }
 0x298   : > { %v14833_v19 = vpop.permute.xlu0 %11380 }
 0x299   : > { %v14831_v0 = vpop.permute.xlu1 %11385 }
 0x29a   : > { %11675 = vrot.lane.b32.xlu0 %v11664_v30, %s13438_s24 }
 0x29b   : > { %11670 = vrot.lane.b32.xlu1 %v11659_v13, %s13436_s14  ;;  %v11308_v13 = vunpack.i.h.bf16 %v14755_v41  ;;  %v11363_v41 = vunpack.i.h.bf16 %v14812_v33 }
 0x29c   : > { %v14843_v14 = vpop.permute.xlu0 %11390 }
 0x29d   : > { %v14841_v36 = vpop.permute.xlu1 %11395  ;;  %v3573_v56 = vsel %vm1744_vm2, %v3541_v26, %v11308_v13 }
 0x29e   : > { %11685 = vrot.lane.b32.xlu0 %v11664_v30, %s13434_s22  ;;  %v3572_v30 = vsel %vm1744_vm2, %v3540_v60, %v11307_v8  ;;  %v3605_v63 = vsel %vm1777_vm3, %v3573_v56, %v11358_v50  ;;  %v2572_v56 = vld [vmem:[#allocation2 + $0x180] sm:$0xff] }
 0x29f   : > { %11680 = vrot.lane.b32.xlu1 %v11679_v55, %s13437_s16  ;;  %v3604_v32 = vsel %vm1777_vm3, %v3572_v30, %v11357_v57 }
 0x2a0   : > { %v14853_v39 = vpop.permute.xlu0 %11400  ;;  %v3636_v8 = vsel %vm1810_vm4, %v3604_v32, %v11362_v45  ;;  %v3637_v45 = vsel %vm1810_vm4, %v3605_v63, %v11363_v41  ;;  %v2604_v41 = vld [vmem:[#allocation2 + $0x181] sm:$0xff] }
 0x2a1   : > { %v14851_v7 = vpop.permute.xlu1 %11405  ;;  %v3668_v32 = vsel %vm1843_vm5, %v3636_v8, %v11367_v31  ;;  %v3669_v31 = vsel %vm1843_vm5, %v3637_v45, %v11368_v42  ;;  %v2605_v8 = vld [vmem:[#allocation2 + $0x189] sm:$0xff]  ;;  %v2574_v42 = vld [vmem:[#allocation2 + $0x198] sm:$0xff] }
 0x2a2   : > { %11695 = vrot.lane.b32.xlu0 %v11694_v18, %s13440_s26 }
 0x2a3   : > { %11690 = vrot.lane.b32.xlu1 %v11679_v55, %s13435_s28  ;;  %v14871_v55 = vld [vmem:[#allocation2 + $0x16a] sm:$0xff] }
 0x2a4   : > { %v14864_v62 = vpop.permute.xlu0 %11410  ;;  %v11714_v57 = vpack.i.bf16 %v14873_v29, %v14871_v55 }
 0x2a5   : > { %v11416_v53 = vpop.permute.xlu1 %11415 }
 0x2a6   : > { %v11417_v60 = vunpack.i.l.bf16 %v11416_v53  ;;  %11705 = vrot.lane.b32.xlu0 %v11694_v18, %s13436_s14  ;;  %v11418_v30 = vunpack.i.h.bf16 %v11416_v53  ;;  %v2573_v53 = vld [vmem:[#allocation2 + $0x188] sm:$0xff] }
 0x2a7   : > { %11700 = vrot.lane.b32.xlu1 %v11699_v51, %s13439_s25 }
 0x2a8   : > { %v11421_v48 = vpop.permute.xlu0 %11420  ;;  %v3700_v18 = vsel %vm1876_vm6, %v3668_v32, %v11417_v60  ;;  %v3701_v60 = vsel %vm1876_vm6, %v3669_v31, %v11418_v30  ;;  %v11729_v32 = vpack.i.bf16 %v2573_v53, %v2572_v56  ;;  %v11373_v53 = vunpack.i.h.bf16 %v14823_v44 }
 0x2a9   : > { %v14880_v4 = vpop.permute.xlu1 %11425  ;;  %v11422_v33 = vunpack.i.l.bf16 %v11421_v48  ;;  %v11423_v13 = vunpack.i.h.bf16 %v11421_v48 }
 0x2aa   : > { %11715 = vrot.lane.b32.xlu0 %v11714_v57, %s13437_s16  ;;  %v11428_v25 = vunpack.i.h.bf16 %v14880_v4 }
 0x2ab   : > { %11710 = vrot.lane.b32.xlu1 %v11699_v51, %s13438_s24  ;;  %v3732_v26 = vsel %vm1909_vm7, %v3700_v18, %v11422_v33  ;;  %v3733_v48 = vsel %vm1909_vm7, %v3701_v60, %v11423_v13  ;;  %v11734_v18 = vpack.i.bf16 %v2605_v8, %v2604_v41  ;;  %v11372_v13 = vunpack.i.l.bf16 %v14823_v44  ;;  %v14935_v60 = vld [vmem:[#allocation2 + $0x18a] sm:$0xff] }
 0x2ac   : > { %v14894_v50 = vpop.permute.xlu0 %11430  ;;  %3947 = vmatmul.mubr.f32.gmra.mrb[48].mxu1 %v3732_v26  ;;  %v2606_v26 = vld [vmem:[#allocation2 + $0x199] sm:$0xff]  ;;  %v11427_v8 = vunpack.i.l.bf16 %v14880_v4  ;;  %18373 = vst [vmem:[#allocation35_spill] sm:$0xff] %v14935_v60 }
 0x2ad   : > { %v14892_v28 = vpop.permute.xlu1 %11435  ;;  %10252 = vmatprep.mubr.msk.f32.mxu1 %vm387_vm0, %v2613_v35  ;;  %v11377_v35 = vunpack.i.l.bf16 %v14825_v17  ;;  %v3542_v41 = vsel %vm387_vm0, %v14597_v46, %v11372_v13  ;;  %v3543_v13 = vsel %vm387_vm0, %v14593_v1, %v11373_v53  ;;  %v11433_v23 = vunpack.i.h.bf16 %v14894_v50 }
 0x2ae   : > { %11725 = vrot.lane.b32.xlu0 %v11714_v57, %s13435_s28  ;;  %v11438_v4 = vunpack.i.h.bf16 %v14892_v28 }
 0x2af   : > { %11720 = vrot.lane.b32.xlu1 %v11699_v51, %s13434_s22  ;;  %v3574_v44 = vsel %vm1744_vm2, %v3542_v41, %v11377_v35 }
 0x2b0   : > { %v14904_v33 = vpop.permute.xlu0 %11440  ;;  %3952 = vmatmul.mubr.f32.gmra.mrb[50].mxu1 %v3733_v48  ;;  %v11432_v48 = vunpack.i.l.bf16 %v14894_v50  ;;  %v3606_v24 = vsel %vm1777_vm3, %v3574_v44, %v11427_v8 }
 0x2b1   : > { %v14902_v63 = vpop.permute.xlu1 %11445  ;;  %10253 = vmatprep.mubr.msk.f32.mxu1 %vm387_vm0, %v14665_v47  ;;  %v14921_v47 = vld [vmem:[#allocation2 + $0x182] sm:$0xff] }
 0x2b2   : > { %11735 = vrot.lane.b32.xlu0 %v11734_v18, %s13439_s25  ;;  %v3638_v22 = vsel %vm1810_vm4, %v3606_v24, %v11432_v48 }
 0x2b3   : > { %11730 = vrot.lane.b32.xlu1 %v11729_v32, %s13440_s26 }
 0x2b4   : > { %v14912_v57 = vpop.permute.xlu0 %11455 }
 0x2b5   : > { %v14910_v51 = vpop.permute.xlu1 %11450 }
 0x2b6   : > { %11745 = vrot.lane.b32.xlu0 %v11734_v18, %s13438_s24  ;;  %v2607_v18 = vld [vmem:[#allocation2 + $0x1a1] sm:$0xff] }
 0x2b7   : > { %11740 = vrot.lane.b32.xlu1 %v11729_v32, %s13436_s14  ;;  %v2575_v32 = vld [vmem:[#allocation2 + $0x1a0] sm:$0xff] }
 0x2b8   : > { %v14918_v30 = vpop.permute.xlu0 %11465 }
 0x2b9   : > { %v14916_v45 = vpop.permute.xlu1 %11460 }
 0x2ba   : > { %3372 = vrot.lane.b32.xlu0 %v2574_v42, %s13440_s26  ;;  %v11378_v42 = vunpack.i.h.bf16 %v14825_v17 }
 0x2bb   : > { %3244 = vrot.lane.b32.xlu1 %v14921_v47, %s13437_s16 }
 0x2bc   : > { %v14929_v31 = vpop.permute.xlu0 %11475  ;;  %v3575_v17 = vsel %vm1744_vm2, %v3543_v13, %v11378_v42  ;;  %v2615_v42 = vld [vmem:[#allocation2 + $0x82] sm:$0xff] }
 0x2bd   : > { %v14927_v56 = vpop.permute.xlu1 %11470  ;;  %v3607_v1 = vsel %vm1777_vm3, %v3575_v17, %v11428_v25  ;;  %v11443_v17 = vunpack.i.h.bf16 %v14904_v33 }
 0x2be   : > { %3246 = vrot.lane.b32.xlu0 %v14935_v60, %s13437_s16  ;;  %v3639_v50 = vsel %vm1810_vm4, %v3607_v1, %v11433_v23  ;;  %v11442_v23 = vunpack.i.l.bf16 %v14904_v33 }
 0x2bf   : > { %3500 = vrot.lane.b32.xlu1 %v2606_v26, %s13439_s25  ;;  %v11437_v26 = vunpack.i.l.bf16 %v14892_v28  ;;  %v3671_v25 = vsel %vm1843_vm5, %v3639_v50, %v11438_v4  ;;  %v11448_v50 = vunpack.i.h.bf16 %v14902_v63 }
 0x2c0   : > { %v11486_v46 = vpop.permute.xlu0 %11485 }
 0x2c1   : > { %v14943_v27 = vpop.permute.xlu1 %11480  ;;  %v11487_v21 = vunpack.i.l.bf16 %v11486_v46  ;;  %v3670_v8 = vsel %vm1843_vm5, %v3638_v22, %v11437_v26  ;;  %v11488_v44 = vunpack.i.h.bf16 %v11486_v46  ;;  %v2360_v26 = vld [vmem:[#allocation2 + $0x60] sm:$0xff] }
 0x2c2   : > { %3502 = vrot.lane.b32.xlu0 %v2607_v18, %s13439_s25 }
 0x2c3   : > { %3374 = vrot.lane.b32.xlu1 %v2575_v32, %s13440_s26  ;;  %v3702_v24 = vsel %vm1876_vm6, %v3670_v8, %v11487_v21  ;;  %v3703_v28 = vsel %vm1876_vm6, %v3671_v25, %v11488_v44  ;;  %v11447_v21 = vunpack.i.l.bf16 %v14902_v63  ;;  %v2361_v44 = vld [vmem:[#allocation2 + $0x68] sm:$0xff] }
 0x2c4   : > { %v11496_v41 = vpop.permute.xlu0 %11495 }
 0x2c5   : > { %v11491_v35 = vpop.permute.xlu1 %11490  ;;  %v11497_v1 = vunpack.i.l.bf16 %v11496_v41 }
 0x2c6   : > { %v11492_v53 = vunpack.i.l.bf16 %v11491_v35  ;;  %v11493_v48 = vunpack.i.h.bf16 %v11491_v35  ;;  %v3544_v35 = vsel %vm387_vm0, %v2360_v26, %v11442_v23 }
 0x2c8   : > { %v3734_v32 = vsel %vm1909_vm7, %v3702_v24, %v11492_v53  ;;  %v11506_v12 = vpop.permute.xlu0 %11505  ;;  %v3735_v22 = vsel %vm1909_vm7, %v3703_v28, %v11493_v48  ;;  %v3545_v24 = vsel %vm387_vm0, %v2361_v44, %v11443_v17  ;;  %v11498_v48 = vunpack.i.h.bf16 %v11496_v41 }
 0x2c9   : > { %v11501_v18 = vpop.permute.xlu1 %11500  ;;  %3957 = vmatmul.mubr.f32.gmra.mrb[52].mxu1 %v3734_v32  ;;  %v11507_v33 = vunpack.i.l.bf16 %v11506_v12  ;;  %v3577_v11 = vsel %vm1744_vm2, %v3545_v24, %v11448_v50  ;;  %v11508_v17 = vunpack.i.h.bf16 %v11506_v12 }
 0x2ca   : > { %10254 = vmatprep.mubr.msk.f32.mxu1 %vm387_vm0, %v2615_v42  ;;  %v11502_v8 = vunpack.i.l.bf16 %v11501_v18  ;;  %v11503_v42 = vunpack.i.h.bf16 %v11501_v18  ;;  %v3609_v10 = vsel %vm1777_vm3, %v3577_v11, %v11498_v48 }
 0x2cc   : > { %v11516_v13 = vpop.permute.xlu0 %11515  ;;  %v3641_v41 = vsel %vm1810_vm4, %v3609_v10, %v11503_v42 }
 0x2cd   : > { %v11511_v46 = vpop.permute.xlu1 %11510  ;;  %3962 = vmatmul.mubr.f32.gmra.mrb[54].mxu1 %v3735_v22 }
 0x2ce   : > { %10255 = vmatprep.mubr.msk.f32.mxu1 %vm387_vm0, %v14703_v61  ;;  %v3576_v61 = vsel %vm1744_vm2, %v3544_v35, %v11447_v21  ;;  %v11513_v23 = vunpack.i.h.bf16 %v11511_v46  ;;  %v11512_v26 = vunpack.i.l.bf16 %v11511_v46  ;;  %v2362_v21 = vld [vmem:[#allocation2 + $0x78] sm:$0xff]  ;;  %v2363_v35 = vld [vmem:[#allocation2 + $0x80] sm:$0xff]  ;;  %v11517_v46 = vunpack.i.l.bf16 %v11516_v13 }
 0x2cf   : > { %v3608_v32 = vsel %vm1777_vm3, %v3576_v61, %v11497_v1  ;;  %v11518_v1 = vunpack.i.h.bf16 %v11516_v13 }
 0x2d0   : > { %v14973_v53 = vpop.permute.xlu0 %11520  ;;  %v3640_v22 = vsel %vm1810_vm4, %v3608_v32, %v11502_v8  ;;  %v3547_v5 = vsel %vm387_vm0, %v2363_v35, %v11513_v23  ;;  %v3546_v8 = vsel %vm387_vm0, %v2362_v21, %v11512_v26 }
 0x2d1   : > { %v14971_v4 = vpop.permute.xlu1 %11525  ;;  %v3672_v61 = vsel %vm1843_vm5, %v3640_v22, %v11507_v33  ;;  %v3579_v48 = vsel %vm1744_vm2, %v3547_v5, %v11518_v1  ;;  %v2617_v33 = vld [vmem:[#allocation2 + $0x9a] sm:$0xff]  ;;  %v3673_v22 = vsel %vm1843_vm5, %v3641_v41, %v11508_v17  ;;  %v3578_v23 = vsel %vm1744_vm2, %v3546_v8, %v11517_v46 }
 0x2d2   : > { %v11242_v17 = vunpack.i.l.bf16 %v14691_v37  ;;  %v11247_v8 = vunpack.i.l.bf16 %v14693_v49 }
 0x2d4   : > { %v14979_v28 = vpop.permute.xlu0 %11530 }
 0x2d5   : > { %v11536_v25 = vpop.permute.xlu1 %11535 }
 0x2d6   : > { %v11537_v63 = vunpack.i.l.bf16 %v11536_v25  ;;  %v11538_v50 = vunpack.i.h.bf16 %v11536_v25 }
 0x2d8   : > { %v11541_v44 = vpop.permute.xlu0 %11540  ;;  %v3704_v11 = vsel %vm1876_vm6, %v3672_v61, %v11537_v63  ;;  %v3705_v5 = vsel %vm1876_vm6, %v3673_v22, %v11538_v50  ;;  %v2618_v61 = vld [vmem:[#allocation2 + $0xaa] sm:$0xff]  ;;  %v2365_v22 = vld [vmem:[#allocation2 + $0x98] sm:$0xff] }
 0x2d9   : > { %v11546_v18 = vpop.permute.xlu1 %11545  ;;  %v11542_v32 = vunpack.i.l.bf16 %v11541_v44  ;;  %v11543_v10 = vunpack.i.h.bf16 %v11541_v44 }
 0x2da   : > { %v11548_v24 = vunpack.i.h.bf16 %v11546_v18  ;;  %v11547_v16 = vunpack.i.l.bf16 %v11546_v18 }
 0x2db   : > { %v3736_v12 = vsel %vm1909_vm7, %v3704_v11, %v11542_v32  ;;  %v3737_v41 = vsel %vm1909_vm7, %v3705_v5, %v11543_v10  ;;  %v11243_v11 = vunpack.i.h.bf16 %v14691_v37  ;;  %v11267_v5 = vunpack.i.l.bf16 %v14712_v38 }
 0x2dc   : > { %v11551_v60 = vpop.permute.xlu0 %11550  ;;  %3967 = vmatmul.mubr.f32.gmra.mrb[56].mxu1 %v3736_v12  ;;  %v3610_v63 = vsel %vm1777_vm3, %v3578_v23, %v11547_v16  ;;  %v3611_v21 = vsel %vm1777_vm3, %v3579_v48, %v11548_v24 }
 0x2dd   : > { %v11556_v42 = vpop.permute.xlu1 %11555  ;;  %v11553_v26 = vunpack.i.h.bf16 %v11551_v60  ;;  %v11552_v25 = vunpack.i.l.bf16 %v11551_v60  ;;  %10256 = vmatprep.mubr.msk.f32.mxu1 %vm387_vm0, %v2617_v33  ;;  %v2364_v33 = vld [vmem:[#allocation2 + $0x90] sm:$0xff] }
 0x2de   : > { %v11557_v13 = vunpack.i.l.bf16 %v11556_v42  ;;  %v11558_v35 = vunpack.i.h.bf16 %v11556_v42  ;;  %v11248_v42 = vunpack.i.h.bf16 %v14693_v49  ;;  %v11258_v49 = vunpack.i.h.bf16 %v14700_v20 }
 0x2df   : > { %v3642_v1 = vsel %vm1810_vm4, %v3610_v63, %v11552_v25  ;;  %v3643_v18 = vsel %vm1810_vm4, %v3611_v21, %v11553_v26  ;;  %v2619_v26 = vld [vmem:[#allocation2 + $0xb2] sm:$0xff]  ;;  %v11253_v63 = vunpack.i.h.bf16 %v14698_v40  ;;  %v11252_v21 = vunpack.i.l.bf16 %v14698_v40 }
 0x2e0   : > { %v11566_v60 = vpop.permute.xlu0 %11565  ;;  %3972 = vmatmul.mubr.f32.gmra.mrb[58].mxu1 %v3737_v41  ;;  %v3674_v16 = vsel %vm1843_vm5, %v3642_v1, %v11557_v13  ;;  %v3675_v24 = vsel %vm1843_vm5, %v3643_v18, %v11558_v35  ;;  %v11257_v41 = vunpack.i.l.bf16 %v14700_v20  ;;  %v2620_v20 = vld [vmem:[#allocation2 + $0xc2] sm:$0xff] }
 0x2e1   : > { %v15001_v44 = vpop.permute.xlu1 %11560  ;;  %10257 = vmatprep.mubr.msk.f32.mxu1 %vm387_vm0, %v2618_v61  ;;  %v11568_v46 = vunpack.i.h.bf16 %v11566_v60  ;;  %v11567_v32 = vunpack.i.l.bf16 %v11566_v60  ;;  %v3706_v50 = vsel %vm1876_vm6, %v3674_v16, %v11242_v17  ;;  %v3707_v25 = vsel %vm1876_vm6, %v3675_v24, %v11243_v11 }
 0x2e2   : > { %v3738_v48 = vsel %vm1909_vm7, %v3706_v50, %v11247_v8  ;;  %v3739_v16 = vsel %vm1909_vm7, %v3707_v25, %v11248_v42  ;;  %v11263_v8 = vunpack.i.h.bf16 %v14710_v59  ;;  %v11272_v50 = vunpack.i.l.bf16 %v14722_v3  ;;  %v13407_v42 = vld [vmem:[#allocation2 + $0xa8] sm:$0xff] }
 0x2e3   : > { %v3549_v37 = vsel %vm387_vm0, %v2365_v22, %v11568_v46  ;;  %v3548_v35 = vsel %vm387_vm0, %v2364_v33, %v11567_v32  ;;  %v11262_v46 = vunpack.i.l.bf16 %v14710_v59  ;;  %v11268_v32 = vunpack.i.h.bf16 %v14712_v38 }
 0x2e4   : > { %v15009_v12 = vpop.permute.xlu0 %11570  ;;  %3977 = vmatmul.mubr.f32.gmra.mrb[60].mxu1 %v3738_v48  ;;  %v11312_v24 = vunpack.i.l.bf16 %v14763_v6  ;;  %v11322_v11 = vunpack.i.l.bf16 %v14769_v2  ;;  %v3550_v33 = vsel %vm387_vm0, %v13407_v42, %v11267_v5  ;;  %v11273_v59 = vunpack.i.h.bf16 %v14722_v3 }
 0x2e5   : > { %v11576_v10 = vpop.permute.xlu1 %11575  ;;  %10258 = vmatprep.mubr.msk.f32.mxu1 %vm387_vm0, %v2619_v26  ;;  %v11317_v22 = vunpack.i.l.bf16 %v14765_v58  ;;  %v11327_v3 = vunpack.i.l.bf16 %v14771_v54 }
 0x2e6   : > { %v11578_v23 = vunpack.i.h.bf16 %v11576_v10  ;;  %v11577_v13 = vunpack.i.l.bf16 %v11576_v10 }
 0x2e8   : > { %v3580_v1 = vsel %vm1744_vm2, %v3548_v35, %v11577_v13  ;;  %v3581_v18 = vsel %vm1744_vm2, %v3549_v37, %v11578_v23  ;;  %v15028_v61 = vpop.permute.xlu0 %11585  ;;  %3982 = vmatmul.mubr.f32.gmra.mrb[62].mxu1 %v3739_v16  ;;  %v11323_v23 = vunpack.i.h.bf16 %v14769_v2  ;;  %v11313_v37 = vunpack.i.h.bf16 %v14763_v6  ;;  %v13408_v35 = vld [vmem:[#allocation2 + $0xb0] sm:$0xff] }
 0x2e9   : > { %v3612_v17 = vsel %vm1777_vm3, %v3580_v1, %v11252_v21  ;;  %v3613_v40 = vsel %vm1777_vm3, %v3581_v18, %v11253_v63  ;;  %v15026_v60 = vpop.permute.xlu1 %11580  ;;  %10259 = vmatprep.mubr.msk.f32.mxu1 %vm387_vm0, %v2620_v20  ;;  %v3582_v21 = vsel %vm1744_vm2, %v3550_v33, %v11272_v50  ;;  %v11332_v2 = vunpack.i.l.bf16 %v14777_v9 }
 0x2ea   : > { %v3644_v10 = vsel %vm1810_vm4, %v3612_v17, %v11257_v41  ;;  %v3645_v48 = vsel %vm1810_vm4, %v3613_v40, %v11258_v49  ;;  %v3551_v49 = vsel %vm387_vm0, %v13408_v35, %v11268_v32  ;;  %v3614_v5 = vsel %vm1777_vm3, %v3582_v21, %v11322_v11  ;;  %v2621_v40 = vld [vmem:[#allocation2 + $0xca] sm:$0xff] }
 0x2eb   : > { %v3676_v38 = vsel %vm1843_vm5, %v3644_v10, %v11262_v46  ;;  %v3677_v63 = vsel %vm1843_vm5, %v3645_v48, %v11263_v8  ;;  %v3583_v18 = vsel %vm1744_vm2, %v3551_v49, %v11273_v59  ;;  %v11318_v41 = vunpack.i.h.bf16 %v14765_v58  ;;  %v2622_v59 = vld [vmem:[#allocation2 + $0xda] sm:$0xff] }
 0x2ec   : > { %v15047_v26 = vpop.permute.xlu0 %11595  ;;  %v3708_v25 = vsel %vm1876_vm6, %v3676_v38, %v11312_v24  ;;  %v11382_v17 = vunpack.i.l.bf16 %v14833_v19  ;;  %v3709_v6 = vsel %vm1876_vm6, %v3677_v63, %v11313_v37  ;;  %v3615_v16 = vsel %vm1777_vm3, %v3583_v18, %v11323_v23 }
 0x2ed   : > { %v15045_v13 = vpop.permute.xlu1 %11590  ;;  %v3740_v1 = vsel %vm1909_vm7, %v3708_v25, %v11317_v22  ;;  %v11328_v8 = vunpack.i.h.bf16 %v14771_v54  ;;  %v11338_v46 = vunpack.i.h.bf16 %v14779_v34  ;;  %v11337_v32 = vunpack.i.l.bf16 %v14779_v34  ;;  %v13409_v22 = vld [vmem:[#allocation2 + $0xc8] sm:$0xff] }
 0x2ee   : > { %3987 = vmatmul.mubr.f32.gmra.mrb[64].mxu1 %v3740_v1  ;;  %v3646_v58 = vsel %vm1810_vm4, %v3614_v5, %v11327_v3  ;;  %v11333_v24 = vunpack.i.h.bf16 %v14777_v9  ;;  %v11343_v11 = vunpack.i.h.bf16 %v14790_v52  ;;  %v11342_v10 = vunpack.i.l.bf16 %v14790_v52  ;;  %v13410_v52 = vld [vmem:[#allocation2 + $0xc0] sm:$0xff] }
 0x2ef   : > { %10260 = vmatprep.mubr.msk.f32.mxu1 %vm387_vm0, %v2621_v40  ;;  %v11387_v54 = vunpack.i.l.bf16 %v14831_v0  ;;  %v11392_v48 = vunpack.i.l.bf16 %v14843_v14  ;;  %v3741_v34 = vsel %vm1909_vm7, %v3709_v6, %v11318_v41  ;;  %v3678_v42 = vsel %vm1843_vm5, %v3646_v58, %v11332_v2  ;;  %v2623_v40 = vld [vmem:[#allocation2 + $0xe2] sm:$0xff] }
 0x2f0   : > { %v15069_v20 = vpop.permute.xlu0 %11605  ;;  %v11383_v33 = vunpack.i.h.bf16 %v14833_v19  ;;  %v3710_v38 = vsel %vm1876_vm6, %v3678_v42, %v11382_v17  ;;  %v3647_v9 = vsel %vm1810_vm4, %v3615_v16, %v11328_v8  ;;  %v3553_v23 = vsel %vm387_vm0, %v13409_v22, %v11338_v46 }
 0x2f1   : > { %v15067_v50 = vpop.permute.xlu1 %11600  ;;  %v3552_v25 = vsel %vm387_vm0, %v13410_v52, %v11337_v32  ;;  %v11393_v63 = vunpack.i.h.bf16 %v14843_v14  ;;  %v3585_v3 = vsel %vm1744_vm2, %v3553_v23, %v11343_v11  ;;  %v11397_v35 = vunpack.i.l.bf16 %v14841_v36 }
 0x2f2   : > { %3992 = vmatmul.mubr.f32.gmra.mrb[66].mxu1 %v3741_v34  ;;  %v3584_v19 = vsel %vm1744_vm2, %v3552_v25, %v11342_v10  ;;  %v3679_v49 = vsel %vm1843_vm5, %v3647_v9, %v11333_v24  ;;  %v11388_v5 = vunpack.i.h.bf16 %v14831_v0  ;;  %v11402_v14 = vunpack.i.l.bf16 %v14853_v39  ;;  %v2371_v10 = vld [vmem:[#allocation2 + $0xe0] sm:$0xff]  ;;  %v2370_v34 = vld [vmem:[#allocation2 + $0xd8] sm:$0xff] }
 0x2f3   : > { %10261 = vmatprep.mubr.msk.f32.mxu1 %vm387_vm0, %v2622_v59  ;;  %v3616_v2 = vsel %vm1777_vm3, %v3584_v19, %v11392_v48  ;;  %v3742_v1 = vsel %vm1909_vm7, %v3710_v38, %v11387_v54  ;;  %v11398_v18 = vunpack.i.h.bf16 %v14841_v36  ;;  %v11408_v41 = vunpack.i.h.bf16 %v14851_v7 }
 0x2f4   : > { %v15088_v37 = vpop.permute.xlu0 %11615  ;;  %v11452_v17 = vunpack.i.l.bf16 %v14910_v51  ;;  %v3711_v6 = vsel %vm1876_vm6, %v3679_v49, %v11383_v33  ;;  %v3617_v16 = vsel %vm1777_vm3, %v3585_v3, %v11393_v63  ;;  %v11407_v0 = vunpack.i.l.bf16 %v14851_v7 }
 0x2f5   : > { %v15086_v21 = vpop.permute.xlu1 %11610  ;;  %v11403_v8 = vunpack.i.h.bf16 %v14853_v39  ;;  %v11413_v46 = vunpack.i.h.bf16 %v14864_v62  ;;  %v11412_v58 = vunpack.i.l.bf16 %v14864_v62  ;;  %v11453_v24 = vunpack.i.h.bf16 %v14910_v51  ;;  %v2624_v62 = vld [vmem:[#allocation2 + $0xf2] sm:$0xff] }
 0x2f6   : > { %3997 = vmatmul.mubr.f32.gmra.mrb[68].mxu1 %v3742_v1  ;;  %v3648_v11 = vsel %vm1810_vm4, %v3616_v2, %v11397_v35  ;;  %v11457_v54 = vunpack.i.l.bf16 %v14912_v57  ;;  %v11462_v7 = vunpack.i.l.bf16 %v14916_v45  ;;  %v3743_v39 = vsel %vm1909_vm7, %v3711_v6, %v11388_v5 }
 0x2f7   : > { %10262 = vmatprep.mubr.msk.f32.mxu1 %vm387_vm0, %v2623_v40  ;;  %v3680_v48 = vsel %vm1843_vm5, %v3648_v11, %v11402_v14  ;;  %v3555_v42 = vsel %vm387_vm0, %v2371_v10, %v11408_v41  ;;  %v11463_v33 = vunpack.i.h.bf16 %v14916_v45  ;;  %v3649_v59 = vsel %vm1810_vm4, %v3617_v16, %v11398_v18  ;;  %v2372_v10 = vld [vmem:[#allocation2 + $0xf0] sm:$0xff] }
 0x2f8   : > { %v15109_v36 = vpop.permute.xlu0 %11625  ;;  %v3712_v51 = vsel %vm1876_vm6, %v3680_v48, %v11452_v17  ;;  %v3554_v38 = vsel %vm387_vm0, %v2370_v34, %v11407_v0  ;;  %v3587_v9 = vsel %vm1744_vm2, %v3555_v42, %v11413_v46  ;;  %v3681_v52 = vsel %vm1843_vm5, %v3649_v59, %v11403_v8 }
 0x2f9   : > { %v15107_v32 = vpop.permute.xlu1 %11620  ;;  %v3586_v45 = vsel %vm1744_vm2, %v3554_v38, %v11412_v58  ;;  %v11458_v25 = vunpack.i.h.bf16 %v14912_v57  ;;  %v11467_v63 = vunpack.i.l.bf16 %v14918_v30  ;;  %v3713_v19 = vsel %vm1876_vm6, %v3681_v52, %v11453_v24  ;;  %v2625_v57 = vld [vmem:[#allocation2 + $0xfa] sm:$0xff]  ;;  %v2626_v24 = vld [vmem:[#allocation2 + $0x10a] sm:$0xff] }
 0x2fa   : > { %4002 = vmatmul.mubr.f32.gmra.mrb[70].mxu1 %v3743_v39  ;;  %v3618_v3 = vsel %vm1777_vm3, %v3586_v45, %v11462_v7  ;;  %v11468_v35 = vunpack.i.h.bf16 %v14918_v30  ;;  %v11472_v49 = vunpack.i.l.bf16 %v14927_v56  ;;  %v3744_v5 = vsel %vm1909_vm7, %v3712_v51, %v11457_v54  ;;  %v2373_v54 = vld [vmem:[#allocation2 + $0xf8] sm:$0xff] }
 0x2fb   : > { %10263 = vmatprep.mubr.msk.f32.mxu1 %vm387_vm0, %v2624_v62  ;;  %v3619_v2 = vsel %vm1777_vm3, %v3587_v9, %v11463_v33  ;;  %v11473_v14 = vunpack.i.h.bf16 %v14927_v56  ;;  %v11522_v1 = vunpack.i.l.bf16 %v14973_v53  ;;  %v11523_v18 = vunpack.i.h.bf16 %v14973_v53 }
 0x2fc   : > { %v15127_v23 = vpop.permute.xlu0 %11635  ;;  %v3650_v30 = vsel %vm1810_vm4, %v3618_v3, %v11467_v63  ;;  %v11478_v40 = vunpack.i.h.bf16 %v14929_v31  ;;  %v11477_v6 = vunpack.i.l.bf16 %v14929_v31  ;;  %v3745_v56 = vsel %vm1909_vm7, %v3713_v19, %v11458_v25  ;;  %v2627_v25 = vld [vmem:[#allocation2 + $0x112] sm:$0xff] }
 0x2fd   : > { %v15125_v22 = vpop.permute.xlu1 %11630  ;;  %v3651_v16 = vsel %vm1810_vm4, %v3619_v2, %v11468_v35  ;;  %v11482_v0 = vunpack.i.l.bf16 %v14943_v27  ;;  %v11527_v53 = vunpack.i.l.bf16 %v14971_v4  ;;  %v3682_v8 = vsel %vm1843_vm5, %v3650_v30, %v11472_v49  ;;  %v2375_v49 = vld [vmem:[#allocation2 + $0x110] sm:$0xff] }
 0x2fe   : > { %4007 = vmatmul.mubr.f32.gmra.mrb[72].mxu1 %v3744_v5  ;;  %v11483_v46 = vunpack.i.h.bf16 %v14943_v27  ;;  %v11528_v58 = vunpack.i.h.bf16 %v14971_v4  ;;  %v3714_v11 = vsel %vm1876_vm6, %v3682_v8, %v11522_v1  ;;  %v3683_v31 = vsel %vm1843_vm5, %v3651_v16, %v11473_v14  ;;  %v2374_v14 = vld [vmem:[#allocation2 + $0x108] sm:$0xff] }
 0x2ff   : > { %10264 = vmatprep.mubr.msk.f32.mxu1 %vm387_vm0, %v2625_v57  ;;  %v11533_v7 = vunpack.i.h.bf16 %v14979_v28  ;;  %v11532_v39 = vunpack.i.l.bf16 %v14979_v28  ;;  %v3715_v27 = vsel %vm1876_vm6, %v3683_v31, %v11523_v18  ;;  %v3557_v4 = vsel %vm387_vm0, %v2373_v54, %v11478_v40 }
 0x300   : > { %v15145_v17 = vpop.permute.xlu0 %11645  ;;  %v3556_v42 = vsel %vm387_vm0, %v2372_v10, %v11477_v6  ;;  %v11562_v33 = vunpack.i.l.bf16 %v15001_v44  ;;  %v11583_v62 = vunpack.i.h.bf16 %v15026_v60  ;;  %v11572_v28 = vunpack.i.l.bf16 %v15009_v12 }
 0x301   : > { %v15143_v41 = vpop.permute.xlu1 %11640  ;;  %v3588_v51 = vsel %vm1744_vm2, %v3556_v42, %v11482_v0  ;;  %v11582_v59 = vunpack.i.l.bf16 %v15026_v60  ;;  %v3746_v38 = vsel %vm1909_vm7, %v3714_v11, %v11527_v53  ;;  %v3589_v9 = vsel %vm1744_vm2, %v3557_v4, %v11483_v46  ;;  %v2628_v0 = vld [vmem:[#allocation2 + $0x122] sm:$0xff] }
 0x302   : > { %4012 = vmatmul.mubr.f32.gmra.mrb[74].mxu1 %v3745_v56  ;;  %v11563_v52 = vunpack.i.h.bf16 %v15001_v44  ;;  %v11592_v45 = vunpack.i.l.bf16 %v15045_v13  ;;  %v3747_v63 = vsel %vm1909_vm7, %v3715_v27, %v11528_v58  ;;  %v3620_v19 = vsel %vm1777_vm3, %v3588_v51, %v11532_v39 }
 0x303   : > { %10265 = vmatprep.mubr.msk.f32.mxu1 %vm387_vm0, %v2626_v24  ;;  %v3621_v3 = vsel %vm1777_vm3, %v3589_v9, %v11533_v7  ;;  %v11573_v35 = vunpack.i.h.bf16 %v15009_v12  ;;  %v11588_v60 = vunpack.i.h.bf16 %v15028_v61  ;;  %v3652_v2 = vsel %vm1810_vm4, %v3620_v19, %v11562_v33 }
 0x304   : > { %v15164_v34 = vpop.permute.xlu0 %11655  ;;  %v3559_v1 = vsel %vm387_vm0, %v2375_v49, %v11583_v62  ;;  %v11587_v57 = vunpack.i.l.bf16 %v15028_v61  ;;  %v11593_v18 = vunpack.i.h.bf16 %v15045_v13  ;;  %v3558_v12 = vsel %vm387_vm0, %v2374_v14, %v11582_v59 }
 0x305   : > { %v15162_v48 = vpop.permute.xlu1 %11650  ;;  %v11597_v30 = vunpack.i.l.bf16 %v15047_v26  ;;  %v11602_v40 = vunpack.i.l.bf16 %v15067_v50  ;;  %v3684_v6 = vsel %vm1843_vm5, %v3652_v2, %v11572_v28  ;;  %v3653_v56 = vsel %vm1810_vm4, %v3621_v3, %v11563_v52  ;;  %v2377_v28 = vld [vmem:[#allocation2 + $0x128] sm:$0xff] }
 0x306   : > { %4017 = vmatmul.mubr.f32.gmra.mrb[76].mxu1 %v3746_v38  ;;  %v11603_v16 = vunpack.i.h.bf16 %v15067_v50  ;;  %v3716_v53 = vsel %vm1876_vm6, %v3684_v6, %v11592_v45  ;;  %v3591_v61 = vsel %vm1744_vm2, %v3559_v1, %v11588_v60  ;;  %v3685_v46 = vsel %vm1843_vm5, %v3653_v56, %v11573_v35  ;;  %v2630_v35 = vld [vmem:[#allocation2 + $0x13a] sm:$0xff] }
 0x307   : > { %10266 = vmatprep.mubr.msk.f32.mxu1 %vm387_vm0, %v2627_v25  ;;  %v3590_v58 = vsel %vm1744_vm2, %v3558_v12, %v11587_v57  ;;  %v11598_v24 = vunpack.i.h.bf16 %v15047_v26  ;;  %v11607_v50 = vunpack.i.l.bf16 %v15069_v20  ;;  %v3717_v11 = vsel %vm1876_vm6, %v3685_v46, %v11593_v18  ;;  %v2629_v26 = vld [vmem:[#allocation2 + $0x12a] sm:$0xff] }
 0x308   : > { %v15186_v44 = vpop.permute.xlu0 %11665  ;;  %v3622_v31 = vsel %vm1777_vm3, %v3590_v58, %v11602_v40  ;;  %v11608_v10 = vunpack.i.h.bf16 %v15069_v20  ;;  %v11618_v54 = vunpack.i.h.bf16 %v15088_v37  ;;  %v3748_v7 = vsel %vm1909_vm7, %v3716_v53, %v11597_v30 }
 0x309   : > { %v15184_v5 = vpop.permute.xlu1 %11660  ;;  %v3623_v39 = vsel %vm1777_vm3, %v3591_v61, %v11603_v16  ;;  %v11612_v27 = vunpack.i.l.bf16 %v15086_v21  ;;  %v11617_v4 = vunpack.i.l.bf16 %v15088_v37  ;;  %v11613_v42 = vunpack.i.h.bf16 %v15086_v21  ;;  %v2376_v21 = vld [vmem:[#allocation2 + $0x120] sm:$0xff] }
 0x30a   : > { %4022 = vmatmul.mubr.f32.gmra.mrb[78].mxu1 %v3747_v63  ;;  %v11622_v33 = vunpack.i.l.bf16 %v15107_v32  ;;  %v3654_v51 = vsel %vm1810_vm4, %v3622_v31, %v11607_v50  ;;  %v11627_v59 = vunpack.i.l.bf16 %v15109_v36  ;;  %v11637_v38 = vunpack.i.l.bf16 %v15127_v23 }
 0x30b   : > { %10267 = vmatprep.mubr.msk.f32.mxu1 %vm387_vm0, %v2628_v0  ;;  %v3749_v37 = vsel %vm1909_vm7, %v3717_v11, %v11598_v24  ;;  %v3655_v9 = vsel %vm1810_vm4, %v3623_v39, %v11608_v10  ;;  %v3561_v52 = vsel %vm387_vm0, %v2377_v28, %v11618_v54  ;;  %v11632_v45 = vunpack.i.l.bf16 %v15125_v22  ;;  %v2631_v0 = vld [vmem:[#allocation2 + $0x142] sm:$0xff] }
 0x30c   : > { %v15203_v8 = vpop.permute.xlu0 %11675  ;;  %v11642_v25 = vunpack.i.l.bf16 %v15143_v41  ;;  %v3560_v63 = vsel %vm387_vm0, %v2376_v21, %v11617_v4  ;;  %v11623_v19 = vunpack.i.h.bf16 %v15107_v32  ;;  %v11628_v3 = vunpack.i.h.bf16 %v15109_v36  ;;  %v13411_v10 = vld [vmem:[#allocation2 + $0x140] sm:$0xff] }
 0x30d   : > { %v15201_v13 = vpop.permute.xlu1 %11670  ;;  %v3686_v49 = vsel %vm1843_vm5, %v3654_v51, %v11612_v27  ;;  %v3592_v60 = vsel %vm1744_vm2, %v3560_v63, %v11622_v33  ;;  %v11633_v2 = vunpack.i.h.bf16 %v15125_v22  ;;  %v11638_v14 = vunpack.i.h.bf16 %v15127_v23 }
 0x30e   : > { %4027 = vmatmul.mubr.f32.gmra.mrb[80].mxu1 %v3748_v7  ;;  %v3687_v32 = vsel %vm1843_vm5, %v3655_v9, %v11613_v42  ;;  %v3624_v36 = vsel %vm1777_vm3, %v3592_v60, %v11637_v38  ;;  %v11643_v18 = vunpack.i.h.bf16 %v15143_v41  ;;  %v11647_v12 = vunpack.i.l.bf16 %v15145_v17 }
 0x30f   : > { %10268 = vmatprep.mubr.msk.f32.mxu1 %vm387_vm0, %v2629_v26  ;;  %v3718_v30 = vsel %vm1876_vm6, %v3686_v49, %v11627_v59  ;;  %v3656_v22 = vsel %vm1810_vm4, %v3624_v36, %v11642_v25  ;;  %v11653_v23 = vunpack.i.h.bf16 %v15162_v48  ;;  %v11652_v40 = vunpack.i.l.bf16 %v15162_v48 }
 0x310   : > { %v15222_v20 = vpop.permute.xlu0 %11685  ;;  %v3750_v6 = vsel %vm1909_vm7, %v3718_v30, %v11632_v45  ;;  %v3593_v56 = vsel %vm1744_vm2, %v3561_v52, %v11623_v19  ;;  %v11662_v16 = vunpack.i.l.bf16 %v15184_v5  ;;  %v3719_v41 = vsel %vm1876_vm6, %v3687_v32, %v11628_v3  ;;  %v13414_v32 = vld [vmem:[#allocation2 + $0x150] sm:$0xff] }
 0x311   : > { %v15220_v62 = vpop.permute.xlu1 %11680  ;;  %v3625_v53 = vsel %vm1777_vm3, %v3593_v56, %v11638_v14  ;;  %v11648_v61 = vunpack.i.h.bf16 %v15145_v17  ;;  %v3751_v48 = vsel %vm1909_vm7, %v3719_v41, %v11633_v2  ;;  %v11658_v50 = vunpack.i.h.bf16 %v15164_v34  ;;  %v13412_v17 = vld [vmem:[#allocation2 + $0x138] sm:$0xff] }
 0x312   : > { %4032 = vmatmul.mubr.f32.gmra.mrb[82].mxu1 %v3749_v37  ;;  %v3657_v24 = vsel %vm1810_vm4, %v3625_v53, %v11643_v18  ;;  %v11657_v11 = vunpack.i.l.bf16 %v15164_v34  ;;  %v3688_v31 = vsel %vm1843_vm5, %v3656_v22, %v11647_v12  ;;  %v3563_v54 = vsel %vm387_vm0, %v13411_v10, %v11653_v23  ;;  %v13413_v2 = vld [vmem:[#allocation2 + $0x158] sm:$0xff] }
 0x313   : > { %10269 = vmatprep.mubr.msk.f32.mxu1 %vm387_vm0, %v2630_v35  ;;  %v3562_v7 = vsel %vm387_vm0, %v13412_v17, %v11652_v40  ;;  %v11663_v39 = vunpack.i.h.bf16 %v15184_v5  ;;  %v11667_v27 = vunpack.i.l.bf16 %v15186_v44  ;;  %v11673_v4 = vunpack.i.h.bf16 %v15201_v13 }
 0x314   : > { %v15242_v57 = vpop.permute.xlu0 %11695  ;;  %v11672_v26 = vunpack.i.l.bf16 %v15201_v13  ;;  %v3720_v42 = vsel %vm1876_vm6, %v3688_v31, %v11662_v16  ;;  %v3595_v51 = vsel %vm1744_vm2, %v3563_v54, %v11658_v50  ;;  %v3594_v5 = vsel %vm1744_vm2, %v3562_v7, %v11657_v11 }
 0x315   : > { %v15240_v1 = vpop.permute.xlu1 %11690  ;;  %v11668_v28 = vunpack.i.h.bf16 %v15186_v44  ;;  %v3689_v59 = vsel %vm1843_vm5, %v3657_v24, %v11648_v61  ;;  %v11678_v13 = vunpack.i.h.bf16 %v15203_v8  ;;  %v11677_v38 = vunpack.i.l.bf16 %v15203_v8  ;;  %v13415_v24 = vld [vmem:[#allocation2 + $0x168] sm:$0xff] }
 0x316   : > { %4037 = vmatmul.mubr.f32.gmra.mrb[84].mxu1 %v3750_v6  ;;  %v3752_v37 = vsel %vm1909_vm7, %v3720_v42, %v11667_v27  ;;  %v3626_v9 = vsel %vm1777_vm3, %v3594_v5, %v11672_v26  ;;  %v3627_v21 = vsel %vm1777_vm3, %v3595_v51, %v11673_v4  ;;  %v11688_v52 = vunpack.i.h.bf16 %v15222_v20 }
 0x317   : > { %10270 = vmatprep.mubr.msk.f32.mxu1 %vm387_vm0, %v2631_v0  ;;  %v11687_v45 = vunpack.i.l.bf16 %v15222_v20  ;;  %v11682_v44 = vunpack.i.l.bf16 %v15220_v62  ;;  %v11692_v63 = vunpack.i.l.bf16 %v15240_v1  ;;  %v11697_v19 = vunpack.i.l.bf16 %v15242_v57 }
 0x318   : > { %v15261_v58 = vpop.permute.xlu0 %11705  ;;  %v3658_v35 = vsel %vm1810_vm4, %v3626_v9, %v11677_v38  ;;  %v3659_v20 = vsel %vm1810_vm4, %v3627_v21, %v11678_v13  ;;  %v3565_v14 = vsel %vm387_vm0, %v13413_v2, %v11688_v52  ;;  %v11693_v12 = vunpack.i.h.bf16 %v15240_v1 }
 0x319   : > { %v15259_v46 = vpop.permute.xlu1 %11700  ;;  %v11707_v60 = vunpack.i.l.bf16 %v15261_v58  ;;  %v3564_v36 = vsel %vm387_vm0, %v13414_v32, %v11687_v45  ;;  %v11698_v30 = vunpack.i.h.bf16 %v15242_v57  ;;  %v3690_v40 = vsel %vm1843_vm5, %v3658_v35, %v11682_v44  ;;  %v18374_v44 = vld [vmem:[#allocation35_spill] sm:$0xff] }
 0x31a   : > { %4042 = vmatmul.mubr.f32.gmra.mrb[86].mxu1 %v3751_v48  ;;  %v11702_v49 = vunpack.i.l.bf16 %v15259_v46  ;;  %v3596_v6 = vsel %vm1744_vm2, %v3564_v36, %v11692_v63  ;;  %v11703_v56 = vunpack.i.h.bf16 %v15259_v46  ;;  %v11708_v16 = vunpack.i.h.bf16 %v15261_v58 }
 0x31b   : > { %10271 = vmatprep.mubr.msk.f32.mxu1 %vm387_vm0, %v14835_v43  ;;  %v3721_v43 = vsel %vm1876_vm6, %v3689_v59, %v11663_v39  ;;  %v3722_v0 = vsel %vm1876_vm6, %v3690_v40, %v11697_v19  ;;  %v3628_v1 = vsel %vm1777_vm3, %v3596_v6, %v11707_v60  ;;  %v3597_v58 = vsel %vm1744_vm2, %v3565_v14, %v11693_v12  ;;  %v2639_v14 = vld [vmem:[#allocation2 + $0x1a2] sm:$0xff] }
 0x31c   : > { %v15279_v33 = vpop.permute.xlu0 %11715  ;;  %v3753_v3 = vsel %vm1909_vm7, %v3721_v43, %v11668_v28  ;;  %v3629_v54 = vsel %vm1777_vm3, %v3597_v58, %v11708_v16 }
 0x31d   : > { %v15277_v34 = vpop.permute.xlu1 %11710  ;;  %v11717_v41 = vunpack.i.l.bf16 %v15279_v33  ;;  %v11718_v17 = vunpack.i.h.bf16 %v15279_v33 }
 0x31e   : > { %4047 = vmatmul.mubr.f32.gmra.mrb[88].mxu1 %v3752_v37  ;;  %v11712_v18 = vunpack.i.l.bf16 %v15277_v34  ;;  %v11713_v57 = vunpack.i.h.bf16 %v15277_v34  ;;  %v13416_v37 = vld [vmem:[#allocation2 + $0x170] sm:$0xff] }
 0x31f   : > { %10272 = vmatprep.mubr.msk.f32.mxu1 %vm387_vm0, %v14837_v15  ;;  %v11683_v15 = vunpack.i.h.bf16 %v15220_v62 }
 0x320   : > { %v15298_v8 = vpop.permute.xlu0 %11725  ;;  %v3660_v53 = vsel %vm1810_vm4, %v3628_v1, %v11712_v18  ;;  %v3661_v27 = vsel %vm1810_vm4, %v3629_v54, %v11713_v57  ;;  %v4157_v1 = vld [vmem:[%s18242_s5] sm:$0xff]  ;;  %v4158_v57 = vld [vmem:[%s18242_s5 + $0x8] sm:$0xff] }
 0x321   : > { %v15296_v25 = vpop.permute.xlu1 %11720  ;;  %v11727_v61 = vunpack.i.l.bf16 %v15298_v8  ;;  %v3691_v46 = vsel %vm1843_vm5, %v3659_v20, %v11683_v15  ;;  %v3692_v42 = vsel %vm1843_vm5, %v3660_v53, %v11717_v41  ;;  %v11728_v13 = vunpack.i.h.bf16 %v15298_v8 }
 0x322   : > { %4052 = vmatmul.mubr.f32.gmra.mrb[90].mxu1 %v3753_v3  ;;  %v11722_v22 = vunpack.i.l.bf16 %v15296_v25  ;;  %v3723_v10 = vsel %vm1876_vm6, %v3691_v46, %v11698_v30  ;;  %v11723_v4 = vunpack.i.h.bf16 %v15296_v25  ;;  %v3693_v38 = vsel %vm1843_vm5, %v3661_v27, %v11718_v17  ;;  %v2638_v3 = vld [vmem:[#allocation2 + $0x19a] sm:$0xff] }
 0x323   : > { %10273 = vmatprep.mubr.msk.f32.mxu1 %vm387_vm0, %v14871_v55  ;;  %v3754_v55 = vsel %vm1909_vm7, %v3722_v0, %v11702_v49  ;;  %v3755_v39 = vsel %vm1909_vm7, %v3723_v10, %v11703_v56  ;;  %v10522_v41 = vpack.c.bf16 %v4158_v57, %v4157_v1  ;;  %v4234_v10 = vld [vmem:[%s18244_s7] sm:$0xf] }
 0x324   : > { %v11736_v62 = vpop.permute.xlu0 %11735  ;;  %v3566_v50 = vsel %vm387_vm0, %v13415_v24, %v11722_v22  ;;  %v3567_v43 = vsel %vm387_vm0, %v13416_v37, %v11723_v4  ;;  %10451 = vmatpush3.msk.msra.mxu1 %vm4240_vm9, %v4234_v10 }
 0x325   : > { %v11731_v23 = vpop.permute.xlu1 %11730  ;;  %v11737_v26 = vunpack.i.l.bf16 %v11736_v62  ;;  %v11738_v9 = vunpack.i.h.bf16 %v11736_v62  ;;  %v3599_v8 = vsel %vm1744_vm2, %v3567_v43, %v11728_v13  ;;  %10523 = vmatpush3.bf16.msra.mxu0 %v10522_v41 }
 0x326   : > { %v11732_v48 = vunpack.i.l.bf16 %v11731_v23  ;;  %4057 = vmatmul.mubr.f32.gmra.mrb[92].mxu1 %v3754_v55  ;;  %v11733_v34 = vunpack.i.h.bf16 %v11731_v23  ;;  %v18375_v55 = vmov 0.0|0.0  }
 0x327   : > { %10274 = vmatprep.mubr.msk.f32.mxu1 %vm387_vm0, %v14873_v29  ;;  %v3598_v29 = vsel %vm1744_vm2, %v3566_v50, %v11727_v61  ;;  %10524 = vmatprep.subr.bf16.mxu0 %v18375_v55 }
 0x328   : > { %v11746_v31 = vpop.permute.xlu0 %11745  ;;  %v3724_v5 = vsel %vm1876_vm6, %v3692_v42, %v11732_v48  ;;  %10551 = vmatprep.subr.bf16.mxu1 %v18375_v55 }
 0x329   : > { %v11741_v11 = vpop.permute.xlu1 %11740  ;;  %v11747_v51 = vunpack.i.l.bf16 %v11746_v31  ;;  %v3756_v52 = vsel %vm1909_vm7, %v3724_v5, %v11737_v26  ;;  %v11748_v63 = vunpack.i.h.bf16 %v11746_v31  ;;  %v18376_v31 = vmov 0.0  }
 0x32a   : > { %v11742_v7 = vunpack.i.l.bf16 %v11741_v11  ;;  %4062 = vmatmul.mubr.f32.gmra.mrb[94].mxu1 %v3755_v39  ;;  %v11743_v21 = vunpack.i.h.bf16 %v11741_v11  ;;  %10447 = vmatprep.mubr.msk.f32.mxu0 %vm13441_vm8, %v18376_v31 }
 0x32b   : > { %10275 = vmatprep.mubr.msk.f32.mxu1 %vm387_vm0, %v14921_v47  ;;  %v3725_v47 = vsel %vm1876_vm6, %v3693_v38, %v11733_v34 }
 0x32c   : > { %v3630_v28 = vsel %vm1777_vm3, %v3598_v29, %v11742_v7  ;;  %v3373_v59 = vpop.permute.xlu0 %3372  ;;  %v3631_v20 = vsel %vm1777_vm3, %v3599_v8, %v11743_v21  ;;  %v3757_v49 = vsel %vm1909_vm7, %v3725_v47, %v11738_v9 }
 0x32d   : > { %v3245_v33 = vpop.permute.xlu1 %3244  ;;  %v3662_v45 = vsel %vm1810_vm4, %v3630_v28, %v11747_v51  ;;  %v3663_v2 = vsel %vm1810_vm4, %v3631_v20, %v11748_v63 }
 0x32e   : > { %4067 = vmatmul.mubr.f32.gmra.mrb[96].mxu1 %v3756_v52  ;;  %v3694_v35 = vsel %vm1843_vm5, %v3662_v45, %v3245_v33 }
 0x32f   : > { %10276 = vmatprep.mubr.msk.f32.mxu1 %vm387_vm0, %v18374_v44  ;;  %v3726_v15 = vsel %vm1876_vm6, %v3694_v35, %v3373_v59  ;;  %v15383_v59 = vld [vmem:[%s18241_s4] ss:$0 sm:$0xff] }
 0x330   : > { %v3247_v19 = vpop.permute.xlu0 %3246 }
 0x331   : > { %v3501_v25 = vpop.permute.xlu1 %3500  ;;  %v3695_v32 = vsel %vm1843_vm5, %v3663_v2, %v3247_v19 }
 0x332   : > { %4072 = vmatmul.mubr.f32.gmra.mrb[98].mxu1 %v3757_v49  ;;  %v3758_v36 = vsel %vm1909_vm7, %v3726_v15, %v3501_v25 }
 0x333   : > { %10277 = vmatprep.mubr.msk.f32.mxu1 %vm387_vm0, %v2638_v3 }
 0x334   : > { %v3503_v12 = vpop.permute.xlu0 %3502 }
 0x335   : > { %v3375_v60 = vpop.permute.xlu1 %3374 }
 0x336   : > { %v3727_v18 = vsel %vm1876_vm6, %v3695_v32, %v3375_v60  ;;  %4077 = vmatmul.mubr.f32.gmra.mrb[100].mxu1 %v3758_v36 }
 0x337   : > { %10278 = vmatprep.mubr.msk.f32.mxu1 %vm387_vm0, %v2639_v14  ;;  %v3759_v30 = vsel %vm1909_vm7, %v3727_v18, %v3503_v12 }
 0x33a   : > { %4082 = vmatmul.mubr.f32.gmra.mrb[102].mxu1 %v3759_v30 }
 0x33b   : > { %10452 = vmatprep.mubr.msk.f32.mxu1 %vm13441_vm8, %v18376_v31 }
 0x347   : > { %v3928_v22 = vpop.f32.mrb[40].mxu1 }
 0x348   : > { %v3930_v23 = vpop.f32.mrb[41].mxu1  ;;  %v15389_v43 = vadd.f32 %v15383_v59, %v3928_v22 }
 0x34a   : > { %v4087_v44 = vsel %vm387_vm0, %v15389_v43, 0.0 }
 0x34b   : > { %v3933_v62 = vpop.f32.mrb[42].mxu1 }
 0x34c   : > { %v3935_v40 = vpop.f32.mrb[43].mxu1  ;;  %v15386_v38 = vadd.f32 %v15383_v59, %v3933_v62 }
 0x34e   : > { %v4088_v52 = vsel %vm387_vm0, %v15386_v38, 0.0 }
 0x34f   : > { %v4089_v63 = vadd.f32 %v4088_v52, %v4087_v44 }
 0x364   : > { %v3938_v6 = vpop.f32.mrb[44].mxu1 }
 0x365   : > { %v3940_v56 = vpop.f32.mrb[45].mxu1  ;;  %v15392_v9 = vadd.f32 %v15383_v59, %v3938_v6 }
 0x367   : > { %v4090_v25 = vsel %vm387_vm0, %v15392_v9, 0.0 }
 0x368   : > { %v3943_v16 = vpop.f32.mrb[46].mxu1  ;;  %v4091_v49 = vadd.f32 %v4090_v25, %v4089_v63 }
 0x369   : > { %v3945_v0 = vpop.f32.mrb[47].mxu1  ;;  %v15397_v45 = vadd.f32 %v15383_v59, %v3943_v16 }
 0x36b   : > { %v4092_v3 = vsel %vm387_vm0, %v15397_v45, 0.0 }
 0x36c   : > { %v4093_v2 = vadd.f32 %v4092_v3, %v4091_v49 }
 0x37f   : > { %v3948_v53 = vpop.f32.mrb[48].mxu1 }
 0x380   : > { %v3950_v61 = vpop.f32.mrb[49].mxu1  ;;  %v15404_v8 = vadd.f32 %v15383_v59, %v3948_v53 }
 0x382   : > { %v4094_v60 = vsel %vm387_vm0, %v15404_v8, 0.0 }
 0x383   : > { %v3953_v48 = vpop.f32.mrb[50].mxu1  ;;  %v4095_v12 = vadd.f32 %v4094_v60, %v4093_v2 }
 0x384   : > { %v3955_v46 = vpop.f32.mrb[51].mxu1  ;;  %v15409_v35 = vadd.f32 %v15383_v59, %v3953_v48 }
 0x386   : > { %v4096_v32 = vsel %vm387_vm0, %v15409_v35, 0.0 }
 0x387   : > { %v4097_v23 = vadd.f32 %v4096_v32, %v4095_v12 }
 0x39c   : > { %v3958_v58 = vpop.f32.mrb[52].mxu1 }
 0x39d   : > { %v3960_v24 = vpop.f32.mrb[53].mxu1  ;;  %v15414_v15 = vadd.f32 %v15383_v59, %v3958_v58 }
 0x39f   : > { %v4098_v30 = vsel %vm387_vm0, %v15414_v15, 0.0 }
 0x3a0   : > { %v3963_v50 = vpop.f32.mrb[54].mxu1  ;;  %v4099_v16 = vadd.f32 %v4098_v30, %v4097_v23 }
 0x3a1   : > { %v3965_v11 = vpop.f32.mrb[55].mxu1  ;;  %v15419_v36 = vadd.f32 %v15383_v59, %v3963_v50 }
 0x3a3   : > { %v4100_v40 = vsel %vm387_vm0, %v15419_v36, 0.0 }
 0x3a4   : > { %v4101_v57 = vadd.f32 %v4100_v40, %v4099_v16 }
 0x3af   : > { %v3968_v54 = vpop.f32.mrb[56].mxu1 }
 0x3b0   : > { %v3970_v17 = vpop.f32.mrb[57].mxu1  ;;  %v15424_v22 = vadd.f32 %v15383_v59, %v3968_v54 }
 0x3b2   : > { %v4102_v0 = vsel %vm387_vm0, %v15424_v22, 0.0 }
 0x3b3   : > { %v3973_v7 = vpop.f32.mrb[58].mxu1  ;;  %v4103_v46 = vadd.f32 %v4102_v0, %v4101_v57 }
 0x3b4   : > { %v3975_v39 = vpop.f32.mrb[59].mxu1  ;;  %v15429_v6 = vadd.f32 %v15383_v59, %v3973_v7 }
 0x3b6   : > { %v4104_v53 = vsel %vm387_vm0, %v15429_v6, 0.0 }
 0x3b7   : > { %v3978_v27 = vpop.f32.mrb[60].mxu1  ;;  %v4105_v50 = vadd.f32 %v4104_v53, %v4103_v46 }
 0x3b8   : > { %v3980_v4 = vpop.f32.mrb[61].mxu1  ;;  %v15434_v1 = vadd.f32 %v15383_v59, %v3978_v27 }
 0x3ba   : > { %v4106_v58 = vsel %vm387_vm0, %v15434_v1, 0.0 }
 0x3bb   : > { %v3983_v26 = vpop.f32.mrb[62].mxu1  ;;  %v4107_v7 = vadd.f32 %v4106_v58, %v4105_v50 }
 0x3bc   : > { %v3985_v42 = vpop.f32.mrb[63].mxu1  ;;  %v15439_v61 = vadd.f32 %v15383_v59, %v3983_v26 }
 0x3be   : > { %v4108_v10 = vsel %vm387_vm0, %v15439_v61, 0.0 }
 0x3bf   : > { %v4109_v4 = vadd.f32 %v4108_v10, %v4107_v7 }
 0x3c1   : > { %v3988_v29 = vpop.f32.mrb[64].mxu1 }
 0x3c2   : > { %v3990_v34 = vpop.f32.mrb[65].mxu1  ;;  %v15444_v24 = vadd.f32 %v15383_v59, %v3988_v29 }
 0x3c4   : > { %v4110_v39 = vsel %vm387_vm0, %v15444_v24, 0.0 }
 0x3c5   : > { %v3993_v51 = vpop.f32.mrb[66].mxu1 }
 0x3c6   : > { %v3995_v5 = vpop.f32.mrb[67].mxu1  ;;  %v15449_v54 = vadd.f32 %v15383_v59, %v3993_v51 }
 0x3c7   : > { %v4111_v5 = vadd.f32 %v4110_v39, %v4109_v4 }
 0x3c8   : > { %v4112_v42 = vsel %vm387_vm0, %v15449_v54, 0.0 }
 0x3c9   : > { %v3998_v33 = vpop.f32.mrb[68].mxu1 }
 0x3ca   : > { %v4000_v28 = vpop.f32.mrb[69].mxu1  ;;  %v15454_v27 = vadd.f32 %v15383_v59, %v3998_v33 }
 0x3cc   : > { %v4114_v51 = vsel %vm387_vm0, %v15454_v27, 0.0 }
 0x3cd   : > { %v4003_v13 = vpop.f32.mrb[70].mxu1 }
 0x3ce   : > { %v4005_v37 = vpop.f32.mrb[71].mxu1  ;;  %v15459_v29 = vadd.f32 %v15383_v59, %v4003_v13 }
 0x3cf   : > { %v4113_v37 = vadd.f32 %v4112_v42, %v4111_v5 }
 0x3d0   : > { %v4116_v33 = vsel %vm387_vm0, %v15459_v29, 0.0 }
 0x3d1   : > { %v4008_v21 = vpop.f32.mrb[72].mxu1  ;;  %v4115_v25 = vadd.f32 %v4114_v51, %v4113_v37 }
 0x3d2   : > { %v4010_v47 = vpop.f32.mrb[73].mxu1  ;;  %v15464_v28 = vadd.f32 %v15383_v59, %v4008_v21 }
 0x3d3   : > { %v4117_v3 = vadd.f32 %v4116_v33, %v4115_v25 }
 0x3d4   : > { %v4118_v13 = vsel %vm387_vm0, %v15464_v28, 0.0 }
 0x3d5   : > { %v4013_v19 = vpop.f32.mrb[74].mxu1  ;;  %v4119_v2 = vadd.f32 %v4118_v13, %v4117_v3 }
 0x3d6   : > { %v4015_v20 = vpop.f32.mrb[75].mxu1  ;;  %v15469_v47 = vadd.f32 %v15383_v59, %v4013_v19 }
 0x3d8   : > { %v4120_v21 = vsel %vm387_vm0, %v15469_v47, 0.0 }
 0x3d9   : > { %v4018_v14 = vpop.f32.mrb[76].mxu1 }
 0x3da   : > { %v4020_v18 = vpop.f32.mrb[77].mxu1  ;;  %v15474_v63 = vadd.f32 %v15383_v59, %v4018_v14 }
 0x3db   : > { %v4121_v18 = vadd.f32 %v4120_v21, %v4119_v2 }
 0x3dc   : > { %v4122_v19 = vsel %vm387_vm0, %v15474_v63, 0.0 }
 0x3dd   : > { %v4023_v62 = vpop.f32.mrb[78].mxu1  ;;  %v4123_v40 = vadd.f32 %v4122_v19, %v4121_v18 }
 0x3de   : > { %v4025_v56 = vpop.f32.mrb[79].mxu1  ;;  %v15479_v49 = vadd.f32 %v15383_v59, %v4023_v62 }
 0x3e0   : > { %v4124_v14 = vsel %vm387_vm0, %v15479_v49, 0.0 }
 0x3e1   : > { %v4028_v41 = vpop.f32.mrb[80].mxu1  ;;  %v4125_v16 = vadd.f32 %v4124_v14, %v4123_v40 }
 0x3e2   : > { %v4030_v48 = vpop.f32.mrb[81].mxu1  ;;  %v15484_v32 = vadd.f32 %v15383_v59, %v4028_v41 }
 0x3e4   : > { %v4126_v62 = vsel %vm387_vm0, %v15484_v32, 0.0 }
 0x3e5   : > { %v4033_v11 = vpop.f32.mrb[82].mxu1  ;;  %v4127_v48 = vadd.f32 %v4126_v62, %v4125_v16 }
 0x3e6   : > { %v4035_v17 = vpop.f32.mrb[83].mxu1  ;;  %v15489_v30 = vadd.f32 %v15383_v59, %v4033_v11 }
 0x3e8   : > { %v4128_v57 = vsel %vm387_vm0, %v15489_v30, 0.0 }
 0x3e9   : > { %v4038_v26 = vpop.f32.mrb[84].mxu1  ;;  %v4129_v50 = vadd.f32 %v4128_v57, %v4127_v48 }
 0x3ea   : > { %v4040_v34 = vpop.f32.mrb[85].mxu1  ;;  %v15494_v56 = vadd.f32 %v15383_v59, %v4038_v26 }
 0x3ec   : > { %v4130_v46 = vsel %vm387_vm0, %v15494_v56, 0.0 }
 0x3ed   : > { %v4043_v52 = vpop.f32.mrb[86].mxu1  ;;  %v4131_v39 = vadd.f32 %v4130_v46, %v4129_v50 }
 0x3ee   : > { %v4045_v44 = vpop.f32.mrb[87].mxu1  ;;  %v15499_v41 = vadd.f32 %v15383_v59, %v4043_v52 }
 0x3f0   : > { %v4132_v10 = vsel %vm387_vm0, %v15499_v41, 0.0 }
 0x3f1   : > { %v4048_v20 = vpop.f32.mrb[88].mxu1  ;;  %v4133_v42 = vadd.f32 %v4132_v10, %v4131_v39 }
 0x3f2   : > { %v4050_v60 = vpop.f32.mrb[89].mxu1  ;;  %v15504_v58 = vadd.f32 %v15383_v59, %v4048_v20 }
 0x3f4   : > { %v4134_v4 = vsel %vm387_vm0, %v15504_v58, 0.0 }
 0x3f5   : > { %v4053_v12 = vpop.f32.mrb[90].mxu1  ;;  %v4135_v52 = vadd.f32 %v4134_v4, %v4133_v42 }
 0x3f6   : > { %v4055_v23 = vpop.f32.mrb[91].mxu1  ;;  %v15509_v17 = vadd.f32 %v15383_v59, %v4053_v12 }
 0x3f8   : > { %v4136_v5 = vsel %vm387_vm0, %v15509_v17, 0.0 }
 0x3f9   : > { %v4058_v0 = vpop.f32.mrb[92].mxu1  ;;  %v4137_v25 = vadd.f32 %v4136_v5, %v4135_v52 }
 0x3fa   : > { %v4060_v53 = vpop.f32.mrb[93].mxu1  ;;  %v15514_v26 = vadd.f32 %v15383_v59, %v4058_v0 }
 0x3fc   : > { %v4138_v33 = vsel %vm387_vm0, %v15514_v26, 0.0 }
 0x3fd   : > { %v4063_v11 = vpop.f32.mrb[94].mxu1  ;;  %v4139_v60 = vadd.f32 %v4138_v33, %v4137_v25  ;;  %v4473_v25 = vld [vmem:[#allocation2 + $0x1] sm:$0xff] }
 0x3fe   : > { %v4065_v7 = vpop.f32.mrb[95].mxu1  ;;  %v15519_v51 = vadd.f32 %v15383_v59, %v4063_v11 }
 0x400   : > { %v4140_v3 = vsel %vm387_vm0, %v15519_v51, 0.0 }
 0x401   : > { %v4068_v34 = vpop.f32.mrb[96].mxu1  ;;  %v4141_v19 = vadd.f32 %v4140_v3, %v4139_v60  ;;  %v4506_v60 = vld [vmem:[#allocation2 + $0xa] sm:$0xff] }
 0x402   : > { %v4070_v37 = vpop.f32.mrb[97].mxu1  ;;  %v15524_v44 = vadd.f32 %v15383_v59, %v4068_v34 }
 0x404   : > { %v4142_v2 = vsel %vm387_vm0, %v15524_v44, 0.0 }
 0x405   : > { %v4073_v13 = vpop.f32.mrb[98].mxu1  ;;  %v4143_v40 = vadd.f32 %v4142_v2, %v4141_v19  ;;  %v4235_v19 = vld [vmem:[%s18245_s8] sm:$0x1] }
 0x406   : > { %v15529_v20 = vadd.f32 %v15383_v59, %v4073_v13  ;;  %v4075_v21 = vpop.f32.mrb[99].mxu1  ;;  %v4474_v13 = vld [vmem:[#allocation2 + $0x9] sm:$0xff] }
 0x407   : > { %v11749_v3 = vpack.i.bf16 %v4474_v13, %v4473_v25  ;;  %v4505_v21 = vld [vmem:[#allocation2 + $0x2] sm:$0xff]  ;;  %v10292_v25 = vld [vmem:[%s18238_s1 + $0xd8] sm:$0xff] }
 0x408   : > { %v4144_v12 = vsel %vm387_vm0, %v15529_v20, 0.0  ;;  %v11754_v2 = vpack.i.bf16 %v4506_v60, %v4505_v21 }
 0x409   : > { %v4078_v18 = vpop.f32.mrb[100].mxu1  ;;  %v4145_v16 = vadd.f32 %v4144_v12, %v4143_v40  ;;  %11750 = vrot.lane.b32.xlu1 %v11749_v3, %s13434_s22 }
 0x40a   : > { %v15536_v14 = vadd.f32 %v15383_v59, %v4078_v18  ;;  %v4080_v23 = vpop.f32.mrb[101].mxu1  ;;  %11755 = vrot.lane.b32.xlu0 %v11754_v2, %s13435_s28 }
 0x40c   : > { %v4146_v62 = vsel %vm387_vm0, %v15536_v14, 0.0 }
 0x40d   : > { %v4083_v0 = vpop.f32.mrb[102].mxu1  ;;  %v4147_v48 = vadd.f32 %v4146_v62, %v4145_v16  ;;  %v10283_v62 = vld [vmem:[%s18238_s1 + $0x90] sm:$0xff]  ;;  %v10284_v16 = vld [vmem:[%s18238_s1 + $0x98] sm:$0xff] }
 0x40e   : > { %v15541_v57 = vadd.f32 %v15383_v59, %v4083_v0  ;;  %v4085_v53 = vpop.f32.mrb[103].mxu1  ;;  %v4159_v59 = vld [vmem:[%s18243_s6] sm:$0x1]  ;;  %v10525_v0 = vpack.c.bf16 %v10284_v16, %v10283_v62 }
 0x410   : > { %v4148_v46 = vsel %vm387_vm0, %v15541_v57, 0.0 }
 0x411   : > { %v4149_v50 = vadd.f32 %v4148_v46, %v4147_v48  ;;  %v10285_v46 = vld [vmem:[%s18238_s1 + $0xa0] sm:$0xff] }
 0x413   : > { %v4150_v11 = vrot.slane %v4149_v50, 4 }
 0x415   : > { %v4151_v10 = vadd.f32 %v4150_v11, %v4149_v50  ;;  %v10286_v50 = vld [vmem:[%s18238_s1 + $0xa8] sm:$0xff]  ;;  %v4320_v11 = vlaneseq }
 0x417   : > { %v4152_v7 = vrot.slane %v4151_v10, 2 }
 0x419   : > { %v4153_v39 = vadd.f32 %v4152_v7, %v4151_v10  ;;  %v10528_v10 = vpack.c.bf16 %v10286_v50, %v10285_v46  ;;  %v10287_v7 = vld [vmem:[%s18238_s1 + $0xb0] sm:$0xff]  ;;  %v18384_v50 = vld [vmem:[#allocation10_spill] sm:$0xff] }
 0x41b   : > { %v4154_v4 = vrot.slane %v4153_v39, 1 }
 0x41d   : > { %v4155_v42 = vadd.f32 %v4154_v4, %v4153_v39  ;;  %v10288_v39 = vld [vmem:[%s18238_s1 + $0xb8] sm:$0xff]  ;;  %v15575_v4 = vshrl.u32 %v4320_v11, 7 }
 0x41f   : > { %v4156_v34 = vmul.f32 0.00390625, %v4155_v42  ;;  %v10531_v42 = vpack.c.bf16 %v10288_v39, %v10287_v7  ;;  %v18386_v39 = vld [vmem:[#allocation12_spill] sm:$0xff] }
 0x421   : > { %10448 = vmatmul.mubr.msk.f32.vlgmr.msra.gmra.mrb[24].mxu0 %vm387_vm0, %v4156_v34  ;;  %v10289_v34 = vld [vmem:[%s18238_s1 + $0xc0] sm:$0xff] }
 0x422   : > { %10526 = vmatpush1.bf16.msra.mxu0 %v10525_v0  ;;  %v18377_v0 = vld [vmem:[#allocation3_spill] sm:$0xff] }
 0x423   : > { %10527 = vmatprep.subr.bf16.mxu0 %v18375_v55 }
 0x426   : > { %10529 = vmatpush1.bf16.msra.mxu0 %v10528_v10  ;;  %v18385_v10 = vld [vmem:[#allocation11_spill] sm:$0xff] }
 0x427   : > { %10530 = vmatprep.subr.bf16.mxu0 %v18375_v55 }
 0x42a   : > { %10532 = vmatpush1.bf16.msra.mxu0 %v10531_v42 }
 0x42b   : > { %10533 = vmatprep.subr.bf16.mxu0 %v18375_v55 }
 0x4f4   : > { %v4229_v5 = vpop.f32.mrb[24].mxu0 }
 0x4f5   : > { %v4230_v37 = vadd.f32 %v4229_v5, %v4159_v59  ;;  %v10449_v52 = vpop.f32.mrb[25].mxu0  ;;  %v10290_v59 = vld [vmem:[%s18238_s1 + $0xc8] sm:$0xff]  ;;  %v18319_v5 = vsub.s32 0, %v15575_v4 }
 0x4f7   : > { %v4233_v33 = vmax.f32 %v4230_v37, 0.0  ;;  %v10534_v37 = vpack.c.bf16 %v10290_v59, %v10289_v34  ;;  %v18387_v34 = vld [vmem:[#allocation13_spill] sm:$0xff] }
 0x4f9   : > { %10453 = vmatmul.mubr.msk.f32.vlgmr.msra.gmra.mrb[104].mxu1 %vm4236_vm10, %v4233_v33  ;;  %10535 = vmatpush1.bf16.msra.mxu0 %v10534_v37  ;;  %v10291_v33 = vld [vmem:[%s18238_s1 + $0xd0] sm:$0xff]  ;;  %v18388_v37 = vld [vmem:[#allocation14_spill] sm:$0xff] }
 0x4fa   : > { %10536 = vmatprep.subr.bf16.mxu0 %v18375_v55  ;;  %v10537_v3 = vpack.c.bf16 %v10292_v25, %v10291_v33  ;;  %v18389_v33 = vld [vmem:[#allocation15_spill] sm:$0xff] }
 0x4fd   : > { %10538 = vmatpush1.bf16.msra.mxu0 %v10537_v3 }
 0x4fe   : > { %10539 = vmatprep.subr.bf16.mxu0 %v18375_v55 }
 0x5cc   : > { %v4310_v18 = vpop.f32.mrb[104].mxu1 }
 0x5cd   : > { %v4311_v12 = vadd.f32 %v4310_v18, %v4235_v19  ;;  %v10454_v23 = vpop.f32.mrb[105].mxu1 }
 0x5cf   : > { %v10282_v40 = vmul.f32 -1.442695, %v4311_v12 }
 0x5d1   : > { %13399 = vpow2.f32 %v10282_v40 }
 0x5db   : > { %v13400_v53 = vpop.eup %13399 }
 0x5dc   : > { %v4317_v48 = vadd.f32 1.0, %v13400_v53 }
 0x5de   : > { %13401 = vrcp.f32 %v4317_v48 }
 0x5e8   : > { %v13402_v52 = vpop.eup %13401 }
 0x5e9   : > { %v4323_v13 = vrot.slane %v13402_v52, %v18319_v5 }
 0x5eb   : > { %v4324_v21 = vmul.f32 %v4323_v13, %v15389_v43  ;;  %v4325_v60 = vmul.f32 %v4323_v13, %v15386_v38  ;;  %v4326_v2 = vmul.f32 %v4323_v13, %v15392_v9  ;;  %v4327_v19 = vmul.f32 %v4323_v13, %v15397_v45 }
 0x5ec   : > { %v4328_v18 = vmul.f32 %v4323_v13, %v15404_v8  ;;  %v4329_v12 = vmul.f32 %v4323_v13, %v15409_v35  ;;  %v4330_v23 = vmul.f32 %v4323_v13, %v15414_v15  ;;  %v4331_v40 = vmul.f32 %v4323_v13, %v15419_v36 }
 0x5ed   : > { %v4332_v62 = vmul.f32 %v4323_v13, %v15424_v22  ;;  %v4333_v43 = vmul.f32 %v4323_v13, %v15429_v6  ;;  %v4334_v38 = vmul.f32 %v4323_v13, %v15434_v1  ;;  %v4335_v9 = vmul.f32 %v4323_v13, %v15439_v61 }
 0x5ee   : > { %v4336_v45 = vmul.f32 %v4323_v13, %v15444_v24  ;;  %v4337_v8 = vmul.f32 %v4323_v13, %v15449_v54  ;;  %v4338_v35 = vmul.f32 %v4323_v13, %v15454_v27  ;;  %v4339_v15 = vmul.f32 %v4323_v13, %v15459_v29 }
 0x5ef   : > { %v4340_v36 = vmul.f32 %v4323_v13, %v15464_v28  ;;  %v4341_v16 = vmul.f32 %v4323_v13, %v15469_v47  ;;  %v4342_v22 = vmul.f32 %v4323_v13, %v15474_v63  ;;  %v4343_v6 = vmul.f32 %v4323_v13, %v15479_v49 }
 0x5f0   : > { %v4344_v1 = vmul.f32 %v4323_v13, %v15484_v32  ;;  %v4345_v61 = vmul.f32 %v4323_v13, %v15489_v30  ;;  %v4346_v24 = vmul.f32 %v4323_v13, %v15494_v56  ;;  %v4347_v54 = vmul.f32 %v4323_v13, %v15499_v41  ;;  %v18378_v41 = vld [vmem:[#allocation4_spill] sm:$0xff] }
 0x5f1   : > { %v4348_v27 = vmul.f32 %v4323_v13, %v15504_v58  ;;  %v4349_v29 = vmul.f32 %v4323_v13, %v15509_v17  ;;  %v4350_v28 = vmul.f32 %v4323_v13, %v15514_v26  ;;  %v4351_v47 = vmul.f32 %v4323_v13, %v15519_v51  ;;  %v18379_v58 = vld [vmem:[#allocation5_spill] sm:$0xff]  ;;  %v18380_v26 = vld [vmem:[#allocation6_spill] sm:$0xff]  ;;  %v18381_v51 = vld [vmem:[#allocation7_spill] sm:$0xff] }
 0x5f2   : > { %v4352_v63 = vmul.f32 %v4323_v13, %v15524_v44  ;;  %v4353_v49 = vmul.f32 %v4323_v13, %v15529_v20  ;;  %v4354_v32 = vmul.f32 %v4323_v13, %v15536_v14  ;;  %v4355_v30 = vmul.f32 %v4323_v13, %v15541_v57  ;;  %v18382_v20 = vld [vmem:[#allocation8_spill] sm:$0xff]  ;;  %v18383_v14 = vld [vmem:[#allocation9_spill] sm:$0xff] }
 0x5f3   : > { %v15628_v56 = vadd.f32 %v4324_v21, %v18377_v0  ;;  %v15631_v53 = vadd.f32 %v4325_v60, %v18378_v41  ;;  %v15634_v17 = vadd.f32 %v4326_v2, %v18379_v58  ;;  %v15637_v48 = vadd.f32 %v4327_v19, %v18380_v26  ;;  %v18390_v13 = vld [vmem:[#allocation16_spill] sm:$0xff]  ;;  %v18392_v21 = vld [vmem:[#allocation17_spill] sm:$0xff]  ;;  %v18394_v2 = vld [vmem:[#allocation18_spill] sm:$0xff] }
 0x5f4   : > { %v15640_v44 = vadd.f32 %v4328_v18, %v18381_v51  ;;  %v15643_v46 = vadd.f32 %v4329_v12, %v18382_v20  ;;  %v15646_v57 = vadd.f32 %v4330_v23, %v18383_v14  ;;  %v15649_v11 = vadd.f32 %v4331_v40, %v18384_v50  ;;  %v18396_v18 = vld [vmem:[#allocation19_spill] sm:$0xff]  ;;  %v18398_v23 = vld [vmem:[#allocation20_spill] sm:$0xff] }
 0x5f5   : > { %v15652_v7 = vadd.f32 %v4332_v62, %v18385_v10  ;;  %v15655_v42 = vadd.f32 %v4333_v43, %v18386_v39  ;;  %v15658_v59 = vadd.f32 %v4334_v38, %v18387_v34  ;;  %v15661_v52 = vadd.f32 %v4335_v9, %v18388_v37  ;;  %4409 = vst.msk [vmem:[#allocation2 + $0x19] sm:$0xff] %vm387_vm0, %v15628_v56  ;;  %v18400_v62 = vld [vmem:[#allocation21_spill] sm:$0xff]  ;;  %v18402_v38 = vld [vmem:[#allocation22_spill] sm:$0xff] }
 0x5f6   : > { %4410 = vst.msk [vmem:[#allocation2 + $0x21] sm:$0xff] %vm387_vm0, %v15631_v53  ;;  %4411 = vst.msk [vmem:[#allocation2 + $0x31] sm:$0xff] %vm387_vm0, %v15634_v17  ;;  %v15672_v25 = vadd.f32 %v4336_v45, %v18389_v33  ;;  %v15675_v3 = vadd.f32 %v4337_v8, %v18390_v13  ;;  %v15678_v60 = vadd.f32 %v4338_v35, %v18392_v21  ;;  %v18404_v45 = vld [vmem:[#allocation23_spill] sm:$0xff]  ;;  %v18406_v35 = vld [vmem:[#allocation24_spill] sm:$0xff] }
 0x5f7   : > { %4412 = vst.msk [vmem:[#allocation2 + $0x39] sm:$0xff] %vm387_vm0, %v15637_v48  ;;  %v15681_v19 = vadd.f32 %v4339_v15, %v18394_v2  ;;  %4413 = vst.msk [vmem:[#allocation2 + $0x49] sm:$0xff] %vm387_vm0, %v15640_v44  ;;  %v15692_v12 = vadd.f32 %v4340_v36, %v18396_v18  ;;  %v15695_v40 = vadd.f32 %v4341_v16, %v18398_v23  ;;  %v18408_v36 = vld [vmem:[#allocation25_spill] sm:$0xff] }
 0x5f8   : > { %18391 = vst [vmem:[#allocation35_spill] sm:$0xff] %v15675_v3  ;;  %18393 = vst [vmem:[#allocation36_spill] sm:$0xff] %v15678_v60  ;;  %v15698_v43 = vadd.f32 %v4342_v22, %v18400_v62  ;;  %v15701_v9 = vadd.f32 %v4343_v6, %v18402_v38  ;;  %v15712_v8 = vadd.f32 %v4344_v1, %v18404_v45  ;;  %v18410_v22 = vld [vmem:[#allocation26_spill] sm:$0xff]  ;;  %v18412_v1 = vld [vmem:[#allocation27_spill] sm:$0xff] }
 0x5f9   : > { %18395 = vst [vmem:[#allocation37_spill] sm:$0xff] %v15681_v19  ;;  %4414 = vst.msk [vmem:[#allocation2 + $0x51] sm:$0xff] %vm387_vm0, %v15643_v46  ;;  %v15715_v15 = vadd.f32 %v4345_v61, %v18406_v35  ;;  %v15718_v16 = vadd.f32 %v4346_v24, %v18408_v36  ;;  %v15721_v6 = vadd.f32 %v4347_v54, %v18410_v22  ;;  %v18414_v24 = vld [vmem:[#allocation28_spill] sm:$0xff]  ;;  %v18416_v54 = vld [vmem:[#allocation29_spill] sm:$0xff] }
 0x5fa   : > { %4415 = vst.msk [vmem:[#allocation2 + $0x61] sm:$0xff] %vm387_vm0, %v15646_v57  ;;  %4416 = vst.msk [vmem:[#allocation2 + $0x69] sm:$0xff] %vm387_vm0, %v15649_v11  ;;  %v15732_v61 = vadd.f32 %v4348_v27, %v18412_v1  ;;  %v15735_v5 = vadd.f32 %v4349_v29, %v18414_v24  ;;  %v15738_v22 = vadd.f32 %v4350_v28, %v18416_v54  ;;  %v18418_v36 = vld [vmem:[#allocation30_spill] sm:$0xff]  ;;  %v10293_v27 = vld [vmem:[%s18238_s1 + $0xe0] sm:$0xff] }
 0x5fb   : > { %18397 = vst [vmem:[#allocation38_spill] sm:$0xff] %v15692_v12  ;;  %18399 = vst [vmem:[#allocation39_spill] sm:$0xff] %v15695_v40  ;;  %v15741_v35 = vadd.f32 %v4351_v47, %v18418_v36  ;;  %v10294_v29 = vld [vmem:[%s18238_s1 + $0xe8] sm:$0xff]  ;;  %v18420_v28 = vld [vmem:[#allocation31_spill] sm:$0xff] }
 0x5fc   : > { %18401 = vst [vmem:[#allocation40_spill] sm:$0xff] %v15698_v43  ;;  %18403 = vst [vmem:[#allocation41_spill] sm:$0xff] %v15701_v9  ;;  %v15758_v47 = vadd.f32 %v4352_v63, %v18420_v28  ;;  %v18422_v36 = vld [vmem:[#allocation32_spill] sm:$0xff]  ;;  %v18424_v24 = vld [vmem:[#allocation33_spill] sm:$0xff] }
 0x5fd   : > { %4417 = vst.msk [vmem:[#allocation2 + $0x79] sm:$0xff] %vm387_vm0, %v15652_v7  ;;  %4418 = vst.msk [vmem:[#allocation2 + $0x81] sm:$0xff] %vm387_vm0, %v15655_v42  ;;  %v15761_v54 = vadd.f32 %v4353_v49, %v18422_v36  ;;  %v15764_v1 = vadd.f32 %v4354_v32, %v18424_v24  ;;  %v18426_v45 = vld [vmem:[#allocation34_spill] sm:$0xff]  ;;  %v10295_v63 = vld [vmem:[%s18238_s1 + $0xf0] sm:$0xff]  ;;  %v10540_v24 = vpack.c.bf16 %v10294_v29, %v10293_v27 }
 0x5fe   : > { %4419 = vst.msk [vmem:[#allocation2 + $0x91] sm:$0xff] %vm387_vm0, %v15658_v59  ;;  %4420 = vst.msk [vmem:[#allocation2 + $0x99] sm:$0xff] %vm387_vm0, %v15661_v52  ;;  %v15767_v38 = vadd.f32 %v4355_v30, %v18426_v45  ;;  %v10296_v49 = vld [vmem:[%s18238_s1 + $0xf8] sm:$0xff]  ;;  %v4570_v45 = vld [vmem:[#allocation2 + $0x21] sm:$0xff] }
 0x5ff   : > { %18405 = vst [vmem:[#allocation42_spill] sm:$0xff] %v15712_v8  ;;  %18407 = vst [vmem:[#allocation43_spill] sm:$0xff] %v15715_v15  ;;  %v4697_v32 = vld [vmem:[#allocation2 + $0x32] sm:$0xff]  ;;  %v15802_v62 = vld [vmem:[#allocation2 + $0x20] sm:$0xff]  ;;  %10541 = vmatpush1.bf16.msra.mxu0 %v10540_v24  ;;  %v10543_v21 = vpack.c.bf16 %v10296_v49, %v10295_v63 }
 0x600   : > { %18409 = vst [vmem:[#allocation44_spill] sm:$0xff] %v15718_v16  ;;  %18411 = vst [vmem:[#allocation45_spill] sm:$0xff] %v15721_v6  ;;  %v4569_v30 = vld [vmem:[#allocation2 + $0x19] sm:$0xff]  ;;  %10303 = vmatprep.mubr.msk.f32.mxu0 %vm387_vm0, %v4697_v32  ;;  %v15806_v18 = vld [vmem:[#allocation2 + $0x30] sm:$0xff]  ;;  %10542 = vmatprep.subr.bf16.mxu0 %v18375_v55 }
 0x601   : > { %4421 = vst.msk [vmem:[#allocation2 + $0xa9] sm:$0xff] %vm387_vm0, %v15672_v25  ;;  %4422 = vst.msk [vmem:[#allocation2 + $0xb1] sm:$0xff] %vm387_vm0, %v15675_v3  ;;  %v11764_v36 = vpack.i.bf16 %v4570_v45, %v4569_v30  ;;  %v15800_v28 = vld [vmem:[#allocation2 + $0x18] sm:$0xff]  ;;  %v10297_v27 = vld [vmem:[%s18238_s1 + $0x100] sm:$0xff] }
 0x602   : > { %4423 = vst.msk [vmem:[#allocation2 + $0xc1] sm:$0xff] %vm387_vm0, %v15678_v60  ;;  %4424 = vst.msk [vmem:[#allocation2 + $0xc9] sm:$0xff] %vm387_vm0, %v15681_v19  ;;  %v11759_v23 = vpack.i.bf16 %v15802_v62, %v15800_v28  ;;  %v15808_v2 = vld [vmem:[#allocation2 + $0x38] sm:$0xff]  ;;  %v4602_v29 = vld [vmem:[#allocation2 + $0x22] sm:$0xff] }
 0x603   : > { %18413 = vst [vmem:[#allocation46_spill] sm:$0xff] %v15732_v61  ;;  %18415 = vst [vmem:[#allocation47_spill] sm:$0xff] %v15735_v5  ;;  %11765 = vrot.lane.b32.xlu0 %v11764_v36, %s13438_s24  ;;  %v4601_v45 = vld [vmem:[#allocation2 + $0x1a] sm:$0xff]  ;;  %v10298_v30 = vld [vmem:[%s18238_s1 + $0x108] sm:$0xff]  ;;  %v11774_v24 = vpack.i.bf16 %v15808_v2, %v15806_v18  ;;  %10544 = vmatpush1.bf16.msra.mxu0 %v10543_v21 }
 0x604   : > { %18417 = vst [vmem:[#allocation48_spill] sm:$0xff] %v15738_v22  ;;  %18419 = vst [vmem:[#allocation49_spill] sm:$0xff] %v15741_v35  ;;  %11760 = vrot.lane.b32.xlu1 %v11759_v23, %s13436_s14  ;;  %v11769_v63 = vpack.i.bf16 %v4602_v29, %v4601_v45  ;;  %v10546_v49 = vpack.c.bf16 %v10298_v30, %v10297_v27  ;;  %v4665_v13 = vld [vmem:[#allocation2 + $0x31] sm:$0xff]  ;;  %v4666_v33 = vld [vmem:[#allocation2 + $0x39] sm:$0xff]  ;;  %10545 = vmatprep.subr.bf16.mxu0 %v18375_v55 }
 0x605   : > { %4425 = vst.msk [vmem:[#allocation2 + $0xd9] sm:$0xff] %vm387_vm0, %v15692_v12  ;;  %4426 = vst.msk [vmem:[#allocation2 + $0xe1] sm:$0xff] %vm387_vm0, %v15695_v40  ;;  %v11779_v37 = vpack.i.bf16 %v4666_v33, %v4665_v13  ;;  %v15827_v23 = vld [vmem:[#allocation2 + $0x3a] sm:$0xff]  ;;  %v15832_v27 = vld [vmem:[#allocation2 + $0x48] sm:$0xff] }
 0x606   : > { %4427 = vst.msk [vmem:[#allocation2 + $0xf1] sm:$0xff] %vm387_vm0, %v15698_v43  ;;  %4428 = vst.msk [vmem:[#allocation2 + $0xf9] sm:$0xff] %vm387_vm0, %v15701_v9  ;;  %v11804_v21 = vpack.i.bf16 %v15827_v23, %v4697_v32  ;;  %v4667_v45 = vld [vmem:[#allocation2 + $0x49] sm:$0xff]  ;;  %v4668_v29 = vld [vmem:[#allocation2 + $0x51] sm:$0xff] }
 0x607   : > { %18421 = vst [vmem:[#allocation50_spill] sm:$0xff] %v15758_v47  ;;  %18423 = vst [vmem:[#allocation51_spill] sm:$0xff] %v15761_v54  ;;  %11775 = vrot.lane.b32.xlu0 %v11774_v24, %s13440_s26  ;;  %10547 = vmatpush1.bf16.msra.mxu0 %v10546_v49  ;;  %v15835_v33 = vld [vmem:[#allocation2 + $0x50] sm:$0xff]  ;;  %v11814_v32 = vpack.i.bf16 %v4668_v29, %v4667_v45  ;;  %v15853_v49 = vld [vmem:[#allocation2 + $0x68] sm:$0xff] }
 0x608   : > { %18425 = vst [vmem:[#allocation52_spill] sm:$0xff] %v15764_v1  ;;  %18427 = vst [vmem:[#allocation53_spill] sm:$0xff] %v15767_v38  ;;  %11770 = vrot.lane.b32.xlu1 %v11769_v63, %s13437_s16  ;;  %10548 = vmatprep.subr.bf16.mxu0 %v18375_v55  ;;  %v10299_v13 = vld [vmem:[%s18238_s1 + $0x110] sm:$0xff]  ;;  %v15869_v34 = vld [vmem:[#allocation2 + $0x62] sm:$0xff] }
 0x609   : > { %4429 = vst.msk [vmem:[#allocation2 + $0x109] sm:$0xff] %vm387_vm0, %v15712_v8  ;;  %4430 = vst.msk [vmem:[#allocation2 + $0x111] sm:$0xff] %vm387_vm0, %v15715_v15  ;;  %v15856_v45 = vld [vmem:[#allocation2 + $0x4a] sm:$0xff]  ;;  %v15858_v29 = vld [vmem:[#allocation2 + $0x52] sm:$0xff] }
 0x60a   : > { %4431 = vst.msk [vmem:[#allocation2 + $0x121] sm:$0xff] %vm387_vm0, %v15718_v16  ;;  %4432 = vst.msk [vmem:[#allocation2 + $0x129] sm:$0xff] %vm387_vm0, %v15721_v6  ;;  %v4671_v10 = vld [vmem:[#allocation2 + $0x79] sm:$0xff]  ;;  %v4672_v50 = vld [vmem:[#allocation2 + $0x81] sm:$0xff] }
 0x60b   : > { %4433 = vst.msk [vmem:[#allocation2 + $0x139] sm:$0xff] %vm387_vm0, %v15732_v61  ;;  %4434 = vst.msk [vmem:[#allocation2 + $0x141] sm:$0xff] %vm387_vm0, %v15735_v5  ;;  %11785 = vrot.lane.b32.xlu0 %v11764_v36, %s13434_s22  ;;  %v10300_v36 = vld [vmem:[%s18238_s1 + $0x118] sm:$0xff]  ;;  %v15892_v51 = vld [vmem:[#allocation2 + $0x82] sm:$0xff] }
 0x60c   : > { %4435 = vst.msk [vmem:[#allocation2 + $0x151] sm:$0xff] %vm387_vm0, %v15738_v22  ;;  %4436 = vst.msk [vmem:[#allocation2 + $0x159] sm:$0xff] %vm387_vm0, %v15741_v35  ;;  %11780 = vrot.lane.b32.xlu1 %v11779_v37, %s13439_s25  ;;  %v10549_v30 = vpack.c.bf16 %v10300_v36, %v10299_v13  ;;  %v4670_v36 = vld [vmem:[#allocation2 + $0x69] sm:$0xff]  ;;  %v15890_v20 = vld [vmem:[#allocation2 + $0x7a] sm:$0xff] }
 0x60d   : > { %4437 = vst.msk [vmem:[#allocation2 + $0x169] sm:$0xff] %vm387_vm0, %v15758_v47  ;;  %4438 = vst.msk [vmem:[#allocation2 + $0x171] sm:$0xff] %vm387_vm0, %v15761_v54  ;;  %v4673_v26 = vld [vmem:[#allocation2 + $0x91] sm:$0xff]  ;;  %v15903_v41 = vld [vmem:[#allocation2 + $0x9a] sm:$0xff] }
 0x60e   : > { %4439 = vst.msk [vmem:[#allocation2 + $0x181] sm:$0xff] %vm387_vm0, %v15764_v1  ;;  %4440 = vst.msk [vmem:[#allocation2 + $0x189] sm:$0xff] %vm387_vm0, %v15767_v38  ;;  %10550 = vmatpush1.bf16.msra.mxu0 %v10549_v30  ;;  %v15901_v58 = vld [vmem:[#allocation2 + $0x92] sm:$0xff]  ;;  %v15916_v38 = vld [vmem:[#allocation2 + $0xaa] sm:$0xff] }
 0x60f   : > { %11795 = vrot.lane.b32.xlu0 %v11774_v24, %s13436_s14  ;;  %v11809_v24 = vpack.i.bf16 %v15835_v33, %v15832_v27  ;;  %10578 = vmatprep.subr.bf16.mxu0 %v18375_v55  ;;  %v4614_v1 = vld [vmem:[#allocation2 + $0xb2] sm:$0xff]  ;;  %v4648_v47 = vld [vmem:[#allocation2 + $0xe0] sm:$0xff] }
 0x610   : > { %11790 = vrot.lane.b32.xlu1 %v11769_v63, %s13435_s28  ;;  %v15851_v63 = vld [vmem:[#allocation2 + $0x60] sm:$0xff]  ;;  %v4649_v35 = vld [vmem:[#allocation2 + $0xf0] sm:$0xff]  ;;  %v4650_v22 = vld [vmem:[#allocation2 + $0xf8] sm:$0xff] }
 0x611   : > { %v11844_v13 = vpack.i.bf16 %v15853_v49, %v15851_v63  ;;  %v4617_v5 = vld [vmem:[#allocation2 + $0xda] sm:$0xff]  ;;  %v4618_v61 = vld [vmem:[#allocation2 + $0xe2] sm:$0xff]  ;;  %v12054_v6 = vpack.i.bf16 %v4650_v22, %v4649_v35  ;;  %v4681_v8 = vld [vmem:[#allocation2 + $0xf1] sm:$0xff] }
 0x612   : > { %v12049_v15 = vpack.i.bf16 %v4618_v61, %v4617_v5  ;;  %v4682_v9 = vld [vmem:[#allocation2 + $0xf9] sm:$0xff] }
 0x613   : > { %11805 = vrot.lane.b32.xlu0 %v11804_v21, %s13437_s16 }
 0x614   : > { %11800 = vrot.lane.b32.xlu1 %v11779_v37, %s13438_s24 }
 0x617   : > { %11815 = vrot.lane.b32.xlu0 %v11814_v32, %s13439_s25 }
 0x618   : > { %11810 = vrot.lane.b32.xlu1 %v11809_v24, %s13440_s26 }
 0x61b   : > { %11825 = vrot.lane.b32.xlu0 %v11804_v21, %s13435_s28  ;;  %v11839_v21 = vpack.i.bf16 %v15858_v29, %v15856_v45 }
 0x61c   : > { %11820 = vrot.lane.b32.xlu1 %v11779_v37, %s13434_s22  ;;  %v4669_v37 = vld [vmem:[#allocation2 + $0x61] sm:$0xff] }
 0x61d   : > { %v11849_v30 = vpack.i.bf16 %v4670_v36, %v4669_v37  ;;  %v15878_v37 = vld [vmem:[#allocation2 + $0x78] sm:$0xff]  ;;  %v11884_v36 = vpack.i.bf16 %v4672_v50, %v4671_v10  ;;  %v11909_v10 = vpack.i.bf16 %v15892_v51, %v15890_v20 }
 0x61f   : > { %11835 = vrot.lane.b32.xlu0 %v11814_v32, %s13438_s24 }
 0x620   : > { %11830 = vrot.lane.b32.xlu1 %v11809_v24, %s13436_s14  ;;  %v15871_v24 = vld [vmem:[#allocation2 + $0x6a] sm:$0xff] }
 0x621   : > { %v11874_v39 = vpack.i.bf16 %v15871_v24, %v15869_v34 }
 0x623   : > { %11845 = vrot.lane.b32.xlu0 %v11844_v13, %s13440_s26 }
 0x624   : > { %11840 = vrot.lane.b32.xlu1 %v11839_v21, %s13437_s16 }
 0x627   : > { %11855 = vrot.lane.b32.xlu0 %v11814_v32, %s13434_s22  ;;  %v15880_v32 = vld [vmem:[#allocation2 + $0x80] sm:$0xff] }
 0x628   : > { %11850 = vrot.lane.b32.xlu1 %v11849_v30, %s13439_s25  ;;  %v11879_v14 = vpack.i.bf16 %v15880_v32, %v15878_v37 }
 0x62b   : > { %11865 = vrot.lane.b32.xlu0 %v11844_v13, %s13436_s14  ;;  %v4641_v13 = vld [vmem:[#allocation2 + $0x90] sm:$0xff] }
 0x62c   : > { %11860 = vrot.lane.b32.xlu1 %v11839_v21, %s13435_s28  ;;  %v4642_v21 = vld [vmem:[#allocation2 + $0x98] sm:$0xff] }
 0x62d   : > { %v11914_v50 = vpack.i.bf16 %v4642_v21, %v4641_v13  ;;  %v4675_v13 = vld [vmem:[#allocation2 + $0xa9] sm:$0xff]  ;;  %v4676_v21 = vld [vmem:[#allocation2 + $0xb1] sm:$0xff] }
 0x62f   : > { %11875 = vrot.lane.b32.xlu0 %v11874_v39, %s13437_s16 }
 0x630   : > { %11870 = vrot.lane.b32.xlu1 %v11849_v30, %s13438_s24 }
 0x633   : > { %11885 = vrot.lane.b32.xlu0 %v11884_v36, %s13439_s25 }
 0x634   : > { %11880 = vrot.lane.b32.xlu1 %v11879_v14, %s13440_s26 }
 0x637   : > { %11895 = vrot.lane.b32.xlu0 %v11874_v39, %s13435_s28  ;;  %v4674_v39 = vld [vmem:[#allocation2 + $0x99] sm:$0xff] }
 0x638   : > { %11890 = vrot.lane.b32.xlu1 %v11849_v30, %s13434_s22  ;;  %v11919_v30 = vpack.i.bf16 %v4674_v39, %v4673_v26  ;;  %v4643_v26 = vld [vmem:[#allocation2 + $0xa8] sm:$0xff]  ;;  %v4644_v39 = vld [vmem:[#allocation2 + $0xb0] sm:$0xff] }
 0x639   : > { %v11949_v0 = vpack.i.bf16 %v4644_v39, %v4643_v26  ;;  %v4678_v26 = vld [vmem:[#allocation2 + $0xc9] sm:$0xff] }
 0x63a   : > { %v4616_v39 = vld [vmem:[#allocation2 + $0xca] sm:$0xff] }
 0x63b   : > { %11905 = vrot.lane.b32.xlu0 %v11884_v36, %s13438_s24 }
 0x63c   : > { %11900 = vrot.lane.b32.xlu1 %v11879_v14, %s13436_s14  ;;  %v11944_v14 = vpack.i.bf16 %v15903_v41, %v15901_v58 }
 0x63f   : > { %11915 = vrot.lane.b32.xlu0 %v11914_v50, %s13440_s26 }
 0x640   : > { %11910 = vrot.lane.b32.xlu1 %v11909_v10, %s13437_s16 }
 0x643   : > { %11925 = vrot.lane.b32.xlu0 %v11884_v36, %s13434_s22  ;;  %v11954_v36 = vpack.i.bf16 %v4676_v21, %v4675_v13  ;;  %v11979_v13 = vpack.i.bf16 %v4614_v1, %v15916_v38  ;;  %v4677_v21 = vld [vmem:[#allocation2 + $0xc1] sm:$0xff]  ;;  %v4679_v1 = vld [vmem:[#allocation2 + $0xd9] sm:$0xff] }
 0x644   : > { %11920 = vrot.lane.b32.xlu1 %v11919_v30, %s13439_s25 }
 0x647   : > { %11935 = vrot.lane.b32.xlu0 %v11914_v50, %s13436_s14  ;;  %v4645_v50 = vld [vmem:[#allocation2 + $0xc0] sm:$0xff] }
 0x648   : > { %11930 = vrot.lane.b32.xlu1 %v11909_v10, %s13435_s28  ;;  %v4646_v10 = vld [vmem:[#allocation2 + $0xc8] sm:$0xff] }
 0x649   : > { %v11984_v54 = vpack.i.bf16 %v4646_v10, %v4645_v50  ;;  %v4680_v50 = vld [vmem:[#allocation2 + $0xe1] sm:$0xff]  ;;  %v4647_v10 = vld [vmem:[#allocation2 + $0xd8] sm:$0xff] }
 0x64b   : > { %11945 = vrot.lane.b32.xlu0 %v11944_v14, %s13437_s16 }
 0x64c   : > { %11940 = vrot.lane.b32.xlu1 %v11919_v30, %s13438_s24 }
 0x64f   : > { %11955 = vrot.lane.b32.xlu0 %v11954_v36, %s13439_s25 }
 0x650   : > { %11950 = vrot.lane.b32.xlu1 %v11949_v0, %s13440_s26 }
 0x653   : > { %11965 = vrot.lane.b32.xlu0 %v11944_v14, %s13435_s28  ;;  %v11989_v14 = vpack.i.bf16 %v4678_v26, %v4677_v21  ;;  %v12019_v21 = vpack.i.bf16 %v4648_v47, %v4647_v10  ;;  %v11751_v26 = vpop.permute.xlu1 %11750 }
 0x654   : > { %11960 = vrot.lane.b32.xlu1 %v11919_v30, %s13434_s22  ;;  %v15924_v30 = vld [vmem:[#allocation2 + $0xc2] sm:$0xff]  ;;  %v11753_v47 = vunpack.i.h.bf16 %v11751_v26 }
 0x657   : > { %11975 = vrot.lane.b32.xlu0 %v11954_v36, %s13438_s24 }
 0x658   : > { %11970 = vrot.lane.b32.xlu1 %v11949_v0, %s13436_s14  ;;  %v12014_v0 = vpack.i.bf16 %v4616_v39, %v15924_v30  ;;  %v4441_v39 = vld [vmem:[#allocation2] sm:$0xff] }
 0x65b   : > { %11985 = vrot.lane.b32.xlu0 %v11984_v54, %s13440_s26 }
 0x65c   : > { %11980 = vrot.lane.b32.xlu1 %v11979_v13, %s13437_s16 }
 0x65f   : > { %11995 = vrot.lane.b32.xlu0 %v11954_v36, %s13434_s22  ;;  %v12024_v36 = vpack.i.bf16 %v4680_v50, %v4679_v1 }
 0x660   : > { %11990 = vrot.lane.b32.xlu1 %v11989_v14, %s13439_s25 }
 0x663   : > { %12005 = vrot.lane.b32.xlu0 %v11984_v54, %s13436_s14  ;;  %v11756_v54 = vpop.permute.xlu0 %11755 }
 0x664   : > { %12000 = vrot.lane.b32.xlu1 %v11979_v13, %s13435_s28  ;;  %v11752_v13 = vunpack.i.l.bf16 %v11751_v26  ;;  %v11757_v1 = vunpack.i.l.bf16 %v11756_v54  ;;  %v11758_v43 = vunpack.i.h.bf16 %v11756_v54 }
 0x666   : > { %v5625_v50 = vsel %vm387_vm0, %v4441_v39, %v11752_v13  ;;  %v15943_v39 = vpack.i.bf16 %v4682_v9, %v4681_v8  ;;  %v15952_v8 = vld [vmem:[#allocation2 + $0xf2] sm:$0xff] }
 0x667   : > { %12015 = vrot.lane.b32.xlu0 %v12014_v0, %s13437_s16  ;;  %v5657_v40 = vsel %vm1744_vm2, %v5625_v50, %v11757_v1 }
 0x668   : > { %12010 = vrot.lane.b32.xlu1 %v11989_v14, %s13438_s24 }
 0x66b   : > { %12025 = vrot.lane.b32.xlu0 %v12024_v36, %s13439_s25 }
 0x66c   : > { %12020 = vrot.lane.b32.xlu1 %v12019_v21, %s13440_s26 }
 0x66f   : > { %12035 = vrot.lane.b32.xlu0 %v12014_v0, %s13435_s28  ;;  %v4442_v0 = vld [vmem:[#allocation2 + $0x8] sm:$0xff] }
 0x670   : > { %12030 = vrot.lane.b32.xlu1 %v11989_v14, %s13434_s22 }
 0x673   : > { %12045 = vrot.lane.b32.xlu0 %v12024_v36, %s13438_s24 }
 0x674   : > { %12040 = vrot.lane.b32.xlu1 %v12019_v21, %s13436_s14  ;;  %v5626_v21 = vsel %vm387_vm0, %v4442_v0, %v11753_v47  ;;  %v4620_v0 = vld [vmem:[#allocation2 + $0xfa] sm:$0xff] }
 0x675   : > { %v11766_v10 = vpop.permute.xlu0 %11765  ;;  %v5658_v61 = vsel %vm1744_vm2, %v5626_v21, %v11758_v43 }
 0x676   : > { %v11761_v16 = vpop.permute.xlu1 %11760  ;;  %v11767_v12 = vunpack.i.l.bf16 %v11766_v10  ;;  %v11768_v54 = vunpack.i.h.bf16 %v11766_v10 }
 0x677   : > { %v11762_v14 = vunpack.i.l.bf16 %v11761_v16  ;;  %12055 = vrot.lane.b32.xlu0 %v12054_v6, %s13440_s26  ;;  %v11763_v26 = vunpack.i.h.bf16 %v11761_v16 }
 0x678   : > { %12050 = vrot.lane.b32.xlu1 %v12049_v15, %s13437_s16 }
 0x679   : > { %v5689_v13 = vsel %vm1777_vm3, %v5657_v40, %v11762_v14  ;;  %v11776_v35 = vpop.permute.xlu0 %11775  ;;  %v5690_v16 = vsel %vm1777_vm3, %v5658_v61, %v11763_v26 }
 0x67a   : > { %v11771_v22 = vpop.permute.xlu1 %11770  ;;  %v11777_v19 = vunpack.i.l.bf16 %v11776_v35  ;;  %v5721_v1 = vsel %vm1810_vm4, %v5689_v13, %v11767_v12  ;;  %v11778_v43 = vunpack.i.h.bf16 %v11776_v35  ;;  %v5722_v12 = vsel %vm1810_vm4, %v5690_v16, %v11768_v54  ;;  %v4684_v35 = vld [vmem:[#allocation2 + $0x111] sm:$0xff] }
 0x67b   : > { %v11772_v5 = vunpack.i.l.bf16 %v11771_v22  ;;  %12065 = vrot.lane.b32.xlu0 %v12024_v36, %s13434_s22  ;;  %v11773_v47 = vunpack.i.h.bf16 %v11771_v22  ;;  %v12084_v22 = vpack.i.bf16 %v4620_v0, %v15952_v8 }
 0x67c   : > { %12060 = vrot.lane.b32.xlu1 %v15943_v39, %s13439_s25 }
 0x67d   : > { %v11786_v40 = vpop.permute.xlu0 %11785  ;;  %v5753_v50 = vsel %vm1843_vm5, %v5721_v1, %v11772_v5  ;;  %v5754_v5 = vsel %vm1843_vm5, %v5722_v12, %v11773_v47 }
 0x67e   : > { %v11781_v9 = vpop.permute.xlu1 %11780  ;;  %v11787_v10 = vunpack.i.l.bf16 %v11786_v40  ;;  %v5785_v14 = vsel %vm1876_vm6, %v5753_v50, %v11777_v19  ;;  %v11788_v61 = vunpack.i.h.bf16 %v11786_v40  ;;  %v4651_v19 = vld [vmem:[#allocation2 + $0x108] sm:$0xff]  ;;  %v5786_v47 = vsel %vm1876_vm6, %v5754_v5, %v11778_v43 }
 0x67f   : > { %v11782_v36 = vunpack.i.l.bf16 %v11781_v9  ;;  %12075 = vrot.lane.b32.xlu0 %v12054_v6, %s13436_s14  ;;  %v11783_v21 = vunpack.i.h.bf16 %v11781_v9  ;;  %v4683_v6 = vld [vmem:[#allocation2 + $0x109] sm:$0xff] }
 0x680   : > { %12070 = vrot.lane.b32.xlu1 %v12049_v15, %s13435_s28  ;;  %v4652_v15 = vld [vmem:[#allocation2 + $0x110] sm:$0xff]  ;;  %v5627_v54 = vsel %vm387_vm0, %v15800_v28, %v11787_v10  ;;  %v15971_v0 = vpack.i.bf16 %v4684_v35, %v4683_v6 }
 0x681   : > { %v5817_v26 = vsel %vm1909_vm7, %v5785_v14, %v11782_v36  ;;  %v11796_v13 = vpop.permute.xlu0 %11795  ;;  %v5818_v50 = vsel %vm1909_vm7, %v5786_v47, %v11783_v21  ;;  %v12089_v28 = vpack.i.bf16 %v4652_v15, %v4651_v19 }
 0x682   : > { %6016 = vmatmul.mubr.f32.vlgmr.msra.gmra.mrb[26].mxu0 %v5817_v26  ;;  %v11791_v1 = vpop.permute.xlu1 %11790  ;;  %v11797_v16 = vunpack.i.l.bf16 %v11796_v13  ;;  %v11798_v36 = vunpack.i.h.bf16 %v11796_v13 }
 0x683   : > { %v11793_v60 = vunpack.i.h.bf16 %v11791_v1  ;;  %v11792_v3 = vunpack.i.l.bf16 %v11791_v1  ;;  %10304 = vmatprep.mubr.msk.f32.mxu0 %vm387_vm0, %v15827_v23  ;;  %12085 = vrot.lane.b32.xlu0 %v12084_v22, %s13437_s16  ;;  %v5628_v23 = vsel %vm387_vm0, %v15802_v62, %v11788_v61 }
 0x684   : > { %12080 = vrot.lane.b32.xlu1 %v15943_v39, %s13438_s24 }
 0x685   : > { %v5659_v40 = vsel %vm1744_vm2, %v5627_v54, %v11792_v3  ;;  %v11806_v9 = vpop.permute.xlu0 %11805  ;;  %v5660_v10 = vsel %vm1744_vm2, %v5628_v23, %v11793_v60 }
 0x686   : > { %6021 = vmatmul.mubr.f32.gmra.mrb[28].mxu0 %v5818_v50  ;;  %v11801_v14 = vpop.permute.xlu1 %11800  ;;  %v5691_v3 = vsel %vm1777_vm3, %v5659_v40, %v11797_v16  ;;  %v11807_v43 = vunpack.i.l.bf16 %v11806_v9  ;;  %v5692_v13 = vsel %vm1777_vm3, %v5660_v10, %v11798_v36  ;;  %v11808_v5 = vunpack.i.h.bf16 %v11806_v9  ;;  %v4653_v50 = vld [vmem:[#allocation2 + $0x120] sm:$0xff]  ;;  %v4654_v9 = vld [vmem:[#allocation2 + $0x128] sm:$0xff]  ;;  %v15997_v36 = vld [vmem:[#allocation2 + $0x112] sm:$0xff] }
 0x687   : > { %v11803_v12 = vunpack.i.h.bf16 %v11801_v14  ;;  %v11802_v26 = vunpack.i.l.bf16 %v11801_v14  ;;  %10305 = vmatprep.mubr.msk.f32.mxu0 %vm387_vm0, %v15856_v45  ;;  %12095 = vrot.lane.b32.xlu0 %v15971_v0, %s13439_s25 }
 0x688   : > { %12090 = vrot.lane.b32.xlu1 %v12089_v28, %s13440_s26 }
 0x689   : > { %v5723_v62 = vsel %vm1810_vm4, %v5691_v3, %v11802_v26  ;;  %v11816_v21 = vpop.permute.xlu0 %11815  ;;  %v5724_v1 = vsel %vm1810_vm4, %v5692_v13, %v11803_v12  ;;  %v12124_v3 = vpack.i.bf16 %v4654_v9, %v4653_v50 }
 0x68a   : > { %v11811_v60 = vpop.permute.xlu1 %11810  ;;  %v11817_v61 = vunpack.i.l.bf16 %v11816_v21  ;;  %v5755_v35 = vsel %vm1843_vm5, %v5723_v62, %v11807_v43  ;;  %v11818_v54 = vunpack.i.h.bf16 %v11816_v21  ;;  %v5756_v40 = vsel %vm1843_vm5, %v5724_v1, %v11808_v5  ;;  %v4686_v5 = vld [vmem:[#allocation2 + $0x129] sm:$0xff] }
 0x68b   : > { %v11813_v6 = vunpack.i.h.bf16 %v11811_v60  ;;  %v11812_v45 = vunpack.i.l.bf16 %v11811_v60  ;;  %12105 = vrot.lane.b32.xlu0 %v12084_v22, %s13435_s28  ;;  %v15995_v22 = vld [vmem:[#allocation2 + $0x10a] sm:$0xff] }
 0x68c   : > { %12100 = vrot.lane.b32.xlu1 %v15943_v39, %s13434_s22  ;;  %v12119_v21 = vpack.i.bf16 %v15997_v36, %v15995_v22 }
 0x68d   : > { %v11826_v19 = vpop.permute.xlu0 %11825  ;;  %v5787_v15 = vsel %vm1876_vm6, %v5755_v35, %v11812_v45  ;;  %v5788_v39 = vsel %vm1876_vm6, %v5756_v40, %v11813_v6 }
 0x68e   : > { %v11821_v16 = vpop.permute.xlu1 %11820  ;;  %v5819_v47 = vsel %vm1909_vm7, %v5787_v15, %v11817_v61  ;;  %v11827_v14 = vunpack.i.l.bf16 %v11826_v19  ;;  %v5820_v62 = vsel %vm1909_vm7, %v5788_v39, %v11818_v54  ;;  %v11828_v60 = vunpack.i.h.bf16 %v11826_v19  ;;  %v16025_v39 = vld [vmem:[#allocation2 + $0x122] sm:$0xff] }
 0x68f   : > { %v11822_v23 = vunpack.i.l.bf16 %v11821_v16  ;;  %6026 = vmatmul.mubr.f32.gmra.mrb[30].mxu0 %v5819_v47  ;;  %12115 = vrot.lane.b32.xlu0 %v15971_v0, %s13438_s24  ;;  %v11823_v10 = vunpack.i.h.bf16 %v11821_v16 }
 0x690   : > { %12110 = vrot.lane.b32.xlu1 %v12089_v28, %s13436_s14  ;;  %10306 = vmatprep.mubr.msk.f32.mxu0 %vm387_vm0, %v15858_v29  ;;  %v4685_v28 = vld [vmem:[#allocation2 + $0x121] sm:$0xff] }
 0x691   : > { %v5629_v12 = vsel %vm387_vm0, %v15806_v18, %v11822_v23  ;;  %v11836_v26 = vpop.permute.xlu0 %11835  ;;  %v5630_v18 = vsel %vm387_vm0, %v15808_v2, %v11823_v10  ;;  %v16015_v15 = vpack.i.bf16 %v4686_v5, %v4685_v28 }
 0x692   : > { %v11831_v43 = vpop.permute.xlu1 %11830  ;;  %v5661_v29 = vsel %vm1744_vm2, %v5629_v12, %v11827_v14  ;;  %v11837_v61 = vunpack.i.l.bf16 %v11836_v26  ;;  %v5662_v19 = vsel %vm1744_vm2, %v5630_v18, %v11828_v60  ;;  %v11838_v16 = vunpack.i.h.bf16 %v11836_v26  ;;  %v16027_v14 = vld [vmem:[#allocation2 + $0x12a] sm:$0xff]  ;;  %v4688_v18 = vld [vmem:[#allocation2 + $0x141] sm:$0xff] }
 0x693   : > { %v11832_v13 = vunpack.i.l.bf16 %v11831_v43  ;;  %6031 = vmatmul.mubr.f32.gmra.mrb[32].mxu0 %v5820_v62  ;;  %12125 = vrot.lane.b32.xlu0 %v12124_v3, %s13440_s26  ;;  %v11833_v1 = vunpack.i.h.bf16 %v11831_v43  ;;  %v12154_v5 = vpack.i.bf16 %v16027_v14, %v16025_v39 }
 0x694   : > { %12120 = vrot.lane.b32.xlu1 %v12119_v21, %s13437_s16  ;;  %10307 = vmatprep.mubr.msk.f32.mxu0 %vm387_vm0, %v15869_v34 }
 0x695   : > { %v5693_v6 = vsel %vm1777_vm3, %v5661_v29, %v11832_v13  ;;  %v11846_v45 = vpop.permute.xlu0 %11845  ;;  %v5694_v2 = vsel %vm1777_vm3, %v5662_v19, %v11833_v1 }
 0x696   : > { %v11841_v35 = vpop.permute.xlu1 %11840  ;;  %v5725_v47 = vsel %vm1810_vm4, %v5693_v6, %v11837_v61  ;;  %v11847_v34 = vunpack.i.l.bf16 %v11846_v45  ;;  %v5726_v10 = vsel %vm1810_vm4, %v5694_v2, %v11838_v16  ;;  %v11848_v12 = vunpack.i.h.bf16 %v11846_v45  ;;  %v4656_v45 = vld [vmem:[#allocation2 + $0x140] sm:$0xff] }
 0x697   : > { %v11842_v54 = vunpack.i.l.bf16 %v11841_v35  ;;  %12135 = vrot.lane.b32.xlu0 %v15971_v0, %s13434_s22  ;;  %v11843_v40 = vunpack.i.h.bf16 %v11841_v35 }
 0x698   : > { %12130 = vrot.lane.b32.xlu1 %v16015_v15, %s13439_s25 }
 0x699   : > { %v11856_v50 = vpop.permute.xlu0 %11855  ;;  %v5757_v9 = vsel %vm1843_vm5, %v5725_v47, %v11842_v54  ;;  %v5758_v60 = vsel %vm1843_vm5, %v5726_v10, %v11843_v40 }
 0x69a   : > { %v11851_v23 = vpop.permute.xlu1 %11850  ;;  %v11857_v26 = vunpack.i.l.bf16 %v11856_v50  ;;  %v5789_v43 = vsel %vm1876_vm6, %v5757_v9, %v11847_v34  ;;  %v11858_v29 = vunpack.i.h.bf16 %v11856_v50  ;;  %v5790_v19 = vsel %vm1876_vm6, %v5758_v60, %v11848_v12 }
 0x69b   : > { %v11852_v0 = vunpack.i.l.bf16 %v11851_v23  ;;  %12145 = vrot.lane.b32.xlu0 %v12124_v3, %s13436_s14  ;;  %v11853_v62 = vunpack.i.h.bf16 %v11851_v23  ;;  %v4687_v3 = vld [vmem:[#allocation2 + $0x139] sm:$0xff] }
 0x69c   : > { %12140 = vrot.lane.b32.xlu1 %v12119_v21, %s13435_s28  ;;  %v4655_v21 = vld [vmem:[#allocation2 + $0x138] sm:$0xff]  ;;  %v5631_v35 = vsel %vm387_vm0, %v15832_v27, %v11857_v26  ;;  %v16047_v2 = vpack.i.bf16 %v4688_v18, %v4687_v3 }
 0x69d   : > { %v11866_v13 = vpop.permute.xlu0 %11865  ;;  %v5821_v28 = vsel %vm1909_vm7, %v5789_v43, %v11852_v0  ;;  %v5822_v34 = vsel %vm1909_vm7, %v5790_v19, %v11853_v62  ;;  %v12159_v27 = vpack.i.bf16 %v4656_v45, %v4655_v21 }
 0x69e   : > { %v11861_v61 = vpop.permute.xlu1 %11860  ;;  %6036 = vmatmul.mubr.f32.gmra.mrb[34].mxu0 %v5821_v28  ;;  %v11867_v54 = vunpack.i.l.bf16 %v11866_v13  ;;  %v11868_v40 = vunpack.i.h.bf16 %v11866_v13 }
 0x69f   : > { %v11863_v1 = vunpack.i.h.bf16 %v11861_v61  ;;  %v11862_v6 = vunpack.i.l.bf16 %v11861_v61  ;;  %10308 = vmatprep.mubr.msk.f32.mxu0 %vm387_vm0, %v15871_v24  ;;  %12155 = vrot.lane.b32.xlu0 %v12154_v5, %s13437_s16  ;;  %v5632_v24 = vsel %vm387_vm0, %v15835_v33, %v11858_v29 }
 0x6a0   : > { %12150 = vrot.lane.b32.xlu1 %v16015_v15, %s13438_s24 }
 0x6a1   : > { %v5663_v16 = vsel %vm1744_vm2, %v5631_v35, %v11862_v6  ;;  %v11876_v47 = vpop.permute.xlu0 %11875  ;;  %v5664_v9 = vsel %vm1744_vm2, %v5632_v24, %v11863_v1  ;;  %v16068_v35 = vld [vmem:[#allocation2 + $0x150] sm:$0xff] }
 0x6a2   : > { %v11871_v50 = vpop.permute.xlu1 %11870  ;;  %6041 = vmatmul.mubr.f32.gmra.mrb[36].mxu0 %v5822_v34  ;;  %v5695_v10 = vsel %vm1777_vm3, %v5663_v16, %v11867_v54  ;;  %v11877_v12 = vunpack.i.l.bf16 %v11876_v47  ;;  %v5696_v43 = vsel %vm1777_vm3, %v5664_v9, %v11868_v40  ;;  %v11878_v62 = vunpack.i.h.bf16 %v11876_v47  ;;  %v16070_v54 = vld [vmem:[#allocation2 + $0x158] sm:$0xff]  ;;  %v16077_v16 = vld [vmem:[#allocation2 + $0x142] sm:$0xff] }
 0x6a3   : > { %v11873_v23 = vunpack.i.h.bf16 %v11871_v50  ;;  %v11872_v0 = vunpack.i.l.bf16 %v11871_v50  ;;  %10309 = vmatprep.mubr.msk.f32.mxu0 %vm387_vm0, %v15890_v20  ;;  %12165 = vrot.lane.b32.xlu0 %v16047_v2, %s13439_s25  ;;  %v12194_v50 = vpack.i.bf16 %v16070_v54, %v16068_v35 }
 0x6a4   : > { %12160 = vrot.lane.b32.xlu1 %v12159_v27, %s13440_s26 }
 0x6a5   : > { %v5727_v33 = vsel %vm1810_vm4, %v5695_v10, %v11872_v0  ;;  %v11886_v26 = vpop.permute.xlu0 %11885  ;;  %v5728_v60 = vsel %vm1810_vm4, %v5696_v43, %v11873_v23 }
 0x6a6   : > { %v11881_v13 = vpop.permute.xlu1 %11880  ;;  %v11887_v28 = vunpack.i.l.bf16 %v11886_v26  ;;  %v5759_v61 = vsel %vm1843_vm5, %v5727_v33, %v11877_v12  ;;  %v11888_v1 = vunpack.i.h.bf16 %v11886_v26  ;;  %v5760_v45 = vsel %vm1843_vm5, %v5728_v60, %v11878_v62 }
 0x6a7   : > { %v11883_v29 = vunpack.i.h.bf16 %v11881_v13  ;;  %v11882_v20 = vunpack.i.l.bf16 %v11881_v13  ;;  %12175 = vrot.lane.b32.xlu0 %v12154_v5, %s13435_s28  ;;  %v16075_v5 = vld [vmem:[#allocation2 + $0x13a] sm:$0xff] }
 0x6a8   : > { %12170 = vrot.lane.b32.xlu1 %v16015_v15, %s13434_s22  ;;  %v12189_v0 = vpack.i.bf16 %v16077_v16, %v16075_v5 }
 0x6a9   : > { %v11896_v3 = vpop.permute.xlu0 %11895  ;;  %v5791_v18 = vsel %vm1876_vm6, %v5759_v61, %v11882_v20  ;;  %v5792_v15 = vsel %vm1876_vm6, %v5760_v45, %v11883_v29  ;;  %v16107_v45 = vld [vmem:[#allocation2 + $0x152] sm:$0xff] }
 0x6aa   : > { %v11891_v6 = vpop.permute.xlu1 %11890  ;;  %v5823_v21 = vsel %vm1909_vm7, %v5791_v18, %v11887_v28  ;;  %v11897_v47 = vunpack.i.l.bf16 %v11896_v3  ;;  %v5824_v23 = vsel %vm1909_vm7, %v5792_v15, %v11888_v1  ;;  %v11898_v12 = vunpack.i.h.bf16 %v11896_v3 }
 0x6ab   : > { %v11892_v19 = vunpack.i.l.bf16 %v11891_v6  ;;  %6046 = vmatmul.mubr.f32.gmra.mrb[38].mxu0 %v5823_v21  ;;  %12185 = vrot.lane.b32.xlu0 %v16047_v2, %s13438_s24  ;;  %v11893_v34 = vunpack.i.h.bf16 %v11891_v6 }
 0x6ac   : > { %12180 = vrot.lane.b32.xlu1 %v12159_v27, %s13436_s14  ;;  %10310 = vmatprep.mubr.msk.f32.mxu0 %vm387_vm0, %v15892_v51  ;;  %v4689_v27 = vld [vmem:[#allocation2 + $0x151] sm:$0xff]  ;;  %v4690_v51 = vld [vmem:[#allocation2 + $0x159] sm:$0xff] }
 0x6ad   : > { %v5633_v24 = vsel %vm387_vm0, %v15851_v63, %v11892_v19  ;;  %v11906_v40 = vpop.permute.xlu0 %11905  ;;  %v5634_v26 = vsel %vm387_vm0, %v15853_v49, %v11893_v34  ;;  %v16097_v60 = vpack.i.bf16 %v4690_v51, %v4689_v27  ;;  %v16109_v19 = vld [vmem:[#allocation2 + $0x15a] sm:$0xff] }
 0x6ae   : > { %v11901_v9 = vpop.permute.xlu1 %11900  ;;  %v5665_v33 = vsel %vm1744_vm2, %v5633_v24, %v11897_v47  ;;  %v11907_v63 = vunpack.i.l.bf16 %v11906_v40  ;;  %v5666_v20 = vsel %vm1744_vm2, %v5634_v26, %v11898_v12  ;;  %v11908_v61 = vunpack.i.h.bf16 %v11906_v40 }
 0x6af   : > { %v11902_v10 = vunpack.i.l.bf16 %v11901_v9  ;;  %6051 = vmatmul.mubr.f32.gmra.mrb[40].mxu0 %v5824_v23  ;;  %12195 = vrot.lane.b32.xlu0 %v12194_v50, %s13440_s26  ;;  %v11903_v43 = vunpack.i.h.bf16 %v11901_v9 }
 0x6b0   : > { %12190 = vrot.lane.b32.xlu1 %v12189_v0, %s13437_s16  ;;  %10311 = vmatprep.mubr.msk.f32.mxu0 %vm387_vm0, %v15901_v58 }
 0x6b1   : > { %v5697_v62 = vsel %vm1777_vm3, %v5665_v33, %v11902_v10  ;;  %v11916_v13 = vpop.permute.xlu0 %11915  ;;  %v5698_v49 = vsel %vm1777_vm3, %v5666_v20, %v11903_v43  ;;  %v12224_v10 = vpack.i.bf16 %v16109_v19, %v16107_v45  ;;  %v4692_v33 = vld [vmem:[#allocation2 + $0x171] sm:$0xff] }
 0x6b2   : > { %v11911_v28 = vpop.permute.xlu1 %11910  ;;  %v5729_v3 = vsel %vm1810_vm4, %v5697_v62, %v11907_v63  ;;  %v11917_v58 = vunpack.i.l.bf16 %v11916_v13  ;;  %v5730_v15 = vsel %vm1810_vm4, %v5698_v49, %v11908_v61  ;;  %v11918_v47 = vunpack.i.h.bf16 %v11916_v13  ;;  %v16124_v43 = vld [vmem:[#allocation2 + $0x170] sm:$0xff] }
 0x6b3   : > { %v11912_v29 = vunpack.i.l.bf16 %v11911_v28  ;;  %12205 = vrot.lane.b32.xlu0 %v16047_v2, %s13434_s22  ;;  %v11913_v18 = vunpack.i.h.bf16 %v11911_v28 }
 0x6b4   : > { %12200 = vrot.lane.b32.xlu1 %v16097_v60, %s13439_s25 }
 0x6b5   : > { %v11926_v1 = vpop.permute.xlu0 %11925  ;;  %v5761_v6 = vsel %vm1843_vm5, %v5729_v3, %v11912_v29  ;;  %v5762_v27 = vsel %vm1843_vm5, %v5730_v15, %v11913_v18 }
 0x6b6   : > { %v11921_v21 = vpop.permute.xlu1 %11920  ;;  %v11927_v34 = vunpack.i.l.bf16 %v11926_v1  ;;  %v5793_v24 = vsel %vm1876_vm6, %v5761_v6, %v11917_v58  ;;  %v11928_v51 = vunpack.i.h.bf16 %v11926_v1  ;;  %v5794_v28 = vsel %vm1876_vm6, %v5762_v27, %v11918_v47 }
 0x6b7   : > { %v11922_v2 = vunpack.i.l.bf16 %v11921_v21  ;;  %12215 = vrot.lane.b32.xlu0 %v12194_v50, %s13436_s14  ;;  %v11923_v40 = vunpack.i.h.bf16 %v11921_v21  ;;  %v4691_v50 = vld [vmem:[#allocation2 + $0x169] sm:$0xff] }
 0x6b8   : > { %12210 = vrot.lane.b32.xlu1 %v12189_v0, %s13435_s28  ;;  %v16122_v0 = vld [vmem:[#allocation2 + $0x168] sm:$0xff]  ;;  %v5635_v62 = vsel %vm387_vm0, %v15878_v37, %v11927_v34  ;;  %v16133_v61 = vpack.i.bf16 %v4692_v33, %v4691_v50  ;;  %v5636_v3 = vsel %vm387_vm0, %v15880_v32, %v11928_v51 }
 0x6b9   : > { %v11936_v9 = vpop.permute.xlu0 %11935  ;;  %v5825_v23 = vsel %vm1909_vm7, %v5793_v24, %v11922_v2  ;;  %v12229_v37 = vpack.i.bf16 %v16124_v43, %v16122_v0 }
 0x6ba   : > { %v11931_v12 = vpop.permute.xlu1 %11930  ;;  %6056 = vmatmul.mubr.f32.gmra.mrb[42].mxu0 %v5825_v23  ;;  %v11937_v13 = vunpack.i.l.bf16 %v11936_v9  ;;  %v11938_v58 = vunpack.i.h.bf16 %v11936_v9 }
 0x6bb   : > { %v11933_v63 = vunpack.i.h.bf16 %v11931_v12  ;;  %v11932_v26 = vunpack.i.l.bf16 %v11931_v12  ;;  %10312 = vmatprep.mubr.msk.f32.mxu0 %vm387_vm0, %v15903_v41  ;;  %12225 = vrot.lane.b32.xlu0 %v12224_v10, %s13437_s16  ;;  %v5826_v41 = vsel %vm1909_vm7, %v5794_v28, %v11923_v40 }
 0x6bc   : > { %12220 = vrot.lane.b32.xlu1 %v16097_v60, %s13438_s24 }
 0x6bd   : > { %v5667_v29 = vsel %vm1744_vm2, %v5635_v62, %v11932_v26  ;;  %v11946_v20 = vpop.permute.xlu0 %11945  ;;  %v5668_v18 = vsel %vm1744_vm2, %v5636_v3, %v11933_v63  ;;  %v4661_v62 = vld [vmem:[#allocation2 + $0x180] sm:$0xff] }
 0x6be   : > { %v11941_v49 = vpop.permute.xlu1 %11940  ;;  %6061 = vmatmul.mubr.f32.gmra.mrb[44].mxu0 %v5826_v41  ;;  %v5699_v21 = vsel %vm1777_vm3, %v5667_v29, %v11937_v13  ;;  %v11947_v2 = vunpack.i.l.bf16 %v11946_v20  ;;  %v5700_v47 = vsel %vm1777_vm3, %v5668_v18, %v11938_v58  ;;  %v11948_v34 = vunpack.i.h.bf16 %v11946_v20  ;;  %v4662_v13 = vld [vmem:[#allocation2 + $0x188] sm:$0xff]  ;;  %v16161_v20 = vld [vmem:[#allocation2 + $0x172] sm:$0xff] }
 0x6bf   : > { %v11943_v1 = vunpack.i.h.bf16 %v11941_v49  ;;  %v11942_v6 = vunpack.i.l.bf16 %v11941_v49  ;;  %10313 = vmatprep.mubr.msk.f32.mxu0 %vm387_vm0, %v15916_v38  ;;  %12235 = vrot.lane.b32.xlu0 %v16133_v61, %s13439_s25  ;;  %v16159_v29 = vld [vmem:[#allocation2 + $0x16a] sm:$0xff] }
 0x6c0   : > { %12230 = vrot.lane.b32.xlu1 %v12229_v37, %s13440_s26  ;;  %v4453_v41 = vld [vmem:[#allocation2 + $0x90] sm:$0xff] }
 0x6c1   : > { %v5731_v32 = vsel %vm1810_vm4, %v5699_v21, %v11942_v6  ;;  %v11956_v15 = vpop.permute.xlu0 %11955  ;;  %v5732_v9 = vsel %vm1810_vm4, %v5700_v47, %v11943_v1  ;;  %v12264_v1 = vpack.i.bf16 %v4662_v13, %v4661_v62  ;;  %v4694_v47 = vld [vmem:[#allocation2 + $0x189] sm:$0xff] }
 0x6c2   : > { %v11951_v24 = vpop.permute.xlu1 %11950  ;;  %v11957_v40 = vunpack.i.l.bf16 %v11956_v15  ;;  %v5763_v27 = vsel %vm1843_vm5, %v5731_v32, %v11947_v2  ;;  %v11958_v50 = vunpack.i.h.bf16 %v11956_v15  ;;  %v5764_v26 = vsel %vm1843_vm5, %v5732_v9, %v11948_v34  ;;  %v4693_v15 = vld [vmem:[#allocation2 + $0x181] sm:$0xff] }
 0x6c3   : > { %v11953_v23 = vunpack.i.h.bf16 %v11951_v24  ;;  %v11952_v38 = vunpack.i.l.bf16 %v11951_v24  ;;  %12245 = vrot.lane.b32.xlu0 %v12224_v10, %s13435_s28  ;;  %v4708_v10 = vld [vmem:[#allocation2 + $0xb2] sm:$0xff]  ;;  %v12259_v2 = vpack.i.bf16 %v16161_v20, %v16159_v29 }
 0x6c4   : > { %12240 = vrot.lane.b32.xlu1 %v16097_v60, %s13434_s22 }
 0x6c5   : > { %v11966_v51 = vpop.permute.xlu0 %11965  ;;  %v5795_v12 = vsel %vm1876_vm6, %v5763_v27, %v11952_v38  ;;  %v5796_v60 = vsel %vm1876_vm6, %v5764_v26, %v11953_v23 }
 0x6c6   : > { %v11961_v33 = vpop.permute.xlu1 %11960  ;;  %v5827_v63 = vsel %vm1909_vm7, %v5795_v12, %v11957_v40  ;;  %v11967_v3 = vunpack.i.l.bf16 %v11966_v51  ;;  %v5828_v21 = vsel %vm1909_vm7, %v5796_v60, %v11958_v50  ;;  %v11968_v34 = vunpack.i.h.bf16 %v11966_v51 }
 0x6c7   : > { %v11962_v28 = vunpack.i.l.bf16 %v11961_v33  ;;  %6066 = vmatmul.mubr.f32.gmra.mrb[46].mxu0 %v5827_v63  ;;  %12255 = vrot.lane.b32.xlu0 %v16133_v61, %s13438_s24  ;;  %v11963_v58 = vunpack.i.h.bf16 %v11961_v33  ;;  %v12269_v50 = vpack.i.bf16 %v4694_v47, %v4693_v15 }
 0x6c8   : > { %12250 = vrot.lane.b32.xlu1 %v12229_v37, %s13436_s14  ;;  %10314 = vmatprep.mubr.msk.f32.mxu0 %vm387_vm0, %v4708_v10  ;;  %v4454_v37 = vld [vmem:[#allocation2 + $0x98] sm:$0xff] }
 0x6c9   : > { %v5637_v49 = vsel %vm387_vm0, %v4453_v41, %v11962_v28  ;;  %v11976_v18 = vpop.permute.xlu0 %11975  ;;  %v5638_v9 = vsel %vm387_vm0, %v4454_v37, %v11963_v58  ;;  %v16183_v41 = vld [vmem:[#allocation2 + $0x182] sm:$0xff] }
 0x6ca   : > { %v11971_v6 = vpop.permute.xlu1 %11970  ;;  %v5669_v24 = vsel %vm1744_vm2, %v5637_v49, %v11967_v3  ;;  %v11977_v40 = vunpack.i.l.bf16 %v11976_v18  ;;  %v5670_v51 = vsel %vm1744_vm2, %v5638_v9, %v11968_v34  ;;  %v11978_v63 = vunpack.i.h.bf16 %v11976_v18  ;;  %v16185_v3 = vld [vmem:[#allocation2 + $0x18a] sm:$0xff] }
 0x6cb   : > { %v11972_v32 = vunpack.i.l.bf16 %v11971_v6  ;;  %6071 = vmatmul.mubr.f32.gmra.mrb[48].mxu0 %v5828_v21  ;;  %12265 = vrot.lane.b32.xlu0 %v12264_v1, %s13440_s26  ;;  %v11973_v23 = vunpack.i.h.bf16 %v11971_v6  ;;  %v4695_v21 = vld [vmem:[#allocation2 + $0x199] sm:$0xff]  ;;  %v12299_v34 = vpack.i.bf16 %v16185_v3, %v16183_v41 }
 0x6cc   : > { %12260 = vrot.lane.b32.xlu1 %v12259_v2, %s13437_s16  ;;  %10315 = vmatprep.mubr.msk.f32.mxu0 %vm387_vm0, %v15924_v30 }
 0x6cd   : > { %v5701_v38 = vsel %vm1777_vm3, %v5669_v24, %v11972_v32  ;;  %v11986_v27 = vpop.permute.xlu0 %11985  ;;  %v5702_v30 = vsel %vm1777_vm3, %v5670_v51, %v11973_v23  ;;  %v4696_v32 = vld [vmem:[#allocation2 + $0x1a1] sm:$0xff] }
 0x6ce   : > { %v11981_v12 = vpop.permute.xlu1 %11980  ;;  %v5733_v26 = vsel %vm1810_vm4, %v5701_v38, %v11977_v40  ;;  %v11987_v62 = vunpack.i.l.bf16 %v11986_v27  ;;  %v5734_v58 = vsel %vm1810_vm4, %v5702_v30, %v11978_v63  ;;  %v11988_v49 = vunpack.i.h.bf16 %v11986_v27  ;;  %v4664_v40 = vld [vmem:[#allocation2 + $0x1a0] sm:$0xff]  ;;  %v4455_v38 = vld [vmem:[#allocation2 + $0xa8] sm:$0xff]  ;;  %v4456_v30 = vld [vmem:[#allocation2 + $0xb0] sm:$0xff] }
 0x6cf   : > { %v11982_v33 = vunpack.i.l.bf16 %v11981_v12  ;;  %12275 = vrot.lane.b32.xlu0 %v16133_v61, %s13434_s22  ;;  %v11983_v13 = vunpack.i.h.bf16 %v11981_v12 }
 0x6d0   : > { %12270 = vrot.lane.b32.xlu1 %v12269_v50, %s13439_s25 }
 0x6d1   : > { %v11996_v28 = vpop.permute.xlu0 %11995  ;;  %v5765_v10 = vsel %vm1843_vm5, %v5733_v26, %v11982_v33  ;;  %v5766_v24 = vsel %vm1843_vm5, %v5734_v58, %v11983_v13  ;;  %v12304_v33 = vpack.i.bf16 %v4696_v32, %v4695_v21 }
 0x6d2   : > { %v11991_v60 = vpop.permute.xlu1 %11990  ;;  %v11997_v18 = vunpack.i.l.bf16 %v11996_v28  ;;  %v5797_v6 = vsel %vm1876_vm6, %v5765_v10, %v11987_v62  ;;  %v11998_v9 = vunpack.i.h.bf16 %v11996_v28  ;;  %v5798_v26 = vsel %vm1876_vm6, %v5766_v24, %v11988_v49 }
 0x6d3   : > { %v11992_v61 = vunpack.i.l.bf16 %v11991_v60  ;;  %12285 = vrot.lane.b32.xlu0 %v12264_v1, %s13436_s14  ;;  %v11993_v15 = vunpack.i.h.bf16 %v11991_v60  ;;  %v16195_v1 = vld [vmem:[#allocation2 + $0x198] sm:$0xff] }
 0x6d4   : > { %12280 = vrot.lane.b32.xlu1 %v12259_v2, %s13435_s28  ;;  %v4710_v2 = vld [vmem:[#allocation2 + $0xca] sm:$0xff]  ;;  %v5639_v51 = vsel %vm387_vm0, %v4455_v38, %v11997_v18  ;;  %v12294_v62 = vpack.i.bf16 %v4664_v40, %v16195_v1  ;;  %v5640_v60 = vsel %vm387_vm0, %v4456_v30, %v11998_v9  ;;  %v6293_v9 = vld [vmem:[#allocation2 + $0x1] sm:$0xff] }
 0x6d5   : > { %v12006_v47 = vpop.permute.xlu0 %12005  ;;  %v5829_v37 = vsel %vm1909_vm7, %v5797_v6, %v11992_v61  ;;  %v5830_v10 = vsel %vm1909_vm7, %v5798_v26, %v11993_v15  ;;  %v4711_v6 = vld [vmem:[#allocation2 + $0xda] sm:$0xff] }
 0x6d6   : > { %v12001_v23 = vpop.permute.xlu1 %12000  ;;  %6076 = vmatmul.mubr.f32.gmra.mrb[50].mxu0 %v5829_v37  ;;  %v12007_v63 = vunpack.i.l.bf16 %v12006_v47  ;;  %v12008_v61 = vunpack.i.h.bf16 %v12006_v47 }
 0x6d7   : > { %v12003_v27 = vunpack.i.h.bf16 %v12001_v23  ;;  %v12002_v12 = vunpack.i.l.bf16 %v12001_v23  ;;  %10316 = vmatprep.mubr.msk.f32.mxu0 %vm387_vm0, %v4710_v2  ;;  %12300 = vrot.lane.b32.xlu0 %v12299_v34, %s13437_s16  ;;  %v6294_v23 = vld [vmem:[#allocation2 + $0x9] sm:$0xff] }
 0x6d8   : > { %12290 = vrot.lane.b32.xlu1 %v12269_v50, %s13438_s24 }
 0x6d9   : > { %v5671_v13 = vsel %vm1744_vm2, %v5639_v51, %v12002_v12  ;;  %v12016_v28 = vpop.permute.xlu0 %12015  ;;  %v5672_v18 = vsel %vm1744_vm2, %v5640_v60, %v12003_v27  ;;  %v12309_v12 = vpack.i.bf16 %v6294_v23, %v6293_v9 }
 0x6da   : > { %v12011_v58 = vpop.permute.xlu1 %12010  ;;  %6081 = vmatmul.mubr.f32.gmra.mrb[52].mxu0 %v5830_v10  ;;  %v5703_v49 = vsel %vm1777_vm3, %v5671_v13, %v12007_v63  ;;  %v12017_v32 = vunpack.i.l.bf16 %v12016_v28  ;;  %v5704_v47 = vsel %vm1777_vm3, %v5672_v18, %v12008_v61  ;;  %v12018_v34 = vunpack.i.h.bf16 %v12016_v28  ;;  %v4712_v10 = vld [vmem:[#allocation2 + $0xe2] sm:$0xff] }
 0x6db   : > { %v12013_v21 = vunpack.i.h.bf16 %v12011_v58  ;;  %v12012_v50 = vunpack.i.l.bf16 %v12011_v58  ;;  %10317 = vmatprep.mubr.msk.f32.mxu0 %vm387_vm0, %v4711_v6  ;;  %12305 = vrot.lane.b32.xlu0 %v12304_v33, %s13439_s25  ;;  %v4457_v61 = vld [vmem:[#allocation2 + $0xc0] sm:$0xff] }
 0x6dc   : > { %12295 = vrot.lane.b32.xlu1 %v12294_v62, %s13440_s26 }
 0x6dd   : > { %v5735_v15 = vsel %vm1810_vm4, %v5703_v49, %v12012_v50  ;;  %v12026_v37 = vpop.permute.xlu0 %12025  ;;  %v5736_v2 = vsel %vm1810_vm4, %v5704_v47, %v12013_v21  ;;  %v4458_v47 = vld [vmem:[#allocation2 + $0xc8] sm:$0xff] }
 0x6de   : > { %v12021_v24 = vpop.permute.xlu1 %12020  ;;  %v12027_v40 = vunpack.i.l.bf16 %v12026_v37  ;;  %v5767_v33 = vsel %vm1843_vm5, %v5735_v15, %v12017_v32  ;;  %v12028_v26 = vunpack.i.h.bf16 %v12026_v37  ;;  %v5768_v13 = vsel %vm1843_vm5, %v5736_v2, %v12018_v34  ;;  %v6325_v15 = vld [vmem:[#allocation2 + $0x2] sm:$0xff]  ;;  %v6326_v37 = vld [vmem:[#allocation2 + $0xa] sm:$0xff] }
 0x6df   : > { %v12023_v38 = vunpack.i.h.bf16 %v12021_v24  ;;  %v12022_v27 = vunpack.i.l.bf16 %v12021_v24  ;;  %v12314_v9 = vpack.i.bf16 %v6326_v37, %v6325_v15  ;;  %v4714_v37 = vld [vmem:[#allocation2 + $0xfa] sm:$0xff] }
 0x6e0   : > { %12310 = vrot.lane.b32.xlu1 %v12309_v12, %s13434_s22 }
 0x6e1   : > { %v12036_v51 = vpop.permute.xlu0 %12035  ;;  %v5799_v63 = vsel %vm1876_vm6, %v5767_v33, %v12022_v27  ;;  %v5800_v60 = vsel %vm1876_vm6, %v5768_v13, %v12023_v38  ;;  %12315 = vrot.lane.b32.xlu0 %v12314_v9, %s13435_s28 }
 0x6e2   : > { %v12031_v62 = vpop.permute.xlu1 %12030  ;;  %v5831_v30 = vsel %vm1909_vm7, %v5799_v63, %v12027_v40  ;;  %v12037_v58 = vunpack.i.l.bf16 %v12036_v51  ;;  %v5832_v49 = vsel %vm1909_vm7, %v5800_v60, %v12028_v26  ;;  %v12038_v34 = vunpack.i.h.bf16 %v12036_v51 }
 0x6e3   : > { %v12032_v28 = vunpack.i.l.bf16 %v12031_v62  ;;  %6086 = vmatmul.mubr.f32.gmra.mrb[54].mxu0 %v5831_v30  ;;  %v12033_v6 = vunpack.i.h.bf16 %v12031_v62 }
 0x6e4   : > { %10318 = vmatprep.mubr.msk.f32.mxu0 %vm387_vm0, %v4712_v10  ;;  %7281 = vrot.lane.b32.xlu1 %v16195_v1, %s13440_s26 }
 0x6e5   : > { %v5641_v18 = vsel %vm387_vm0, %v4457_v61, %v12032_v28  ;;  %v12046_v21 = vpop.permute.xlu0 %12045  ;;  %v5642_v23 = vsel %vm387_vm0, %v4458_v47, %v12033_v6  ;;  %v4459_v47 = vld [vmem:[#allocation2 + $0xd8] sm:$0xff] }
 0x6e6   : > { %v12041_v50 = vpop.permute.xlu1 %12040  ;;  %v5673_v24 = vsel %vm1744_vm2, %v5641_v18, %v12037_v58  ;;  %v12047_v40 = vunpack.i.l.bf16 %v12046_v21  ;;  %v5674_v33 = vsel %vm1744_vm2, %v5642_v23, %v12038_v34  ;;  %v12048_v51 = vunpack.i.h.bf16 %v12046_v21 }
 0x6e7   : > { %v12042_v32 = vunpack.i.l.bf16 %v12041_v50  ;;  %6091 = vmatmul.mubr.f32.gmra.mrb[56].mxu0 %v5832_v49  ;;  %v12043_v2 = vunpack.i.h.bf16 %v12041_v50 }
 0x6e8   : > { %10319 = vmatprep.mubr.msk.f32.mxu0 %vm387_vm0, %v15952_v8 }
 0x6e9   : > { %v5705_v1 = vsel %vm1777_vm3, %v5673_v24, %v12042_v32  ;;  %v12056_v38 = vpop.permute.xlu0 %12055  ;;  %v5706_v62 = vsel %vm1777_vm3, %v5674_v33, %v12043_v2  ;;  %v4460_v2 = vld [vmem:[#allocation2 + $0xe0] sm:$0xff] }
 0x6ea   : > { %v12051_v27 = vpop.permute.xlu1 %12050  ;;  %v5737_v63 = vsel %vm1810_vm4, %v5705_v1, %v12047_v40  ;;  %v12057_v26 = vunpack.i.l.bf16 %v12056_v38  ;;  %v5738_v60 = vsel %vm1810_vm4, %v5706_v62, %v12048_v51  ;;  %v12058_v61 = vunpack.i.h.bf16 %v12056_v38 }
 0x6eb   : > { %v12052_v12 = vunpack.i.l.bf16 %v12051_v27  ;;  %v12053_v8 = vunpack.i.h.bf16 %v12051_v27 }
 0x6ed   : > { %v12066_v30 = vpop.permute.xlu0 %12065  ;;  %v5769_v13 = vsel %vm1843_vm5, %v5737_v63, %v12052_v12  ;;  %v5770_v49 = vsel %vm1843_vm5, %v5738_v60, %v12053_v8 }
 0x6ee   : > { %v12061_v28 = vpop.permute.xlu1 %12060  ;;  %v12067_v58 = vunpack.i.l.bf16 %v12066_v30  ;;  %v5801_v6 = vsel %vm1876_vm6, %v5769_v13, %v12057_v26  ;;  %v12068_v32 = vunpack.i.h.bf16 %v12066_v30  ;;  %v5802_v23 = vsel %vm1876_vm6, %v5770_v49, %v12058_v61 }
 0x6ef   : > { %v12062_v10 = vunpack.i.l.bf16 %v12061_v28  ;;  %v12063_v18 = vunpack.i.h.bf16 %v12061_v28 }
 0x6f0   : > { %v5643_v40 = vsel %vm387_vm0, %v4459_v47, %v12067_v58  ;;  %v5644_v12 = vsel %vm387_vm0, %v4460_v2, %v12068_v32 }
 0x6f1   : > { %v12076_v50 = vpop.permute.xlu0 %12075  ;;  %v5833_v21 = vsel %vm1909_vm7, %v5801_v6, %v12062_v10  ;;  %v5834_v27 = vsel %vm1909_vm7, %v5802_v23, %v12063_v18 }
 0x6f2   : > { %v12071_v15 = vpop.permute.xlu1 %12070  ;;  %6096 = vmatmul.mubr.f32.gmra.mrb[58].mxu0 %v5833_v21  ;;  %v12077_v9 = vunpack.i.l.bf16 %v12076_v50  ;;  %v12078_v33 = vunpack.i.h.bf16 %v12076_v50 }
 0x6f3   : > { %v12073_v34 = vunpack.i.h.bf16 %v12071_v15  ;;  %v12072_v24 = vunpack.i.l.bf16 %v12071_v15  ;;  %10320 = vmatprep.mubr.msk.f32.mxu0 %vm387_vm0, %v4714_v37 }
 0x6f5   : > { %v5675_v1 = vsel %vm1744_vm2, %v5643_v40, %v12072_v24  ;;  %v12086_v38 = vpop.permute.xlu0 %12085  ;;  %v5676_v63 = vsel %vm1744_vm2, %v5644_v12, %v12073_v34  ;;  %v4461_v40 = vld [vmem:[#allocation2 + $0xf0] sm:$0xff] }
 0x6f6   : > { %v12081_v51 = vpop.permute.xlu1 %12080  ;;  %6101 = vmatmul.mubr.f32.gmra.mrb[60].mxu0 %v5834_v27  ;;  %v5707_v8 = vsel %vm1777_vm3, %v5675_v1, %v12077_v9  ;;  %v12087_v30 = vunpack.i.l.bf16 %v12086_v38  ;;  %v5708_v10 = vsel %vm1777_vm3, %v5676_v63, %v12078_v33  ;;  %v12088_v60 = vunpack.i.h.bf16 %v12086_v38  ;;  %v4462_v33 = vld [vmem:[#allocation2 + $0xf8] sm:$0xff] }
 0x6f7   : > { %v12083_v26 = vunpack.i.h.bf16 %v12081_v51  ;;  %v12082_v62 = vunpack.i.l.bf16 %v12081_v51  ;;  %10321 = vmatprep.mubr.msk.f32.mxu0 %vm387_vm0, %v15995_v22 }
 0x6f9   : > { %v5739_v13 = vsel %vm1810_vm4, %v5707_v8, %v12082_v62  ;;  %v12096_v28 = vpop.permute.xlu0 %12095  ;;  %v5740_v6 = vsel %vm1810_vm4, %v5708_v10, %v12083_v26 }
 0x6fa   : > { %v12091_v61 = vpop.permute.xlu1 %12090  ;;  %v12097_v58 = vunpack.i.l.bf16 %v12096_v28  ;;  %v5771_v21 = vsel %vm1843_vm5, %v5739_v13, %v12087_v30  ;;  %v12098_v32 = vunpack.i.h.bf16 %v12096_v28  ;;  %v5772_v47 = vsel %vm1843_vm5, %v5740_v6, %v12088_v60 }
 0x6fb   : > { %v12093_v18 = vunpack.i.h.bf16 %v12091_v61  ;;  %v12092_v50 = vunpack.i.l.bf16 %v12091_v61 }
 0x6fd   : > { %v12106_v49 = vpop.permute.xlu0 %12105  ;;  %v5803_v22 = vsel %vm1876_vm6, %v5771_v21, %v12092_v50  ;;  %v5804_v24 = vsel %vm1876_vm6, %v5772_v47, %v12093_v18 }
 0x6fe   : > { %v12101_v15 = vpop.permute.xlu1 %12100  ;;  %v5835_v37 = vsel %vm1909_vm7, %v5803_v22, %v12097_v58  ;;  %v12107_v9 = vunpack.i.l.bf16 %v12106_v49  ;;  %v5836_v27 = vsel %vm1909_vm7, %v5804_v24, %v12098_v32  ;;  %v12108_v51 = vunpack.i.h.bf16 %v12106_v49 }
 0x6ff   : > { %v12102_v34 = vunpack.i.l.bf16 %v12101_v15  ;;  %6106 = vmatmul.mubr.f32.gmra.mrb[62].mxu0 %v5835_v37  ;;  %v12103_v23 = vunpack.i.h.bf16 %v12101_v15 }
 0x700   : > { %10322 = vmatprep.mubr.msk.f32.mxu0 %vm387_vm0, %v15997_v36 }
 0x701   : > { %v5645_v2 = vsel %vm387_vm0, %v4461_v40, %v12102_v34  ;;  %v12116_v1 = vpop.permute.xlu0 %12115  ;;  %v5646_v62 = vsel %vm387_vm0, %v4462_v33, %v12103_v23 }
 0x702   : > { %v12111_v38 = vpop.permute.xlu1 %12110  ;;  %v5677_v63 = vsel %vm1744_vm2, %v5645_v2, %v12107_v9  ;;  %v12117_v26 = vunpack.i.l.bf16 %v12116_v1  ;;  %v5678_v10 = vsel %vm1744_vm2, %v5646_v62, %v12108_v51  ;;  %v12118_v60 = vunpack.i.h.bf16 %v12116_v1  ;;  %v4463_v2 = vld [vmem:[#allocation2 + $0x108] sm:$0xff]  ;;  %v4464_v51 = vld [vmem:[#allocation2 + $0x110] sm:$0xff] }
 0x703   : > { %v12112_v12 = vunpack.i.l.bf16 %v12111_v38  ;;  %6111 = vmatmul.mubr.f32.gmra.mrb[64].mxu0 %v5836_v27  ;;  %v12113_v36 = vunpack.i.h.bf16 %v12111_v38 }
 0x704   : > { %10323 = vmatprep.mubr.msk.f32.mxu0 %vm387_vm0, %v16025_v39 }
 0x705   : > { %v5709_v8 = vsel %vm1777_vm3, %v5677_v63, %v12112_v12  ;;  %v12126_v30 = vpop.permute.xlu0 %12125  ;;  %v5710_v6 = vsel %vm1777_vm3, %v5678_v10, %v12113_v36 }
 0x706   : > { %v12121_v13 = vpop.permute.xlu1 %12120  ;;  %v5741_v61 = vsel %vm1810_vm4, %v5709_v8, %v12117_v26  ;;  %v12127_v58 = vunpack.i.l.bf16 %v12126_v30  ;;  %v5742_v22 = vsel %vm1810_vm4, %v5710_v6, %v12118_v60  ;;  %v12128_v32 = vunpack.i.h.bf16 %v12126_v30 }
 0x707   : > { %v12122_v28 = vunpack.i.l.bf16 %v12121_v13  ;;  %v12123_v18 = vunpack.i.h.bf16 %v12121_v13 }
 0x709   : > { %v12136_v50 = vpop.permute.xlu0 %12135  ;;  %v5773_v39 = vsel %vm1843_vm5, %v5741_v61, %v12122_v28  ;;  %v5774_v40 = vsel %vm1843_vm5, %v5742_v22, %v12123_v18 }
 0x70a   : > { %v12131_v21 = vpop.permute.xlu1 %12130  ;;  %v12137_v15 = vunpack.i.l.bf16 %v12136_v50  ;;  %v5805_v37 = vsel %vm1876_vm6, %v5773_v39, %v12127_v58  ;;  %v12138_v9 = vunpack.i.h.bf16 %v12136_v50  ;;  %v5806_v33 = vsel %vm1876_vm6, %v5774_v40, %v12128_v32 }
 0x70b   : > { %v12132_v49 = vunpack.i.l.bf16 %v12131_v21  ;;  %v12133_v47 = vunpack.i.h.bf16 %v12131_v21 }
 0x70c   : > { %v5647_v27 = vsel %vm387_vm0, %v4463_v2, %v12137_v15  ;;  %v5648_v36 = vsel %vm387_vm0, %v4464_v51, %v12138_v9 }
 0x70d   : > { %v12146_v34 = vpop.permute.xlu0 %12145  ;;  %v5837_v24 = vsel %vm1909_vm7, %v5805_v37, %v12132_v49  ;;  %v5838_v62 = vsel %vm1909_vm7, %v5806_v33, %v12133_v47 }
 0x70e   : > { %v12141_v23 = vpop.permute.xlu1 %12140  ;;  %6116 = vmatmul.mubr.f32.gmra.mrb[66].mxu0 %v5837_v24  ;;  %v12147_v12 = vunpack.i.l.bf16 %v12146_v34  ;;  %v12148_v8 = vunpack.i.h.bf16 %v12146_v34 }
 0x70f   : > { %v12143_v1 = vunpack.i.h.bf16 %v12141_v23  ;;  %v12142_v38 = vunpack.i.l.bf16 %v12141_v23  ;;  %10324 = vmatprep.mubr.msk.f32.mxu0 %vm387_vm0, %v16027_v14  ;;  %v4465_v23 = vld [vmem:[#allocation2 + $0x120] sm:$0xff] }
 0x711   : > { %v5679_v63 = vsel %vm1744_vm2, %v5647_v27, %v12142_v38  ;;  %v12156_v26 = vpop.permute.xlu0 %12155  ;;  %v5680_v13 = vsel %vm1744_vm2, %v5648_v36, %v12143_v1 }
 0x712   : > { %v12151_v30 = vpop.permute.xlu1 %12150  ;;  %6121 = vmatmul.mubr.f32.gmra.mrb[68].mxu0 %v5838_v62  ;;  %v5711_v10 = vsel %vm1777_vm3, %v5679_v63, %v12147_v12  ;;  %v12157_v60 = vunpack.i.l.bf16 %v12156_v26  ;;  %v5712_v6 = vsel %vm1777_vm3, %v5680_v13, %v12148_v8  ;;  %v12158_v18 = vunpack.i.h.bf16 %v12156_v26  ;;  %v4466_v63 = vld [vmem:[#allocation2 + $0x128] sm:$0xff] }
 0x713   : > { %v12153_v28 = vunpack.i.h.bf16 %v12151_v30  ;;  %v12152_v14 = vunpack.i.l.bf16 %v12151_v30  ;;  %10325 = vmatprep.mubr.msk.f32.mxu0 %vm387_vm0, %v16075_v5 }
 0x715   : > { %v5743_v61 = vsel %vm1810_vm4, %v5711_v10, %v12152_v14  ;;  %v12166_v58 = vpop.permute.xlu0 %12165  ;;  %v5744_v21 = vsel %vm1810_vm4, %v5712_v6, %v12153_v28 }
 0x716   : > { %v12161_v50 = vpop.permute.xlu1 %12160  ;;  %v12167_v39 = vunpack.i.l.bf16 %v12166_v58  ;;  %v5775_v32 = vsel %vm1843_vm5, %v5743_v61, %v12157_v60  ;;  %v12168_v37 = vunpack.i.h.bf16 %v12166_v58  ;;  %v5776_v24 = vsel %vm1843_vm5, %v5744_v21, %v12158_v18 }
 0x717   : > { %v12163_v49 = vunpack.i.h.bf16 %v12161_v50  ;;  %v12162_v22 = vunpack.i.l.bf16 %v12161_v50 }
 0x719   : > { %v12176_v15 = vpop.permute.xlu0 %12175  ;;  %v5807_v5 = vsel %vm1876_vm6, %v5775_v32, %v12162_v22  ;;  %v5808_v9 = vsel %vm1876_vm6, %v5776_v24, %v12163_v49 }
 0x71a   : > { %v12171_v47 = vpop.permute.xlu1 %12170  ;;  %v5839_v34 = vsel %vm1909_vm7, %v5807_v5, %v12167_v39  ;;  %v12177_v2 = vunpack.i.l.bf16 %v12176_v15  ;;  %v5840_v33 = vsel %vm1909_vm7, %v5808_v9, %v12168_v37  ;;  %v12178_v26 = vunpack.i.h.bf16 %v12176_v15  ;;  %v4467_v9 = vld [vmem:[#allocation2 + $0x138] sm:$0xff] }
 0x71b   : > { %v12172_v40 = vunpack.i.l.bf16 %v12171_v47  ;;  %6126 = vmatmul.mubr.f32.gmra.mrb[70].mxu0 %v5839_v34  ;;  %v12173_v1 = vunpack.i.h.bf16 %v12171_v47 }
 0x71c   : > { %10326 = vmatprep.mubr.msk.f32.mxu0 %vm387_vm0, %v16077_v16 }
 0x71d   : > { %v5649_v38 = vsel %vm387_vm0, %v4465_v23, %v12172_v40  ;;  %v12186_v27 = vpop.permute.xlu0 %12185  ;;  %v5650_v8 = vsel %vm387_vm0, %v4466_v63, %v12173_v1 }
 0x71e   : > { %v12181_v12 = vpop.permute.xlu1 %12180  ;;  %v5681_v62 = vsel %vm1744_vm2, %v5649_v38, %v12177_v2  ;;  %v12187_v36 = vunpack.i.l.bf16 %v12186_v27  ;;  %v5682_v10 = vsel %vm1744_vm2, %v5650_v8, %v12178_v26  ;;  %v12188_v60 = vunpack.i.h.bf16 %v12186_v27 }
 0x71f   : > { %v12182_v51 = vunpack.i.l.bf16 %v12181_v12  ;;  %6131 = vmatmul.mubr.f32.gmra.mrb[72].mxu0 %v5840_v33  ;;  %v12183_v16 = vunpack.i.h.bf16 %v12181_v12  ;;  %v4468_v12 = vld [vmem:[#allocation2 + $0x140] sm:$0xff] }
 0x720   : > { %10327 = vmatprep.mubr.msk.f32.mxu0 %vm387_vm0, %v16107_v45 }
 0x721   : > { %v5713_v30 = vsel %vm1777_vm3, %v5681_v62, %v12182_v51  ;;  %v12196_v13 = vpop.permute.xlu0 %12195  ;;  %v5714_v6 = vsel %vm1777_vm3, %v5682_v10, %v12183_v16 }
 0x722   : > { %v12191_v28 = vpop.permute.xlu1 %12190  ;;  %v5745_v61 = vsel %vm1810_vm4, %v5713_v30, %v12187_v36  ;;  %v12197_v58 = vunpack.i.l.bf16 %v12196_v13  ;;  %v5746_v49 = vsel %vm1810_vm4, %v5714_v6, %v12188_v60  ;;  %v12198_v22 = vunpack.i.h.bf16 %v12196_v13 }
 0x723   : > { %v12192_v14 = vunpack.i.l.bf16 %v12191_v28  ;;  %v12193_v18 = vunpack.i.h.bf16 %v12191_v28 }
 0x725   : > { %v12206_v50 = vpop.permute.xlu0 %12205  ;;  %v5777_v45 = vsel %vm1843_vm5, %v5745_v61, %v12192_v14  ;;  %v5778_v34 = vsel %vm1843_vm5, %v5746_v49, %v12193_v18 }
 0x726   : > { %v12201_v39 = vpop.permute.xlu1 %12200  ;;  %v12207_v32 = vunpack.i.l.bf16 %v12206_v50  ;;  %v5809_v15 = vsel %vm1876_vm6, %v5777_v45, %v12197_v58  ;;  %v12208_v24 = vunpack.i.h.bf16 %v12206_v50  ;;  %v5810_v27 = vsel %vm1876_vm6, %v5778_v34, %v12198_v22 }
 0x727   : > { %v12202_v21 = vunpack.i.l.bf16 %v12201_v39  ;;  %v12203_v5 = vunpack.i.h.bf16 %v12201_v39 }
 0x728   : > { %v5651_v1 = vsel %vm387_vm0, %v4467_v9, %v12207_v32  ;;  %v5652_v26 = vsel %vm387_vm0, %v4468_v12, %v12208_v24 }
 0x729   : > { %v12216_v37 = vpop.permute.xlu0 %12215  ;;  %v5841_v47 = vsel %vm1909_vm7, %v5809_v15, %v12202_v21  ;;  %v5842_v63 = vsel %vm1909_vm7, %v5810_v27, %v12203_v5 }
 0x72a   : > { %v12211_v40 = vpop.permute.xlu1 %12210  ;;  %6136 = vmatmul.mubr.f32.gmra.mrb[74].mxu0 %v5841_v47  ;;  %v12217_v38 = vunpack.i.l.bf16 %v12216_v37  ;;  %v12218_v62 = vunpack.i.h.bf16 %v12216_v37 }
 0x72b   : > { %v12213_v23 = vunpack.i.h.bf16 %v12211_v40  ;;  %v12212_v2 = vunpack.i.l.bf16 %v12211_v40  ;;  %10328 = vmatprep.mubr.msk.f32.mxu0 %vm387_vm0, %v16109_v19 }
 0x72d   : > { %v5683_v33 = vsel %vm1744_vm2, %v5651_v1, %v12212_v2  ;;  %v12226_v51 = vpop.permute.xlu0 %12225  ;;  %v5684_v8 = vsel %vm1744_vm2, %v5652_v26, %v12213_v23 }
 0x72e   : > { %v12221_v36 = vpop.permute.xlu1 %12220  ;;  %6141 = vmatmul.mubr.f32.gmra.mrb[76].mxu0 %v5842_v63  ;;  %v5715_v30 = vsel %vm1777_vm3, %v5683_v33, %v12217_v38  ;;  %v12227_v13 = vunpack.i.l.bf16 %v12226_v51  ;;  %v5716_v10 = vsel %vm1777_vm3, %v5684_v8, %v12218_v62  ;;  %v12228_v60 = vunpack.i.h.bf16 %v12226_v51 }
 0x72f   : > { %v12223_v16 = vunpack.i.h.bf16 %v12221_v36  ;;  %v12222_v19 = vunpack.i.l.bf16 %v12221_v36  ;;  %10329 = vmatprep.mubr.msk.f32.mxu0 %vm387_vm0, %v16159_v29 }
 0x731   : > { %v5747_v28 = vsel %vm1810_vm4, %v5715_v30, %v12222_v19  ;;  %v12236_v14 = vpop.permute.xlu0 %12235  ;;  %v5748_v6 = vsel %vm1810_vm4, %v5716_v10, %v12223_v16 }
 0x732   : > { %v12231_v61 = vpop.permute.xlu1 %12230  ;;  %v12237_v58 = vunpack.i.l.bf16 %v12236_v14  ;;  %v5779_v45 = vsel %vm1843_vm5, %v5747_v28, %v12227_v13  ;;  %v12238_v21 = vunpack.i.h.bf16 %v12236_v14  ;;  %v5780_v32 = vsel %vm1843_vm5, %v5748_v6, %v12228_v60 }
 0x733   : > { %v12233_v18 = vunpack.i.h.bf16 %v12231_v61  ;;  %v12232_v50 = vunpack.i.l.bf16 %v12231_v61 }
 0x735   : > { %v12246_v39 = vpop.permute.xlu0 %12245  ;;  %v5811_v29 = vsel %vm1876_vm6, %v5779_v45, %v12232_v50  ;;  %v5812_v5 = vsel %vm1876_vm6, %v5780_v32, %v12233_v18 }
 0x736   : > { %v12241_v49 = vpop.permute.xlu1 %12240  ;;  %v5843_v22 = vsel %vm1909_vm7, %v5811_v29, %v12237_v58  ;;  %v12247_v37 = vunpack.i.l.bf16 %v12246_v39  ;;  %v5844_v9 = vsel %vm1909_vm7, %v5812_v5, %v12238_v21  ;;  %v12248_v2 = vunpack.i.h.bf16 %v12246_v39 }
 0x737   : > { %v12242_v15 = vunpack.i.l.bf16 %v12241_v49  ;;  %6146 = vmatmul.mubr.f32.gmra.mrb[78].mxu0 %v5843_v22  ;;  %v12243_v47 = vunpack.i.h.bf16 %v12241_v49  ;;  %v4727_v22 = vld [vmem:[#allocation2 + $0x19a] sm:$0xff] }
 0x738   : > { %10330 = vmatprep.mubr.msk.f32.mxu0 %vm387_vm0, %v16161_v20 }
 0x739   : > { %v5653_v34 = vsel %vm387_vm0, %v16068_v35, %v12242_v15  ;;  %v12256_v24 = vpop.permute.xlu0 %12255  ;;  %v5654_v20 = vsel %vm387_vm0, %v16070_v54, %v12243_v47 }
 0x73a   : > { %v12251_v40 = vpop.permute.xlu1 %12250  ;;  %v5685_v1 = vsel %vm1744_vm2, %v5653_v34, %v12247_v37  ;;  %v12257_v38 = vunpack.i.l.bf16 %v12256_v24  ;;  %v5686_v63 = vsel %vm1744_vm2, %v5654_v20, %v12248_v2  ;;  %v12258_v26 = vunpack.i.h.bf16 %v12256_v24 }
 0x73b   : > { %v12252_v23 = vunpack.i.l.bf16 %v12251_v40  ;;  %6151 = vmatmul.mubr.f32.gmra.mrb[80].mxu0 %v5844_v9  ;;  %v12253_v27 = vunpack.i.h.bf16 %v12251_v40 }
 0x73c   : > { %10331 = vmatprep.mubr.msk.f32.mxu0 %vm387_vm0, %v16183_v41 }
 0x73d   : > { %v5717_v12 = vsel %vm1777_vm3, %v5685_v1, %v12252_v23  ;;  %v12266_v35 = vpop.permute.xlu0 %12265  ;;  %v5718_v8 = vsel %vm1777_vm3, %v5686_v63, %v12253_v27  ;;  %v10335_v27 = vld [vmem:[%s18240_s3 + $0x90] sm:$0xff] }
 0x73e   : > { %v12261_v33 = vpop.permute.xlu1 %12260  ;;  %v5749_v62 = vsel %vm1810_vm4, %v5717_v12, %v12257_v38  ;;  %v12267_v36 = vunpack.i.l.bf16 %v12266_v35  ;;  %v5750_v13 = vsel %vm1810_vm4, %v5718_v8, %v12258_v26  ;;  %v12268_v28 = vunpack.i.h.bf16 %v12266_v35  ;;  %v10336_v12 = vld [vmem:[%s18240_s3 + $0x98] sm:$0xff]  ;;  %v10337_v35 = vld [vmem:[%s18240_s3 + $0xa0] sm:$0xff] }
 0x73f   : > { %v12262_v51 = vunpack.i.l.bf16 %v12261_v33  ;;  %v12263_v16 = vunpack.i.h.bf16 %v12261_v33  ;;  %v10552_v26 = vpack.c.bf16 %v10336_v12, %v10335_v27  ;;  %v10347_v12 = vld [vmem:[%s18240_s3 + $0xf0] sm:$0xff] }
 0x741   : > { %v12276_v19 = vpop.permute.xlu0 %12275  ;;  %v5781_v41 = vsel %vm1843_vm5, %v5749_v62, %v12262_v51  ;;  %v5782_v6 = vsel %vm1843_vm5, %v5750_v13, %v12263_v16  ;;  %v10338_v62 = vld [vmem:[%s18240_s3 + $0xa8] sm:$0xff]  ;;  %10553 = vmatpush1.bf16.msra.mxu1 %v10552_v26  ;;  %v10339_v13 = vld [vmem:[%s18240_s3 + $0xb0] sm:$0xff] }
 0x742   : > { %v12271_v30 = vpop.permute.xlu1 %12270  ;;  %v12277_v14 = vunpack.i.l.bf16 %v12276_v19  ;;  %v5813_v10 = vsel %vm1876_vm6, %v5781_v41, %v12267_v36  ;;  %v12278_v18 = vunpack.i.h.bf16 %v12276_v19  ;;  %v5814_v49 = vsel %vm1876_vm6, %v5782_v6, %v12268_v28  ;;  %v4728_v16 = vld [vmem:[#allocation2 + $0x1a2] sm:$0xff]  ;;  %10554 = vmatprep.subr.bf16.mxu1 %v18375_v55  ;;  %v10340_v28 = vld [vmem:[%s18240_s3 + $0xb8] sm:$0xff] }
 0x743   : > { %v12272_v54 = vunpack.i.l.bf16 %v12271_v30  ;;  %v12273_v60 = vunpack.i.h.bf16 %v12271_v30  ;;  %v10555_v19 = vpack.c.bf16 %v10338_v62, %v10337_v35  ;;  %v10348_v35 = vld [vmem:[%s18240_s3 + $0xf8] sm:$0xff] }
 0x744   : > { %v5655_v29 = vsel %vm387_vm0, %v16122_v0, %v12277_v14  ;;  %v5656_v37 = vsel %vm387_vm0, %v16124_v43, %v12278_v18  ;;  %v16389_v14 = vld [vmem:[%s18239_s2 + $0x1] ss:$0 sm:$0xff]  ;;  %v10570_v62 = vpack.c.bf16 %v10348_v35, %v10347_v12 }
 0x745   : > { %v12286_v61 = vpop.permute.xlu0 %12285  ;;  %v5845_v58 = vsel %vm1909_vm7, %v5813_v10, %v12272_v54  ;;  %v5846_v5 = vsel %vm1909_vm7, %v5814_v49, %v12273_v60  ;;  %10556 = vmatpush1.bf16.msra.mxu1 %v10555_v19  ;;  %v10350_v19 = vld [vmem:[%s18240_s3 + $0x108] sm:$0xff] }
 0x746   : > { %v12281_v50 = vpop.permute.xlu1 %12280  ;;  %6156 = vmatmul.mubr.f32.gmra.mrb[82].mxu0 %v5845_v58  ;;  %v12287_v21 = vunpack.i.l.bf16 %v12286_v61  ;;  %v12288_v47 = vunpack.i.h.bf16 %v12286_v61  ;;  %v10558_v61 = vpack.c.bf16 %v10340_v28, %v10339_v13  ;;  %10557 = vmatprep.subr.bf16.mxu1 %v18375_v55 }
 0x747   : > { %v12283_v45 = vunpack.i.h.bf16 %v12281_v50  ;;  %v12282_v39 = vunpack.i.l.bf16 %v12281_v50  ;;  %10332 = vmatprep.mubr.msk.f32.mxu0 %vm387_vm0, %v16185_v3  ;;  %v10341_v50 = vld [vmem:[%s18240_s3 + $0xc0] sm:$0xff] }
 0x749   : > { %v5687_v32 = vsel %vm1744_vm2, %v5655_v29, %v12282_v39  ;;  %v12301_v15 = vpop.permute.xlu0 %12300  ;;  %v5688_v3 = vsel %vm1744_vm2, %v5656_v37, %v12283_v45  ;;  %v10342_v45 = vld [vmem:[%s18240_s3 + $0xc8] sm:$0xff]  ;;  %10559 = vmatpush1.bf16.msra.mxu1 %v10558_v61 }
 0x74a   : > { %v12291_v34 = vpop.permute.xlu1 %12290  ;;  %6161 = vmatmul.mubr.f32.gmra.mrb[84].mxu0 %v5846_v5  ;;  %v5719_v0 = vsel %vm1777_vm3, %v5687_v32, %v12287_v21  ;;  %v12302_v9 = vunpack.i.l.bf16 %v12301_v15  ;;  %v5720_v1 = vsel %vm1777_vm3, %v5688_v3, %v12288_v47  ;;  %v12303_v38 = vunpack.i.h.bf16 %v12301_v15  ;;  %10560 = vmatprep.subr.bf16.mxu1 %v18375_v55  ;;  %v10343_v32 = vld [vmem:[%s18240_s3 + $0xd0] sm:$0xff]  ;;  %v10344_v15 = vld [vmem:[%s18240_s3 + $0xd8] sm:$0xff]  ;;  %v10345_v47 = vld [vmem:[%s18240_s3 + $0xe0] sm:$0xff] }
 0x74b   : > { %v12293_v24 = vunpack.i.h.bf16 %v12291_v34  ;;  %v12292_v40 = vunpack.i.l.bf16 %v12291_v34  ;;  %10333 = vmatprep.mubr.msk.f32.mxu0 %vm387_vm0, %v4727_v22  ;;  %v10561_v21 = vpack.c.bf16 %v10342_v45, %v10341_v50  ;;  %v10564_v37 = vpack.c.bf16 %v10344_v15, %v10343_v32  ;;  %v10346_v34 = vld [vmem:[%s18240_s3 + $0xe8] sm:$0xff] }
 0x74c   : > { %v10567_v3 = vpack.c.bf16 %v10346_v34, %v10345_v47 }
 0x74d   : > { %v5751_v23 = vsel %vm1810_vm4, %v5719_v0, %v12292_v40  ;;  %v12306_v2 = vpop.permute.xlu0 %12305  ;;  %v5752_v33 = vsel %vm1810_vm4, %v5720_v1, %v12293_v24  ;;  %10562 = vmatpush1.bf16.msra.mxu1 %v10561_v21 }
 0x74e   : > { %v12296_v20 = vpop.permute.xlu1 %12295  ;;  %v12307_v43 = vunpack.i.l.bf16 %v12306_v2  ;;  %v5783_v36 = vsel %vm1843_vm5, %v5751_v23, %v12302_v9  ;;  %v12308_v41 = vunpack.i.h.bf16 %v12306_v2  ;;  %v5784_v54 = vsel %vm1843_vm5, %v5752_v33, %v12303_v38  ;;  %10563 = vmatprep.subr.bf16.mxu1 %v18375_v55 }
 0x74f   : > { %v12298_v51 = vunpack.i.h.bf16 %v12296_v20  ;;  %v12297_v63 = vunpack.i.l.bf16 %v12296_v20 }
 0x751   : > { %v5815_v8 = vsel %vm1876_vm6, %v5783_v36, %v12297_v63  ;;  %v5816_v10 = vsel %vm1876_vm6, %v5784_v54, %v12298_v51  ;;  %10565 = vmatpush1.bf16.msra.mxu1 %v10564_v37  ;;  %v10352_v54 = vld [vmem:[%s18240_s3 + $0x118] sm:$0xff] }
 0x752   : > { %v5847_v30 = vsel %vm1909_vm7, %v5815_v8, %v12307_v43  ;;  %v5848_v18 = vsel %vm1909_vm7, %v5816_v10, %v12308_v41  ;;  %10566 = vmatprep.subr.bf16.mxu1 %v18375_v55  ;;  %v10351_v41 = vld [vmem:[%s18240_s3 + $0x110] sm:$0xff] }
 0x753   : > { %6166 = vmatmul.mubr.f32.gmra.mrb[86].mxu0 %v5847_v30  ;;  %v10576_v13 = vpack.c.bf16 %v10352_v54, %v10351_v41 }
 0x754   : > { %10334 = vmatprep.mubr.msk.f32.mxu0 %vm387_vm0, %v4728_v16  ;;  %v10349_v16 = vld [vmem:[%s18240_s3 + $0x100] sm:$0xff] }
 0x755   : > { %v6017_v60 = vpop.f32.mrb[26].mxu0  ;;  %10568 = vmatpush1.bf16.msra.mxu1 %v10567_v3  ;;  %v10573_v30 = vpack.c.bf16 %v10350_v19, %v10349_v16 }
 0x756   : > { %v6018_v58 = vadd.f32 %v16389_v14, %v6017_v60  ;;  %v6019_v6 = vpop.f32.mrb[27].mxu0  ;;  %10569 = vmatprep.subr.bf16.mxu1 %v18375_v55 }
 0x757   : > { %6171 = vmatmul.mubr.f32.gmra.mrb[88].mxu0 %v5848_v18 }
 0x758   : > { %v6176_v39 = vmax.f32 %v6018_v58, 0.0  ;;  %10459 = vmatprep.mubr.msk.f32.mxu0 %vm13441_vm8, %v18376_v31 }
 0x759   : > { %v6022_v29 = vpop.f32.mrb[28].mxu0  ;;  %10571 = vmatpush1.bf16.msra.mxu1 %v10570_v62 }
 0x75a   : > { %6229 = vst.msk [vmem:[#allocation2 + $0x19] sm:$0xff] %vm387_vm0, %v6176_v39  ;;  %v6023_v49 = vadd.f32 %v16389_v14, %v6022_v29  ;;  %v6024_v22 = vpop.f32.mrb[29].mxu0  ;;  %10572 = vmatprep.subr.bf16.mxu1 %v18375_v55 }
 0x75c   : > { %v6177_v5 = vmax.f32 %v6023_v49, 0.0 }
 0x75d   : > { %10574 = vmatpush1.bf16.msra.mxu1 %v10573_v30 }
 0x75e   : > { %6230 = vst.msk [vmem:[#allocation2 + $0x21] sm:$0xff] %vm387_vm0, %v6177_v5  ;;  %10575 = vmatprep.subr.bf16.mxu1 %v18375_v55 }
 0x761   : > { %v6389_v9 = vld [vmem:[#allocation2 + $0x19] sm:$0xff]  ;;  %10577 = vmatpush1.bf16.msra.mxu1 %v10576_v13 }
 0x762   : > { %v6027_v24 = vpop.f32.mrb[30].mxu0  ;;  %v16423_v1 = vld [vmem:[#allocation2 + $0x18] sm:$0xff]  ;;  %10462 = vmatprep.subr.mxu1 %v18376_v31 }
 0x763   : > { %v6028_v40 = vadd.f32 %v16389_v14, %v6027_v24  ;;  %v6029_v0 = vpop.f32.mrb[31].mxu0 }
 0x765   : > { %v6178_v23 = vmax.f32 %v6028_v40, 0.0  ;;  %v6390_v2 = vld [vmem:[#allocation2 + $0x21] sm:$0xff] }
 0x766   : > { %v16425_v38 = vld [vmem:[#allocation2 + $0x20] sm:$0xff]  ;;  %v6032_v20 = vpop.f32.mrb[32].mxu0  ;;  %v12324_v43 = vpack.i.bf16 %v6390_v2, %v6389_v9 }
 0x767   : > { %v12319_v27 = vpack.i.bf16 %v16425_v38, %v16423_v1  ;;  %6231 = vst.msk [vmem:[#allocation2 + $0x31] sm:$0xff] %vm387_vm0, %v6178_v23  ;;  %v6033_v33 = vadd.f32 %v16389_v14, %v6032_v20  ;;  %v6034_v51 = vpop.f32.mrb[33].mxu0  ;;  %v6421_v63 = vld [vmem:[#allocation2 + $0x1a] sm:$0xff]  ;;  %v6422_v26 = vld [vmem:[#allocation2 + $0x22] sm:$0xff] }
 0x768   : > { %12325 = vrot.lane.b32.xlu0 %v12324_v43, %s13438_s24  ;;  %v12329_v8 = vpack.i.bf16 %v6422_v26, %v6421_v63 }
 0x769   : > { %12320 = vrot.lane.b32.xlu1 %v12319_v27, %s13436_s14  ;;  %v6179_v36 = vmax.f32 %v6033_v33, 0.0 }
 0x76b   : > { %6232 = vst.msk [vmem:[#allocation2 + $0x39] sm:$0xff] %vm387_vm0, %v6179_v36 }
 0x76c   : > { %12335 = vrot.lane.b32.xlu0 %v12324_v43, %s13434_s22 }
 0x76d   : > { %12330 = vrot.lane.b32.xlu1 %v12329_v8, %s13437_s16 }
 0x76e   : > { %v6485_v10 = vld [vmem:[#allocation2 + $0x31] sm:$0xff] }
 0x76f   : > { %v16458_v60 = vld [vmem:[#allocation2 + $0x30] sm:$0xff] }
 0x771   : > { %12340 = vrot.lane.b32.xlu1 %v12329_v8, %s13435_s28  ;;  %v6037_v28 = vpop.f32.mrb[34].mxu0 }
 0x772   : > { %v6038_v61 = vadd.f32 %v16389_v14, %v6037_v28  ;;  %v6039_v58 = vpop.f32.mrb[35].mxu0  ;;  %v6517_v6 = vld [vmem:[#allocation2 + $0x32] sm:$0xff]  ;;  %v16471_v15 = vld [vmem:[#allocation2 + $0x3a] sm:$0xff] }
 0x773   : > { %v6486_v18 = vld [vmem:[#allocation2 + $0x39] sm:$0xff]  ;;  %10355 = vmatprep.mubr.msk.f32.mxu1 %vm387_vm0, %v6517_v6  ;;  %v12364_v5 = vpack.i.bf16 %v16471_v15, %v6517_v6 }
 0x774   : > { %v16461_v50 = vld [vmem:[#allocation2 + $0x38] sm:$0xff]  ;;  %v12349_v45 = vpack.i.bf16 %v6486_v18, %v6485_v10  ;;  %v6180_v29 = vmax.f32 %v6038_v61, 0.0 }
 0x775   : > { %v12344_v39 = vpack.i.bf16 %v16461_v50, %v16458_v60  ;;  %v6042_v21 = vpop.f32.mrb[36].mxu0 }
 0x776   : > { %12350 = vrot.lane.b32.xlu1 %v12349_v45, %s13439_s25  ;;  %6233 = vst.msk [vmem:[#allocation2 + $0x49] sm:$0xff] %vm387_vm0, %v6180_v29  ;;  %v6043_v49 = vadd.f32 %v16389_v14, %v6042_v21  ;;  %v6044_v22 = vpop.f32.mrb[37].mxu0 }
 0x777   : > { %12345 = vrot.lane.b32.xlu0 %v12344_v39, %s13440_s26 }
 0x778   : > { %v6181_v32 = vmax.f32 %v6043_v49, 0.0 }
 0x77a   : > { %12360 = vrot.lane.b32.xlu1 %v12349_v45, %s13438_s24  ;;  %6234 = vst.msk [vmem:[#allocation2 + $0x51] sm:$0xff] %vm387_vm0, %v6181_v32 }
 0x77b   : > { %12355 = vrot.lane.b32.xlu0 %v12344_v39, %s13436_s14 }
 0x77d   : > { %v16480_v3 = vld [vmem:[#allocation2 + $0x48] sm:$0xff] }
 0x77e   : > { %12370 = vrot.lane.b32.xlu1 %v12349_v45, %s13434_s22  ;;  %v6047_v37 = vpop.f32.mrb[38].mxu0  ;;  %v6487_v0 = vld [vmem:[#allocation2 + $0x49] sm:$0xff] }
 0x77f   : > { %12365 = vrot.lane.b32.xlu0 %v12364_v5, %s13437_s16  ;;  %v6048_v47 = vadd.f32 %v16389_v14, %v6047_v37  ;;  %v6049_v34 = vpop.f32.mrb[39].mxu0 }
 0x781   : > { %v6182_v24 = vmax.f32 %v6048_v47, 0.0  ;;  %v16483_v40 = vld [vmem:[#allocation2 + $0x50] sm:$0xff] }
 0x782   : > { %v6488_v9 = vld [vmem:[#allocation2 + $0x51] sm:$0xff]  ;;  %v6052_v23 = vpop.f32.mrb[40].mxu0  ;;  %v12379_v2 = vpack.i.bf16 %v16483_v40, %v16480_v3 }
 0x783   : > { %12375 = vrot.lane.b32.xlu0 %v12364_v5, %s13435_s28  ;;  %v12384_v20 = vpack.i.bf16 %v6488_v9, %v6487_v0  ;;  %6235 = vst.msk [vmem:[#allocation2 + $0x61] sm:$0xff] %vm387_vm0, %v6182_v24  ;;  %v6053_v43 = vadd.f32 %v16389_v14, %v6052_v23  ;;  %v6054_v27 = vpop.f32.mrb[41].mxu0  ;;  %v16492_v35 = vld [vmem:[#allocation2 + $0x4a] sm:$0xff]  ;;  %v16494_v33 = vld [vmem:[#allocation2 + $0x52] sm:$0xff] }
 0x784   : > { %12380 = vrot.lane.b32.xlu1 %v12379_v2, %s13440_s26  ;;  %v12399_v51 = vpack.i.bf16 %v16494_v33, %v16492_v35 }
 0x785   : > { %v6183_v12 = vmax.f32 %v6053_v43, 0.0 }
 0x787   : > { %12385 = vrot.lane.b32.xlu0 %v12384_v20, %s13439_s25  ;;  %6236 = vst.msk [vmem:[#allocation2 + $0x69] sm:$0xff] %vm387_vm0, %v6183_v12 }
 0x788   : > { %12390 = vrot.lane.b32.xlu1 %v12379_v2, %s13436_s14 }
 0x78a   : > { %v6457_v36 = vld [vmem:[#allocation2 + $0x60] sm:$0xff] }
 0x78b   : > { %12395 = vrot.lane.b32.xlu0 %v12384_v20, %s13438_s24  ;;  %v6489_v54 = vld [vmem:[#allocation2 + $0x61] sm:$0xff] }
 0x78c   : > { %12400 = vrot.lane.b32.xlu1 %v12399_v51, %s13437_s16 }
 0x78d   : > { %v6057_v63 = vpop.f32.mrb[42].mxu0 }
 0x78e   : > { %v6058_v26 = vadd.f32 %v16389_v14, %v6057_v63  ;;  %v6059_v62 = vpop.f32.mrb[43].mxu0  ;;  %v6458_v8 = vld [vmem:[#allocation2 + $0x68] sm:$0xff] }
 0x78f   : > { %12405 = vrot.lane.b32.xlu0 %v12384_v20, %s13434_s22  ;;  %v12414_v16 = vpack.i.bf16 %v6458_v8, %v6457_v36  ;;  %v6490_v19 = vld [vmem:[#allocation2 + $0x69] sm:$0xff] }
 0x790   : > { %v6184_v41 = vmax.f32 %v6058_v26, 0.0  ;;  %12410 = vrot.lane.b32.xlu1 %v12399_v51, %s13435_s28  ;;  %v12419_v10 = vpack.i.bf16 %v6490_v19, %v6489_v54  ;;  %v16508_v58 = vld [vmem:[#allocation2 + $0x62] sm:$0xff]  ;;  %v16510_v6 = vld [vmem:[#allocation2 + $0x6a] sm:$0xff] }
 0x791   : > { %v6062_v30 = vpop.f32.mrb[44].mxu0  ;;  %v12434_v18 = vpack.i.bf16 %v16510_v6, %v16508_v58 }
 0x792   : > { %6237 = vst.msk [vmem:[#allocation2 + $0x79] sm:$0xff] %vm387_vm0, %v6184_v41  ;;  %v6063_v13 = vadd.f32 %v16389_v14, %v6062_v30  ;;  %v6064_v28 = vpop.f32.mrb[45].mxu0 }
 0x793   : > { %12415 = vrot.lane.b32.xlu0 %v12414_v16, %s13440_s26 }
 0x794   : > { %v6185_v61 = vmax.f32 %v6063_v13, 0.0  ;;  %12420 = vrot.lane.b32.xlu1 %v12419_v10, %s13439_s25 }
 0x796   : > { %6238 = vst.msk [vmem:[#allocation2 + $0x81] sm:$0xff] %vm387_vm0, %v6185_v61 }
 0x797   : > { %12425 = vrot.lane.b32.xlu0 %v12414_v16, %s13436_s14 }
 0x798   : > { %12430 = vrot.lane.b32.xlu1 %v12419_v10, %s13438_s24 }
 0x799   : > { %v6459_v21 = vld [vmem:[#allocation2 + $0x78] sm:$0xff] }
 0x79a   : > { %v6067_v45 = vpop.f32.mrb[46].mxu0  ;;  %v6491_v32 = vld [vmem:[#allocation2 + $0x79] sm:$0xff] }
 0x79b   : > { %12435 = vrot.lane.b32.xlu0 %v12434_v18, %s13437_s16  ;;  %v6068_v39 = vadd.f32 %v16389_v14, %v6067_v45  ;;  %v6069_v29 = vpop.f32.mrb[47].mxu0 }
 0x79c   : > { %12440 = vrot.lane.b32.xlu1 %v12419_v10, %s13434_s22 }
 0x79d   : > { %v6186_v49 = vmax.f32 %v6068_v39, 0.0  ;;  %v6460_v22 = vld [vmem:[#allocation2 + $0x80] sm:$0xff] }
 0x79e   : > { %v6492_v5 = vld [vmem:[#allocation2 + $0x81] sm:$0xff]  ;;  %v6072_v37 = vpop.f32.mrb[48].mxu0  ;;  %v12449_v47 = vpack.i.bf16 %v6460_v22, %v6459_v21 }
 0x79f   : > { %12445 = vrot.lane.b32.xlu0 %v12434_v18, %s13435_s28  ;;  %v12454_v34 = vpack.i.bf16 %v6492_v5, %v6491_v32  ;;  %6239 = vst.msk [vmem:[#allocation2 + $0x91] sm:$0xff] %vm387_vm0, %v6186_v49  ;;  %v6073_v24 = vadd.f32 %v16389_v14, %v6072_v37  ;;  %v6074_v0 = vpop.f32.mrb[49].mxu0  ;;  %v16526_v23 = vld [vmem:[#allocation2 + $0x7a] sm:$0xff]  ;;  %v6430_v2 = vld [vmem:[#allocation2 + $0x82] sm:$0xff] }
 0x7a0   : > { %12450 = vrot.lane.b32.xlu1 %v12449_v47, %s13440_s26  ;;  %v12469_v20 = vpack.i.bf16 %v6430_v2, %v16526_v23 }
 0x7a1   : > { %v6187_v9 = vmax.f32 %v6073_v24, 0.0 }
 0x7a3   : > { %12455 = vrot.lane.b32.xlu0 %v12454_v34, %s13439_s25  ;;  %6240 = vst.msk [vmem:[#allocation2 + $0x99] sm:$0xff] %vm387_vm0, %v6187_v9 }
 0x7a4   : > { %12460 = vrot.lane.b32.xlu1 %v12449_v47, %s13436_s14 }
 0x7a6   : > { %v6461_v51 = vld [vmem:[#allocation2 + $0x90] sm:$0xff] }
 0x7a7   : > { %12465 = vrot.lane.b32.xlu0 %v12454_v34, %s13438_s24  ;;  %v6493_v16 = vld [vmem:[#allocation2 + $0x91] sm:$0xff] }
 0x7a8   : > { %12470 = vrot.lane.b32.xlu1 %v12469_v20, %s13437_s16 }
 0x7a9   : > { %v6077_v43 = vpop.f32.mrb[50].mxu0 }
 0x7aa   : > { %v6078_v27 = vadd.f32 %v16389_v14, %v6077_v43  ;;  %v6079_v12 = vpop.f32.mrb[51].mxu0  ;;  %v6462_v63 = vld [vmem:[#allocation2 + $0x98] sm:$0xff] }
 0x7ab   : > { %12475 = vrot.lane.b32.xlu0 %v12454_v34, %s13434_s22  ;;  %v12484_v26 = vpack.i.bf16 %v6462_v63, %v6461_v51  ;;  %v6494_v62 = vld [vmem:[#allocation2 + $0x99] sm:$0xff] }
 0x7ac   : > { %v6188_v36 = vmax.f32 %v6078_v27, 0.0  ;;  %12480 = vrot.lane.b32.xlu1 %v12469_v20, %s13435_s28  ;;  %v12489_v30 = vpack.i.bf16 %v6494_v62, %v6493_v16  ;;  %v6431_v13 = vld [vmem:[#allocation2 + $0x92] sm:$0xff]  ;;  %v6432_v28 = vld [vmem:[#allocation2 + $0x9a] sm:$0xff] }
 0x7ad   : > { %v6082_v8 = vpop.f32.mrb[52].mxu0  ;;  %v12504_v10 = vpack.i.bf16 %v6432_v28, %v6431_v13  ;;  %v12311_v28 = vpop.permute.xlu1 %12310 }
 0x7ae   : > { %6241 = vst.msk [vmem:[#allocation2 + $0xa9] sm:$0xff] %vm387_vm0, %v6188_v36  ;;  %v6083_v19 = vadd.f32 %v16389_v14, %v6082_v8  ;;  %v6084_v41 = vpop.f32.mrb[53].mxu0 }
 0x7af   : > { %12485 = vrot.lane.b32.xlu0 %v12484_v26, %s13440_s26 }
 0x7b0   : > { %v6189_v54 = vmax.f32 %v6083_v19, 0.0  ;;  %12490 = vrot.lane.b32.xlu1 %v12489_v30, %s13439_s25 }
 0x7b2   : > { %6242 = vst.msk [vmem:[#allocation2 + $0xb1] sm:$0xff] %vm387_vm0, %v6189_v54 }
 0x7b3   : > { %12495 = vrot.lane.b32.xlu0 %v12484_v26, %s13436_s14 }
 0x7b4   : > { %12500 = vrot.lane.b32.xlu1 %v12489_v30, %s13438_s24 }
 0x7b5   : > { %v6463_v39 = vld [vmem:[#allocation2 + $0xa8] sm:$0xff] }
 0x7b6   : > { %v6087_v61 = vpop.f32.mrb[54].mxu0  ;;  %v6495_v49 = vld [vmem:[#allocation2 + $0xa9] sm:$0xff] }
 0x7b7   : > { %12505 = vrot.lane.b32.xlu0 %v12504_v10, %s13437_s16  ;;  %v6088_v18 = vadd.f32 %v16389_v14, %v6087_v61  ;;  %v6089_v45 = vpop.f32.mrb[55].mxu0 }
 0x7b8   : > { %12510 = vrot.lane.b32.xlu1 %v12489_v30, %s13434_s22 }
 0x7b9   : > { %v6190_v29 = vmax.f32 %v6088_v18, 0.0  ;;  %v6464_v21 = vld [vmem:[#allocation2 + $0xb0] sm:$0xff] }
 0x7ba   : > { %v6496_v22 = vld [vmem:[#allocation2 + $0xb1] sm:$0xff]  ;;  %v6092_v32 = vpop.f32.mrb[56].mxu0  ;;  %v12519_v5 = vpack.i.bf16 %v6464_v21, %v6463_v39  ;;  %v16567_v39 = vpop.permute.xlu1 %7281 }
 0x7bb   : > { %12515 = vrot.lane.b32.xlu0 %v12504_v10, %s13435_s28  ;;  %v12524_v37 = vpack.i.bf16 %v6496_v22, %v6495_v49  ;;  %6243 = vst.msk [vmem:[#allocation2 + $0xc1] sm:$0xff] %vm387_vm0, %v6190_v29  ;;  %v6093_v47 = vadd.f32 %v16389_v14, %v6092_v32  ;;  %v6094_v34 = vpop.f32.mrb[57].mxu0  ;;  %v6433_v0 = vld [vmem:[#allocation2 + $0xaa] sm:$0xff]  ;;  %v6434_v9 = vld [vmem:[#allocation2 + $0xb2] sm:$0xff] }
 0x7bc   : > { %12520 = vrot.lane.b32.xlu1 %v12519_v5, %s13440_s26  ;;  %v12539_v2 = vpack.i.bf16 %v6434_v9, %v6433_v0  ;;  %v12316_v34 = vpop.permute.xlu0 %12315 }
 0x7bd   : > { %v6191_v24 = vmax.f32 %v6093_v47, 0.0 }
 0x7bf   : > { %12525 = vrot.lane.b32.xlu0 %v12524_v37, %s13439_s25  ;;  %6244 = vst.msk [vmem:[#allocation2 + $0xc9] sm:$0xff] %vm387_vm0, %v6191_v24 }
 0x7c0   : > { %12530 = vrot.lane.b32.xlu1 %v12519_v5, %s13436_s14 }
 0x7c2   : > { %v6465_v12 = vld [vmem:[#allocation2 + $0xc0] sm:$0xff] }
 0x7c3   : > { %12535 = vrot.lane.b32.xlu0 %v12524_v37, %s13438_s24  ;;  %v6497_v8 = vld [vmem:[#allocation2 + $0xc1] sm:$0xff] }
 0x7c4   : > { %12540 = vrot.lane.b32.xlu1 %v12539_v2, %s13437_s16 }
 0x7c5   : > { %v6097_v20 = vpop.f32.mrb[58].mxu0 }
 0x7c6   : > { %v6098_v43 = vadd.f32 %v16389_v14, %v6097_v20  ;;  %v6099_v27 = vpop.f32.mrb[59].mxu0  ;;  %v6466_v51 = vld [vmem:[#allocation2 + $0xc8] sm:$0xff] }
 0x7c7   : > { %12545 = vrot.lane.b32.xlu0 %v12524_v37, %s13434_s22  ;;  %v12554_v63 = vpack.i.bf16 %v6466_v51, %v6465_v12  ;;  %v6498_v26 = vld [vmem:[#allocation2 + $0xc9] sm:$0xff]  ;;  %v12312_v12 = vunpack.i.l.bf16 %v12311_v28 }
 0x7c8   : > { %v6192_v62 = vmax.f32 %v6098_v43, 0.0  ;;  %12550 = vrot.lane.b32.xlu1 %v12539_v2, %s13435_s28  ;;  %v12559_v41 = vpack.i.bf16 %v6498_v26, %v6497_v8  ;;  %v6435_v54 = vld [vmem:[#allocation2 + $0xc2] sm:$0xff]  ;;  %v6436_v13 = vld [vmem:[#allocation2 + $0xca] sm:$0xff]  ;;  %v12317_v8 = vunpack.i.l.bf16 %v12316_v34 }
 0x7c9   : > { %v6102_v36 = vpop.f32.mrb[60].mxu0  ;;  %v12574_v10 = vpack.i.bf16 %v6436_v13, %v6435_v54  ;;  %v6261_v26 = vld [vmem:[#allocation2] sm:$0xff] }
 0x7ca   : > { %6245 = vst.msk [vmem:[#allocation2 + $0xd9] sm:$0xff] %vm387_vm0, %v6192_v62  ;;  %v6103_v16 = vadd.f32 %v16389_v14, %v6102_v36  ;;  %v6104_v19 = vpop.f32.mrb[61].mxu0  ;;  %v12313_v62 = vunpack.i.h.bf16 %v12311_v28  ;;  %v6262_v36 = vld [vmem:[#allocation2 + $0x8] sm:$0xff] }
 0x7cb   : > { %12555 = vrot.lane.b32.xlu0 %v12554_v63, %s13440_s26  ;;  %v7445_v19 = vsel %vm387_vm0, %v6261_v26, %v12312_v12 }
 0x7cc   : > { %v6193_v30 = vmax.f32 %v6103_v16, 0.0  ;;  %12560 = vrot.lane.b32.xlu1 %v12559_v41, %s13439_s25 }
 0x7ce   : > { %6246 = vst.msk [vmem:[#allocation2 + $0xe1] sm:$0xff] %vm387_vm0, %v6193_v30 }
 0x7cf   : > { %12565 = vrot.lane.b32.xlu0 %v12554_v63, %s13436_s14 }
 0x7d0   : > { %12570 = vrot.lane.b32.xlu1 %v12559_v41, %s13438_s24 }
 0x7d1   : > { %v6467_v29 = vld [vmem:[#allocation2 + $0xd8] sm:$0xff] }
 0x7d2   : > { %v6107_v61 = vpop.f32.mrb[62].mxu0  ;;  %v6499_v22 = vld [vmem:[#allocation2 + $0xd9] sm:$0xff] }
 0x7d3   : > { %12575 = vrot.lane.b32.xlu0 %v12574_v10, %s13437_s16  ;;  %v6108_v18 = vadd.f32 %v16389_v14, %v6107_v61  ;;  %v6109_v45 = vpop.f32.mrb[63].mxu0 }
 0x7d4   : > { %12580 = vrot.lane.b32.xlu1 %v12559_v41, %s13434_s22 }
 0x7d5   : > { %v6194_v21 = vmax.f32 %v6108_v18, 0.0  ;;  %v6468_v49 = vld [vmem:[#allocation2 + $0xe0] sm:$0xff]  ;;  %v12318_v18 = vunpack.i.h.bf16 %v12316_v34 }
 0x7d6   : > { %v6500_v32 = vld [vmem:[#allocation2 + $0xe1] sm:$0xff]  ;;  %v6112_v5 = vpop.f32.mrb[64].mxu0  ;;  %v12589_v37 = vpack.i.bf16 %v6468_v49, %v6467_v29 }
 0x7d7   : > { %12585 = vrot.lane.b32.xlu0 %v12574_v10, %s13435_s28  ;;  %v12594_v47 = vpack.i.bf16 %v6500_v32, %v6499_v22  ;;  %6247 = vst.msk [vmem:[#allocation2 + $0xf1] sm:$0xff] %vm387_vm0, %v6194_v21  ;;  %v6113_v24 = vadd.f32 %v16389_v14, %v6112_v5  ;;  %v6114_v0 = vpop.f32.mrb[65].mxu0  ;;  %v6437_v20 = vld [vmem:[#allocation2 + $0xda] sm:$0xff]  ;;  %v6438_v43 = vld [vmem:[#allocation2 + $0xe2] sm:$0xff]  ;;  %v7446_v21 = vsel %vm387_vm0, %v6262_v36, %v12313_v62 }
 0x7d8   : > { %12590 = vrot.lane.b32.xlu1 %v12589_v37, %s13440_s26  ;;  %v12609_v63 = vpack.i.bf16 %v6438_v43, %v6437_v20  ;;  %v7477_v32 = vsel %vm1744_vm2, %v7445_v19, %v12317_v8  ;;  %v7478_v20 = vsel %vm1744_vm2, %v7446_v21, %v12318_v18 }
 0x7d9   : > { %v6195_v9 = vmax.f32 %v6113_v24, 0.0 }
 0x7da   : > { %v12326_v27 = vpop.permute.xlu0 %12325 }
 0x7db   : > { %12595 = vrot.lane.b32.xlu0 %v12594_v47, %s13439_s25  ;;  %v12321_v2 = vpop.permute.xlu1 %12320  ;;  %6248 = vst.msk [vmem:[#allocation2 + $0xf9] sm:$0xff] %vm387_vm0, %v6195_v9  ;;  %v12327_v5 = vunpack.i.l.bf16 %v12326_v27 }
 0x7dc   : > { %12600 = vrot.lane.b32.xlu1 %v12589_v37, %s13436_s14  ;;  %v12322_v41 = vunpack.i.l.bf16 %v12321_v2  ;;  %v12323_v49 = vunpack.i.h.bf16 %v12321_v2 }
 0x7de   : > { %v6469_v10 = vld [vmem:[#allocation2 + $0xf0] sm:$0xff]  ;;  %v16585_v45 = vpop.permute.xlu0 %12335  ;;  %v7509_v24 = vsel %vm1777_vm3, %v7477_v32, %v12322_v41  ;;  %v7510_v26 = vsel %vm1777_vm3, %v7478_v20, %v12323_v49 }
 0x7df   : > { %12605 = vrot.lane.b32.xlu0 %v12594_v47, %s13438_s24  ;;  %v16577_v51 = vpop.permute.xlu1 %12330  ;;  %v12338_v20 = vunpack.i.h.bf16 %v16585_v45 }
 0x7e0   : > { %12610 = vrot.lane.b32.xlu1 %v12609_v63, %s13437_s16  ;;  %v12332_v34 = vunpack.i.l.bf16 %v16577_v51 }
 0x7e1   : > { %v6117_v16 = vpop.f32.mrb[66].mxu0 }
 0x7e2   : > { %v6118_v30 = vadd.f32 %v16389_v14, %v6117_v16  ;;  %v6119_v54 = vpop.f32.mrb[67].mxu0  ;;  %v6470_v61 = vld [vmem:[#allocation2 + $0xf8] sm:$0xff]  ;;  %v12333_v16 = vunpack.i.h.bf16 %v16577_v51 }
 0x7e3   : > { %12615 = vrot.lane.b32.xlu0 %v12594_v47, %s13434_s22  ;;  %v16583_v13 = vpop.permute.xlu1 %12340  ;;  %v12624_v28 = vpack.i.bf16 %v6470_v61, %v6469_v10  ;;  %v6502_v29 = vld [vmem:[#allocation2 + $0xf9] sm:$0xff]  ;;  %v6501_v47 = vld [vmem:[#allocation2 + $0xf1] sm:$0xff] }
 0x7e4   : > { %v6196_v22 = vmax.f32 %v6118_v30, 0.0  ;;  %12620 = vrot.lane.b32.xlu1 %v12609_v63, %s13435_s28  ;;  %v12629_v2 = vpack.i.bf16 %v6502_v29, %v6501_v47  ;;  %v12328_v63 = vunpack.i.h.bf16 %v12326_v27  ;;  %v6439_v36 = vld [vmem:[#allocation2 + $0xf2] sm:$0xff]  ;;  %v6440_v8 = vld [vmem:[#allocation2 + $0xfa] sm:$0xff]  ;;  %v7541_v30 = vsel %vm1810_vm4, %v7509_v24, %v12327_v5 }
 0x7e5   : > { %v6122_v37 = vpop.f32.mrb[68].mxu0  ;;  %v7573_v27 = vsel %vm1843_vm5, %v7541_v30, %v12332_v34  ;;  %v12644_v18 = vpack.i.bf16 %v6440_v8, %v6439_v36  ;;  %v12343_v36 = vunpack.i.h.bf16 %v16583_v13 }
 0x7e6   : > { %6249 = vst.msk [vmem:[#allocation2 + $0x109] sm:$0xff] %vm387_vm0, %v6196_v22  ;;  %v6123_v0 = vadd.f32 %v16389_v14, %v6122_v37  ;;  %v6124_v9 = vpop.f32.mrb[69].mxu0  ;;  %v7542_v51 = vsel %vm1810_vm4, %v7510_v26, %v12328_v63  ;;  %v12337_v22 = vunpack.i.l.bf16 %v16585_v45  ;;  %v12342_v37 = vunpack.i.l.bf16 %v16583_v13 }
 0x7e7   : > { %12625 = vrot.lane.b32.xlu0 %v12624_v28, %s13440_s26  ;;  %v7574_v49 = vsel %vm1843_vm5, %v7542_v51, %v12333_v16 }
 0x7e8   : > { %v12351_v43 = vpop.permute.xlu1 %12350  ;;  %v6197_v62 = vmax.f32 %v6123_v0, 0.0  ;;  %12630 = vrot.lane.b32.xlu1 %v12629_v2, %s13439_s25 }
 0x7e9   : > { %v12346_v12 = vpop.permute.xlu0 %12345  ;;  %v12352_v19 = vunpack.i.l.bf16 %v12351_v43  ;;  %v12353_v21 = vunpack.i.h.bf16 %v12351_v43 }
 0x7ea   : > { %v12347_v41 = vunpack.i.l.bf16 %v12346_v12  ;;  %6250 = vst.msk [vmem:[#allocation2 + $0x111] sm:$0xff] %vm387_vm0, %v6197_v62  ;;  %v12348_v54 = vunpack.i.h.bf16 %v12346_v12 }
 0x7eb   : > { %12635 = vrot.lane.b32.xlu0 %v12624_v28, %s13436_s14 }
 0x7ec   : > { %v7605_v61 = vsel %vm1876_vm6, %v7573_v27, %v12347_v41  ;;  %v16604_v29 = vpop.permute.xlu1 %12360  ;;  %12640 = vrot.lane.b32.xlu1 %v12629_v2, %s13438_s24  ;;  %v7606_v5 = vsel %vm1876_vm6, %v7574_v49, %v12348_v54 }
 0x7ed   : > { %v12356_v10 = vpop.permute.xlu0 %12355  ;;  %v7637_v28 = vsel %vm1909_vm7, %v7605_v61, %v12352_v19  ;;  %v6471_v9 = vld [vmem:[#allocation2 + $0x108] sm:$0xff]  ;;  %v7638_v12 = vsel %vm1909_vm7, %v7606_v5, %v12353_v21  ;;  %v12362_v41 = vunpack.i.l.bf16 %v16604_v29 }
 0x7ee   : > { %7836 = vmatmul.mubr.f32.vlgmr.msra.gmra.mrb[106].mxu1 %v7637_v28  ;;  %v6127_v32 = vpop.f32.mrb[70].mxu0  ;;  %v12357_v34 = vunpack.i.l.bf16 %v12356_v10  ;;  %v6503_v26 = vld [vmem:[#allocation2 + $0x109] sm:$0xff]  ;;  %v12358_v30 = vunpack.i.h.bf16 %v12356_v10 }
 0x7ef   : > { %12645 = vrot.lane.b32.xlu0 %v12644_v18, %s13437_s16  ;;  %10356 = vmatprep.mubr.msk.f32.mxu1 %vm387_vm0, %v16471_v15  ;;  %v6128_v47 = vadd.f32 %v16389_v14, %v6127_v32  ;;  %v6129_v24 = vpop.f32.mrb[71].mxu0  ;;  %v7447_v15 = vsel %vm387_vm0, %v16423_v1, %v12337_v22 }
 0x7f0   : > { %12650 = vrot.lane.b32.xlu1 %v12629_v2, %s13434_s22  ;;  %v16624_v8 = vpop.permute.xlu1 %12370  ;;  %v7479_v45 = vsel %vm1744_vm2, %v7447_v15, %v12342_v37 }
 0x7f1   : > { %v12366_v0 = vpop.permute.xlu0 %12365  ;;  %v6198_v43 = vmax.f32 %v6128_v47, 0.0  ;;  %v6472_v63 = vld [vmem:[#allocation2 + $0x110] sm:$0xff]  ;;  %v7511_v13 = vsel %vm1777_vm3, %v7479_v45, %v12357_v34  ;;  %v12372_v15 = vunpack.i.l.bf16 %v16624_v8 }
 0x7f2   : > { %v6504_v62 = vld [vmem:[#allocation2 + $0x111] sm:$0xff]  ;;  %7841 = vmatmul.mubr.f32.gmra.mrb[108].mxu1 %v7638_v12  ;;  %v6132_v2 = vpop.f32.mrb[72].mxu0  ;;  %v12659_v16 = vpack.i.bf16 %v6472_v63, %v6471_v9  ;;  %v12367_v27 = vunpack.i.l.bf16 %v12366_v0  ;;  %v12368_v49 = vunpack.i.h.bf16 %v12366_v0  ;;  %v7543_v32 = vsel %vm1810_vm4, %v7511_v13, %v12362_v41 }
 0x7f3   : > { %12655 = vrot.lane.b32.xlu0 %v12644_v18, %s13435_s28  ;;  %v12664_v19 = vpack.i.bf16 %v6504_v62, %v6503_v26  ;;  %6251 = vst.msk [vmem:[#allocation2 + $0x121] sm:$0xff] %vm387_vm0, %v6198_v43  ;;  %10357 = vmatprep.mubr.msk.f32.mxu1 %vm387_vm0, %v16492_v35  ;;  %v6133_v1 = vadd.f32 %v16389_v14, %v6132_v2  ;;  %v6134_v54 = vpop.f32.mrb[73].mxu0  ;;  %v12363_v35 = vunpack.i.h.bf16 %v16604_v29  ;;  %v6441_v5 = vld [vmem:[#allocation2 + $0x10a] sm:$0xff]  ;;  %v6442_v37 = vld [vmem:[#allocation2 + $0x112] sm:$0xff] }
 0x7f4   : > { %12660 = vrot.lane.b32.xlu1 %v12659_v16, %s13440_s26  ;;  %v7448_v18 = vsel %vm387_vm0, %v16425_v38, %v12338_v20  ;;  %v7575_v24 = vsel %vm1843_vm5, %v7543_v32, %v12367_v27  ;;  %v12679_v0 = vpack.i.bf16 %v6442_v37, %v6441_v5 }
 0x7f5   : > { %v16633_v61 = vpop.permute.xlu0 %12375  ;;  %v6199_v51 = vmax.f32 %v6133_v1, 0.0  ;;  %v7480_v10 = vsel %vm1744_vm2, %v7448_v18, %v12343_v36 }
 0x7f6   : > { %v12381_v21 = vpop.permute.xlu1 %12380  ;;  %v7512_v28 = vsel %vm1777_vm3, %v7480_v10, %v12358_v30  ;;  %v12377_v2 = vunpack.i.l.bf16 %v16633_v61  ;;  %v7449_v10 = vsel %vm387_vm0, %v16458_v60, %v12372_v15 }
 0x7f7   : > { %12665 = vrot.lane.b32.xlu0 %v12664_v19, %s13439_s25  ;;  %6252 = vst.msk [vmem:[#allocation2 + $0x129] sm:$0xff] %vm387_vm0, %v6199_v51  ;;  %v12382_v22 = vunpack.i.l.bf16 %v12381_v21  ;;  %v12383_v47 = vunpack.i.h.bf16 %v12381_v21  ;;  %v7544_v20 = vsel %vm1810_vm4, %v7512_v28, %v12363_v35  ;;  %v12378_v35 = vunpack.i.h.bf16 %v16633_v61 }
 0x7f8   : > { %12670 = vrot.lane.b32.xlu1 %v12659_v16, %s13436_s14  ;;  %v7576_v63 = vsel %vm1843_vm5, %v7544_v20, %v12368_v49  ;;  %v7481_v49 = vsel %vm1744_vm2, %v7449_v10, %v12377_v2 }
 0x7f9   : > { %v12386_v38 = vpop.permute.xlu0 %12385  ;;  %v7607_v29 = vsel %vm1876_vm6, %v7575_v24, %v12382_v22  ;;  %v7608_v62 = vsel %vm1876_vm6, %v7576_v63, %v12383_v47 }
 0x7fa   : > { %v12387_v34 = vunpack.i.l.bf16 %v12386_v38  ;;  %v12391_v9 = vpop.permute.xlu1 %12390  ;;  %v12388_v43 = vunpack.i.h.bf16 %v12386_v38  ;;  %v6473_v13 = vld [vmem:[#allocation2 + $0x120] sm:$0xff] }
 0x7fb   : > { %12675 = vrot.lane.b32.xlu0 %v12664_v19, %s13438_s24  ;;  %v12392_v1 = vunpack.i.l.bf16 %v12391_v9  ;;  %v6505_v28 = vld [vmem:[#allocation2 + $0x121] sm:$0xff]  ;;  %v12393_v61 = vunpack.i.h.bf16 %v12391_v9 }
 0x7fc   : > { %v7639_v12 = vsel %vm1909_vm7, %v7607_v29, %v12387_v34  ;;  %12680 = vrot.lane.b32.xlu1 %v12679_v0, %s13437_s16  ;;  %v7640_v54 = vsel %vm1909_vm7, %v7608_v62, %v12388_v43 }
 0x7fd   : > { %v16651_v26 = vpop.permute.xlu0 %12395  ;;  %7846 = vmatmul.mubr.f32.gmra.mrb[110].mxu1 %v7639_v12  ;;  %v6137_v36 = vpop.f32.mrb[74].mxu0  ;;  %v7513_v37 = vsel %vm1777_vm3, %v7481_v49, %v12392_v1 }
 0x7fe   : > { %10358 = vmatprep.mubr.msk.f32.mxu1 %vm387_vm0, %v16494_v33  ;;  %v6138_v16 = vadd.f32 %v16389_v14, %v6137_v36  ;;  %v6139_v45 = vpop.f32.mrb[75].mxu0  ;;  %v16661_v41 = vpop.permute.xlu1 %12400  ;;  %v6474_v30 = vld [vmem:[#allocation2 + $0x128] sm:$0xff]  ;;  %v12397_v22 = vunpack.i.l.bf16 %v16651_v26  ;;  %v12398_v9 = vunpack.i.h.bf16 %v16651_v26 }
 0x7ff   : > { %12685 = vrot.lane.b32.xlu0 %v12664_v19, %s13434_s22  ;;  %v6506_v27 = vld [vmem:[#allocation2 + $0x129] sm:$0xff]  ;;  %v12694_v33 = vpack.i.bf16 %v6474_v30, %v6473_v13  ;;  %v12373_v19 = vunpack.i.h.bf16 %v16624_v8 }
 0x800   : > { %v6200_v18 = vmax.f32 %v6138_v16, 0.0  ;;  %12690 = vrot.lane.b32.xlu1 %v12679_v0, %s13435_s28  ;;  %v12699_v60 = vpack.i.bf16 %v6506_v27, %v6505_v28  ;;  %v16685_v29 = vld [vmem:[#allocation2 + $0x122] sm:$0xff]  ;;  %v16687_v0 = vld [vmem:[#allocation2 + $0x12a] sm:$0xff]  ;;  %v7545_v43 = vsel %vm1810_vm4, %v7513_v37, %v12397_v22 }
 0x801   : > { %v16664_v51 = vpop.permute.xlu0 %12405  ;;  %7851 = vmatmul.mubr.f32.gmra.mrb[112].mxu1 %v7640_v54  ;;  %v6142_v21 = vpop.f32.mrb[76].mxu0  ;;  %v7450_v24 = vsel %vm387_vm0, %v16461_v50, %v12373_v19  ;;  %v12403_v50 = vunpack.i.h.bf16 %v16661_v41  ;;  %v12714_v26 = vpack.i.bf16 %v16687_v0, %v16685_v29 }
 0x802   : > { %10359 = vmatprep.mubr.msk.f32.mxu1 %vm387_vm0, %v16508_v58  ;;  %6253 = vst.msk [vmem:[#allocation2 + $0x139] sm:$0xff] %vm387_vm0, %v6200_v18  ;;  %v6143_v32 = vadd.f32 %v16389_v14, %v6142_v21  ;;  %v6144_v8 = vpop.f32.mrb[77].mxu0  ;;  %v16678_v5 = vpop.permute.xlu1 %12410  ;;  %v12402_v58 = vunpack.i.l.bf16 %v16661_v41  ;;  %v7482_v20 = vsel %vm1744_vm2, %v7450_v24, %v12378_v35  ;;  %v12407_v54 = vunpack.i.l.bf16 %v16664_v51 }
 0x803   : > { %12695 = vrot.lane.b32.xlu0 %v12694_v33, %s13440_s26  ;;  %v7514_v63 = vsel %vm1777_vm3, %v7482_v20, %v12393_v61  ;;  %v12412_v27 = vunpack.i.l.bf16 %v16678_v5  ;;  %v12408_v49 = vunpack.i.h.bf16 %v16664_v51 }
 0x804   : > { %v6201_v47 = vmax.f32 %v6143_v32, 0.0  ;;  %12700 = vrot.lane.b32.xlu1 %v12699_v60, %s13439_s25  ;;  %v7577_v15 = vsel %vm1843_vm5, %v7545_v43, %v12402_v58  ;;  %v7546_v1 = vsel %vm1810_vm4, %v7514_v63, %v12398_v9 }
 0x805   : > { %v12416_v38 = vpop.permute.xlu0 %12415  ;;  %v7578_v19 = vsel %vm1843_vm5, %v7546_v1, %v12403_v50  ;;  %v7452_v50 = vsel %vm387_vm0, %v16483_v40, %v12408_v49 }
 0x806   : > { %v12417_v34 = vunpack.i.l.bf16 %v12416_v38  ;;  %6254 = vst.msk [vmem:[#allocation2 + $0x141] sm:$0xff] %vm387_vm0, %v6201_v47  ;;  %v12421_v12 = vpop.permute.xlu1 %12420  ;;  %v12418_v36 = vunpack.i.h.bf16 %v12416_v38  ;;  %v12413_v47 = vunpack.i.h.bf16 %v16678_v5 }
 0x807   : > { %12705 = vrot.lane.b32.xlu0 %v12694_v33, %s13436_s14  ;;  %v12422_v62 = vunpack.i.l.bf16 %v12421_v12  ;;  %v12423_v45 = vunpack.i.h.bf16 %v12421_v12 }
 0x808   : > { %12710 = vrot.lane.b32.xlu1 %v12699_v60, %s13438_s24  ;;  %v7609_v16 = vsel %vm1876_vm6, %v7577_v15, %v12417_v34  ;;  %v7610_v21 = vsel %vm1876_vm6, %v7578_v19, %v12418_v36 }
 0x809   : > { %v12426_v2 = vpop.permute.xlu0 %12425  ;;  %v7641_v30 = vsel %vm1909_vm7, %v7609_v16, %v12422_v62  ;;  %v6475_v28 = vld [vmem:[#allocation2 + $0x138] sm:$0xff]  ;;  %v7642_v8 = vsel %vm1909_vm7, %v7610_v21, %v12423_v45 }
 0x80a   : > { %v6147_v41 = vpop.f32.mrb[78].mxu0  ;;  %v12431_v13 = vpop.permute.xlu1 %12430  ;;  %7856 = vmatmul.mubr.f32.gmra.mrb[114].mxu1 %v7641_v30  ;;  %v12427_v10 = vunpack.i.l.bf16 %v12426_v2  ;;  %v6507_v37 = vld [vmem:[#allocation2 + $0x139] sm:$0xff]  ;;  %v12428_v20 = vunpack.i.h.bf16 %v12426_v2 }
 0x80b   : > { %12715 = vrot.lane.b32.xlu0 %v12714_v26, %s13437_s16  ;;  %v6148_v18 = vadd.f32 %v16389_v14, %v6147_v41  ;;  %v6149_v33 = vpop.f32.mrb[79].mxu0  ;;  %10360 = vmatprep.mubr.msk.f32.mxu1 %vm387_vm0, %v16510_v6  ;;  %v12432_v32 = vunpack.i.l.bf16 %v12431_v13  ;;  %v7451_v6 = vsel %vm387_vm0, %v16480_v3, %v12407_v54  ;;  %v12433_v5 = vunpack.i.h.bf16 %v12431_v13 }
 0x80c   : > { %12720 = vrot.lane.b32.xlu1 %v12699_v60, %s13434_s22  ;;  %v7483_v34 = vsel %vm1744_vm2, %v7451_v6, %v12412_v27 }
 0x80d   : > { %v12436_v35 = vpop.permute.xlu0 %12435  ;;  %v6202_v22 = vmax.f32 %v6148_v18, 0.0  ;;  %v6476_v61 = vld [vmem:[#allocation2 + $0x140] sm:$0xff]  ;;  %v7515_v3 = vsel %vm1777_vm3, %v7483_v34, %v12427_v10 }
 0x80e   : > { %v6508_v58 = vld [vmem:[#allocation2 + $0x141] sm:$0xff]  ;;  %v6152_v60 = vpop.f32.mrb[80].mxu0  ;;  %v16718_v38 = vpop.permute.xlu1 %12440  ;;  %7861 = vmatmul.mubr.f32.gmra.mrb[116].mxu1 %v7642_v8  ;;  %v12729_v24 = vpack.i.bf16 %v6476_v61, %v6475_v28  ;;  %v12437_v12 = vunpack.i.l.bf16 %v12436_v35  ;;  %v7547_v62 = vsel %vm1810_vm4, %v7515_v3, %v12432_v32  ;;  %v12438_v2 = vunpack.i.h.bf16 %v12436_v35 }
 0x80f   : > { %12725 = vrot.lane.b32.xlu0 %v12714_v26, %s13435_s28  ;;  %v12734_v51 = vpack.i.bf16 %v6508_v58, %v6507_v37  ;;  %6255 = vst.msk [vmem:[#allocation2 + $0x151] sm:$0xff] %vm387_vm0, %v6202_v22  ;;  %v6153_v9 = vadd.f32 %v16389_v14, %v6152_v60  ;;  %v6154_v43 = vpop.f32.mrb[81].mxu0  ;;  %10361 = vmatprep.mubr.msk.f32.mxu1 %vm387_vm0, %v16526_v23  ;;  %v16736_v16 = vld [vmem:[#allocation2 + $0x13a] sm:$0xff]  ;;  %v16738_v45 = vld [vmem:[#allocation2 + $0x142] sm:$0xff]  ;;  %v12442_v33 = vunpack.i.l.bf16 %v16718_v38  ;;  %v12443_v60 = vunpack.i.h.bf16 %v16718_v38 }
 0x810   : > { %12730 = vrot.lane.b32.xlu1 %v12729_v24, %s13440_s26  ;;  %v7484_v14 = vsel %vm1744_vm2, %v7452_v50, %v12413_v47  ;;  %v7579_v54 = vsel %vm1843_vm5, %v7547_v62, %v12437_v12  ;;  %v12749_v18 = vpack.i.bf16 %v16738_v45, %v16736_v16  ;;  %v6524_v28 = vld [vmem:[#allocation2 + $0x82] sm:$0xff]  ;;  %v16761_v61 = vld [vmem:[%s18239_s2 + $0x1] ss:$0 sm:$0xff] }
 0x811   : > { %v16726_v63 = vpop.permute.xlu0 %12445  ;;  %v6203_v15 = vmax.f32 %v6153_v9, 0.0  ;;  %v7516_v23 = vsel %vm1777_vm3, %v7484_v14, %v12428_v20  ;;  %v6269_v32 = vld [vmem:[#allocation2 + $0x60] sm:$0xff] }
 0x812   : > { %v12451_v36 = vpop.permute.xlu1 %12450  ;;  %v7548_v40 = vsel %vm1810_vm4, %v7516_v23, %v12433_v5  ;;  %v12447_v8 = vunpack.i.l.bf16 %v16726_v63  ;;  %v12448_v38 = vunpack.i.h.bf16 %v16726_v63 }
 0x813   : > { %12735 = vrot.lane.b32.xlu0 %v12734_v51, %s13439_s25  ;;  %6256 = vst.msk [vmem:[#allocation2 + $0x159] sm:$0xff] %vm387_vm0, %v6203_v15  ;;  %v12452_v26 = vunpack.i.l.bf16 %v12451_v36  ;;  %v12453_v30 = vunpack.i.h.bf16 %v12451_v36  ;;  %v7580_v35 = vsel %vm1843_vm5, %v7548_v40, %v12438_v2  ;;  %v6270_v15 = vld [vmem:[#allocation2 + $0x68] sm:$0xff] }
 0x814   : > { %12740 = vrot.lane.b32.xlu1 %v12729_v24, %s13436_s14  ;;  %v7453_v24 = vsel %vm387_vm0, %v6269_v32, %v12442_v33  ;;  %v7454_v63 = vsel %vm387_vm0, %v6270_v15, %v12443_v60  ;;  %v6271_v15 = vld [vmem:[#allocation2 + $0x78] sm:$0xff] }
 0x815   : > { %v12456_v1 = vpop.permute.xlu0 %12455  ;;  %v7611_v13 = vsel %vm1876_vm6, %v7579_v54, %v12452_v26  ;;  %v7612_v49 = vsel %vm1876_vm6, %v7580_v35, %v12453_v30  ;;  %v7485_v14 = vsel %vm1744_vm2, %v7453_v24, %v12447_v8 }
 0x816   : > { %v12457_v41 = vunpack.i.l.bf16 %v12456_v1  ;;  %v16745_v27 = vpop.permute.xlu1 %12460  ;;  %v12458_v19 = vunpack.i.h.bf16 %v12456_v1  ;;  %v16773_v9 = vld [vmem:[#allocation2 + $0x150] sm:$0xff] }
 0x817   : > { %12745 = vrot.lane.b32.xlu0 %v12734_v51, %s13438_s24  ;;  %v12462_v34 = vunpack.i.l.bf16 %v16745_v27  ;;  %v6509_v62 = vld [vmem:[#allocation2 + $0x151] sm:$0xff]  ;;  %v12463_v30 = vunpack.i.h.bf16 %v16745_v27 }
 0x818   : > { %v7643_v10 = vsel %vm1909_vm7, %v7611_v13, %v12457_v41  ;;  %12750 = vrot.lane.b32.xlu1 %v12749_v18, %s13437_s16  ;;  %v7644_v20 = vsel %vm1909_vm7, %v7612_v49, %v12458_v19 }
 0x819   : > { %v16752_v21 = vpop.permute.xlu0 %12465  ;;  %7866 = vmatmul.mubr.f32.gmra.mrb[118].mxu1 %v7643_v10  ;;  %v6157_v22 = vpop.f32.mrb[82].mxu0  ;;  %v7517_v1 = vsel %vm1777_vm3, %v7485_v14, %v12462_v34  ;;  %v7486_v10 = vsel %vm1744_vm2, %v7454_v63, %v12448_v38 }
 0x81a   : > { %10362 = vmatprep.mubr.msk.f32.mxu1 %vm387_vm0, %v6524_v28  ;;  %v6158_v37 = vadd.f32 %v16761_v61, %v6157_v22  ;;  %v6159_v58 = vpop.f32.mrb[83].mxu0  ;;  %v16765_v6 = vpop.permute.xlu1 %12470  ;;  %v16767_v47 = vld [vmem:[#allocation2 + $0x158] sm:$0xff]  ;;  %v12467_v36 = vunpack.i.l.bf16 %v16752_v21  ;;  %v12468_v35 = vunpack.i.h.bf16 %v16752_v21  ;;  %v7518_v49 = vsel %vm1777_vm3, %v7486_v10, %v12463_v30 }
 0x81b   : > { %12755 = vrot.lane.b32.xlu0 %v12734_v51, %s13434_s22  ;;  %v6510_v43 = vld [vmem:[#allocation2 + $0x159] sm:$0xff]  ;;  %v12764_v12 = vpack.i.bf16 %v16767_v47, %v16773_v9  ;;  %v12472_v54 = vunpack.i.l.bf16 %v16765_v6  ;;  %v12473_v22 = vunpack.i.h.bf16 %v16765_v6 }
 0x81c   : > { %v6204_v3 = vmax.f32 %v6158_v37, 0.0  ;;  %12760 = vrot.lane.b32.xlu1 %v12749_v18, %s13435_s28  ;;  %v6525_v51 = vld [vmem:[#allocation2 + $0x92] sm:$0xff]  ;;  %v12769_v40 = vpack.i.bf16 %v6510_v43, %v6509_v62  ;;  %v16796_v19 = vld [vmem:[#allocation2 + $0x15a] sm:$0xff]  ;;  %v7549_v28 = vsel %vm1810_vm4, %v7517_v1, %v12467_v36 }
 0x81d   : > { %v16775_v5 = vpop.permute.xlu0 %12475  ;;  %7871 = vmatmul.mubr.f32.gmra.mrb[120].mxu1 %v7644_v20  ;;  %v6162_v50 = vpop.f32.mrb[84].mxu0  ;;  %v16794_v33 = vld [vmem:[#allocation2 + $0x152] sm:$0xff]  ;;  %v7581_v8 = vsel %vm1843_vm5, %v7549_v28, %v12472_v54  ;;  %v7550_v20 = vsel %vm1810_vm4, %v7518_v49, %v12468_v35 }
 0x81e   : > { %10363 = vmatprep.mubr.msk.f32.mxu1 %vm387_vm0, %v6525_v51  ;;  %6257 = vst.msk [vmem:[#allocation2 + $0x169] sm:$0xff] %vm387_vm0, %v6204_v3  ;;  %v6163_v23 = vadd.f32 %v16761_v61, %v6162_v50  ;;  %v6164_v2 = vpop.f32.mrb[85].mxu0  ;;  %v16787_v26 = vpop.permute.xlu1 %12480  ;;  %v12784_v21 = vpack.i.bf16 %v16796_v19, %v16794_v33  ;;  %v12477_v43 = vunpack.i.l.bf16 %v16775_v5  ;;  %v6526_v51 = vld [vmem:[#allocation2 + $0x9a] sm:$0xff]  ;;  %v7582_v62 = vsel %vm1843_vm5, %v7550_v20, %v12473_v22 }
 0x81f   : > { %12765 = vrot.lane.b32.xlu0 %v12764_v12, %s13440_s26  ;;  %v12478_v63 = vunpack.i.h.bf16 %v16775_v5  ;;  %v12483_v35 = vunpack.i.h.bf16 %v16787_v26 }
 0x820   : > { %v6205_v41 = vmax.f32 %v6163_v23, 0.0  ;;  %12770 = vrot.lane.b32.xlu1 %v12769_v40, %s13439_s25  ;;  %v7455_v10 = vsel %vm387_vm0, %v6271_v15, %v12477_v43 }
 0x821   : > { %v12486_v13 = vpop.permute.xlu0 %12485 }
 0x822   : > { %v12487_v18 = vunpack.i.l.bf16 %v12486_v13  ;;  %6258 = vst.msk [vmem:[#allocation2 + $0x171] sm:$0xff] %vm387_vm0, %v6205_v41  ;;  %v12491_v27 = vpop.permute.xlu1 %12490  ;;  %v12488_v37 = vunpack.i.h.bf16 %v12486_v13 }
 0x823   : > { %12775 = vrot.lane.b32.xlu0 %v12764_v12, %s13436_s14  ;;  %v12492_v32 = vunpack.i.l.bf16 %v12491_v27  ;;  %v12493_v24 = vunpack.i.h.bf16 %v12491_v27  ;;  %v12482_v12 = vunpack.i.l.bf16 %v16787_v26  ;;  %v6527_v27 = vld [vmem:[#allocation2 + $0xaa] sm:$0xff]  ;;  %v6272_v26 = vld [vmem:[#allocation2 + $0x80] sm:$0xff] }
 0x824   : > { %12780 = vrot.lane.b32.xlu1 %v12769_v40, %s13438_s24  ;;  %v7613_v60 = vsel %vm1876_vm6, %v7581_v8, %v12487_v18  ;;  %v7614_v23 = vsel %vm1876_vm6, %v7582_v62, %v12488_v37  ;;  %v7456_v20 = vsel %vm387_vm0, %v6272_v26, %v12478_v63 }
 0x825   : > { %v12496_v58 = vpop.permute.xlu0 %12495  ;;  %v7645_v34 = vsel %vm1909_vm7, %v7613_v60, %v12492_v32  ;;  %v16820_v2 = vld [vmem:[#allocation2 + $0x168] sm:$0xff]  ;;  %v7646_v54 = vsel %vm1909_vm7, %v7614_v23, %v12493_v24  ;;  %v7487_v22 = vsel %vm1744_vm2, %v7455_v10, %v12482_v12 }
 0x826   : > { %v6167_v6 = vpop.f32.mrb[86].mxu0  ;;  %v12501_v3 = vpop.permute.xlu1 %12500  ;;  %7876 = vmatmul.mubr.f32.gmra.mrb[122].mxu1 %v7645_v34  ;;  %v12497_v14 = vunpack.i.l.bf16 %v12496_v58  ;;  %v6511_v13 = vld [vmem:[#allocation2 + $0x169] sm:$0xff]  ;;  %v12498_v32 = vunpack.i.h.bf16 %v12496_v58 }
 0x827   : > { %12785 = vrot.lane.b32.xlu0 %v12784_v21, %s13437_s16  ;;  %v6168_v38 = vadd.f32 %v16761_v61, %v6167_v6  ;;  %v6169_v50 = vpop.f32.mrb[87].mxu0  ;;  %10364 = vmatprep.mubr.msk.f32.mxu1 %vm387_vm0, %v6526_v51  ;;  %v12502_v1 = vunpack.i.l.bf16 %v12501_v3  ;;  %v12503_v60 = vunpack.i.h.bf16 %v12501_v3  ;;  %v7488_v6 = vsel %vm1744_vm2, %v7456_v20, %v12483_v35 }
 0x828   : > { %12790 = vrot.lane.b32.xlu1 %v12769_v40, %s13434_s22  ;;  %v7520_v51 = vsel %vm1777_vm3, %v7488_v6, %v12498_v32 }
 0x829   : > { %v12506_v36 = vpop.permute.xlu0 %12505  ;;  %v6206_v30 = vmax.f32 %v6168_v38, 0.0  ;;  %v16824_v41 = vld [vmem:[#allocation2 + $0x170] sm:$0xff]  ;;  %v7552_v62 = vsel %vm1810_vm4, %v7520_v51, %v12503_v60 }
 0x82a   : > { %v6512_v18 = vld [vmem:[#allocation2 + $0x171] sm:$0xff]  ;;  %v6172_v40 = vpop.f32.mrb[88].mxu0  ;;  %v16829_v28 = vpop.permute.xlu1 %12510  ;;  %7881 = vmatmul.mubr.f32.gmra.mrb[124].mxu1 %v7646_v54  ;;  %v12799_v5 = vpack.i.bf16 %v16824_v41, %v16820_v2  ;;  %v12507_v24 = vunpack.i.l.bf16 %v12506_v36  ;;  %v12508_v12 = vunpack.i.h.bf16 %v12506_v36 }
 0x82b   : > { %12795 = vrot.lane.b32.xlu0 %v12784_v21, %s13435_s28  ;;  %v12804_v49 = vpack.i.bf16 %v6512_v18, %v6511_v13  ;;  %6259 = vst.msk [vmem:[#allocation2 + $0x181] sm:$0xff] %vm387_vm0, %v6206_v30  ;;  %v6173_v8 = vadd.f32 %v16761_v61, %v6172_v40  ;;  %v6174_v37 = vpop.f32.mrb[89].mxu0  ;;  %10365 = vmatprep.mubr.msk.f32.mxu1 %vm387_vm0, %v6527_v27  ;;  %v16847_v38 = vld [vmem:[#allocation2 + $0x16a] sm:$0xff]  ;;  %v16849_v50 = vld [vmem:[#allocation2 + $0x172] sm:$0xff]  ;;  %v12512_v54 = vunpack.i.l.bf16 %v16829_v28 }
 0x82c   : > { %v7519_v21 = vsel %vm1777_vm3, %v7487_v22, %v12497_v14  ;;  %12800 = vrot.lane.b32.xlu1 %v12799_v5, %s13440_s26  ;;  %v7584_v10 = vsel %vm1843_vm5, %v7552_v62, %v12508_v12  ;;  %v6528_v40 = vld [vmem:[#allocation2 + $0xb2] sm:$0xff]  ;;  %v12513_v37 = vunpack.i.h.bf16 %v16829_v28 }
 0x82d   : > { %v16838_v34 = vpop.permute.xlu0 %12515  ;;  %v7551_v58 = vsel %vm1810_vm4, %v7519_v21, %v12502_v1  ;;  %v6207_v43 = vmax.f32 %v6173_v8, 0.0  ;;  %v12819_v1 = vpack.i.bf16 %v16849_v50, %v16847_v38 }
 0x82e   : > { %v12521_v61 = vpop.permute.xlu1 %12520  ;;  %v7583_v23 = vsel %vm1843_vm5, %v7551_v58, %v12507_v24  ;;  %v12517_v22 = vunpack.i.l.bf16 %v16838_v34  ;;  %v12518_v28 = vunpack.i.h.bf16 %v16838_v34 }
 0x82f   : > { %12805 = vrot.lane.b32.xlu0 %v12804_v49, %s13439_s25  ;;  %6260 = vst.msk [vmem:[#allocation2 + $0x189] sm:$0xff] %vm387_vm0, %v6207_v43  ;;  %v12522_v3 = vunpack.i.l.bf16 %v12521_v61  ;;  %v12523_v15 = vunpack.i.h.bf16 %v12521_v61  ;;  %v6529_v43 = vld [vmem:[#allocation2 + $0xc2] sm:$0xff]  ;;  %v6274_v61 = vld [vmem:[#allocation2 + $0x98] sm:$0xff] }
 0x830   : > { %12810 = vrot.lane.b32.xlu1 %v12799_v5, %s13436_s14  ;;  %v6273_v5 = vld [vmem:[#allocation2 + $0x90] sm:$0xff] }
 0x831   : > { %v12526_v14 = vpop.permute.xlu0 %12525  ;;  %v7615_v30 = vsel %vm1876_vm6, %v7583_v23, %v12522_v3  ;;  %v7616_v27 = vsel %vm1876_vm6, %v7584_v10, %v12523_v15  ;;  %v7457_v26 = vsel %vm387_vm0, %v6273_v5, %v12512_v54  ;;  %v7458_v15 = vsel %vm387_vm0, %v6274_v61, %v12513_v37 }
 0x832   : > { %v12527_v63 = vunpack.i.l.bf16 %v12526_v14  ;;  %v12531_v36 = vpop.permute.xlu1 %12530  ;;  %v12528_v13 = vunpack.i.h.bf16 %v12526_v14  ;;  %v6481_v24 = vld [vmem:[#allocation2 + $0x180] sm:$0xff]  ;;  %v7489_v51 = vsel %vm1744_vm2, %v7457_v26, %v12517_v22  ;;  %v7490_v34 = vsel %vm1744_vm2, %v7458_v15, %v12518_v28 }
 0x833   : > { %12815 = vrot.lane.b32.xlu0 %v12804_v49, %s13438_s24  ;;  %v12532_v21 = vunpack.i.l.bf16 %v12531_v36  ;;  %v12533_v14 = vunpack.i.h.bf16 %v12531_v36 }
 0x834   : > { %v7647_v18 = vsel %vm1909_vm7, %v7615_v30, %v12527_v63  ;;  %12820 = vrot.lane.b32.xlu1 %v12819_v1, %s13437_s16  ;;  %v7648_v60 = vsel %vm1909_vm7, %v7616_v27, %v12528_v13 }
 0x835   : > { %v12536_v35 = vpop.permute.xlu0 %12535  ;;  %7886 = vmatmul.mubr.f32.gmra.mrb[126].mxu1 %v7647_v18  ;;  %v7521_v23 = vsel %vm1777_vm3, %v7489_v51, %v12532_v21  ;;  %v7522_v10 = vsel %vm1777_vm3, %v7490_v34, %v12533_v14  ;;  %v6531_v34 = vld [vmem:[#allocation2 + $0xda] sm:$0xff] }
 0x836   : > { %10366 = vmatprep.mubr.msk.f32.mxu1 %vm387_vm0, %v6528_v40  ;;  %v12541_v32 = vpop.permute.xlu1 %12540  ;;  %v6482_v8 = vld [vmem:[#allocation2 + $0x188] sm:$0xff]  ;;  %v12537_v12 = vunpack.i.l.bf16 %v12536_v35  ;;  %v12538_v54 = vunpack.i.h.bf16 %v12536_v35 }
 0x837   : > { %12825 = vrot.lane.b32.xlu0 %v12804_v49, %s13434_s22  ;;  %v6514_v20 = vld [vmem:[#allocation2 + $0x189] sm:$0xff]  ;;  %v12834_v6 = vpack.i.bf16 %v6482_v8, %v6481_v24  ;;  %v6513_v49 = vld [vmem:[#allocation2 + $0x181] sm:$0xff]  ;;  %v12542_v63 = vunpack.i.l.bf16 %v12541_v32  ;;  %v12543_v40 = vunpack.i.h.bf16 %v12541_v32 }
 0x838   : > { %12830 = vrot.lane.b32.xlu1 %v12819_v1, %s13435_s28  ;;  %v12839_v62 = vpack.i.bf16 %v6514_v20, %v6513_v49  ;;  %v7553_v13 = vsel %vm1810_vm4, %v7521_v23, %v12537_v12  ;;  %v16888_v26 = vld [vmem:[#allocation2 + $0x182] sm:$0xff]  ;;  %v7554_v21 = vsel %vm1810_vm4, %v7522_v10, %v12538_v54  ;;  %v6530_v24 = vld [vmem:[#allocation2 + $0xca] sm:$0xff] }
 0x839   : > { %v16869_v58 = vpop.permute.xlu0 %12545  ;;  %7891 = vmatmul.mubr.f32.gmra.mrb[128].mxu1 %v7648_v60  ;;  %v7585_v36 = vsel %vm1843_vm5, %v7553_v13, %v12542_v63  ;;  %v7586_v49 = vsel %vm1843_vm5, %v7554_v21, %v12543_v40  ;;  %v6275_v12 = vld [vmem:[#allocation2 + $0xa8] sm:$0xff] }
 0x83a   : > { %10367 = vmatprep.mubr.msk.f32.mxu1 %vm387_vm0, %v6529_v43  ;;  %v16876_v3 = vpop.permute.xlu1 %12550  ;;  %v12547_v60 = vunpack.i.l.bf16 %v16869_v58  ;;  %v16897_v43 = vld [vmem:[#allocation2 + $0x18a] sm:$0xff]  ;;  %v6516_v23 = vld [vmem:[#allocation2 + $0x1a1] sm:$0xff] }
 0x83b   : > { %12835 = vrot.lane.b32.xlu0 %v12834_v6, %s13440_s26  ;;  %v12552_v20 = vunpack.i.l.bf16 %v16876_v3 }
 0x83c   : > { %12840 = vrot.lane.b32.xlu1 %v12839_v62, %s13439_s25  ;;  %v7459_v63 = vsel %vm387_vm0, %v6275_v12, %v12547_v60 }
 0x83d   : > { %v12556_v30 = vpop.permute.xlu0 %12555  ;;  %v7491_v54 = vsel %vm1744_vm2, %v7459_v63, %v12552_v20  ;;  %v6277_v63 = vld [vmem:[#allocation2 + $0xc0] sm:$0xff] }
 0x83e   : > { %v12557_v1 = vunpack.i.l.bf16 %v12556_v30  ;;  %v12561_v18 = vpop.permute.xlu1 %12560  ;;  %v12558_v5 = vunpack.i.h.bf16 %v12556_v30  ;;  %v12553_v30 = vunpack.i.h.bf16 %v16876_v3 }
 0x83f   : > { %12845 = vrot.lane.b32.xlu0 %v12834_v6, %s13436_s14  ;;  %v12562_v27 = vunpack.i.l.bf16 %v12561_v18  ;;  %v12563_v37 = vunpack.i.h.bf16 %v12561_v18  ;;  %v6515_v6 = vld [vmem:[#allocation2 + $0x199] sm:$0xff] }
 0x840   : > { %12850 = vrot.lane.b32.xlu1 %v12839_v62, %s13438_s24  ;;  %v7617_v8 = vsel %vm1876_vm6, %v7585_v36, %v12557_v1  ;;  %v7618_v51 = vsel %vm1876_vm6, %v7586_v49, %v12558_v5  ;;  %v12548_v62 = vunpack.i.h.bf16 %v16869_v58  ;;  %v6484_v18 = vld [vmem:[#allocation2 + $0x1a0] sm:$0xff]  ;;  %v6276_v58 = vld [vmem:[#allocation2 + $0xb0] sm:$0xff] }
 0x841   : > { %v12566_v22 = vpop.permute.xlu0 %12565  ;;  %v7649_v35 = vsel %vm1909_vm7, %v7617_v8, %v12562_v27  ;;  %v7650_v14 = vsel %vm1909_vm7, %v7618_v51, %v12563_v37 }
 0x842   : > { %v12571_v32 = vpop.permute.xlu1 %12570  ;;  %7896 = vmatmul.mubr.f32.gmra.mrb[130].mxu1 %v7649_v35  ;;  %v12567_v61 = vunpack.i.l.bf16 %v12566_v22  ;;  %v12568_v13 = vunpack.i.h.bf16 %v12566_v22  ;;  %v7460_v3 = vsel %vm387_vm0, %v6276_v58, %v12548_v62 }
 0x843   : > { %7153 = vrot.lane.b32.xlu0 %v16888_v26, %s13437_s16  ;;  %10368 = vmatprep.mubr.msk.f32.mxu1 %vm387_vm0, %v6530_v24  ;;  %v12572_v15 = vunpack.i.l.bf16 %v12571_v32  ;;  %v12573_v40 = vunpack.i.h.bf16 %v12571_v32  ;;  %v7492_v8 = vsel %vm1744_vm2, %v7460_v3, %v12553_v30 }
 0x844   : > { %7155 = vrot.lane.b32.xlu1 %v16897_v43, %s13437_s16  ;;  %v7523_v10 = vsel %vm1777_vm3, %v7491_v54, %v12567_v61  ;;  %v7524_v37 = vsel %vm1777_vm3, %v7492_v8, %v12568_v13 }
 0x845   : > { %v12576_v28 = vpop.permute.xlu0 %12575  ;;  %v7555_v5 = vsel %vm1810_vm4, %v7523_v10, %v12572_v15  ;;  %v7556_v60 = vsel %vm1810_vm4, %v7524_v37, %v12573_v40  ;;  %v6533_v40 = vld [vmem:[#allocation2 + $0xf2] sm:$0xff] }
 0x846   : > { %v12581_v1 = vpop.permute.xlu1 %12580  ;;  %7901 = vmatmul.mubr.f32.gmra.mrb[132].mxu1 %v7650_v14  ;;  %v12577_v27 = vunpack.i.l.bf16 %v12576_v28  ;;  %v12578_v35 = vunpack.i.h.bf16 %v12576_v28  ;;  %v6532_v28 = vld [vmem:[#allocation2 + $0xe2] sm:$0xff] }
 0x847   : > { %7409 = vrot.lane.b32.xlu0 %v6515_v6, %s13439_s25  ;;  %10369 = vmatprep.mubr.msk.f32.mxu1 %vm387_vm0, %v6531_v34  ;;  %v12582_v51 = vunpack.i.l.bf16 %v12581_v1  ;;  %v12583_v54 = vunpack.i.h.bf16 %v12581_v1 }
 0x848   : > { %7411 = vrot.lane.b32.xlu1 %v6516_v23, %s13439_s25  ;;  %v7587_v20 = vsel %vm1843_vm5, %v7555_v5, %v12577_v27  ;;  %v7588_v15 = vsel %vm1843_vm5, %v7556_v60, %v12578_v35  ;;  %v6278_v27 = vld [vmem:[#allocation2 + $0xc8] sm:$0xff] }
 0x849   : > { %v12586_v36 = vpop.permute.xlu0 %12585  ;;  %v7461_v13 = vsel %vm387_vm0, %v6277_v63, %v12582_v51  ;;  %v7462_v37 = vsel %vm387_vm0, %v6278_v27, %v12583_v54 }
 0x84a   : > { %v12591_v22 = vpop.permute.xlu1 %12590  ;;  %v12587_v30 = vunpack.i.l.bf16 %v12586_v36  ;;  %v12588_v3 = vunpack.i.h.bf16 %v12586_v36 }
 0x84b   : > { %7283 = vrot.lane.b32.xlu0 %v6484_v18, %s13440_s26  ;;  %v12592_v21 = vunpack.i.l.bf16 %v12591_v22  ;;  %v12593_v32 = vunpack.i.h.bf16 %v12591_v22 }
 0x84c   : > { %v7493_v5 = vsel %vm1744_vm2, %v7461_v13, %v12587_v30  ;;  %v6534_v13 = vld [vmem:[#allocation2 + $0xfa] sm:$0xff] }
 0x84d   : > { %v12596_v24 = vpop.permute.xlu0 %12595  ;;  %v7619_v49 = vsel %vm1876_vm6, %v7587_v20, %v12592_v21  ;;  %v7620_v23 = vsel %vm1876_vm6, %v7588_v15, %v12593_v32 }
 0x84e   : > { %v12597_v6 = vunpack.i.l.bf16 %v12596_v24  ;;  %v12601_v61 = vpop.permute.xlu1 %12600  ;;  %v12598_v12 = vunpack.i.h.bf16 %v12596_v24  ;;  %v7494_v24 = vsel %vm1744_vm2, %v7462_v37, %v12588_v3  ;;  %v6279_v3 = vld [vmem:[#allocation2 + $0xd8] sm:$0xff] }
 0x84f   : > { %v12602_v18 = vunpack.i.l.bf16 %v12601_v61  ;;  %v12603_v35 = vunpack.i.h.bf16 %v12601_v61 }
 0x850   : > { %v7651_v62 = vsel %vm1909_vm7, %v7619_v49, %v12597_v6  ;;  %v7652_v58 = vsel %vm1909_vm7, %v7620_v23, %v12598_v12 }
 0x851   : > { %v12606_v14 = vpop.permute.xlu0 %12605  ;;  %7906 = vmatmul.mubr.f32.gmra.mrb[134].mxu1 %v7651_v62  ;;  %v7525_v1 = vsel %vm1777_vm3, %v7493_v5, %v12602_v18  ;;  %v7526_v36 = vsel %vm1777_vm3, %v7494_v24, %v12603_v35 }
 0x852   : > { %10370 = vmatprep.mubr.msk.f32.mxu1 %vm387_vm0, %v6532_v28  ;;  %v12611_v34 = vpop.permute.xlu1 %12610  ;;  %v12607_v8 = vunpack.i.l.bf16 %v12606_v14  ;;  %v12608_v20 = vunpack.i.h.bf16 %v12606_v14 }
 0x853   : > { %v12612_v21 = vunpack.i.l.bf16 %v12611_v34  ;;  %v12613_v51 = vunpack.i.h.bf16 %v12611_v34 }
 0x854   : > { %v7557_v6 = vsel %vm1810_vm4, %v7525_v1, %v12607_v8  ;;  %v7558_v30 = vsel %vm1810_vm4, %v7526_v36, %v12608_v20  ;;  %v6280_v20 = vld [vmem:[#allocation2 + $0xe0] sm:$0xff] }
 0x855   : > { %v12616_v10 = vpop.permute.xlu0 %12615  ;;  %7911 = vmatmul.mubr.f32.gmra.mrb[136].mxu1 %v7652_v58  ;;  %v7589_v62 = vsel %vm1843_vm5, %v7557_v6, %v12612_v21  ;;  %v7590_v34 = vsel %vm1843_vm5, %v7558_v30, %v12613_v51 }
 0x856   : > { %10371 = vmatprep.mubr.msk.f32.mxu1 %vm387_vm0, %v6533_v40  ;;  %v12621_v22 = vpop.permute.xlu1 %12620  ;;  %v12617_v54 = vunpack.i.l.bf16 %v12616_v10  ;;  %v12618_v5 = vunpack.i.h.bf16 %v12616_v10 }
 0x857   : > { %v12622_v18 = vunpack.i.l.bf16 %v12621_v22  ;;  %v12623_v1 = vunpack.i.h.bf16 %v12621_v22 }
 0x858   : > { %v7463_v35 = vsel %vm387_vm0, %v6279_v3, %v12617_v54  ;;  %v7464_v51 = vsel %vm387_vm0, %v6280_v20, %v12618_v5 }
 0x859   : > { %v12626_v60 = vpop.permute.xlu0 %12625  ;;  %v7496_v22 = vsel %vm1744_vm2, %v7464_v51, %v12623_v1 }
 0x85a   : > { %v12627_v32 = vunpack.i.l.bf16 %v12626_v60  ;;  %v12631_v49 = vpop.permute.xlu1 %12630  ;;  %v12628_v15 = vunpack.i.h.bf16 %v12626_v60  ;;  %v6535_v60 = vld [vmem:[#allocation2 + $0x10a] sm:$0xff] }
 0x85b   : > { %v12632_v12 = vunpack.i.l.bf16 %v12631_v49  ;;  %v12633_v23 = vunpack.i.h.bf16 %v12631_v49 }
 0x85c   : > { %v7621_v61 = vsel %vm1876_vm6, %v7589_v62, %v12627_v32  ;;  %v7622_v27 = vsel %vm1876_vm6, %v7590_v34, %v12628_v15  ;;  %v7495_v32 = vsel %vm1744_vm2, %v7463_v35, %v12622_v18 }
 0x85d   : > { %v12636_v28 = vpop.permute.xlu0 %12635  ;;  %v7653_v63 = vsel %vm1909_vm7, %v7621_v61, %v12632_v12  ;;  %v7654_v37 = vsel %vm1909_vm7, %v7622_v27, %v12633_v23 }
 0x85e   : > { %v12641_v14 = vpop.permute.xlu1 %12640  ;;  %7916 = vmatmul.mubr.f32.gmra.mrb[138].mxu1 %v7653_v63  ;;  %v12637_v58 = vunpack.i.l.bf16 %v12636_v28  ;;  %v12638_v24 = vunpack.i.h.bf16 %v12636_v28 }
 0x85f   : > { %10372 = vmatprep.mubr.msk.f32.mxu1 %vm387_vm0, %v6534_v13  ;;  %v12642_v8 = vunpack.i.l.bf16 %v12641_v14  ;;  %v12643_v49 = vunpack.i.h.bf16 %v12641_v14 }
 0x860   : > { %v7527_v6 = vsel %vm1777_vm3, %v7495_v32, %v12637_v58  ;;  %v7528_v15 = vsel %vm1777_vm3, %v7496_v22, %v12638_v24 }
 0x861   : > { %v12646_v40 = vpop.permute.xlu0 %12645  ;;  %v7559_v12 = vsel %vm1810_vm4, %v7527_v6, %v12642_v8  ;;  %v7560_v28 = vsel %vm1810_vm4, %v7528_v15, %v12643_v49  ;;  %v6282_v49 = vld [vmem:[#allocation2 + $0xf8] sm:$0xff] }
 0x862   : > { %v12651_v21 = vpop.permute.xlu1 %12650  ;;  %7921 = vmatmul.mubr.f32.gmra.mrb[140].mxu1 %v7654_v37  ;;  %v12647_v36 = vunpack.i.l.bf16 %v12646_v40  ;;  %v12648_v61 = vunpack.i.h.bf16 %v12646_v40  ;;  %v6536_v40 = vld [vmem:[#allocation2 + $0x112] sm:$0xff] }
 0x863   : > { %10373 = vmatprep.mubr.msk.f32.mxu1 %vm387_vm0, %v6535_v60  ;;  %v12652_v34 = vunpack.i.l.bf16 %v12651_v21  ;;  %v6281_v37 = vld [vmem:[#allocation2 + $0xf0] sm:$0xff]  ;;  %v12653_v60 = vunpack.i.h.bf16 %v12651_v21 }
 0x864   : > { %v7591_v54 = vsel %vm1843_vm5, %v7559_v12, %v12647_v36  ;;  %v7592_v3 = vsel %vm1843_vm5, %v7560_v28, %v12648_v61 }
 0x865   : > { %v12656_v10 = vpop.permute.xlu0 %12655  ;;  %v7465_v32 = vsel %vm387_vm0, %v6281_v37, %v12652_v34 }
 0x866   : > { %v12661_v62 = vpop.permute.xlu1 %12660  ;;  %v12657_v35 = vunpack.i.l.bf16 %v12656_v10  ;;  %v12658_v36 = vunpack.i.h.bf16 %v12656_v10 }
 0x867   : > { %v12662_v23 = vunpack.i.l.bf16 %v12661_v62  ;;  %v12663_v63 = vunpack.i.h.bf16 %v12661_v62  ;;  %v7466_v62 = vsel %vm387_vm0, %v6282_v49, %v12653_v60 }
 0x868   : > { %v7497_v51 = vsel %vm1744_vm2, %v7465_v32, %v12657_v35 }
 0x869   : > { %v12666_v30 = vpop.permute.xlu0 %12665  ;;  %v7623_v13 = vsel %vm1876_vm6, %v7591_v54, %v12662_v23  ;;  %v7624_v8 = vsel %vm1876_vm6, %v7592_v3, %v12663_v63  ;;  %v7498_v63 = vsel %vm1744_vm2, %v7466_v62, %v12658_v36 }
 0x86a   : > { %v12667_v14 = vunpack.i.l.bf16 %v12666_v30  ;;  %v12671_v18 = vpop.permute.xlu1 %12670  ;;  %v12668_v58 = vunpack.i.h.bf16 %v12666_v30 }
 0x86b   : > { %v12672_v24 = vunpack.i.l.bf16 %v12671_v18  ;;  %v12673_v15 = vunpack.i.h.bf16 %v12671_v18 }
 0x86c   : > { %v7655_v27 = vsel %vm1909_vm7, %v7623_v13, %v12667_v14  ;;  %v7656_v20 = vsel %vm1909_vm7, %v7624_v8, %v12668_v58 }
 0x86d   : > { %v12676_v5 = vpop.permute.xlu0 %12675  ;;  %7926 = vmatmul.mubr.f32.gmra.mrb[142].mxu1 %v7655_v27  ;;  %v7529_v21 = vsel %vm1777_vm3, %v7497_v51, %v12672_v24  ;;  %v7530_v10 = vsel %vm1777_vm3, %v7498_v63, %v12673_v15 }
 0x86e   : > { %10374 = vmatprep.mubr.msk.f32.mxu1 %vm387_vm0, %v6536_v40  ;;  %v12681_v1 = vpop.permute.xlu1 %12680  ;;  %v12677_v12 = vunpack.i.l.bf16 %v12676_v5  ;;  %v12678_v30 = vunpack.i.h.bf16 %v12676_v5 }
 0x86f   : > { %v12682_v61 = vunpack.i.l.bf16 %v12681_v1  ;;  %v12683_v14 = vunpack.i.h.bf16 %v12681_v1 }
 0x870   : > { %v7561_v54 = vsel %vm1810_vm4, %v7529_v21, %v12677_v12  ;;  %v7562_v8 = vsel %vm1810_vm4, %v7530_v10, %v12678_v30 }
 0x871   : > { %v12686_v6 = vpop.permute.xlu0 %12685  ;;  %7931 = vmatmul.mubr.f32.gmra.mrb[144].mxu1 %v7656_v20  ;;  %v7593_v34 = vsel %vm1843_vm5, %v7561_v54, %v12682_v61  ;;  %v7594_v1 = vsel %vm1843_vm5, %v7562_v8, %v12683_v14  ;;  %v6283_v20 = vld [vmem:[#allocation2 + $0x108] sm:$0xff] }
 0x872   : > { %10375 = vmatprep.mubr.msk.f32.mxu1 %vm387_vm0, %v16685_v29  ;;  %v12691_v22 = vpop.permute.xlu1 %12690  ;;  %v12687_v37 = vunpack.i.l.bf16 %v12686_v6  ;;  %v12688_v49 = vunpack.i.h.bf16 %v12686_v6 }
 0x873   : > { %v12692_v35 = vunpack.i.l.bf16 %v12691_v22  ;;  %v12693_v62 = vunpack.i.h.bf16 %v12691_v22 }
 0x874   : > { %v7467_v12 = vsel %vm387_vm0, %v6283_v20, %v12687_v37 }
 0x875   : > { %v12696_v23 = vpop.permute.xlu0 %12695  ;;  %v7499_v21 = vsel %vm1744_vm2, %v7467_v12, %v12692_v35 }
 0x876   : > { %v12697_v28 = vunpack.i.l.bf16 %v12696_v23  ;;  %v12701_v29 = vpop.permute.xlu1 %12700  ;;  %v12698_v58 = vunpack.i.h.bf16 %v12696_v23 }
 0x877   : > { %v12702_v13 = vunpack.i.l.bf16 %v12701_v29  ;;  %v12703_v3 = vunpack.i.h.bf16 %v12701_v29 }
 0x878   : > { %v7625_v18 = vsel %vm1876_vm6, %v7593_v34, %v12697_v28  ;;  %v7626_v24 = vsel %vm1876_vm6, %v7594_v1, %v12698_v58 }
 0x879   : > { %v12706_v27 = vpop.permute.xlu0 %12705  ;;  %v7657_v40 = vsel %vm1909_vm7, %v7625_v18, %v12702_v13  ;;  %v7658_v51 = vsel %vm1909_vm7, %v7626_v24, %v12703_v3 }
 0x87a   : > { %v12711_v5 = vpop.permute.xlu1 %12710  ;;  %7936 = vmatmul.mubr.f32.gmra.mrb[146].mxu1 %v7657_v40  ;;  %v12707_v60 = vunpack.i.l.bf16 %v12706_v27  ;;  %v12708_v61 = vunpack.i.h.bf16 %v12706_v27 }
 0x87b   : > { %10376 = vmatprep.mubr.msk.f32.mxu1 %vm387_vm0, %v16687_v0  ;;  %v12712_v36 = vunpack.i.l.bf16 %v12711_v5  ;;  %v6284_v0 = vld [vmem:[#allocation2 + $0x110] sm:$0xff]  ;;  %v12713_v28 = vunpack.i.h.bf16 %v12711_v5 }
 0x87c   : > { %v7531_v23 = vsel %vm1777_vm3, %v7499_v21, %v12707_v60  ;;  %v7468_v30 = vsel %vm387_vm0, %v6284_v0, %v12688_v49  ;;  %v6286_v21 = vld [vmem:[#allocation2 + $0x128] sm:$0xff] }
 0x87d   : > { %v12716_v32 = vpop.permute.xlu0 %12715  ;;  %v7563_v54 = vsel %vm1810_vm4, %v7531_v23, %v12712_v36  ;;  %v7500_v22 = vsel %vm1744_vm2, %v7468_v30, %v12693_v62 }
 0x87e   : > { %v12721_v15 = vpop.permute.xlu1 %12720  ;;  %7941 = vmatmul.mubr.f32.gmra.mrb[148].mxu1 %v7658_v51  ;;  %v12717_v63 = vunpack.i.l.bf16 %v12716_v32  ;;  %v7532_v10 = vsel %vm1777_vm3, %v7500_v22, %v12708_v61  ;;  %v12718_v14 = vunpack.i.h.bf16 %v12716_v32  ;;  %v6285_v32 = vld [vmem:[#allocation2 + $0x120] sm:$0xff] }
 0x87f   : > { %10377 = vmatprep.mubr.msk.f32.mxu1 %vm387_vm0, %v16736_v16  ;;  %v7564_v34 = vsel %vm1810_vm4, %v7532_v10, %v12713_v28  ;;  %v12722_v8 = vunpack.i.l.bf16 %v12721_v15  ;;  %v12723_v49 = vunpack.i.h.bf16 %v12721_v15 }
 0x880   : > { %v7595_v27 = vsel %vm1843_vm5, %v7563_v54, %v12717_v63  ;;  %v7596_v35 = vsel %vm1843_vm5, %v7564_v34, %v12718_v14 }
 0x881   : > { %v12726_v6 = vpop.permute.xlu0 %12725  ;;  %v7469_v36 = vsel %vm387_vm0, %v6285_v32, %v12722_v8  ;;  %v7470_v28 = vsel %vm387_vm0, %v6286_v21, %v12723_v49 }
 0x882   : > { %v12731_v29 = vpop.permute.xlu1 %12730  ;;  %v12727_v24 = vunpack.i.l.bf16 %v12726_v6  ;;  %v12728_v61 = vunpack.i.h.bf16 %v12726_v6 }
 0x883   : > { %v12732_v13 = vunpack.i.l.bf16 %v12731_v29  ;;  %v12733_v16 = vunpack.i.h.bf16 %v12731_v29 }
 0x884   : > { %v7501_v0 = vsel %vm1744_vm2, %v7469_v36, %v12727_v24  ;;  %v7502_v29 = vsel %vm1744_vm2, %v7470_v28, %v12728_v61 }
 0x885   : > { %v12736_v58 = vpop.permute.xlu0 %12735  ;;  %v7627_v3 = vsel %vm1876_vm6, %v7595_v27, %v12732_v13  ;;  %v7628_v60 = vsel %vm1876_vm6, %v7596_v35, %v12733_v16 }
 0x886   : > { %v12737_v18 = vunpack.i.l.bf16 %v12736_v58  ;;  %v12741_v40 = vpop.permute.xlu1 %12740  ;;  %v12738_v37 = vunpack.i.h.bf16 %v12736_v58 }
 0x887   : > { %v12742_v51 = vunpack.i.l.bf16 %v12741_v40  ;;  %v12743_v63 = vunpack.i.h.bf16 %v12741_v40 }
 0x888   : > { %v7659_v5 = vsel %vm1909_vm7, %v7627_v3, %v12737_v18  ;;  %v7660_v12 = vsel %vm1909_vm7, %v7628_v60, %v12738_v37 }
 0x889   : > { %v12746_v1 = vpop.permute.xlu0 %12745  ;;  %7946 = vmatmul.mubr.f32.gmra.mrb[150].mxu1 %v7659_v5  ;;  %v7533_v15 = vsel %vm1777_vm3, %v7501_v0, %v12742_v51  ;;  %v7534_v6 = vsel %vm1777_vm3, %v7502_v29, %v12743_v63  ;;  %v13418_v51 = vld [vmem:[#allocation2 + $0x138] sm:$0xff] }
 0x88a   : > { %10378 = vmatprep.mubr.msk.f32.mxu1 %vm387_vm0, %v16738_v45  ;;  %v12751_v20 = vpop.permute.xlu1 %12750  ;;  %v12747_v23 = vunpack.i.l.bf16 %v12746_v1  ;;  %v12748_v10 = vunpack.i.h.bf16 %v12746_v1 }
 0x88b   : > { %v12752_v30 = vunpack.i.l.bf16 %v12751_v20  ;;  %v12753_v13 = vunpack.i.h.bf16 %v12751_v20 }
 0x88c   : > { %v7565_v14 = vsel %vm1810_vm4, %v7533_v15, %v12747_v23  ;;  %v7566_v8 = vsel %vm1810_vm4, %v7534_v6, %v12748_v10  ;;  %v13419_v15 = vld [vmem:[#allocation2 + $0x140] sm:$0xff] }
 0x88d   : > { %v12756_v62 = vpop.permute.xlu0 %12755  ;;  %7951 = vmatmul.mubr.f32.gmra.mrb[152].mxu1 %v7660_v12  ;;  %v7597_v16 = vsel %vm1843_vm5, %v7565_v14, %v12752_v30  ;;  %v7598_v1 = vsel %vm1843_vm5, %v7566_v8, %v12753_v13 }
 0x88e   : > { %10379 = vmatprep.mubr.msk.f32.mxu1 %vm387_vm0, %v16794_v33  ;;  %v12761_v45 = vpop.permute.xlu1 %12760  ;;  %v12757_v37 = vunpack.i.l.bf16 %v12756_v62  ;;  %v12758_v20 = vunpack.i.h.bf16 %v12756_v62 }
 0x88f   : > { %v12762_v35 = vunpack.i.l.bf16 %v12761_v45  ;;  %v12763_v21 = vunpack.i.h.bf16 %v12761_v45 }
 0x890   : > { %v7471_v12 = vsel %vm387_vm0, %v13418_v51, %v12757_v37  ;;  %v7472_v30 = vsel %vm387_vm0, %v13419_v15, %v12758_v20  ;;  %v10387_v20 = vld [vmem:[%s18242_s5 + $0x10] sm:$0xff] }
 0x891   : > { %v12766_v54 = vpop.permute.xlu0 %12765  ;;  %v7503_v0 = vsel %vm1744_vm2, %v7471_v12, %v12762_v35  ;;  %v7504_v45 = vsel %vm1744_vm2, %v7472_v30, %v12763_v21 }
 0x892   : > { %v12767_v22 = vunpack.i.l.bf16 %v12766_v54  ;;  %v12771_v33 = vpop.permute.xlu1 %12770  ;;  %v12768_v58 = vunpack.i.h.bf16 %v12766_v54 }
 0x893   : > { %v12772_v34 = vunpack.i.l.bf16 %v12771_v33  ;;  %v12773_v3 = vunpack.i.h.bf16 %v12771_v33 }
 0x894   : > { %v7629_v18 = vsel %vm1876_vm6, %v7597_v16, %v12767_v22  ;;  %v7630_v24 = vsel %vm1876_vm6, %v7598_v1, %v12768_v58 }
 0x895   : > { %v12776_v27 = vpop.permute.xlu0 %12775  ;;  %v7661_v40 = vsel %vm1909_vm7, %v7629_v18, %v12772_v34  ;;  %v7662_v36 = vsel %vm1909_vm7, %v7630_v24, %v12773_v3 }
 0x896   : > { %v12781_v5 = vpop.permute.xlu1 %12780  ;;  %7956 = vmatmul.mubr.f32.gmra.mrb[154].mxu1 %v7661_v40  ;;  %v12777_v60 = vunpack.i.l.bf16 %v12776_v27  ;;  %v12778_v23 = vunpack.i.h.bf16 %v12776_v27 }
 0x897   : > { %10380 = vmatprep.mubr.msk.f32.mxu1 %vm387_vm0, %v16796_v19  ;;  %v12782_v49 = vunpack.i.l.bf16 %v12781_v5  ;;  %v12783_v28 = vunpack.i.h.bf16 %v12781_v5 }
 0x898   : > { %v7535_v19 = vsel %vm1777_vm3, %v7503_v0, %v12777_v60  ;;  %v7536_v29 = vsel %vm1777_vm3, %v7504_v45, %v12778_v23 }
 0x899   : > { %v12786_v32 = vpop.permute.xlu0 %12785  ;;  %v7567_v54 = vsel %vm1810_vm4, %v7535_v19, %v12782_v49  ;;  %v7568_v33 = vsel %vm1810_vm4, %v7536_v29, %v12783_v28  ;;  %v10388_v49 = vld [vmem:[%s18242_s5 + $0x18] sm:$0xff] }
 0x89a   : > { %v12791_v61 = vpop.permute.xlu1 %12790  ;;  %7961 = vmatmul.mubr.f32.gmra.mrb[156].mxu1 %v7662_v36  ;;  %v12787_v63 = vunpack.i.l.bf16 %v12786_v32  ;;  %v12788_v10 = vunpack.i.h.bf16 %v12786_v32 }
 0x89b   : > { %10381 = vmatprep.mubr.msk.f32.mxu1 %vm387_vm0, %v16847_v38  ;;  %v12792_v27 = vunpack.i.l.bf16 %v12791_v61  ;;  %v12793_v5 = vunpack.i.h.bf16 %v12791_v61 }
 0x89c   : > { %v7599_v13 = vsel %vm1843_vm5, %v7567_v54, %v12787_v63  ;;  %v7600_v40 = vsel %vm1843_vm5, %v7568_v33, %v12788_v10 }
 0x89d   : > { %v12796_v62 = vpop.permute.xlu0 %12795  ;;  %v7473_v60 = vsel %vm387_vm0, %v16773_v9, %v12792_v27  ;;  %v7474_v9 = vsel %vm387_vm0, %v16767_v47, %v12793_v5 }
 0x89e   : > { %v12801_v22 = vpop.permute.xlu1 %12800  ;;  %v12797_v35 = vunpack.i.l.bf16 %v12796_v62  ;;  %v12798_v51 = vunpack.i.h.bf16 %v12796_v62 }
 0x89f   : > { %v12802_v14 = vunpack.i.l.bf16 %v12801_v22  ;;  %v12803_v38 = vunpack.i.h.bf16 %v12801_v22 }
 0x8a0   : > { %v7505_v12 = vsel %vm1744_vm2, %v7473_v60, %v12797_v35  ;;  %v7506_v63 = vsel %vm1744_vm2, %v7474_v9, %v12798_v51 }
 0x8a1   : > { %v12806_v6 = vpop.permute.xlu0 %12805  ;;  %v7631_v16 = vsel %vm1876_vm6, %v7599_v13, %v12802_v14  ;;  %v7632_v37 = vsel %vm1876_vm6, %v7600_v40, %v12803_v38 }
 0x8a2   : > { %v12807_v34 = vunpack.i.l.bf16 %v12806_v6  ;;  %v12811_v58 = vpop.permute.xlu1 %12810  ;;  %v12808_v18 = vunpack.i.h.bf16 %v12806_v6 }
 0x8a3   : > { %v12812_v32 = vunpack.i.l.bf16 %v12811_v58  ;;  %v12813_v21 = vunpack.i.h.bf16 %v12811_v58 }
 0x8a4   : > { %v7663_v3 = vsel %vm1909_vm7, %v7631_v16, %v12807_v34  ;;  %v7664_v24 = vsel %vm1909_vm7, %v7632_v37, %v12808_v18 }
 0x8a5   : > { %v12816_v8 = vpop.permute.xlu0 %12815  ;;  %7966 = vmatmul.mubr.f32.gmra.mrb[158].mxu1 %v7663_v3  ;;  %v7537_v23 = vsel %vm1777_vm3, %v7505_v12, %v12812_v32  ;;  %v6547_v32 = vld [vmem:[#allocation2 + $0x19a] sm:$0xff] }
 0x8a6   : > { %10382 = vmatprep.mubr.msk.f32.mxu1 %vm387_vm0, %v16849_v50  ;;  %v12821_v1 = vpop.permute.xlu1 %12820  ;;  %v10579_v50 = vpack.c.bf16 %v10388_v49, %v10387_v20  ;;  %v12817_v61 = vunpack.i.l.bf16 %v12816_v8  ;;  %v12818_v15 = vunpack.i.h.bf16 %v12816_v8 }
 0x8a7   : > { %v12822_v19 = vunpack.i.l.bf16 %v12821_v1  ;;  %v12823_v45 = vunpack.i.h.bf16 %v12821_v1 }
 0x8a8   : > { %10580 = vmatpush3.bf16.msra.mxu0 %v10579_v50  ;;  %v7569_v47 = vsel %vm1810_vm4, %v7537_v23, %v12817_v61 }
 0x8a9   : > { %v12826_v36 = vpop.permute.xlu0 %12825  ;;  %7971 = vmatmul.mubr.f32.gmra.mrb[160].mxu1 %v7664_v24  ;;  %10581 = vmatprep.subr.bf16.mxu0 %v18375_v55  ;;  %v7601_v10 = vsel %vm1843_vm5, %v7569_v47, %v12822_v19 }
 0x8aa   : > { %10383 = vmatprep.mubr.msk.f32.mxu1 %vm387_vm0, %v16888_v26  ;;  %v12831_v0 = vpop.permute.xlu1 %12830  ;;  %v7538_v26 = vsel %vm1777_vm3, %v7506_v63, %v12813_v21  ;;  %v12827_v30 = vunpack.i.l.bf16 %v12826_v36  ;;  %v12828_v58 = vunpack.i.h.bf16 %v12826_v36  ;;  %v6548_v21 = vld [vmem:[#allocation2 + $0x1a2] sm:$0xff] }
 0x8ab   : > { %v12832_v22 = vunpack.i.l.bf16 %v12831_v0  ;;  %v7570_v16 = vsel %vm1810_vm4, %v7538_v26, %v12818_v15  ;;  %v12833_v3 = vunpack.i.h.bf16 %v12831_v0 }
 0x8ac   : > { %v7475_v27 = vsel %vm387_vm0, %v16820_v2, %v12827_v30  ;;  %v7602_v37 = vsel %vm1843_vm5, %v7570_v16, %v12823_v45  ;;  %v7476_v49 = vsel %vm387_vm0, %v16824_v41, %v12828_v58 }
 0x8ad   : > { %v12836_v28 = vpop.permute.xlu0 %12835  ;;  %v7507_v40 = vsel %vm1744_vm2, %v7475_v27, %v12832_v22 }
 0x8ae   : > { %v12837_v62 = vunpack.i.l.bf16 %v12836_v28  ;;  %v12841_v54 = vpop.permute.xlu1 %12840  ;;  %v12838_v14 = vunpack.i.h.bf16 %v12836_v28 }
 0x8af   : > { %v12842_v29 = vunpack.i.l.bf16 %v12841_v54  ;;  %v12843_v6 = vunpack.i.h.bf16 %v12841_v54 }
 0x8b0   : > { %v7633_v38 = vsel %vm1876_vm6, %v7601_v10, %v12837_v62  ;;  %v7634_v60 = vsel %vm1876_vm6, %v7602_v37, %v12838_v14 }
 0x8b1   : > { %v12846_v33 = vpop.permute.xlu0 %12845  ;;  %v7665_v34 = vsel %vm1909_vm7, %v7633_v38, %v12842_v29  ;;  %v7666_v20 = vsel %vm1909_vm7, %v7634_v60, %v12843_v6 }
 0x8b2   : > { %v12847_v13 = vunpack.i.l.bf16 %v12846_v33  ;;  %v12851_v18 = vpop.permute.xlu1 %12850  ;;  %7976 = vmatmul.mubr.f32.gmra.mrb[162].mxu1 %v7665_v34  ;;  %v12848_v5 = vunpack.i.h.bf16 %v12846_v33 }
 0x8b3   : > { %v12852_v8 = vunpack.i.l.bf16 %v12851_v18  ;;  %10384 = vmatprep.mubr.msk.f32.mxu1 %vm387_vm0, %v16897_v43  ;;  %v12853_v24 = vunpack.i.h.bf16 %v12851_v18  ;;  %v7508_v43 = vsel %vm1744_vm2, %v7476_v49, %v12833_v3 }
 0x8b4   : > { %v7539_v1 = vsel %vm1777_vm3, %v7507_v40, %v12847_v13  ;;  %v7540_v9 = vsel %vm1777_vm3, %v7508_v43, %v12848_v5 }
 0x8b5   : > { %v7154_v35 = vpop.permute.xlu0 %7153  ;;  %v7571_v2 = vsel %vm1810_vm4, %v7539_v1, %v12852_v8  ;;  %v7572_v61 = vsel %vm1810_vm4, %v7540_v9, %v12853_v24 }
 0x8b6   : > { %v7603_v36 = vsel %vm1843_vm5, %v7571_v2, %v7154_v35  ;;  %7981 = vmatmul.mubr.f32.gmra.mrb[164].mxu1 %v7666_v20  ;;  %v7156_v50 = vpop.permute.xlu1 %7155 }
 0x8b7   : > { %10385 = vmatprep.mubr.msk.f32.mxu1 %vm387_vm0, %v6547_v32  ;;  %v7635_v51 = vsel %vm1876_vm6, %v7603_v36, %v16567_v39  ;;  %v7604_v23 = vsel %vm1843_vm5, %v7572_v61, %v7156_v50  ;;  %v10391_v32 = vld [vmem:[%s18244_s7 + $0x4] sm:$0xf] }
 0x8b8   : > { %10463 = vmatpush3.msk.msra.mxu1 %vm4240_vm9, %v10391_v32 }
 0x8b9   : > { %v7410_v12 = vpop.permute.xlu0 %7409 }
 0x8ba   : > { %v7667_v0 = vsel %vm1909_vm7, %v7635_v51, %v7410_v12  ;;  %v7412_v41 = vpop.permute.xlu1 %7411 }
 0x8bb   : > { %7986 = vmatmul.mubr.f32.gmra.mrb[166].mxu1 %v7667_v0 }
 0x8bc   : > { %10386 = vmatprep.mubr.msk.f32.mxu1 %vm387_vm0, %v6548_v21 }
 0x8bd   : > { %v7284_v19 = vpop.permute.xlu0 %7283 }
 0x8be   : > { %v7636_v28 = vsel %vm1876_vm6, %v7604_v23, %v7284_v19 }
 0x8bf   : > { %v7668_v63 = vsel %vm1909_vm7, %v7636_v28, %v7412_v41  ;;  %v17098_v41 = vld [vmem:[%s18241_s4 + $0x1] ss:$0 sm:$0xff] }
 0x8c0   : > { %7991 = vmatmul.mubr.f32.gmra.mrb[168].mxu1 %v7668_v63 }
 0x8c1   : > { %10464 = vmatprep.mubr.msk.f32.mxu1 %vm13441_vm8, %v18376_v31  ;;  %v7837_v39 = vpop.f32.mrb[106].mxu1 }
 0x8c2   : > { %v7839_v62 = vpop.f32.mrb[107].mxu1  ;;  %v17104_v28 = vadd.f32 %v17098_v41, %v7837_v39 }
 0x8c5   : > { %v7842_v26 = vpop.f32.mrb[108].mxu1 }
 0x8c6   : > { %v7844_v15 = vpop.f32.mrb[109].mxu1  ;;  %v17101_v19 = vadd.f32 %v17098_v41, %v7842_v26 }
 0x8c8   : > { %v7997_v62 = vsel %vm387_vm0, %v17101_v19, 0.0 }
 0x8d0   : > { %v7847_v47 = vpop.f32.mrb[110].mxu1 }
 0x8d1   : > { %v7849_v30 = vpop.f32.mrb[111].mxu1  ;;  %v17107_v63 = vadd.f32 %v17098_v41, %v7847_v47 }
 0x8d2   : > { %v7996_v30 = vsel %vm387_vm0, %v17104_v28, 0.0 }
 0x8d3   : > { %v7998_v39 = vadd.f32 %v7997_v62, %v7996_v30 }
 0x8d4   : > { %v7852_v54 = vpop.f32.mrb[112].mxu1 }
 0x8d5   : > { %v7854_v45 = vpop.f32.mrb[113].mxu1  ;;  %v17112_v15 = vadd.f32 %v17098_v41, %v7852_v54 }
 0x8d6   : > { %v7999_v45 = vsel %vm387_vm0, %v17107_v63, 0.0 }
 0x8d7   : > { %v8001_v47 = vsel %vm387_vm0, %v17112_v15, 0.0 }
 0x8dd   : > { %v7857_v22 = vpop.f32.mrb[114].mxu1 }
 0x8de   : > { %v7859_v29 = vpop.f32.mrb[115].mxu1  ;;  %v17119_v26 = vadd.f32 %v17098_v41, %v7857_v22 }
 0x8e1   : > { %v7862_v10 = vpop.f32.mrb[116].mxu1 }
 0x8e2   : > { %v7864_v14 = vpop.f32.mrb[117].mxu1  ;;  %v17124_v29 = vadd.f32 %v17098_v41, %v7862_v10 }
 0x8e4   : > { %v8005_v22 = vsel %vm387_vm0, %v17124_v29, 0.0 }
 0x8ec   : > { %v7867_v33 = vpop.f32.mrb[118].mxu1 }
 0x8ed   : > { %v7869_v38 = vpop.f32.mrb[119].mxu1 }
 0x8ee   : > { %v8000_v38 = vadd.f32 %v7999_v45, %v7998_v39 }
 0x8f0   : > { %v7872_v6 = vpop.f32.mrb[120].mxu1 }
 0x8f1   : > { %v7874_v13 = vpop.f32.mrb[121].mxu1 }
 0x8f2   : > { %v8003_v13 = vsel %vm387_vm0, %v17119_v26, 0.0 }
 0x8f9   : > { %v7877_v34 = vpop.f32.mrb[122].mxu1 }
 0x8fa   : > { %v7879_v16 = vpop.f32.mrb[123].mxu1 }
 0x8fb   : > { %v17129_v16 = vadd.f32 %v17098_v41, %v7867_v33 }
 0x8fd   : > { %v7882_v58 = vpop.f32.mrb[124].mxu1 }
 0x8fe   : > { %v7884_v31 = vpop.f32.mrb[125].mxu1 }
 0x8ff   : > { %v8002_v31 = vadd.f32 %v8001_v47, %v8000_v38 }
 0x908   : > { %v7887_v27 = vpop.f32.mrb[126].mxu1 }
 0x909   : > { %v7889_v18 = vpop.f32.mrb[127].mxu1 }
 0x90a   : > { %v17134_v18 = vadd.f32 %v17098_v41, %v7872_v6 }
 0x90c   : > { %v7892_v3 = vpop.f32.mrb[128].mxu1  ;;  %v8009_v33 = vsel %vm387_vm0, %v17134_v18, 0.0 }
 0x90d   : > { %v7894_v40 = vpop.f32.mrb[129].mxu1 }
 0x915   : > { %v7897_v8 = vpop.f32.mrb[130].mxu1 }
 0x916   : > { %v7899_v37 = vpop.f32.mrb[131].mxu1 }
 0x917   : > { %v8004_v37 = vadd.f32 %v8003_v13, %v8002_v31 }
 0x919   : > { %v7902_v5 = vpop.f32.mrb[132].mxu1  ;;  %v8006_v32 = vadd.f32 %v8005_v22, %v8004_v37 }
 0x91a   : > { %v7904_v35 = vpop.f32.mrb[133].mxu1  ;;  %v17164_v39 = vadd.f32 %v17098_v41, %v7902_v5 }
 0x91b   : > { %v8007_v35 = vsel %vm387_vm0, %v17129_v16, 0.0 }
 0x91c   : > { %v8021_v31 = vsel %vm387_vm0, %v17164_v39, 0.0 }
 0x924   : > { %v7907_v1 = vpop.f32.mrb[134].mxu1 }
 0x925   : > { %v7909_v60 = vpop.f32.mrb[135].mxu1  ;;  %v17169_v38 = vadd.f32 %v17098_v41, %v7907_v1 }
 0x926   : > { %v17139_v60 = vadd.f32 %v17098_v41, %v7877_v34  ;;  %v17154_v34 = vadd.f32 %v17098_v41, %v7892_v3 }
 0x927   : > { %v8023_v5 = vsel %vm387_vm0, %v17169_v38, 0.0 }
 0x928   : > { %v17080_v24 = vpop.f32.mrb[136].mxu1  ;;  %v8011_v6 = vsel %vm387_vm0, %v17139_v60, 0.0 }
 0x929   : > { %v7914_v2 = vpop.f32.mrb[137].mxu1  ;;  %v17175_v22 = vadd.f32 %v17098_v41, %v17080_v24 }
 0x92a   : > { %v17144_v2 = vadd.f32 %v17098_v41, %v7882_v58  ;;  %v17159_v58 = vadd.f32 %v17098_v41, %v7897_v8 }
 0x92c   : > { %v8019_v3 = vsel %vm387_vm0, %v17159_v58, 0.0 }
 0x931   : > { %v17083_v20 = vpop.f32.mrb[138].mxu1 }
 0x932   : > { %v7919_v49 = vpop.f32.mrb[139].mxu1 }
 0x933   : > { %v8008_v49 = vadd.f32 %v8007_v35, %v8006_v32  ;;  %v8025_v35 = vsel %vm387_vm0, %v17175_v22, 0.0 }
 0x935   : > { %v17085_v36 = vpop.f32.mrb[140].mxu1 }
 0x936   : > { %v7924_v43 = vpop.f32.mrb[141].mxu1  ;;  %v17187_v32 = vadd.f32 %v17098_v41, %v17085_v36 }
 0x937   : > { %v17149_v43 = vadd.f32 %v17098_v41, %v7887_v27  ;;  %v8017_v27 = vsel %vm387_vm0, %v17154_v34, 0.0 }
 0x940   : > { %v17087_v50 = vpop.f32.mrb[142].mxu1 }
 0x941   : > { %v7929_v51 = vpop.f32.mrb[143].mxu1 }
 0x942   : > { %v8010_v51 = vadd.f32 %v8009_v33, %v8008_v49  ;;  %v17193_v49 = vadd.f32 %v17098_v41, %v17087_v50 }
 0x944   : > { %v17089_v9 = vpop.f32.mrb[144].mxu1 }
 0x945   : > { %v7934_v12 = vpop.f32.mrb[145].mxu1 }
 0x946   : > { %v8013_v12 = vsel %vm387_vm0, %v17144_v2, 0.0 }
 0x94d   : > { %v17091_v21 = vpop.f32.mrb[146].mxu1 }
 0x94e   : > { %v7939_v61 = vpop.f32.mrb[147].mxu1 }
 0x94f   : > { %v8012_v61 = vadd.f32 %v8011_v6, %v8010_v51  ;;  %v17199_v51 = vadd.f32 %v17098_v41, %v17089_v9 }
 0x951   : > { %v17093_v0 = vpop.f32.mrb[148].mxu1  ;;  %v8014_v30 = vadd.f32 %v8013_v12, %v8012_v61 }
 0x952   : > { %v7944_v23 = vpop.f32.mrb[149].mxu1 }
 0x953   : > { %v8015_v23 = vsel %vm387_vm0, %v17149_v43, 0.0 }
 0x954   : > { %v8016_v47 = vadd.f32 %v8015_v23, %v8014_v30  ;;  %v8031_v23 = vsel %vm387_vm0, %v17193_v49, 0.0  ;;  %v17205_v30 = vadd.f32 %v17098_v41, %v17091_v21 }
 0x956   : > { %v8018_v13 = vadd.f32 %v8017_v27, %v8016_v47  ;;  %v17211_v27 = vadd.f32 %v17098_v41, %v17093_v0 }
 0x958   : > { %v8020_v37 = vadd.f32 %v8019_v3, %v8018_v13  ;;  %v8035_v13 = vsel %vm387_vm0, %v17205_v30, 0.0  ;;  %v8037_v21 = vsel %vm387_vm0, %v17211_v27, 0.0 }
 0x95a   : > { %v8022_v1 = vadd.f32 %v8021_v31, %v8020_v37 }
 0x95c   : > { %v7947_v14 = vpop.f32.mrb[150].mxu1  ;;  %v8024_v33 = vadd.f32 %v8023_v5, %v8022_v1 }
 0x95d   : > { %v7949_v54 = vpop.f32.mrb[151].mxu1 }
 0x95e   : > { %v8026_v6 = vadd.f32 %v8025_v35, %v8024_v33 }
 0x960   : > { %v7952_v40 = vpop.f32.mrb[152].mxu1 }
 0x961   : > { %v7954_v10 = vpop.f32.mrb[153].mxu1  ;;  %v17221_v37 = vadd.f32 %v17098_v41, %v7952_v40 }
 0x962   : > { %v17181_v10 = vadd.f32 %v17098_v41, %v17083_v20  ;;  %v8029_v20 = vsel %vm387_vm0, %v17187_v32, 0.0 }
 0x963   : > { %v8041_v33 = vsel %vm387_vm0, %v17221_v37, 0.0 }
 0x964   : > { %v8027_v24 = vsel %vm387_vm0, %v17181_v10, 0.0 }
 0x965   : > { %v8028_v61 = vadd.f32 %v8027_v24, %v8026_v6 }
 0x967   : > { %v8030_v50 = vadd.f32 %v8029_v20, %v8028_v61 }
 0x969   : > { %v7957_v62 = vpop.f32.mrb[154].mxu1  ;;  %v8032_v47 = vadd.f32 %v8031_v23, %v8030_v50 }
 0x96a   : > { %v7959_v45 = vpop.f32.mrb[155].mxu1  ;;  %v17226_v1 = vadd.f32 %v17098_v41, %v7957_v62 }
 0x96b   : > { %v8033_v45 = vsel %vm387_vm0, %v17199_v51, 0.0 }
 0x96c   : > { %v8034_v31 = vadd.f32 %v8033_v45, %v8032_v47  ;;  %v8043_v6 = vsel %vm387_vm0, %v17226_v1, 0.0 }
 0x96d   : > { %v7962_v54 = vpop.f32.mrb[156].mxu1 }
 0x96e   : > { %v7964_v8 = vpop.f32.mrb[157].mxu1  ;;  %v8036_v5 = vadd.f32 %v8035_v13, %v8034_v31 }
 0x96f   : > { %v17216_v8 = vadd.f32 %v17098_v41, %v7947_v14  ;;  %v17231_v14 = vadd.f32 %v17098_v41, %v7962_v54 }
 0x970   : > { %v8038_v35 = vadd.f32 %v8037_v21, %v8036_v5 }
 0x971   : > { %v8039_v0 = vsel %vm387_vm0, %v17216_v8, 0.0  ;;  %v8045_v62 = vsel %vm387_vm0, %v17231_v14, 0.0 }
 0x972   : > { %v8040_v24 = vadd.f32 %v8039_v0, %v8038_v35 }
 0x974   : > { %v8042_v61 = vadd.f32 %v8041_v33, %v8040_v24 }
 0x976   : > { %v8044_v50 = vadd.f32 %v8043_v6, %v8042_v61 }
 0x978   : > { %v7967_v12 = vpop.f32.mrb[158].mxu1 }
 0x979   : > { %v7969_v36 = vpop.f32.mrb[159].mxu1  ;;  %v17236_v40 = vadd.f32 %v17098_v41, %v7967_v12 }
 0x97b   : > { %v8047_v54 = vsel %vm387_vm0, %v17236_v40, 0.0 }
 0x97c   : > { %v7972_v9 = vpop.f32.mrb[160].mxu1 }
 0x97d   : > { %v7974_v3 = vpop.f32.mrb[161].mxu1  ;;  %v17241_v23 = vadd.f32 %v17098_v41, %v7972_v9 }
 0x97e   : > { %v8046_v3 = vadd.f32 %v8045_v62, %v8044_v50 }
 0x97f   : > { %v8049_v13 = vsel %vm387_vm0, %v17241_v23, 0.0 }
 0x980   : > { %v8048_v21 = vadd.f32 %v8047_v54, %v8046_v3 }
 0x982   : > { %v8050_v0 = vadd.f32 %v8049_v13, %v8048_v21 }
 0x985   : > { %v7977_v20 = vpop.f32.mrb[162].mxu1 }
 0x986   : > { %v7979_v36 = vpop.f32.mrb[163].mxu1  ;;  %v17246_v45 = vadd.f32 %v17098_v41, %v7977_v20 }
 0x988   : > { %v8051_v9 = vsel %vm387_vm0, %v17246_v45, 0.0 }
 0x989   : > { %v7982_v47 = vpop.f32.mrb[164].mxu1  ;;  %v8052_v6 = vadd.f32 %v8051_v9, %v8050_v0 }
 0x98a   : > { %v7984_v12 = vpop.f32.mrb[165].mxu1  ;;  %v17251_v31 = vadd.f32 %v17098_v41, %v7982_v47 }
 0x98c   : > { %v8053_v24 = vsel %vm387_vm0, %v17251_v31, 0.0 }
 0x98d   : > { %v8054_v61 = vadd.f32 %v8053_v24, %v8052_v6 }
 0x98e   : > { %v7987_v5 = vpop.f32.mrb[166].mxu1 }
 0x98f   : > { %v17256_v35 = vadd.f32 %v17098_v41, %v7987_v5  ;;  %v7989_v33 = vpop.f32.mrb[167].mxu1 }
 0x991   : > { %v8055_v20 = vsel %vm387_vm0, %v17256_v35, 0.0 }
 0x992   : > { %v8056_v54 = vadd.f32 %v8055_v20, %v8054_v61 }
 0x993   : > { %v7992_v36 = vpop.f32.mrb[168].mxu1 }
 0x994   : > { %v17263_v62 = vadd.f32 %v17098_v41, %v7992_v36  ;;  %v7994_v50 = vpop.f32.mrb[169].mxu1  ;;  %v10389_v41 = vld [vmem:[%s18243_s6 + $0x1] sm:$0x1] }
 0x995   : > { %v8382_v36 = vld [vmem:[#allocation2 + $0x1] sm:$0xff]  ;;  %v8383_v50 = vld [vmem:[#allocation2 + $0x9] sm:$0xff] }
 0x996   : > { %v8057_v47 = vsel %vm387_vm0, %v17263_v62, 0.0 }
 0x997   : > { %v8058_v3 = vadd.f32 %v8057_v47, %v8056_v54  ;;  %v12854_v54 = vpack.i.bf16 %v8383_v50, %v8382_v36  ;;  %v8414_v47 = vld [vmem:[#allocation2 + $0x2] sm:$0xff] }
 0x999   : > { %v8059_v12 = vrot.slane %v8058_v3, 4  ;;  %12855 = vrot.lane.b32.xlu0 %v12854_v54, %s13434_s22 }
 0x99b   : > { %v8060_v13 = vadd.f32 %v8059_v12, %v8058_v3  ;;  %v8415_v3 = vld [vmem:[#allocation2 + $0xa] sm:$0xff] }
 0x99c   : > { %v12859_v12 = vpack.i.bf16 %v8415_v3, %v8414_v47 }
 0x99d   : > { %v8061_v21 = vrot.slane %v8060_v13, 2 }
 0x99e   : > { %12860 = vrot.lane.b32.xlu1 %v12859_v12, %s13435_s28 }
 0x99f   : > { %v8062_v5 = vadd.f32 %v8061_v21, %v8060_v13  ;;  %v8572_v13 = vld [vmem:[#allocation2 + $0x198] sm:$0xff]  ;;  %v10392_v21 = vld [vmem:[%s18245_s8 + $0x1] sm:$0x1] }
 0x9a0   : > { %9370 = vrot.lane.b32.xlu0 %v8572_v13, %s13440_s26 }
 0x9a1   : > { %v8063_v33 = vrot.slane %v8062_v5, 1 }
 0x9a3   : > { %v8064_v9 = vadd.f32 %v8063_v33, %v8062_v5 }
 0x9a5   : > { %v8065_v0 = vmul.f32 0.00390625, %v8064_v9 }
 0x9a7   : > { %10460 = vmatmul.mubr.msk.f32.vlgmr.msra.gmra.mrb[90].mxu0 %vm387_vm0, %v8065_v0 }
 0xa7a   : > { %v8140_v24 = vpop.f32.mrb[90].mxu0 }
 0xa7b   : > { %v8141_v6 = vadd.f32 %v10389_v41, %v8140_v24  ;;  %v10461_v20 = vpop.f32.mrb[91].mxu0 }
 0xa7c   : > { %v18428_v20 = vsub.s32 0, %v15575_v4 }
 0xa7d   : > { %v8144_v61 = vmax.f32 %v8141_v6, 0.0 }
 0xa7f   : > { %10465 = vmatmul.mubr.msk.f32.vlgmr.msra.gmra.mrb[170].mxu1 %vm4236_vm10, %v8144_v61 }
 0xb52   : > { %v8221_v5 = vpop.f32.mrb[170].mxu1 }
 0xb53   : > { %v8222_v33 = vadd.f32 %v10392_v21, %v8221_v5  ;;  %v10466_v9 = vpop.f32.mrb[171].mxu1 }
 0xb54   : > { %v18434_v9 = vld [vmem:[#allocation40_spill] sm:$0xff] }
 0xb55   : > { %v10395_v0 = vmul.f32 -1.442695, %v8222_v33 }
 0xb57   : > { %13403 = vpow2.f32 %v10395_v0  ;;  %v18435_v0 = vld [vmem:[#allocation41_spill] sm:$0xff] }
 0xb61   : > { %v13404_v41 = vpop.eup %13403 }
 0xb62   : > { %v8228_v24 = vadd.f32 1.0, %v13404_v41 }
 0xb64   : > { %13405 = vrcp.f32 %v8228_v24  ;;  %v18436_v24 = vld [vmem:[#allocation42_spill] sm:$0xff] }
 0xb6e   : > { %v13406_v6 = vpop.eup %13405 }
 0xb6f   : > { %v8234_v61 = vrot.slane %v13406_v6, %v18428_v20  ;;  %v18437_v20 = vld [vmem:[#allocation43_spill] sm:$0xff] }
 0xb71   : > { %v8235_v36 = vmul.f32 %v8234_v61, %v17104_v28  ;;  %v8236_v50 = vmul.f32 %v8234_v61, %v17101_v19  ;;  %v8237_v54 = vmul.f32 %v8234_v61, %v17107_v63  ;;  %v8238_v47 = vmul.f32 %v8234_v61, %v17112_v15 }
 0xb72   : > { %v8239_v3 = vmul.f32 %v8234_v61, %v17119_v26  ;;  %v8240_v12 = vmul.f32 %v8234_v61, %v17124_v29  ;;  %v8241_v13 = vmul.f32 %v8234_v61, %v17129_v16  ;;  %v8242_v21 = vmul.f32 %v8234_v61, %v17134_v18 }
 0xb73   : > { %v8243_v5 = vmul.f32 %v8234_v61, %v17139_v60  ;;  %v8244_v4 = vmul.f32 %v8234_v61, %v17144_v2  ;;  %v8245_v28 = vmul.f32 %v8234_v61, %v17149_v43  ;;  %v8246_v19 = vmul.f32 %v8234_v61, %v17154_v34 }
 0xb74   : > { %v8247_v63 = vmul.f32 %v8234_v61, %v17159_v58  ;;  %v8248_v15 = vmul.f32 %v8234_v61, %v17164_v39  ;;  %v8249_v26 = vmul.f32 %v8234_v61, %v17169_v38  ;;  %v8250_v29 = vmul.f32 %v8234_v61, %v17175_v22 }
 0xb75   : > { %v8251_v16 = vmul.f32 %v8234_v61, %v17181_v10  ;;  %v8252_v18 = vmul.f32 %v8234_v61, %v17187_v32  ;;  %v8253_v60 = vmul.f32 %v8234_v61, %v17193_v49  ;;  %v8254_v2 = vmul.f32 %v8234_v61, %v17199_v51 }
 0xb76   : > { %v8255_v43 = vmul.f32 %v8234_v61, %v17205_v30  ;;  %v8256_v34 = vmul.f32 %v8234_v61, %v17211_v27  ;;  %v8257_v58 = vmul.f32 %v8234_v61, %v17216_v8  ;;  %v8258_v39 = vmul.f32 %v8234_v61, %v17221_v37 }
 0xb77   : > { %v8259_v38 = vmul.f32 %v8234_v61, %v17226_v1  ;;  %v8260_v22 = vmul.f32 %v8234_v61, %v17231_v14  ;;  %v8261_v10 = vmul.f32 %v8234_v61, %v17236_v40  ;;  %v8262_v32 = vmul.f32 %v8234_v61, %v17241_v23 }
 0xb78   : > { %v8263_v49 = vmul.f32 %v8234_v61, %v17246_v45  ;;  %v8264_v51 = vmul.f32 %v8234_v61, %v17251_v31  ;;  %v8265_v30 = vmul.f32 %v8234_v61, %v17256_v35  ;;  %v8266_v27 = vmul.f32 %v8234_v61, %v17263_v62 }
 0xb79   : > { %v8267_v8 = vadd.f32 %v8235_v36, %v15628_v56  ;;  %v8268_v37 = vadd.f32 %v8236_v50, %v15631_v53  ;;  %v8269_v1 = vadd.f32 %v8237_v54, %v15634_v17  ;;  %v8270_v14 = vadd.f32 %v8238_v47, %v15637_v48  ;;  %v18429_v48 = vld [vmem:[#allocation35_spill] sm:$0xff]  ;;  %v18438_v36 = vld [vmem:[#allocation44_spill] sm:$0xff]  ;;  %v18439_v54 = vld [vmem:[#allocation45_spill] sm:$0xff] }
 0xb7a   : > { %v8271_v40 = vadd.f32 %v8239_v3, %v15640_v44  ;;  %v8272_v23 = vadd.f32 %v8240_v12, %v15643_v46  ;;  %v8273_v45 = vadd.f32 %v8241_v13, %v15646_v57  ;;  %v8274_v31 = vadd.f32 %v8242_v21, %v15649_v11  ;;  %v18430_v46 = vld [vmem:[#allocation36_spill] sm:$0xff]  ;;  %v18431_v11 = vld [vmem:[#allocation37_spill] sm:$0xff]  ;;  %v18440_v3 = vld [vmem:[#allocation46_spill] sm:$0xff] }
 0xb7b   : > { %v8275_v35 = vadd.f32 %v8243_v5, %v15652_v7  ;;  %v8276_v62 = vadd.f32 %v8244_v4, %v15655_v42  ;;  %v8277_v56 = vadd.f32 %v8245_v28, %v15658_v59  ;;  %v8278_v53 = vadd.f32 %v8246_v19, %v15661_v52  ;;  %8318 = vst.msk [vmem:[#allocation2 + $0x19] sm:$0xff] %vm387_vm0, %v8267_v8  ;;  %v18432_v42 = vld [vmem:[#allocation38_spill] sm:$0xff]  ;;  %v18433_v52 = vld [vmem:[#allocation39_spill] sm:$0xff]  ;;  %v18442_v5 = vld [vmem:[#allocation48_spill] sm:$0xff] }
 0xb7c   : > { %8319 = vst.msk [vmem:[#allocation2 + $0x21] sm:$0xff] %vm387_vm0, %v8268_v37  ;;  %8320 = vst.msk [vmem:[#allocation2 + $0x31] sm:$0xff] %vm387_vm0, %v8269_v1  ;;  %v8279_v17 = vadd.f32 %v8247_v63, %v15672_v25  ;;  %v8280_v44 = vadd.f32 %v8248_v15, %v18429_v48  ;;  %v8281_v57 = vadd.f32 %v8249_v26, %v18430_v46  ;;  %v18441_v13 = vld [vmem:[#allocation47_spill] sm:$0xff]  ;;  %v18443_v28 = vld [vmem:[#allocation49_spill] sm:$0xff] }
 0xb7d   : > { %8321 = vst.msk [vmem:[#allocation2 + $0x39] sm:$0xff] %vm387_vm0, %v8270_v14  ;;  %v8282_v7 = vadd.f32 %v8250_v29, %v18431_v11  ;;  %8322 = vst.msk [vmem:[#allocation2 + $0x49] sm:$0xff] %vm387_vm0, %v8271_v40  ;;  %v8283_v59 = vadd.f32 %v8251_v16, %v18432_v42  ;;  %v8284_v33 = vadd.f32 %v8252_v18, %v18433_v52  ;;  %v8299_v63 = vld [vmem:[%s18246_s9] sm:$0xff]  ;;  %v8300_v15 = vld [vmem:[%s18246_s9 + $0x8] sm:$0xff] }
 0xb7e   : > { %8323 = vst.msk [vmem:[#allocation2 + $0x51] sm:$0xff] %vm387_vm0, %v8272_v23  ;;  %8324 = vst.msk [vmem:[#allocation2 + $0x61] sm:$0xff] %vm387_vm0, %v8273_v45  ;;  %v8285_v25 = vadd.f32 %v8253_v60, %v18434_v9  ;;  %v8286_v41 = vadd.f32 %v8254_v2, %v18435_v0  ;;  %v8287_v6 = vadd.f32 %v8255_v43, %v18436_v24  ;;  %v18444_v26 = vld [vmem:[#allocation50_spill] sm:$0xff]  ;;  %v18445_v16 = vld [vmem:[#allocation51_spill] sm:$0xff] }
 0xb7f   : > { %8325 = vst.msk [vmem:[#allocation2 + $0x69] sm:$0xff] %vm387_vm0, %v8274_v31  ;;  %8326 = vst.msk [vmem:[#allocation2 + $0x79] sm:$0xff] %vm387_vm0, %v8275_v35  ;;  %v8288_v61 = vadd.f32 %v8256_v34, %v18437_v20  ;;  %v8289_v50 = vadd.f32 %v8257_v58, %v18438_v36  ;;  %v8290_v47 = vadd.f32 %v8258_v39, %v18439_v54  ;;  %v18446_v60 = vld [vmem:[#allocation52_spill] sm:$0xff]  ;;  %v18447_v43 = vld [vmem:[#allocation53_spill] sm:$0xff] }
 0xb80   : > { %8327 = vst.msk [vmem:[#allocation2 + $0x81] sm:$0xff] %vm387_vm0, %v8276_v62  ;;  %8328 = vst.msk [vmem:[#allocation2 + $0x91] sm:$0xff] %vm387_vm0, %v8277_v56  ;;  %v8291_v12 = vadd.f32 %v8259_v38, %v18440_v3  ;;  %v8292_v21 = vadd.f32 %v8260_v22, %v18441_v13  ;;  %v8293_v4 = vadd.f32 %v8261_v10, %v18442_v5  ;;  %v8301_v58 = vld [vmem:[%s18246_s9 + $0x10] sm:$0xff]  ;;  %v8302_v39 = vld [vmem:[%s18246_s9 + $0x18] sm:$0xff] }
 0xb81   : > { %8329 = vst.msk [vmem:[#allocation2 + $0x99] sm:$0xff] %vm387_vm0, %v8278_v53  ;;  %8330 = vst.msk [vmem:[#allocation2 + $0xa9] sm:$0xff] %vm387_vm0, %v8279_v17  ;;  %v8294_v19 = vadd.f32 %v8262_v32, %v18443_v28  ;;  %v8295_v29 = vadd.f32 %v8263_v49, %v18444_v26  ;;  %v8296_v18 = vadd.f32 %v8264_v51, %v18445_v16  ;;  %v8303_v14 = vld [vmem:[%s18246_s9 + $0x20] sm:$0xff]  ;;  %v8304_v45 = vld [vmem:[%s18246_s9 + $0x28] sm:$0xff] }
 0xb82   : > { %8331 = vst.msk [vmem:[#allocation2 + $0xb1] sm:$0xff] %vm387_vm0, %v8280_v44  ;;  %8332 = vst.msk [vmem:[#allocation2 + $0xc1] sm:$0xff] %vm387_vm0, %v8281_v57  ;;  %v8297_v2 = vadd.f32 %v8265_v30, %v18446_v60  ;;  %v8298_v34 = vadd.f32 %v8266_v27, %v18447_v43  ;;  %v10582_v32 = vpack.c.bf16 %v8300_v15, %v8299_v63  ;;  %v8384_v51 = vld [vmem:[#allocation2 + $0x19] sm:$0xff]  ;;  %v8309_v28 = vld [vmem:[%s18246_s9 + $0x50] sm:$0xff] }
 0xb83   : > { %8333 = vst.msk [vmem:[#allocation2 + $0xc9] sm:$0xff] %vm387_vm0, %v8282_v7  ;;  %8334 = vst.msk [vmem:[#allocation2 + $0xd9] sm:$0xff] %vm387_vm0, %v8283_v59  ;;  %v8386_v22 = vld [vmem:[#allocation2 + $0x31] sm:$0xff]  ;;  %v8385_v30 = vld [vmem:[#allocation2 + $0x21] sm:$0xff]  ;;  %v10585_v1 = vpack.c.bf16 %v8302_v39, %v8301_v58  ;;  %v10588_v53 = vpack.c.bf16 %v8304_v45, %v8303_v14 }
 0xb84   : > { %8335 = vst.msk [vmem:[#allocation2 + $0xe1] sm:$0xff] %vm387_vm0, %v8284_v33  ;;  %8336 = vst.msk [vmem:[#allocation2 + $0xf1] sm:$0xff] %vm387_vm0, %v8285_v25  ;;  %v17388_v38 = vld [vmem:[#allocation2 + $0x32] sm:$0xff]  ;;  %v12864_v27 = vpack.i.bf16 %v8385_v30, %v8384_v51  ;;  %10583 = vmatpush1.bf16.msra.mxu0 %v10582_v32  ;;  %v8388_v40 = vld [vmem:[#allocation2 + $0x49] sm:$0xff] }
 0xb85   : > { %8337 = vst.msk [vmem:[#allocation2 + $0xf9] sm:$0xff] %vm387_vm0, %v8286_v41  ;;  %8338 = vst.msk [vmem:[#allocation2 + $0x109] sm:$0xff] %vm387_vm0, %v8287_v6  ;;  %v8387_v10 = vld [vmem:[#allocation2 + $0x39] sm:$0xff]  ;;  %10397 = vmatprep.mubr.msk.f32.mxu0 %vm387_vm0, %v17388_v38  ;;  %v8390_v8 = vld [vmem:[#allocation2 + $0x61] sm:$0xff]  ;;  %10584 = vmatprep.subr.bf16.mxu0 %v18375_v55 }
 0xb86   : > { %8339 = vst.msk [vmem:[#allocation2 + $0x111] sm:$0xff] %vm387_vm0, %v8288_v61  ;;  %8340 = vst.msk [vmem:[#allocation2 + $0x121] sm:$0xff] %vm387_vm0, %v8289_v50  ;;  %v17392_v49 = vpack.i.bf16 %v8387_v10, %v8386_v22  ;;  %v8391_v37 = vld [vmem:[#allocation2 + $0x69] sm:$0xff]  ;;  %v8389_v23 = vld [vmem:[#allocation2 + $0x51] sm:$0xff]  ;;  %12865 = vrot.lane.b32.xlu1 %v12864_v27, %s13434_s22 }
 0xb87   : > { %8341 = vst.msk [vmem:[#allocation2 + $0x129] sm:$0xff] %vm387_vm0, %v8290_v47  ;;  %8342 = vst.msk [vmem:[#allocation2 + $0x139] sm:$0xff] %vm387_vm0, %v8291_v12  ;;  %v17404_v31 = vpack.i.bf16 %v8391_v37, %v8390_v8  ;;  %v17406_v35 = vpack.i.bf16 %v8389_v23, %v8388_v40  ;;  %v8394_v62 = vld [vmem:[#allocation2 + $0x91] sm:$0xff]  ;;  %v8392_v17 = vld [vmem:[#allocation2 + $0x79] sm:$0xff] }
 0xb88   : > { %8343 = vst.msk [vmem:[#allocation2 + $0x141] sm:$0xff] %vm387_vm0, %v8292_v21  ;;  %8344 = vst.msk [vmem:[#allocation2 + $0x151] sm:$0xff] %vm387_vm0, %v8293_v4  ;;  %12870 = vrot.lane.b32.xlu0 %v17392_v49, %s13434_s22  ;;  %v8395_v56 = vld [vmem:[#allocation2 + $0x99] sm:$0xff]  ;;  %10586 = vmatpush1.bf16.msra.mxu0 %v10585_v1  ;;  %v8393_v48 = vld [vmem:[#allocation2 + $0x81] sm:$0xff] }
 0xb89   : > { %8345 = vst.msk [vmem:[#allocation2 + $0x159] sm:$0xff] %vm387_vm0, %v8294_v19  ;;  %8346 = vst.msk [vmem:[#allocation2 + $0x169] sm:$0xff] %vm387_vm0, %v8295_v29  ;;  %10587 = vmatprep.subr.bf16.mxu0 %v18375_v55  ;;  %v17413_v44 = vpack.i.bf16 %v8395_v56, %v8394_v62  ;;  %v17415_v46 = vpack.i.bf16 %v8393_v48, %v8392_v17  ;;  %v8398_v57 = vld [vmem:[#allocation2 + $0xc1] sm:$0xff]  ;;  %v8396_v7 = vld [vmem:[#allocation2 + $0xa9] sm:$0xff] }
 0xb8a   : > { %8347 = vst.msk [vmem:[#allocation2 + $0x171] sm:$0xff] %vm387_vm0, %v8296_v18  ;;  %8348 = vst.msk [vmem:[#allocation2 + $0x181] sm:$0xff] %vm387_vm0, %v8297_v2  ;;  %12875 = vrot.lane.b32.xlu1 %v17406_v35, %s13434_s22  ;;  %v8399_v11 = vld [vmem:[#allocation2 + $0xc9] sm:$0xff]  ;;  %v8397_v42 = vld [vmem:[#allocation2 + $0xb1] sm:$0xff] }
 0xb8b   : > { %8349 = vst.msk [vmem:[#allocation2 + $0x189] sm:$0xff] %vm387_vm0, %v8298_v34  ;;  %v17422_v59 = vpack.i.bf16 %v8399_v11, %v8398_v57  ;;  %v17424_v52 = vpack.i.bf16 %v8397_v42, %v8396_v7  ;;  %v8402_v33 = vld [vmem:[#allocation2 + $0xf1] sm:$0xff]  ;;  %v8400_v25 = vld [vmem:[#allocation2 + $0xd9] sm:$0xff]  ;;  %v8401_v0 = vld [vmem:[#allocation2 + $0xe1] sm:$0xff] }
 0xb8c   : > { %12880 = vrot.lane.b32.xlu0 %v17404_v31, %s13434_s22  ;;  %10589 = vmatpush1.bf16.msra.mxu0 %v10588_v53  ;;  %v8403_v9 = vld [vmem:[#allocation2 + $0xf9] sm:$0xff]  ;;  %v17432_v24 = vpack.i.bf16 %v8401_v0, %v8400_v25  ;;  %v8305_v61 = vld [vmem:[%s18246_s9 + $0x30] sm:$0xff]  ;;  %v8308_v47 = vld [vmem:[%s18246_s9 + $0x48] sm:$0xff] }
 0xb8d   : > { %10590 = vmatprep.subr.bf16.mxu0 %v18375_v55  ;;  %v17430_v41 = vpack.i.bf16 %v8403_v9, %v8402_v33  ;;  %v17434_v6 = vld [vmem:[#allocation2 + $0x18] sm:$0xff]  ;;  %v17436_v20 = vld [vmem:[#allocation2 + $0x20] sm:$0xff]  ;;  %v17456_v21 = vld [vmem:[#allocation2 + $0x30] sm:$0xff] }
 0xb8e   : > { %12885 = vrot.lane.b32.xlu1 %v17415_v46, %s13434_s22  ;;  %v8306_v36 = vld [vmem:[%s18246_s9 + $0x38] sm:$0xff]  ;;  %v8307_v54 = vld [vmem:[%s18246_s9 + $0x40] sm:$0xff]  ;;  %v12914_v3 = vpack.i.bf16 %v17436_v20, %v17434_v6  ;;  %v8312_v16 = vld [vmem:[%s18246_s9 + $0x68] sm:$0xff] }
 0xb8f   : > { %v10591_v50 = vpack.c.bf16 %v8306_v36, %v8305_v61  ;;  %v8510_v12 = vld [vmem:[#allocation2 + $0x1a] sm:$0xff]  ;;  %v8511_v13 = vld [vmem:[#allocation2 + $0x22] sm:$0xff]  ;;  %v10594_v5 = vpack.c.bf16 %v8308_v47, %v8307_v54  ;;  %v8313_v60 = vld [vmem:[%s18246_s9 + $0x70] sm:$0xff] }
 0xb90   : > { %12890 = vrot.lane.b32.xlu0 %v17413_v44, %s13434_s22  ;;  %v17459_v4 = vld [vmem:[#allocation2 + $0x38] sm:$0xff]  ;;  %v12924_v63 = vpack.i.bf16 %v8511_v13, %v8510_v12  ;;  %v8311_v29 = vld [vmem:[%s18246_s9 + $0x60] sm:$0xff]  ;;  %v17492_v34 = vld [vmem:[#allocation2 + $0x48] sm:$0xff] }
 0xb91   : > { %10592 = vmatpush1.bf16.msra.mxu0 %v10591_v50  ;;  %v8310_v19 = vld [vmem:[%s18246_s9 + $0x58] sm:$0xff]  ;;  %v12929_v15 = vpack.i.bf16 %v17459_v4, %v17456_v21  ;;  %v10600_v18 = vpack.c.bf16 %v8312_v16, %v8311_v29  ;;  %v17495_v39 = vld [vmem:[#allocation2 + $0x50] sm:$0xff]  ;;  %v8315_v22 = vld [vmem:[%s18246_s9 + $0x80] sm:$0xff]  ;;  %v17607_v50 = vpop.permute.xlu0 %12855 }
 0xb92   : > { %12895 = vrot.lane.b32.xlu1 %v17424_v52, %s13434_s22  ;;  %10593 = vmatprep.subr.bf16.mxu0 %v18375_v55  ;;  %v10597_v26 = vpack.c.bf16 %v8310_v19, %v8309_v28  ;;  %v8314_v2 = vld [vmem:[%s18246_s9 + $0x78] sm:$0xff]  ;;  %v8316_v10 = vld [vmem:[%s18246_s9 + $0x88] sm:$0xff]  ;;  %v12959_v51 = vpack.i.bf16 %v17495_v39, %v17492_v34  ;;  %v17543_v23 = vld [vmem:[#allocation2 + $0x80] sm:$0xff]  ;;  %v12861_v28 = vpop.permute.xlu1 %12860 }
 0xb93   : > { %v17490_v43 = vld [vmem:[#allocation2 + $0x3a] sm:$0xff]  ;;  %v10603_v58 = vpack.c.bf16 %v8314_v2, %v8313_v60  ;;  %v10606_v30 = vpack.c.bf16 %v8316_v10, %v8315_v22  ;;  %v17523_v8 = vld [vmem:[#allocation2 + $0x68] sm:$0xff]  ;;  %v17576_v57 = vld [vmem:[#allocation2 + $0x92] sm:$0xff] }
 0xb94   : > { %12900 = vrot.lane.b32.xlu0 %v17422_v59, %s13434_s22  ;;  %v12954_v32 = vpack.i.bf16 %v17490_v43, %v17388_v38  ;;  %v17518_v38 = vld [vmem:[#allocation2 + $0x52] sm:$0xff]  ;;  %v17536_v1 = vld [vmem:[#allocation2 + $0x62] sm:$0xff]  ;;  %v17538_v14 = vld [vmem:[#allocation2 + $0x6a] sm:$0xff] }
 0xb95   : > { %10595 = vmatpush1.bf16.msra.mxu0 %v10594_v5  ;;  %v17541_v40 = vld [vmem:[#allocation2 + $0x78] sm:$0xff]  ;;  %v13014_v45 = vpack.i.bf16 %v17538_v14, %v17536_v1  ;;  %v17558_v56 = vld [vmem:[#allocation2 + $0x82] sm:$0xff]  ;;  %v17581_v7 = vld [vmem:[#allocation2 + $0xb0] sm:$0xff]  ;;  %v17619_v5 = vpop.permute.xlu0 %9370 }
 0xb96   : > { %12905 = vrot.lane.b32.xlu1 %v17432_v24, %s13434_s22  ;;  %10596 = vmatprep.subr.bf16.mxu0 %v18375_v55  ;;  %v17556_v62 = vld [vmem:[#allocation2 + $0x7a] sm:$0xff]  ;;  %v8522_v9 = vld [vmem:[#allocation2 + $0xaa] sm:$0xff]  ;;  %v8523_v25 = vld [vmem:[#allocation2 + $0xb2] sm:$0xff]  ;;  %18448 = vst [vmem:[#allocation35_spill] sm:$0xff] %v17619_v5 }
 0xb97   : > { %v17563_v53 = vld [vmem:[#allocation2 + $0x98] sm:$0xff]  ;;  %v13044_v17 = vpack.i.bf16 %v17558_v56, %v17556_v62  ;;  %v17594_v0 = vld [vmem:[#allocation2 + $0xc0] sm:$0xff]  ;;  %v13104_v61 = vpack.i.bf16 %v8523_v25, %v8522_v9  ;;  %v8525_v47 = vld [vmem:[#allocation2 + $0xca] sm:$0xff]  ;;  %v12862_v9 = vunpack.i.l.bf16 %v12861_v28  ;;  %v12858_v25 = vunpack.i.h.bf16 %v17607_v50 }
 0xb98   : > { %12910 = vrot.lane.b32.xlu0 %v17430_v41, %s13434_s22  ;;  %v8521_v11 = vld [vmem:[#allocation2 + $0x9a] sm:$0xff]  ;;  %v8524_v54 = vld [vmem:[#allocation2 + $0xc2] sm:$0xff] }
 0xb99   : > { %10598 = vmatpush1.bf16.msra.mxu0 %v10597_v26  ;;  %v13074_v42 = vpack.i.bf16 %v8521_v11, %v17576_v57  ;;  %v13134_v12 = vpack.i.bf16 %v8525_v47, %v8524_v54  ;;  %v8558_v26 = vld [vmem:[#allocation2 + $0xf0] sm:$0xff]  ;;  %v8559_v29 = vld [vmem:[#allocation2 + $0xf8] sm:$0xff] }
 0xb9a   : > { %12920 = vrot.lane.b32.xlu1 %v12864_v27, %s13438_s24  ;;  %10599 = vmatprep.subr.bf16.mxu0 %v18375_v55  ;;  %v17521_v27 = vld [vmem:[#allocation2 + $0x60] sm:$0xff]  ;;  %v13169_v2 = vpack.i.bf16 %v8559_v29, %v8558_v26 }
 0xb9b   : > { %v12989_v37 = vpack.i.bf16 %v17523_v8, %v17521_v27 }
 0xb9c   : > { %12915 = vrot.lane.b32.xlu0 %v12914_v3, %s13436_s14  ;;  %v17612_v3 = vld [vmem:[#allocation2 + $0xe0] sm:$0xff] }
 0xb9d   : > { %10601 = vmatpush1.bf16.msra.mxu0 %v10600_v18 }
 0xb9e   : > { %12930 = vrot.lane.b32.xlu1 %v12929_v15, %s13440_s26  ;;  %10602 = vmatprep.subr.bf16.mxu0 %v18375_v55 }
 0xba0   : > { %12925 = vrot.lane.b32.xlu0 %v12924_v63, %s13437_s16 }
 0xba1   : > { %10604 = vmatpush1.bf16.msra.mxu0 %v10603_v58 }
 0xba2   : > { %12940 = vrot.lane.b32.xlu1 %v12924_v63, %s13435_s28  ;;  %10605 = vmatprep.subr.bf16.mxu0 %v18375_v55 }
 0xba4   : > { %12935 = vrot.lane.b32.xlu0 %v17392_v49, %s13439_s25 }
 0xba5   : > { %10607 = vmatpush1.bf16.msra.mxu0 %v10606_v30  ;;  %v8560_v30 = vld [vmem:[#allocation2 + $0x108] sm:$0xff] }
 0xba6   : > { %12950 = vrot.lane.b32.xlu1 %v17392_v49, %s13438_s24  ;;  %v17516_v49 = vld [vmem:[#allocation2 + $0x4a] sm:$0xff] }
 0xba7   : > { %v12984_v55 = vpack.i.bf16 %v17518_v38, %v17516_v49 }
 0xba8   : > { %12945 = vrot.lane.b32.xlu0 %v12929_v15, %s13436_s14  ;;  %v8527_v15 = vld [vmem:[#allocation2 + $0xe2] sm:$0xff] }
 0xbaa   : > { %12960 = vrot.lane.b32.xlu1 %v12959_v51, %s13440_s26 }
 0xbac   : > { %12955 = vrot.lane.b32.xlu0 %v12954_v32, %s13437_s16 }
 0xbae   : > { %12970 = vrot.lane.b32.xlu1 %v12954_v32, %s13435_s28  ;;  %v17649_v32 = vld [vmem:[#allocation2 + $0xf2] sm:$0xff] }
 0xbb0   : > { %12965 = vrot.lane.b32.xlu0 %v17406_v35, %s13439_s25 }
 0xbb2   : > { %12980 = vrot.lane.b32.xlu1 %v17406_v35, %s13438_s24  ;;  %v13019_v35 = vpack.i.bf16 %v17543_v23, %v17541_v40 }
 0xbb4   : > { %12975 = vrot.lane.b32.xlu0 %v12959_v51, %s13436_s14  ;;  %v8529_v51 = vld [vmem:[#allocation2 + $0xfa] sm:$0xff] }
 0xbb6   : > { %12990 = vrot.lane.b32.xlu1 %v12989_v37, %s13440_s26 }
 0xbb8   : > { %12985 = vrot.lane.b32.xlu0 %v12984_v55, %s13437_s16 }
 0xbba   : > { %13000 = vrot.lane.b32.xlu1 %v12984_v55, %s13435_s28  ;;  %v8561_v55 = vld [vmem:[#allocation2 + $0x110] sm:$0xff] }
 0xbbb   : > { %v13199_v11 = vpack.i.bf16 %v8561_v55, %v8560_v30  ;;  %v17669_v30 = vld [vmem:[#allocation2 + $0x10a] sm:$0xff]  ;;  %v17671_v55 = vld [vmem:[#allocation2 + $0x112] sm:$0xff] }
 0xbbc   : > { %12995 = vrot.lane.b32.xlu0 %v17404_v31, %s13439_s25 }
 0xbbe   : > { %13010 = vrot.lane.b32.xlu1 %v17404_v31, %s13438_s24  ;;  %v17561_v31 = vld [vmem:[#allocation2 + $0x90] sm:$0xff] }
 0xbbf   : > { %v13049_v48 = vpack.i.bf16 %v17563_v53, %v17561_v31 }
 0xbc0   : > { %13005 = vrot.lane.b32.xlu0 %v12989_v37, %s13436_s14  ;;  %v12857_v37 = vunpack.i.l.bf16 %v17607_v50 }
 0xbc2   : > { %13020 = vrot.lane.b32.xlu1 %v13019_v35, %s13440_s26 }
 0xbc4   : > { %13015 = vrot.lane.b32.xlu0 %v13014_v45, %s13437_s16 }
 0xbc6   : > { %13030 = vrot.lane.b32.xlu1 %v13014_v45, %s13435_s28  ;;  %v8350_v45 = vld [vmem:[#allocation2] sm:$0xff] }
 0xbc8   : > { %13025 = vrot.lane.b32.xlu0 %v17415_v46, %s13439_s25 }
 0xbca   : > { %13040 = vrot.lane.b32.xlu1 %v17415_v46, %s13438_s24  ;;  %v17579_v46 = vld [vmem:[#allocation2 + $0xa8] sm:$0xff] }
 0xbcb   : > { %v13079_v33 = vpack.i.bf16 %v17581_v7, %v17579_v46 }
 0xbcc   : > { %13035 = vrot.lane.b32.xlu0 %v13019_v35, %s13436_s14 }
 0xbce   : > { %13050 = vrot.lane.b32.xlu1 %v13049_v48, %s13440_s26 }
 0xbd0   : > { %13045 = vrot.lane.b32.xlu0 %v13044_v17, %s13437_s16 }
 0xbd2   : > { %13060 = vrot.lane.b32.xlu1 %v13044_v17, %s13435_s28  ;;  %v13194_v17 = vpack.i.bf16 %v8529_v51, %v17649_v32 }
 0xbd4   : > { %13055 = vrot.lane.b32.xlu0 %v17413_v44, %s13439_s25 }
 0xbd6   : > { %13070 = vrot.lane.b32.xlu1 %v17413_v44, %s13438_s24  ;;  %v17596_v44 = vld [vmem:[#allocation2 + $0xc8] sm:$0xff] }
 0xbd7   : > { %v13109_v36 = vpack.i.bf16 %v17596_v44, %v17594_v0 }
 0xbd8   : > { %13065 = vrot.lane.b32.xlu0 %v13049_v48, %s13436_s14 }
 0xbda   : > { %13080 = vrot.lane.b32.xlu1 %v13079_v33, %s13440_s26 }
 0xbdc   : > { %13075 = vrot.lane.b32.xlu0 %v13074_v42, %s13437_s16 }
 0xbde   : > { %13090 = vrot.lane.b32.xlu1 %v13074_v42, %s13435_s28  ;;  %v8592_v42 = vld [vmem:[#allocation2 + $0x109] sm:$0xff] }
 0xbe0   : > { %13085 = vrot.lane.b32.xlu0 %v17424_v52, %s13439_s25 }
 0xbe2   : > { %13100 = vrot.lane.b32.xlu1 %v17424_v52, %s13438_s24  ;;  %v17610_v52 = vld [vmem:[#allocation2 + $0xd8] sm:$0xff] }
 0xbe3   : > { %v13139_v13 = vpack.i.bf16 %v17612_v3, %v17610_v52 }
 0xbe4   : > { %13095 = vrot.lane.b32.xlu0 %v13079_v33, %s13436_s14  ;;  %v8593_v33 = vld [vmem:[#allocation2 + $0x111] sm:$0xff] }
 0xbe5   : > { %v13204_v54 = vpack.i.bf16 %v8593_v33, %v8592_v42  ;;  %v8562_v33 = vld [vmem:[#allocation2 + $0x120] sm:$0xff] }
 0xbe6   : > { %13110 = vrot.lane.b32.xlu1 %v13109_v36, %s13440_s26 }
 0xbe8   : > { %13105 = vrot.lane.b32.xlu0 %v13104_v61, %s13437_s16 }
 0xbea   : > { %13120 = vrot.lane.b32.xlu1 %v13104_v61, %s13435_s28  ;;  %v9534_v61 = vsel %vm387_vm0, %v8350_v45, %v12857_v37 }
 0xbec   : > { %13115 = vrot.lane.b32.xlu0 %v17422_v59, %s13439_s25 }
 0xbee   : > { %13130 = vrot.lane.b32.xlu1 %v17422_v59, %s13438_s24  ;;  %v8526_v59 = vld [vmem:[#allocation2 + $0xda] sm:$0xff] }
 0xbef   : > { %v13164_v18 = vpack.i.bf16 %v8527_v15, %v8526_v59  ;;  %v9566_v59 = vsel %vm1744_vm2, %v9534_v61, %v12862_v9  ;;  %v8563_v9 = vld [vmem:[#allocation2 + $0x128] sm:$0xff] }
 0xbf0   : > { %13125 = vrot.lane.b32.xlu0 %v13109_v36, %s13436_s14 }
 0xbf2   : > { %13140 = vrot.lane.b32.xlu1 %v13139_v13, %s13440_s26 }
 0xbf4   : > { %13135 = vrot.lane.b32.xlu0 %v13134_v12, %s13437_s16 }
 0xbf6   : > { %13150 = vrot.lane.b32.xlu1 %v13134_v12, %s13435_s28 }
 0xbf8   : > { %13145 = vrot.lane.b32.xlu0 %v17432_v24, %s13439_s25  ;;  %v17627_v63 = vpop.permute.xlu1 %12865 }
 0xbfa   : > { %v17625_v19 = vpop.permute.xlu0 %12870  ;;  %13160 = vrot.lane.b32.xlu1 %v17432_v24, %s13438_s24 }
 0xbfc   : > { %13155 = vrot.lane.b32.xlu0 %v13139_v13, %s13436_s14  ;;  %v17634_v60 = vpop.permute.xlu1 %12875  ;;  %v12863_v13 = vunpack.i.h.bf16 %v12861_v28 }
 0xbfe   : > { %v17632_v16 = vpop.permute.xlu0 %12880  ;;  %13170 = vrot.lane.b32.xlu1 %v13169_v2, %s13440_s26 }
 0xc00   : > { %13165 = vrot.lane.b32.xlu0 %v13164_v18, %s13437_s16  ;;  %v17640_v22 = vpop.permute.xlu1 %12885 }
 0xc02   : > { %v17638_v58 = vpop.permute.xlu0 %12890  ;;  %13180 = vrot.lane.b32.xlu1 %v13164_v18, %s13435_s28 }
 0xc04   : > { %13175 = vrot.lane.b32.xlu0 %v17430_v41, %s13439_s25  ;;  %v17647_v10 = vpop.permute.xlu1 %12895 }
 0xc06   : > { %v17645_v24 = vpop.permute.xlu0 %12900  ;;  %13190 = vrot.lane.b32.xlu1 %v17430_v41, %s13438_s24  ;;  %v8351_v41 = vld [vmem:[#allocation2 + $0x8] sm:$0xff] }
 0xc07   : > { %v9535_v26 = vsel %vm387_vm0, %v8351_v41, %v12858_v25 }
 0xc08   : > { %13185 = vrot.lane.b32.xlu0 %v13169_v2, %s13436_s14  ;;  %v17658_v48 = vpop.permute.xlu1 %12905  ;;  %v9567_v28 = vsel %vm1744_vm2, %v9535_v26, %v12863_v13 }
 0xc0a   : > { %v17655_v35 = vpop.permute.xlu0 %12910  ;;  %13200 = vrot.lane.b32.xlu1 %v13199_v11, %s13440_s26 }
 0xc0c   : > { %13195 = vrot.lane.b32.xlu0 %v13194_v17, %s13437_s16  ;;  %v12921_v12 = vpop.permute.xlu1 %12920 }
 0xc0d   : > { %v12922_v15 = vunpack.i.l.bf16 %v12921_v12  ;;  %v12923_v37 = vunpack.i.h.bf16 %v12921_v12 }
 0xc0e   : > { %v12916_v36 = vpop.permute.xlu0 %12915  ;;  %13210 = vrot.lane.b32.xlu1 %v13194_v17, %s13435_s28 }
 0xc0f   : > { %v12917_v47 = vunpack.i.l.bf16 %v12916_v36  ;;  %v12918_v29 = vunpack.i.h.bf16 %v12916_v36  ;;  %v13224_v36 = vpack.i.bf16 %v17671_v55, %v17669_v30 }
 0xc10   : > { %13205 = vrot.lane.b32.xlu0 %v13204_v54, %s13439_s25  ;;  %v12931_v51 = vpop.permute.xlu1 %12930 }
 0xc11   : > { %v9598_v50 = vsel %vm1777_vm3, %v9566_v59, %v12917_v47  ;;  %v12932_v42 = vunpack.i.l.bf16 %v12931_v51  ;;  %v9599_v25 = vsel %vm1777_vm3, %v9567_v28, %v12918_v29  ;;  %v12867_v47 = vunpack.i.l.bf16 %v17627_v63 }
 0xc12   : > { %v12926_v18 = vpop.permute.xlu0 %12925  ;;  %v9630_v45 = vsel %vm1810_vm4, %v9598_v50, %v12922_v15  ;;  %13220 = vrot.lane.b32.xlu1 %v13204_v54, %s13438_s24  ;;  %v13229_v59 = vpack.i.bf16 %v8563_v9, %v8562_v33  ;;  %v8594_v15 = vld [vmem:[#allocation2 + $0x121] sm:$0xff]  ;;  %v9631_v26 = vsel %vm1810_vm4, %v9599_v25, %v12923_v37  ;;  %v12933_v50 = vunpack.i.h.bf16 %v12931_v51 }
 0xc13   : > { %v12927_v2 = vunpack.i.l.bf16 %v12926_v18  ;;  %v12928_v17 = vunpack.i.h.bf16 %v12926_v18  ;;  %v12868_v9 = vunpack.i.h.bf16 %v17627_v63  ;;  %v9536_v51 = vsel %vm387_vm0, %v17434_v6, %v12867_v47 }
 0xc14   : > { %13215 = vrot.lane.b32.xlu0 %v13199_v11, %s13436_s14  ;;  %v12941_v13 = vpop.permute.xlu1 %12940  ;;  %v8595_v11 = vld [vmem:[#allocation2 + $0x129] sm:$0xff] }
 0xc15   : > { %v9662_v61 = vsel %vm1843_vm5, %v9630_v45, %v12927_v2  ;;  %v12942_v29 = vunpack.i.l.bf16 %v12941_v13  ;;  %v9663_v45 = vsel %vm1843_vm5, %v9631_v26, %v12928_v17  ;;  %v17688_v33 = vpack.i.bf16 %v8595_v11, %v8594_v15 }
 0xc16   : > { %v12936_v41 = vpop.permute.xlu0 %12935  ;;  %v9694_v18 = vsel %vm1876_vm6, %v9662_v61, %v12932_v42  ;;  %13230 = vrot.lane.b32.xlu1 %v13229_v59, %s13440_s26  ;;  %v12943_v42 = vunpack.i.h.bf16 %v12941_v13  ;;  %v9695_v17 = vsel %vm1876_vm6, %v9663_v45, %v12933_v50 }
 0xc17   : > { %v12937_v12 = vunpack.i.l.bf16 %v12936_v41  ;;  %v12938_v2 = vunpack.i.h.bf16 %v12936_v41  ;;  %v9568_v61 = vsel %vm1744_vm2, %v9536_v51, %v12942_v29  ;;  %v17711_v29 = vld [vmem:[#allocation2 + $0x12a] sm:$0xff] }
 0xc18   : > { %13225 = vrot.lane.b32.xlu0 %v13224_v36, %s13437_s16  ;;  %v12951_v25 = vpop.permute.xlu1 %12950 }
 0xc19   : > { %v9726_v28 = vsel %vm1909_vm7, %v9694_v18, %v12937_v12  ;;  %v12952_v41 = vunpack.i.l.bf16 %v12951_v25  ;;  %v9727_v6 = vsel %vm1909_vm7, %v9695_v17, %v12938_v2  ;;  %v12953_v26 = vunpack.i.h.bf16 %v12951_v25  ;;  %v8597_v17 = vld [vmem:[#allocation2 + $0x141] sm:$0xff] }
 0xc1a   : > { %v12946_v5 = vpop.permute.xlu0 %12945  ;;  %9925 = vmatmul.mubr.f32.vlgmr.msra.gmra.mrb[92].mxu0 %v9726_v28  ;;  %13240 = vrot.lane.b32.xlu1 %v13204_v54, %s13434_s22  ;;  %v17709_v54 = vld [vmem:[#allocation2 + $0x122] sm:$0xff]  ;;  %v12872_v28 = vunpack.i.l.bf16 %v17625_v19 }
 0xc1b   : > { %v12947_v37 = vunpack.i.l.bf16 %v12946_v5  ;;  %10398 = vmatprep.mubr.msk.f32.mxu0 %vm387_vm0, %v17490_v43  ;;  %v12948_v12 = vunpack.i.h.bf16 %v12946_v5  ;;  %v9537_v43 = vsel %vm387_vm0, %v17436_v20, %v12868_v9  ;;  %v13259_v51 = vpack.i.bf16 %v17711_v29, %v17709_v54 }
 0xc1c   : > { %13235 = vrot.lane.b32.xlu0 %v17688_v33, %s13439_s25  ;;  %v12961_v15 = vpop.permute.xlu1 %12960  ;;  %v9569_v11 = vsel %vm1744_vm2, %v9537_v43, %v12943_v42 }
 0xc1d   : > { %v9600_v63 = vsel %vm1777_vm3, %v9568_v61, %v12947_v37  ;;  %v12962_v50 = vunpack.i.l.bf16 %v12961_v15  ;;  %v9601_v18 = vsel %vm1777_vm3, %v9569_v11, %v12948_v12  ;;  %v8565_v37 = vld [vmem:[#allocation2 + $0x140] sm:$0xff]  ;;  %v12963_v42 = vunpack.i.h.bf16 %v12961_v15 }
 0xc1e   : > { %v12956_v47 = vpop.permute.xlu0 %12955  ;;  %9930 = vmatmul.mubr.f32.gmra.mrb[94].mxu0 %v9727_v6  ;;  %v9632_v5 = vsel %vm1810_vm4, %v9600_v63, %v12952_v41  ;;  %13250 = vrot.lane.b32.xlu1 %v13229_v59, %s13436_s14  ;;  %v9633_v25 = vsel %vm1810_vm4, %v9601_v18, %v12953_v26  ;;  %v8596_v41 = vld [vmem:[#allocation2 + $0x139] sm:$0xff]  ;;  %v9538_v15 = vsel %vm387_vm0, %v17456_v21, %v12872_v28 }
 0xc1f   : > { %v12957_v13 = vunpack.i.l.bf16 %v12956_v47  ;;  %10399 = vmatprep.mubr.msk.f32.mxu0 %vm387_vm0, %v17516_v49  ;;  %v12958_v20 = vunpack.i.h.bf16 %v12956_v47 }
 0xc20   : > { %13245 = vrot.lane.b32.xlu0 %v13224_v36, %s13435_s28  ;;  %v12971_v9 = vpop.permute.xlu1 %12970  ;;  %v8564_v36 = vld [vmem:[#allocation2 + $0x138] sm:$0xff] }
 0xc21   : > { %v9664_v2 = vsel %vm1843_vm5, %v9632_v5, %v12957_v13  ;;  %v12972_v61 = vunpack.i.l.bf16 %v12971_v9  ;;  %v9665_v6 = vsel %vm1843_vm5, %v9633_v25, %v12958_v20  ;;  %v13264_v43 = vpack.i.bf16 %v8565_v37, %v8564_v36 }
 0xc22   : > { %v12966_v49 = vpop.permute.xlu0 %12965  ;;  %v9696_v59 = vsel %vm1876_vm6, %v9664_v2, %v12962_v50  ;;  %13260 = vrot.lane.b32.xlu1 %v13259_v51, %s13437_s16  ;;  %v12873_v13 = vunpack.i.h.bf16 %v17625_v19  ;;  %v17731_v5 = vpack.i.bf16 %v8597_v17, %v8596_v41  ;;  %v12973_v50 = vunpack.i.h.bf16 %v12971_v9 }
 0xc23   : > { %v12967_v45 = vunpack.i.l.bf16 %v12966_v49  ;;  %v12968_v12 = vunpack.i.h.bf16 %v12966_v49  ;;  %v9570_v18 = vsel %vm1744_vm2, %v9538_v15, %v12972_v61  ;;  %v9697_v20 = vsel %vm1876_vm6, %v9665_v6, %v12963_v42  ;;  %v17754_v6 = vld [vmem:[#allocation2 + $0x142] sm:$0xff] }
 0xc24   : > { %13255 = vrot.lane.b32.xlu0 %v17688_v33, %s13438_s24  ;;  %v12981_v26 = vpop.permute.xlu1 %12980  ;;  %v12877_v17 = vunpack.i.l.bf16 %v17634_v60 }
 0xc25   : > { %v9728_v63 = vsel %vm1909_vm7, %v9696_v59, %v12967_v45  ;;  %v12982_v2 = vunpack.i.l.bf16 %v12981_v26  ;;  %v9729_v21 = vsel %vm1909_vm7, %v9697_v20, %v12968_v12  ;;  %v12983_v37 = vunpack.i.h.bf16 %v12981_v26 }
 0xc26   : > { %v12976_v47 = vpop.permute.xlu0 %12975  ;;  %9935 = vmatmul.mubr.f32.gmra.mrb[96].mxu0 %v9728_v63  ;;  %13270 = vrot.lane.b32.xlu1 %v17731_v5, %s13439_s25  ;;  %v17752_v63 = vld [vmem:[#allocation2 + $0x13a] sm:$0xff] }
 0xc27   : > { %v12977_v11 = vunpack.i.l.bf16 %v12976_v47  ;;  %10400 = vmatprep.mubr.msk.f32.mxu0 %vm387_vm0, %v17518_v38  ;;  %v12978_v49 = vunpack.i.h.bf16 %v12976_v47  ;;  %v9539_v38 = vsel %vm387_vm0, %v17459_v4, %v12873_v13  ;;  %v13294_v20 = vpack.i.bf16 %v17754_v6, %v17752_v63 }
 0xc28   : > { %13265 = vrot.lane.b32.xlu0 %v13264_v43, %s13440_s26  ;;  %v12991_v9 = vpop.permute.xlu1 %12990  ;;  %v9571_v36 = vsel %vm1744_vm2, %v9539_v38, %v12973_v50  ;;  %v8598_v38 = vld [vmem:[#allocation2 + $0x151] sm:$0xff] }
 0xc29   : > { %v9602_v19 = vsel %vm1777_vm3, %v9570_v18, %v12977_v11  ;;  %v12992_v42 = vunpack.i.l.bf16 %v12991_v9  ;;  %v9603_v61 = vsel %vm1777_vm3, %v9571_v36, %v12978_v49  ;;  %v12993_v13 = vunpack.i.h.bf16 %v12991_v9  ;;  %v17761_v11 = vld [vmem:[#allocation2 + $0x158] sm:$0xff] }
 0xc2a   : > { %v12986_v28 = vpop.permute.xlu0 %12985  ;;  %9940 = vmatmul.mubr.f32.gmra.mrb[98].mxu0 %v9729_v21  ;;  %v9634_v25 = vsel %vm1810_vm4, %v9602_v19, %v12982_v2  ;;  %13280 = vrot.lane.b32.xlu1 %v13259_v51, %s13435_s28  ;;  %v9635_v47 = vsel %vm1810_vm4, %v9603_v61, %v12983_v37  ;;  %v17759_v51 = vld [vmem:[#allocation2 + $0x150] sm:$0xff]  ;;  %v9540_v49 = vsel %vm387_vm0, %v17492_v34, %v12877_v17 }
 0xc2b   : > { %v12987_v45 = vunpack.i.l.bf16 %v12986_v28  ;;  %10401 = vmatprep.mubr.msk.f32.mxu0 %vm387_vm0, %v17536_v1  ;;  %v12988_v59 = vunpack.i.h.bf16 %v12986_v28  ;;  %v13299_v28 = vpack.i.bf16 %v17761_v11, %v17759_v51 }
 0xc2c   : > { %13275 = vrot.lane.b32.xlu0 %v17688_v33, %s13434_s22  ;;  %v13001_v12 = vpop.permute.xlu1 %13000 }
 0xc2d   : > { %v9666_v4 = vsel %vm1843_vm5, %v9634_v25, %v12987_v45  ;;  %v13002_v33 = vunpack.i.l.bf16 %v13001_v12  ;;  %v9667_v18 = vsel %vm1843_vm5, %v9635_v47, %v12988_v59  ;;  %v8599_v45 = vld [vmem:[#allocation2 + $0x159] sm:$0xff]  ;;  %v13003_v9 = vunpack.i.h.bf16 %v13001_v12 }
 0xc2e   : > { %v12996_v41 = vpop.permute.xlu0 %12995  ;;  %v9698_v15 = vsel %vm1876_vm6, %v9666_v4, %v12992_v42  ;;  %13290 = vrot.lane.b32.xlu1 %v17731_v5, %s13438_s24  ;;  %v17782_v61 = vpack.i.bf16 %v8599_v45, %v8598_v38 }
 0xc2f   : > { %v12997_v1 = vunpack.i.l.bf16 %v12996_v41  ;;  %v12998_v26 = vunpack.i.h.bf16 %v12996_v41  ;;  %v9572_v36 = vsel %vm1744_vm2, %v9540_v49, %v13002_v33 }
 0xc30   : > { %13285 = vrot.lane.b32.xlu0 %v13264_v43, %s13436_s14  ;;  %v12878_v43 = vunpack.i.h.bf16 %v17634_v60  ;;  %v13011_v21 = vpop.permute.xlu1 %13010  ;;  %v9699_v60 = vsel %vm1876_vm6, %v9667_v18, %v12993_v13 }
 0xc31   : > { %v9730_v50 = vsel %vm1909_vm7, %v9698_v15, %v12997_v1  ;;  %v13012_v37 = vunpack.i.l.bf16 %v13011_v21  ;;  %v13013_v1 = vunpack.i.h.bf16 %v13011_v21  ;;  %v17802_v21 = vld [vmem:[#allocation2 + $0x15a] sm:$0xff] }
 0xc32   : > { %v13006_v2 = vpop.permute.xlu0 %13005  ;;  %9945 = vmatmul.mubr.f32.gmra.mrb[100].mxu0 %v9730_v50  ;;  %13300 = vrot.lane.b32.xlu1 %v13299_v28, %s13440_s26  ;;  %v9541_v59 = vsel %vm387_vm0, %v17495_v39, %v12878_v43 }
 0xc33   : > { %v13007_v19 = vunpack.i.l.bf16 %v13006_v2  ;;  %10402 = vmatprep.mubr.msk.f32.mxu0 %vm387_vm0, %v17538_v14  ;;  %v13008_v25 = vunpack.i.h.bf16 %v13006_v2  ;;  %v9731_v14 = vsel %vm1909_vm7, %v9699_v60, %v12998_v26  ;;  %v9573_v17 = vsel %vm1744_vm2, %v9541_v59, %v13003_v9 }
 0xc34   : > { %13295 = vrot.lane.b32.xlu0 %v13294_v20, %s13437_s16  ;;  %v13021_v41 = vpop.permute.xlu1 %13020 }
 0xc35   : > { %v9604_v34 = vsel %vm1777_vm3, %v9572_v36, %v13007_v19  ;;  %v13022_v47 = vunpack.i.l.bf16 %v13021_v41  ;;  %v9605_v13 = vsel %vm1777_vm3, %v9573_v17, %v13008_v25  ;;  %v13023_v2 = vunpack.i.h.bf16 %v13021_v41  ;;  %v17800_v19 = vld [vmem:[#allocation2 + $0x152] sm:$0xff] }
 0xc36   : > { %v13016_v42 = vpop.permute.xlu0 %13015  ;;  %9950 = vmatmul.mubr.f32.gmra.mrb[102].mxu0 %v9731_v14  ;;  %v9636_v12 = vsel %vm1810_vm4, %v9604_v34, %v13012_v37  ;;  %13310 = vrot.lane.b32.xlu1 %v17731_v5, %s13434_s22  ;;  %v9637_v18 = vsel %vm1810_vm4, %v9605_v13, %v13013_v1  ;;  %v12883_v36 = vunpack.i.h.bf16 %v17632_v16  ;;  %v13329_v25 = vpack.i.bf16 %v17802_v21, %v17800_v19  ;;  %v17816_v34 = vld [vmem:[#allocation2 + $0x170] sm:$0xff] }
 0xc37   : > { %v13017_v4 = vunpack.i.l.bf16 %v13016_v42  ;;  %10403 = vmatprep.mubr.msk.f32.mxu0 %vm387_vm0, %v17556_v62  ;;  %v13018_v33 = vunpack.i.h.bf16 %v13016_v42  ;;  %v12882_v62 = vunpack.i.l.bf16 %v17632_v16  ;;  %v8600_v16 = vld [vmem:[#allocation2 + $0x169] sm:$0xff] }
 0xc38   : > { %13305 = vrot.lane.b32.xlu0 %v17782_v61, %s13439_s25  ;;  %v13031_v50 = vpop.permute.xlu1 %13030 }
 0xc39   : > { %v9668_v39 = vsel %vm1843_vm5, %v9636_v12, %v13017_v4  ;;  %v13032_v43 = vunpack.i.l.bf16 %v13031_v50  ;;  %v9669_v45 = vsel %vm1843_vm5, %v9637_v18, %v13018_v33  ;;  %v13033_v14 = vunpack.i.h.bf16 %v13031_v50  ;;  %v8601_v4 = vld [vmem:[#allocation2 + $0x171] sm:$0xff] }
 0xc3a   : > { %v13026_v15 = vpop.permute.xlu0 %13025  ;;  %v9700_v49 = vsel %vm1876_vm6, %v9668_v39, %v13022_v47  ;;  %13320 = vrot.lane.b32.xlu1 %v13299_v28, %s13436_s14  ;;  %v17814_v28 = vld [vmem:[#allocation2 + $0x168] sm:$0xff]  ;;  %v9543_v47 = vsel %vm387_vm0, %v17523_v8, %v12883_v36  ;;  %v17831_v39 = vpack.i.bf16 %v8601_v4, %v8600_v16 }
 0xc3b   : > { %v13027_v26 = vunpack.i.l.bf16 %v13026_v15  ;;  %v13028_v5 = vunpack.i.h.bf16 %v13026_v15  ;;  %v13334_v12 = vpack.i.bf16 %v17816_v34, %v17814_v28  ;;  %v9575_v15 = vsel %vm1744_vm2, %v9543_v47, %v13033_v14  ;;  %v8571_v47 = vld [vmem:[#allocation2 + $0x188] sm:$0xff] }
 0xc3c   : > { %13315 = vrot.lane.b32.xlu0 %v13294_v20, %s13435_s28  ;;  %v9542_v20 = vsel %vm387_vm0, %v17521_v27, %v12882_v62  ;;  %v13041_v60 = vpop.permute.xlu1 %13040  ;;  %v9701_v27 = vsel %vm1876_vm6, %v9669_v45, %v13023_v2 }
 0xc3d   : > { %v9732_v38 = vsel %vm1909_vm7, %v9700_v49, %v13027_v26  ;;  %v9574_v42 = vsel %vm1744_vm2, %v9542_v20, %v13032_v43  ;;  %v13042_v59 = vunpack.i.l.bf16 %v13041_v60  ;;  %v9733_v17 = vsel %vm1909_vm7, %v9701_v27, %v13028_v5 }
 0xc3e   : > { %v13036_v9 = vpop.permute.xlu0 %13035  ;;  %9955 = vmatmul.mubr.f32.gmra.mrb[104].mxu0 %v9732_v38  ;;  %13330 = vrot.lane.b32.xlu1 %v13329_v25, %s13437_s16  ;;  %v13043_v62 = vunpack.i.h.bf16 %v13041_v60 }
 0xc3f   : > { %v13037_v37 = vunpack.i.l.bf16 %v13036_v9  ;;  %10404 = vmatprep.mubr.msk.f32.mxu0 %vm387_vm0, %v17558_v56  ;;  %v13038_v41 = vunpack.i.h.bf16 %v13036_v9 }
 0xc40   : > { %13325 = vrot.lane.b32.xlu0 %v17782_v61, %s13438_s24  ;;  %v13051_v33 = vpop.permute.xlu1 %13050 }
 0xc41   : > { %v9606_v56 = vsel %vm1777_vm3, %v9574_v42, %v13037_v37  ;;  %v13052_v50 = vunpack.i.l.bf16 %v13051_v33  ;;  %v9607_v18 = vsel %vm1777_vm3, %v9575_v15, %v13038_v41  ;;  %v13053_v45 = vunpack.i.h.bf16 %v13051_v33  ;;  %v8615_v42 = vld [vmem:[#allocation2 + $0x9a] sm:$0xff]  ;;  %v17854_v41 = vld [vmem:[#allocation2 + $0x172] sm:$0xff] }
 0xc42   : > { %v13046_v1 = vpop.permute.xlu0 %13045  ;;  %9960 = vmatmul.mubr.f32.gmra.mrb[106].mxu0 %v9733_v17  ;;  %v9638_v26 = vsel %vm1810_vm4, %v9606_v56, %v13042_v59  ;;  %13340 = vrot.lane.b32.xlu1 %v17831_v39, %s13439_s25  ;;  %v9639_v38 = vsel %vm1810_vm4, %v9607_v18, %v13043_v62  ;;  %v12888_v59 = vunpack.i.h.bf16 %v17640_v22  ;;  %v8616_v62 = vld [vmem:[#allocation2 + $0xaa] sm:$0xff] }
 0xc43   : > { %v13047_v13 = vunpack.i.l.bf16 %v13046_v1  ;;  %10405 = vmatprep.mubr.msk.f32.mxu0 %vm387_vm0, %v17576_v57  ;;  %v13048_v2 = vunpack.i.h.bf16 %v13046_v1  ;;  %v12887_v57 = vunpack.i.l.bf16 %v17640_v22  ;;  %v8570_v22 = vld [vmem:[#allocation2 + $0x180] sm:$0xff] }
 0xc44   : > { %13335 = vrot.lane.b32.xlu0 %v13334_v12, %s13440_s26  ;;  %v13061_v5 = vpop.permute.xlu1 %13060 }
 0xc45   : > { %v9670_v8 = vsel %vm1843_vm5, %v9638_v26, %v13047_v13  ;;  %v13062_v9 = vunpack.i.l.bf16 %v13061_v5  ;;  %v9671_v60 = vsel %vm1843_vm5, %v9639_v38, %v13048_v2  ;;  %v9544_v27 = vsel %vm387_vm0, %v17541_v40, %v12887_v57 }
 0xc46   : > { %v13056_v43 = vpop.permute.xlu0 %13055  ;;  %v9702_v36 = vsel %vm1876_vm6, %v9670_v8, %v13052_v50  ;;  %13350 = vrot.lane.b32.xlu1 %v13329_v25, %s13435_s28  ;;  %v13063_v25 = vunpack.i.h.bf16 %v13061_v5  ;;  %v9703_v1 = vsel %vm1876_vm6, %v9671_v60, %v13053_v45  ;;  %v13369_v2 = vpack.i.bf16 %v8571_v47, %v8570_v22  ;;  %v8602_v8 = vld [vmem:[#allocation2 + $0x181] sm:$0xff] }
 0xc47   : > { %v13057_v49 = vunpack.i.l.bf16 %v13056_v43  ;;  %v13058_v20 = vunpack.i.h.bf16 %v13056_v43  ;;  %v9576_v56 = vsel %vm1744_vm2, %v9544_v27, %v13062_v9  ;;  %v8603_v43 = vld [vmem:[#allocation2 + $0x189] sm:$0xff]  ;;  %v12893_v22 = vunpack.i.h.bf16 %v17638_v58 }
 0xc48   : > { %13345 = vrot.lane.b32.xlu0 %v17782_v61, %s13434_s22  ;;  %v13071_v4 = vpop.permute.xlu1 %13070  ;;  %v17852_v61 = vld [vmem:[#allocation2 + $0x16a] sm:$0xff] }
 0xc49   : > { %v9734_v37 = vsel %vm1909_vm7, %v9702_v36, %v13057_v49  ;;  %v13072_v17 = vunpack.i.l.bf16 %v13071_v4  ;;  %v9735_v33 = vsel %vm1909_vm7, %v9703_v1, %v13058_v20  ;;  %v13364_v26 = vpack.i.bf16 %v17854_v41, %v17852_v61  ;;  %v8617_v1 = vld [vmem:[#allocation2 + $0xb2] sm:$0xff] }
 0xc4a   : > { %v13066_v14 = vpop.permute.xlu0 %13065  ;;  %9965 = vmatmul.mubr.f32.gmra.mrb[108].mxu0 %v9734_v37  ;;  %13360 = vrot.lane.b32.xlu1 %v17831_v39, %s13438_s24  ;;  %v13073_v49 = vunpack.i.h.bf16 %v13071_v4  ;;  %v13374_v20 = vpack.i.bf16 %v8603_v43, %v8602_v8  ;;  %v12892_v37 = vunpack.i.l.bf16 %v17638_v58  ;;  %v9547_v8 = vsel %vm387_vm0, %v17563_v53, %v12893_v22  ;;  %v8619_v22 = vld [vmem:[#allocation2 + $0xca] sm:$0xff] }
 0xc4b   : > { %v13067_v16 = vunpack.i.l.bf16 %v13066_v14  ;;  %10406 = vmatprep.mubr.msk.f32.mxu0 %vm387_vm0, %v8615_v42  ;;  %v13068_v13 = vunpack.i.h.bf16 %v13066_v14 }
 0xc4c   : > { %13355 = vrot.lane.b32.xlu0 %v13334_v12, %s13436_s14  ;;  %v9545_v12 = vsel %vm387_vm0, %v17543_v23, %v12888_v59  ;;  %v13081_v18 = vpop.permute.xlu1 %13080  ;;  %v9546_v47 = vsel %vm387_vm0, %v17561_v31, %v12892_v37  ;;  %v12897_v37 = vunpack.i.l.bf16 %v17647_v10 }
 0xc4d   : > { %v9608_v40 = vsel %vm1777_vm3, %v9576_v56, %v13067_v16  ;;  %v9577_v57 = vsel %vm1744_vm2, %v9545_v12, %v13063_v25  ;;  %v13082_v38 = vunpack.i.l.bf16 %v13081_v18  ;;  %v13083_v59 = vunpack.i.h.bf16 %v13081_v18  ;;  %v8618_v18 = vld [vmem:[#allocation2 + $0xc2] sm:$0xff] }
 0xc4e   : > { %v13076_v15 = vpop.permute.xlu0 %13075  ;;  %9970 = vmatmul.mubr.f32.gmra.mrb[110].mxu0 %v9735_v33  ;;  %v9640_v5 = vsel %vm1810_vm4, %v9608_v40, %v13072_v17  ;;  %v9609_v45 = vsel %vm1777_vm3, %v9577_v57, %v13068_v13  ;;  %13370 = vrot.lane.b32.xlu1 %v13369_v2, %s13440_s26 }
 0xc4f   : > { %v13077_v50 = vunpack.i.l.bf16 %v13076_v15  ;;  %10407 = vmatprep.mubr.msk.f32.mxu0 %vm387_vm0, %v8616_v62  ;;  %v13078_v9 = vunpack.i.h.bf16 %v13076_v15  ;;  %v9641_v42 = vsel %vm1810_vm4, %v9609_v45, %v13073_v49 }
 0xc50   : > { %13365 = vrot.lane.b32.xlu0 %v13364_v26, %s13437_s16  ;;  %v13091_v14 = vpop.permute.xlu1 %13090 }
 0xc51   : > { %v9672_v23 = vsel %vm1843_vm5, %v9640_v5, %v13077_v50  ;;  %v13092_v27 = vunpack.i.l.bf16 %v13091_v14  ;;  %v9673_v56 = vsel %vm1843_vm5, %v9641_v42, %v13078_v9  ;;  %v13093_v33 = vunpack.i.h.bf16 %v13091_v14  ;;  %v17905_v42 = vld [vmem:[#allocation2 + $0x18a] sm:$0xff] }
 0xc52   : > { %v13086_v36 = vpop.permute.xlu0 %13085  ;;  %v9704_v16 = vsel %vm1876_vm6, %v9672_v23, %v13082_v38  ;;  %13380 = vrot.lane.b32.xlu1 %v17831_v39, %s13434_s22  ;;  %v9705_v62 = vsel %vm1876_vm6, %v9673_v56, %v13083_v59  ;;  %v8605_v56 = vld [vmem:[#allocation2 + $0x1a1] sm:$0xff] }
 0xc53   : > { %v13087_v60 = vunpack.i.l.bf16 %v13086_v36  ;;  %v13088_v4 = vunpack.i.h.bf16 %v13086_v36  ;;  %v9578_v15 = vsel %vm1744_vm2, %v9546_v47, %v13092_v27  ;;  %v8604_v36 = vld [vmem:[#allocation2 + $0x199] sm:$0xff] }
 0xc54   : > { %13375 = vrot.lane.b32.xlu0 %v13374_v20, %s13439_s25  ;;  %v13101_v40 = vpop.permute.xlu1 %13100  ;;  %v8573_v47 = vld [vmem:[#allocation2 + $0x1a0] sm:$0xff] }
 0xc55   : > { %v9736_v25 = vsel %vm1909_vm7, %v9704_v16, %v13087_v60  ;;  %v13102_v39 = vunpack.i.l.bf16 %v13101_v40  ;;  %v9737_v58 = vsel %vm1909_vm7, %v9705_v62, %v13088_v4  ;;  %v13103_v49 = vunpack.i.h.bf16 %v13101_v40 }
 0xc56   : > { %v13096_v17 = vpop.permute.xlu0 %13095  ;;  %9975 = vmatmul.mubr.f32.gmra.mrb[112].mxu0 %v9736_v25  ;;  %13390 = vrot.lane.b32.xlu1 %v13369_v2, %s13436_s14  ;;  %v17898_v2 = vld [vmem:[#allocation2 + $0x182] sm:$0xff]  ;;  %v9548_v40 = vsel %vm387_vm0, %v17579_v46, %v12897_v37 }
 0xc57   : > { %v13097_v13 = vunpack.i.l.bf16 %v13096_v17  ;;  %10408 = vmatprep.mubr.msk.f32.mxu0 %vm387_vm0, %v8617_v1  ;;  %v13098_v12 = vunpack.i.h.bf16 %v13096_v17 }
 0xc58   : > { %13385 = vrot.lane.b32.xlu0 %v13364_v26, %s13435_s28  ;;  %v13111_v57 = vpop.permute.xlu1 %13110  ;;  %v9579_v26 = vsel %vm1744_vm2, %v9547_v8, %v13093_v33 }
 0xc59   : > { %v9610_v50 = vsel %vm1777_vm3, %v9578_v15, %v13097_v13  ;;  %v13112_v38 = vunpack.i.l.bf16 %v13111_v57  ;;  %v9611_v45 = vsel %vm1777_vm3, %v9579_v26, %v13098_v12  ;;  %v13113_v59 = vunpack.i.h.bf16 %v13111_v57 }
 0xc5a   : > { %v13106_v31 = vpop.permute.xlu0 %13105  ;;  %9980 = vmatmul.mubr.f32.gmra.mrb[114].mxu0 %v9737_v58  ;;  %v9642_v5 = vsel %vm1810_vm4, %v9610_v50, %v13102_v39  ;;  %9242 = vrot.lane.b32.xlu1 %v17898_v2, %s13437_s16  ;;  %v12898_v13 = vunpack.i.h.bf16 %v17647_v10 }
 0xc5b   : > { %v13107_v43 = vunpack.i.l.bf16 %v13106_v31  ;;  %10409 = vmatprep.mubr.msk.f32.mxu0 %vm387_vm0, %v8618_v18  ;;  %v13108_v9 = vunpack.i.h.bf16 %v13106_v31  ;;  %v8620_v18 = vld [vmem:[#allocation2 + $0xda] sm:$0xff] }
 0xc5c   : > { %13395 = vrot.lane.b32.xlu0 %v13374_v20, %s13438_s24  ;;  %v13121_v14 = vpop.permute.xlu1 %13120  ;;  %v9643_v20 = vsel %vm1810_vm4, %v9611_v45, %v13103_v49  ;;  %v9549_v8 = vsel %vm387_vm0, %v17581_v7, %v12898_v13  ;;  %s18105_s24 = scalar_lea.vmem %s18248_s11, %s10431_s27 }
 0xc5d   : > { %v9674_v53 = vsel %vm1843_vm5, %v9642_v5, %v13107_v43  ;;  %v13122_v27 = vunpack.i.l.bf16 %v13121_v14  ;;  %v9675_v17 = vsel %vm1843_vm5, %v9643_v20, %v13108_v9  ;;  %v13123_v39 = vunpack.i.h.bf16 %v13121_v14 }
 0xc5e   : > { %v13116_v23 = vpop.permute.xlu0 %13115  ;;  %v9706_v16 = vsel %vm1876_vm6, %v9674_v53, %v13112_v38  ;;  %9498 = vrot.lane.b32.xlu1 %v8604_v36, %s13439_s25  ;;  %v9707_v50 = vsel %vm1876_vm6, %v9675_v17, %v13113_v59  ;;  %v12902_v36 = vunpack.i.l.bf16 %v17645_v24  ;;  %v12903_v17 = vunpack.i.h.bf16 %v17645_v24 }
 0xc5f   : > { %v13117_v60 = vunpack.i.l.bf16 %v13116_v23  ;;  %v13118_v4 = vunpack.i.h.bf16 %v13116_v23  ;;  %v9580_v62 = vsel %vm1744_vm2, %v9548_v40, %v13122_v27  ;;  %v9581_v26 = vsel %vm1744_vm2, %v9549_v8, %v13123_v39 }
 0xc60   : > { %9244 = vrot.lane.b32.xlu0 %v17905_v42, %s13437_s16  ;;  %v13131_v15 = vpop.permute.xlu1 %13130 }
 0xc61   : > { %v9738_v25 = vsel %vm1909_vm7, %v9706_v16, %v13117_v60  ;;  %v13132_v12 = vunpack.i.l.bf16 %v13131_v15  ;;  %v9739_v10 = vsel %vm1909_vm7, %v9707_v50, %v13118_v4  ;;  %v13133_v49 = vunpack.i.h.bf16 %v13131_v15 }
 0xc62   : > { %v13126_v1 = vpop.permute.xlu0 %13125  ;;  %9985 = vmatmul.mubr.f32.gmra.mrb[116].mxu0 %v9738_v25  ;;  %9372 = vrot.lane.b32.xlu1 %v8573_v47, %s13440_s26 }
 0xc63   : > { %v13127_v33 = vunpack.i.l.bf16 %v13126_v1  ;;  %10410 = vmatprep.mubr.msk.f32.mxu0 %vm387_vm0, %v8619_v22  ;;  %v13128_v58 = vunpack.i.h.bf16 %v13126_v1  ;;  %v9550_v1 = vsel %vm387_vm0, %v17594_v0, %v12902_v36  ;;  %v9551_v0 = vsel %vm387_vm0, %v17596_v44, %v12903_v17 }
 0xc64   : > { %9500 = vrot.lane.b32.xlu0 %v8605_v56, %s13439_s25  ;;  %v13141_v57 = vpop.permute.xlu1 %13140  ;;  %v8621_v56 = vld [vmem:[#allocation2 + $0xe2] sm:$0xff] }
 0xc65   : > { %v9612_v31 = vsel %vm1777_vm3, %v9580_v62, %v13127_v33  ;;  %v13142_v38 = vunpack.i.l.bf16 %v13141_v57  ;;  %v9613_v45 = vsel %vm1777_vm3, %v9581_v26, %v13128_v58  ;;  %v13143_v14 = vunpack.i.h.bf16 %v13141_v57 }
 0xc66   : > { %v13136_v46 = vpop.permute.xlu0 %13135  ;;  %9990 = vmatmul.mubr.f32.gmra.mrb[118].mxu0 %v9739_v10  ;;  %v9644_v5 = vsel %vm1810_vm4, %v9612_v31, %v13132_v12  ;;  %v9645_v60 = vsel %vm1810_vm4, %v9613_v45, %v13133_v49  ;;  %v12907_v49 = vunpack.i.l.bf16 %v17658_v48 }
 0xc67   : > { %v13137_v43 = vunpack.i.l.bf16 %v13136_v46  ;;  %10411 = vmatprep.mubr.msk.f32.mxu0 %vm387_vm0, %v8620_v18  ;;  %v13138_v9 = vunpack.i.h.bf16 %v13136_v46 }
 0xc68   : > { %v13151_v7 = vpop.permute.xlu1 %13150 }
 0xc69   : > { %v9676_v53 = vsel %vm1843_vm5, %v9644_v5, %v13137_v43  ;;  %v13152_v20 = vunpack.i.l.bf16 %v13151_v7  ;;  %v9677_v4 = vsel %vm1843_vm5, %v9645_v60, %v13138_v9  ;;  %v13153_v13 = vunpack.i.h.bf16 %v13151_v7  ;;  %v8623_v7 = vld [vmem:[#allocation2 + $0xfa] sm:$0xff] }
 0xc6a   : > { %v13146_v23 = vpop.permute.xlu0 %13145  ;;  %v9708_v59 = vsel %vm1876_vm6, %v9676_v53, %v13142_v38  ;;  %v9709_v15 = vsel %vm1876_vm6, %v9677_v4, %v13143_v14  ;;  %v12908_v60 = vunpack.i.h.bf16 %v17658_v48  ;;  %v9552_v14 = vsel %vm387_vm0, %v17610_v52, %v12907_v49 }
 0xc6b   : > { %v13147_v37 = vunpack.i.l.bf16 %v13146_v23  ;;  %v13148_v27 = vunpack.i.h.bf16 %v13146_v23  ;;  %v9582_v40 = vsel %vm1744_vm2, %v9550_v1, %v13152_v20  ;;  %v9583_v31 = vsel %vm1744_vm2, %v9551_v0, %v13153_v13 }
 0xc6c   : > { %v13161_v47 = vpop.permute.xlu1 %13160  ;;  %v9553_v52 = vsel %vm387_vm0, %v17612_v3, %v12908_v60  ;;  %v12912_v0 = vunpack.i.l.bf16 %v17655_v35 }
 0xc6d   : > { %v9740_v16 = vsel %vm1909_vm7, %v9708_v59, %v13147_v37  ;;  %v13162_v33 = vunpack.i.l.bf16 %v13161_v47  ;;  %v9741_v12 = vsel %vm1909_vm7, %v9709_v15, %v13148_v27  ;;  %v13163_v10 = vunpack.i.h.bf16 %v13161_v47 }
 0xc6e   : > { %v13156_v25 = vpop.permute.xlu0 %13155  ;;  %9995 = vmatmul.mubr.f32.gmra.mrb[120].mxu0 %v9740_v16 }
 0xc6f   : > { %v13157_v22 = vunpack.i.l.bf16 %v13156_v25  ;;  %10412 = vmatprep.mubr.msk.f32.mxu0 %vm387_vm0, %v8621_v56  ;;  %v13158_v39 = vunpack.i.h.bf16 %v13156_v25 }
 0xc70   : > { %v13171_v58 = vpop.permute.xlu1 %13170 }
 0xc71   : > { %v9614_v62 = vsel %vm1777_vm3, %v9582_v40, %v13157_v22  ;;  %v13172_v18 = vunpack.i.l.bf16 %v13171_v58  ;;  %v9615_v8 = vsel %vm1777_vm3, %v9583_v31, %v13158_v39  ;;  %v13173_v45 = vunpack.i.h.bf16 %v13171_v58 }
 0xc72   : > { %v13166_v50 = vpop.permute.xlu0 %13165  ;;  %10000 = vmatmul.mubr.f32.gmra.mrb[122].mxu0 %v9741_v12  ;;  %v9646_v46 = vsel %vm1810_vm4, %v9614_v62, %v13162_v33  ;;  %v9647_v38 = vsel %vm1810_vm4, %v9615_v8, %v13163_v10 }
 0xc73   : > { %v13167_v24 = vunpack.i.l.bf16 %v13166_v50  ;;  %10413 = vmatprep.mubr.msk.f32.mxu0 %vm387_vm0, %v17649_v32  ;;  %v13168_v43 = vunpack.i.h.bf16 %v13166_v50 }
 0xc74   : > { %v13181_v5 = vpop.permute.xlu1 %13180 }
 0xc75   : > { %v9678_v57 = vsel %vm1843_vm5, %v9646_v46, %v13167_v24  ;;  %v13182_v32 = vunpack.i.l.bf16 %v13181_v5  ;;  %v9679_v36 = vsel %vm1843_vm5, %v9647_v38, %v13168_v43  ;;  %v13183_v27 = vunpack.i.h.bf16 %v13181_v5 }
 0xc76   : > { %v13176_v26 = vpop.permute.xlu0 %13175  ;;  %v9710_v9 = vsel %vm1876_vm6, %v9678_v57, %v13172_v18  ;;  %v9711_v25 = vsel %vm1876_vm6, %v9679_v36, %v13173_v45  ;;  %v12913_v57 = vunpack.i.h.bf16 %v17655_v35 }
 0xc77   : > { %v13177_v44 = vunpack.i.l.bf16 %v13176_v26  ;;  %v13178_v53 = vunpack.i.h.bf16 %v13176_v26  ;;  %v9584_v16 = vsel %vm1744_vm2, %v9552_v14, %v13182_v32  ;;  %v9585_v13 = vsel %vm1744_vm2, %v9553_v52, %v13183_v27  ;;  %v13420_v26 = vld [vmem:[#allocation2 + $0xf0] sm:$0xff] }
 0xc78   : > { %v13191_v59 = vpop.permute.xlu1 %13190  ;;  %v9554_v49 = vsel %vm387_vm0, %v13420_v26, %v12912_v0 }
 0xc79   : > { %v9742_v23 = vsel %vm1909_vm7, %v9710_v9, %v13177_v44  ;;  %v13192_v4 = vunpack.i.l.bf16 %v13191_v59  ;;  %v9743_v1 = vsel %vm1909_vm7, %v9711_v25, %v13178_v53  ;;  %v13193_v40 = vunpack.i.h.bf16 %v13191_v59 }
 0xc7a   : > { %v13186_v37 = vpop.permute.xlu0 %13185  ;;  %10005 = vmatmul.mubr.f32.gmra.mrb[124].mxu0 %v9742_v23 }
 0xc7b   : > { %v13187_v20 = vunpack.i.l.bf16 %v13186_v37  ;;  %10414 = vmatprep.mubr.msk.f32.mxu0 %vm387_vm0, %v8623_v7  ;;  %v13188_v56 = vunpack.i.h.bf16 %v13186_v37  ;;  %v13421_v37 = vld [vmem:[#allocation2 + $0xf8] sm:$0xff] }
 0xc7c   : > { %v13201_v47 = vpop.permute.xlu1 %13200  ;;  %v9555_v7 = vsel %vm387_vm0, %v13421_v37, %v12913_v57 }
 0xc7d   : > { %v9616_v17 = vsel %vm1777_vm3, %v9584_v16, %v13187_v20  ;;  %v13202_v15 = vunpack.i.l.bf16 %v13201_v47  ;;  %v9617_v39 = vsel %vm1777_vm3, %v9585_v13, %v13188_v56  ;;  %v13203_v31 = vunpack.i.h.bf16 %v13201_v47 }
 0xc7e   : > { %v13196_v22 = vpop.permute.xlu0 %13195  ;;  %10010 = vmatmul.mubr.f32.gmra.mrb[126].mxu0 %v9743_v1  ;;  %v9648_v33 = vsel %vm1810_vm4, %v9616_v17, %v13192_v4  ;;  %v9649_v58 = vsel %vm1810_vm4, %v9617_v39, %v13193_v40  ;;  %v8372_v39 = vld [vmem:[#allocation2 + $0x108] sm:$0xff] }
 0xc7f   : > { %v13197_v48 = vunpack.i.l.bf16 %v13196_v22  ;;  %10415 = vmatprep.mubr.msk.f32.mxu0 %vm387_vm0, %v17669_v30  ;;  %v13198_v62 = vunpack.i.h.bf16 %v13196_v22 }
 0xc80   : > { %v13211_v24 = vpop.permute.xlu1 %13210 }
 0xc81   : > { %v9680_v12 = vsel %vm1843_vm5, %v9648_v33, %v13197_v48  ;;  %v13212_v30 = vunpack.i.l.bf16 %v13211_v24  ;;  %v9681_v8 = vsel %vm1843_vm5, %v9649_v58, %v13198_v62  ;;  %v13213_v38 = vunpack.i.h.bf16 %v13211_v24  ;;  %v8373_v58 = vld [vmem:[#allocation2 + $0x110] sm:$0xff] }
 0xc82   : > { %v13206_v50 = vpop.permute.xlu0 %13205  ;;  %v9712_v10 = vsel %vm1876_vm6, %v9680_v12, %v13202_v15  ;;  %v9713_v9 = vsel %vm1876_vm6, %v9681_v8, %v13203_v31 }
 0xc83   : > { %v13207_v3 = vunpack.i.l.bf16 %v13206_v50  ;;  %v13208_v46 = vunpack.i.h.bf16 %v13206_v50  ;;  %v9586_v45 = vsel %vm1744_vm2, %v9554_v49, %v13212_v30 }
 0xc84   : > { %v13221_v5 = vpop.permute.xlu1 %13220 }
 0xc85   : > { %v9744_v18 = vsel %vm1909_vm7, %v9712_v10, %v13207_v3  ;;  %v13222_v32 = vunpack.i.l.bf16 %v13221_v5  ;;  %v9745_v36 = vsel %vm1909_vm7, %v9713_v9, %v13208_v46  ;;  %v13223_v20 = vunpack.i.h.bf16 %v13221_v5 }
 0xc86   : > { %v13216_v43 = vpop.permute.xlu0 %13215  ;;  %10015 = vmatmul.mubr.f32.gmra.mrb[128].mxu0 %v9744_v18 }
 0xc87   : > { %v13217_v44 = vunpack.i.l.bf16 %v13216_v43  ;;  %10416 = vmatprep.mubr.msk.f32.mxu0 %vm387_vm0, %v17671_v55  ;;  %v13218_v53 = vunpack.i.h.bf16 %v13216_v43  ;;  %v9587_v55 = vsel %vm1744_vm2, %v9555_v7, %v13213_v38 }
 0xc88   : > { %v13231_v14 = vpop.permute.xlu1 %13230 }
 0xc89   : > { %v9618_v23 = vsel %vm1777_vm3, %v9586_v45, %v13217_v44  ;;  %v13232_v27 = vunpack.i.l.bf16 %v13231_v14  ;;  %v9619_v16 = vsel %vm1777_vm3, %v9587_v55, %v13218_v53  ;;  %v13233_v52 = vunpack.i.h.bf16 %v13231_v14 }
 0xc8a   : > { %v13226_v35 = vpop.permute.xlu0 %13225  ;;  %10020 = vmatmul.mubr.f32.gmra.mrb[130].mxu0 %v9745_v36  ;;  %v9650_v59 = vsel %vm1810_vm4, %v9618_v23, %v13222_v32  ;;  %v9651_v22 = vsel %vm1810_vm4, %v9619_v16, %v13223_v20 }
 0xc8b   : > { %v13227_v60 = vunpack.i.l.bf16 %v13226_v35  ;;  %10417 = vmatprep.mubr.msk.f32.mxu0 %vm387_vm0, %v17709_v54  ;;  %v13228_v4 = vunpack.i.h.bf16 %v13226_v35 }
 0xc8c   : > { %v13241_v1 = vpop.permute.xlu1 %13240 }
 0xc8d   : > { %v9682_v25 = vsel %vm1843_vm5, %v9650_v59, %v13227_v60  ;;  %v13242_v48 = vunpack.i.l.bf16 %v13241_v1  ;;  %v9683_v40 = vsel %vm1843_vm5, %v9651_v22, %v13228_v4  ;;  %v13243_v33 = vunpack.i.h.bf16 %v13241_v1 }
 0xc8e   : > { %v13236_v56 = vpop.permute.xlu0 %13235  ;;  %v9714_v54 = vsel %vm1876_vm6, %v9682_v25, %v13232_v27  ;;  %v9715_v24 = vsel %vm1876_vm6, %v9683_v40, %v13233_v52  ;;  %v8374_v27 = vld [vmem:[#allocation2 + $0x120] sm:$0xff]  ;;  %v8375_v52 = vld [vmem:[#allocation2 + $0x128] sm:$0xff] }
 0xc8f   : > { %v13237_v17 = vunpack.i.l.bf16 %v13236_v56  ;;  %v13238_v47 = vunpack.i.h.bf16 %v13236_v56  ;;  %v9556_v0 = vsel %vm387_vm0, %v8372_v39, %v13242_v48  ;;  %v9557_v10 = vsel %vm387_vm0, %v8373_v58, %v13243_v33 }
 0xc90   : > { %v13251_v50 = vpop.permute.xlu1 %13250 }
 0xc91   : > { %v9746_v13 = vsel %vm1909_vm7, %v9714_v54, %v13237_v17  ;;  %v13252_v3 = vunpack.i.l.bf16 %v13251_v50  ;;  %v9747_v30 = vsel %vm1909_vm7, %v9715_v24, %v13238_v47  ;;  %v13253_v46 = vunpack.i.h.bf16 %v13251_v50 }
 0xc92   : > { %v13246_v15 = vpop.permute.xlu0 %13245  ;;  %10025 = vmatmul.mubr.f32.gmra.mrb[132].mxu0 %v9746_v13 }
 0xc93   : > { %v13248_v62 = vunpack.i.h.bf16 %v13246_v15  ;;  %v13247_v12 = vunpack.i.l.bf16 %v13246_v15  ;;  %10418 = vmatprep.mubr.msk.f32.mxu0 %vm387_vm0, %v17711_v29 }
 0xc94   : > { %v13261_v29 = vpop.permute.xlu1 %13260 }
 0xc95   : > { %v9588_v31 = vsel %vm1744_vm2, %v9556_v0, %v13247_v12  ;;  %v9589_v8 = vsel %vm1744_vm2, %v9557_v10, %v13248_v62  ;;  %v13262_v49 = vunpack.i.l.bf16 %v13261_v29  ;;  %v13263_v38 = vunpack.i.h.bf16 %v13261_v29 }
 0xc96   : > { %v13256_v18 = vpop.permute.xlu0 %13255  ;;  %10030 = vmatmul.mubr.f32.gmra.mrb[134].mxu0 %v9747_v30  ;;  %v9620_v26 = vsel %vm1777_vm3, %v9588_v31, %v13252_v3  ;;  %v9621_v5 = vsel %vm1777_vm3, %v9589_v8, %v13253_v46 }
 0xc97   : > { %v13258_v43 = vunpack.i.h.bf16 %v13256_v18  ;;  %v13257_v57 = vunpack.i.l.bf16 %v13256_v18  ;;  %10419 = vmatprep.mubr.msk.f32.mxu0 %vm387_vm0, %v17752_v63 }
 0xc98   : > { %v13271_v23 = vpop.permute.xlu1 %13270 }
 0xc99   : > { %v9652_v44 = vsel %vm1810_vm4, %v9620_v26, %v13257_v57  ;;  %v9653_v32 = vsel %vm1810_vm4, %v9621_v5, %v13258_v43  ;;  %v13272_v36 = vunpack.i.l.bf16 %v13271_v23  ;;  %v13273_v63 = vunpack.i.h.bf16 %v13271_v23 }
 0xc9a   : > { %v13266_v45 = vpop.permute.xlu0 %13265  ;;  %v9684_v35 = vsel %vm1843_vm5, %v9652_v44, %v13262_v49  ;;  %v9685_v14 = vsel %vm1843_vm5, %v9653_v32, %v13263_v38 }
 0xc9b   : > { %v13268_v9 = vunpack.i.h.bf16 %v13266_v45  ;;  %v13267_v53 = vunpack.i.l.bf16 %v13266_v45  ;;  %v13422_v45 = vld [vmem:[#allocation2 + $0x138] sm:$0xff] }
 0xc9c   : > { %v13281_v20 = vpop.permute.xlu1 %13280 }
 0xc9d   : > { %v9716_v37 = vsel %vm1876_vm6, %v9684_v35, %v13267_v53  ;;  %v9717_v59 = vsel %vm1876_vm6, %v9685_v14, %v13268_v9  ;;  %v13282_v16 = vunpack.i.l.bf16 %v13281_v20  ;;  %v13283_v48 = vunpack.i.h.bf16 %v13281_v20  ;;  %v13423_v35 = vld [vmem:[#allocation2 + $0x140] sm:$0xff] }
 0xc9e   : > { %v13276_v7 = vpop.permute.xlu0 %13275  ;;  %v9748_v60 = vsel %vm1909_vm7, %v9716_v37, %v13272_v36  ;;  %v9749_v17 = vsel %vm1909_vm7, %v9717_v59, %v13273_v63 }
 0xc9f   : > { %v13277_v55 = vunpack.i.l.bf16 %v13276_v7  ;;  %10035 = vmatmul.mubr.f32.gmra.mrb[136].mxu0 %v9748_v60  ;;  %v13278_v4 = vunpack.i.h.bf16 %v13276_v7 }
 0xca0   : > { %10420 = vmatprep.mubr.msk.f32.mxu0 %vm387_vm0, %v17754_v6  ;;  %v13291_v22 = vpop.permute.xlu1 %13290 }
 0xca1   : > { %v9558_v25 = vsel %vm387_vm0, %v8374_v27, %v13277_v55  ;;  %v13292_v47 = vunpack.i.l.bf16 %v13291_v22  ;;  %v9559_v13 = vsel %vm387_vm0, %v8375_v52, %v13278_v4  ;;  %v13293_v12 = vunpack.i.h.bf16 %v13291_v22 }
 0xca2   : > { %v13286_v56 = vpop.permute.xlu0 %13285  ;;  %v9590_v54 = vsel %vm1744_vm2, %v9558_v25, %v13282_v16  ;;  %v9591_v62 = vsel %vm1744_vm2, %v9559_v13, %v13283_v48 }
 0xca3   : > { %v13287_v1 = vunpack.i.l.bf16 %v13286_v56  ;;  %10040 = vmatmul.mubr.f32.gmra.mrb[138].mxu0 %v9749_v17  ;;  %v13288_v6 = vunpack.i.h.bf16 %v13286_v56 }
 0xca4   : > { %10421 = vmatprep.mubr.msk.f32.mxu0 %vm387_vm0, %v17800_v19  ;;  %v13301_v39 = vpop.permute.xlu1 %13300 }
 0xca5   : > { %v9622_v40 = vsel %vm1777_vm3, %v9590_v54, %v13287_v1  ;;  %v13302_v0 = vunpack.i.l.bf16 %v13301_v39  ;;  %v9623_v3 = vsel %vm1777_vm3, %v9591_v62, %v13288_v6  ;;  %v13303_v46 = vunpack.i.h.bf16 %v13301_v39 }
 0xca6   : > { %v13296_v33 = vpop.permute.xlu0 %13295  ;;  %v9654_v50 = vsel %vm1810_vm4, %v9622_v40, %v13292_v47  ;;  %v9655_v10 = vsel %vm1810_vm4, %v9623_v3, %v13293_v12 }
 0xca7   : > { %v13297_v15 = vunpack.i.l.bf16 %v13296_v33  ;;  %v13298_v24 = vunpack.i.h.bf16 %v13296_v33 }
 0xca8   : > { %v13311_v30 = vpop.permute.xlu1 %13310 }
 0xca9   : > { %v9686_v58 = vsel %vm1843_vm5, %v9654_v50, %v13297_v15  ;;  %v13312_v18 = vunpack.i.l.bf16 %v13311_v30  ;;  %v9687_v29 = vsel %vm1843_vm5, %v9655_v10, %v13298_v24  ;;  %v13313_v26 = vunpack.i.h.bf16 %v13311_v30 }
 0xcaa   : > { %v13306_v19 = vpop.permute.xlu0 %13305  ;;  %v9718_v8 = vsel %vm1876_vm6, %v9686_v58, %v13302_v0  ;;  %v9719_v53 = vsel %vm1876_vm6, %v9687_v29, %v13303_v46 }
 0xcab   : > { %v13307_v31 = vunpack.i.l.bf16 %v13306_v19  ;;  %v13308_v43 = vunpack.i.h.bf16 %v13306_v19  ;;  %v9560_v32 = vsel %vm387_vm0, %v13422_v45, %v13312_v18  ;;  %v9561_v37 = vsel %vm387_vm0, %v13423_v35, %v13313_v26 }
 0xcac   : > { %v13321_v38 = vpop.permute.xlu1 %13320 }
 0xcad   : > { %v9750_v57 = vsel %vm1909_vm7, %v9718_v8, %v13307_v31  ;;  %v13322_v9 = vunpack.i.l.bf16 %v13321_v38  ;;  %v9751_v36 = vsel %vm1909_vm7, %v9719_v53, %v13308_v43  ;;  %v13323_v63 = vunpack.i.h.bf16 %v13321_v38 }
 0xcae   : > { %v13316_v49 = vpop.permute.xlu0 %13315  ;;  %10045 = vmatmul.mubr.f32.gmra.mrb[140].mxu0 %v9750_v57 }
 0xcaf   : > { %v13318_v44 = vunpack.i.h.bf16 %v13316_v49  ;;  %v13317_v5 = vunpack.i.l.bf16 %v13316_v49  ;;  %10422 = vmatprep.mubr.msk.f32.mxu0 %vm387_vm0, %v17802_v21 }
 0xcb0   : > { %v13331_v55 = vpop.permute.xlu1 %13330 }
 0xcb1   : > { %v9592_v23 = vsel %vm1744_vm2, %v9560_v32, %v13317_v5  ;;  %v9593_v60 = vsel %vm1744_vm2, %v9561_v37, %v13318_v44  ;;  %v13332_v59 = vunpack.i.l.bf16 %v13331_v55  ;;  %v13333_v4 = vunpack.i.h.bf16 %v13331_v55 }
 0xcb2   : > { %v13326_v7 = vpop.permute.xlu0 %13325  ;;  %10050 = vmatmul.mubr.f32.gmra.mrb[142].mxu0 %v9751_v36  ;;  %v9624_v20 = vsel %vm1777_vm3, %v9592_v23, %v13322_v9  ;;  %v9625_v16 = vsel %vm1777_vm3, %v9593_v60, %v13323_v63 }
 0xcb3   : > { %v13328_v14 = vunpack.i.h.bf16 %v13326_v7  ;;  %v13327_v21 = vunpack.i.l.bf16 %v13326_v7  ;;  %10423 = vmatprep.mubr.msk.f32.mxu0 %vm387_vm0, %v17852_v61 }
 0xcb4   : > { %v13341_v22 = vpop.permute.xlu1 %13340 }
 0xcb5   : > { %v9656_v27 = vsel %vm1810_vm4, %v9624_v20, %v13327_v21  ;;  %v9657_v56 = vsel %vm1810_vm4, %v9625_v16, %v13328_v14  ;;  %v13342_v52 = vunpack.i.l.bf16 %v13341_v22  ;;  %v13343_v61 = vunpack.i.h.bf16 %v13341_v22  ;;  %v8636_v20 = vld [vmem:[#allocation2 + $0x19a] sm:$0xff] }
 0xcb6   : > { %v13336_v25 = vpop.permute.xlu0 %13335  ;;  %v9688_v48 = vsel %vm1843_vm5, %v9656_v27, %v13332_v59  ;;  %v9689_v6 = vsel %vm1843_vm5, %v9657_v56, %v13333_v4 }
 0xcb7   : > { %v13338_v17 = vunpack.i.h.bf16 %v13336_v25  ;;  %v13337_v1 = vunpack.i.l.bf16 %v13336_v25 }
 0xcb8   : > { %v13351_v33 = vpop.permute.xlu1 %13350 }
 0xcb9   : > { %v9720_v54 = vsel %vm1876_vm6, %v9688_v48, %v13337_v1  ;;  %v9721_v15 = vsel %vm1876_vm6, %v9689_v6, %v13338_v17  ;;  %v13352_v39 = vunpack.i.l.bf16 %v13351_v33  ;;  %v13353_v58 = vunpack.i.h.bf16 %v13351_v33 }
 0xcba   : > { %v13346_v47 = vpop.permute.xlu0 %13345  ;;  %v9752_v13 = vsel %vm1909_vm7, %v9720_v54, %v13342_v52  ;;  %v9753_v0 = vsel %vm1909_vm7, %v9721_v15, %v13343_v61 }
 0xcbb   : > { %v13347_v40 = vunpack.i.l.bf16 %v13346_v47  ;;  %10055 = vmatmul.mubr.f32.gmra.mrb[144].mxu0 %v9752_v13  ;;  %v13348_v62 = vunpack.i.h.bf16 %v13346_v47  ;;  %v18449_v47 = vld [vmem:[#allocation35_spill] sm:$0xff]  ;;  %v8637_v13 = vld [vmem:[#allocation2 + $0x1a2] sm:$0xff] }
 0xcbc   : > { %10424 = vmatprep.mubr.msk.f32.mxu0 %vm387_vm0, %v17854_v41  ;;  %v13361_v24 = vpop.permute.xlu1 %13360 }
 0xcbd   : > { %v9562_v12 = vsel %vm387_vm0, %v17759_v51, %v13347_v40  ;;  %v13362_v31 = vunpack.i.l.bf16 %v13361_v24  ;;  %v9563_v41 = vsel %vm387_vm0, %v17761_v11, %v13348_v62  ;;  %v13363_v43 = vunpack.i.h.bf16 %v13361_v24 }
 0xcbe   : > { %v13356_v50 = vpop.permute.xlu0 %13355  ;;  %v9594_v19 = vsel %vm1744_vm2, %v9562_v12, %v13352_v39  ;;  %v9595_v8 = vsel %vm1744_vm2, %v9563_v41, %v13353_v58  ;;  %v18450_v58 = vld [vmem:[#allocation3_spill] sm:$0xff] }
 0xcbf   : > { %v13357_v3 = vunpack.i.l.bf16 %v13356_v50  ;;  %10060 = vmatmul.mubr.f32.gmra.mrb[146].mxu0 %v9753_v0  ;;  %v13358_v30 = vunpack.i.h.bf16 %v13356_v50  ;;  %v18097_v50 = vld [vmem:[%s18247_s10] ss:$0 sm:$0xff] }
 0xcc0   : > { %10425 = vmatprep.mubr.msk.f32.mxu0 %vm387_vm0, %v17898_v2  ;;  %v13371_v18 = vpop.permute.xlu1 %13370 }
 0xcc1   : > { %v9626_v10 = vsel %vm1777_vm3, %v9594_v19, %v13357_v3  ;;  %v13372_v29 = vunpack.i.l.bf16 %v13371_v18  ;;  %v9627_v26 = vsel %vm1777_vm3, %v9595_v8, %v13358_v30  ;;  %v13373_v45 = vunpack.i.h.bf16 %v13371_v18 }
 0xcc2   : > { %v13366_v51 = vpop.permute.xlu0 %13365  ;;  %v9658_v57 = vsel %vm1810_vm4, %v9626_v10, %v13362_v31  ;;  %v9659_v38 = vsel %vm1810_vm4, %v9627_v26, %v13363_v43  ;;  %v18451_v10 = vld [vmem:[#allocation4_spill] sm:$0xff]  ;;  %v18452_v43 = vld [vmem:[#allocation5_spill] sm:$0xff] }
 0xcc3   : > { %v13367_v46 = vunpack.i.l.bf16 %v13366_v51  ;;  %v13368_v49 = vunpack.i.h.bf16 %v13366_v51 }
 0xcc4   : > { %v13381_v11 = vpop.permute.xlu1 %13380 }
 0xcc5   : > { %v9690_v2 = vsel %vm1843_vm5, %v9658_v57, %v13367_v46  ;;  %v13382_v32 = vunpack.i.l.bf16 %v13381_v11  ;;  %v9691_v36 = vsel %vm1843_vm5, %v9659_v38, %v13368_v49  ;;  %v13383_v37 = vunpack.i.h.bf16 %v13381_v11 }
 0xcc6   : > { %v13376_v44 = vpop.permute.xlu0 %13375  ;;  %v9722_v9 = vsel %vm1876_vm6, %v9690_v2, %v13372_v29  ;;  %v9723_v55 = vsel %vm1876_vm6, %v9691_v36, %v13373_v45  ;;  %v18453_v2 = vld [vmem:[#allocation6_spill] sm:$0xff]  ;;  %v18454_v45 = vld [vmem:[#allocation7_spill] sm:$0xff]  ;;  %v18455_v36 = vld [vmem:[#allocation8_spill] sm:$0xff] }
 0xcc7   : > { %v13377_v5 = vunpack.i.l.bf16 %v13376_v44  ;;  %v13378_v53 = vunpack.i.h.bf16 %v13376_v44  ;;  %v9564_v60 = vsel %vm387_vm0, %v17814_v28, %v13382_v32  ;;  %v9565_v4 = vsel %vm387_vm0, %v17816_v34, %v13383_v37 }
 0xcc8   : > { %v13391_v7 = vpop.permute.xlu1 %13390 }
 0xcc9   : > { %v9754_v23 = vsel %vm1909_vm7, %v9722_v9, %v13377_v5  ;;  %v13392_v21 = vunpack.i.l.bf16 %v13391_v7  ;;  %v9755_v27 = vsel %vm1909_vm7, %v9723_v55, %v13378_v53  ;;  %v13393_v25 = vunpack.i.h.bf16 %v13391_v7 }
 0xcca   : > { %v13386_v35 = vpop.permute.xlu0 %13385  ;;  %10065 = vmatmul.mubr.f32.gmra.mrb[148].mxu0 %v9754_v23 }
 0xccb   : > { %v13387_v63 = vunpack.i.l.bf16 %v13386_v35  ;;  %10426 = vmatprep.mubr.msk.f32.mxu0 %vm387_vm0, %v17905_v42  ;;  %v13388_v14 = vunpack.i.h.bf16 %v13386_v35 }
 0xccc   : > { %v9243_v42 = vpop.permute.xlu1 %9242 }
 0xccd   : > { %v9596_v59 = vsel %vm1744_vm2, %v9564_v60, %v13387_v63  ;;  %v9597_v28 = vsel %vm1744_vm2, %v9565_v4, %v13388_v14  ;;  %v18456_v60 = vld [vmem:[#allocation9_spill] sm:$0xff] }
 0xcce   : > { %v13396_v16 = vpop.permute.xlu0 %13395  ;;  %10070 = vmatmul.mubr.f32.gmra.mrb[150].mxu0 %v9755_v27  ;;  %v9628_v1 = vsel %vm1777_vm3, %v9596_v59, %v13392_v21  ;;  %v9629_v54 = vsel %vm1777_vm3, %v9597_v28, %v13393_v25  ;;  %v18457_v59 = vld [vmem:[#allocation10_spill] sm:$0xff] }
 0xccf   : > { %v13397_v56 = vunpack.i.l.bf16 %v13396_v16  ;;  %10427 = vmatprep.mubr.msk.f32.mxu0 %vm387_vm0, %v8636_v20  ;;  %v13398_v17 = vunpack.i.h.bf16 %v13396_v16 }
 0xcd0   : > { %v9499_v61 = vpop.permute.xlu1 %9498 }
 0xcd1   : > { %v9660_v22 = vsel %vm1810_vm4, %v9628_v1, %v13397_v56  ;;  %v9661_v6 = vsel %vm1810_vm4, %v9629_v54, %v13398_v17  ;;  %v18458_v56 = vld [vmem:[#allocation11_spill] sm:$0xff] }
 0xcd2   : > { %v9692_v52 = vsel %vm1843_vm5, %v9660_v22, %v9243_v42  ;;  %v9245_v48 = vpop.permute.xlu0 %9244  ;;  %v18459_v22 = vld [vmem:[#allocation12_spill] sm:$0xff] }
 0xcd3   : > { %v9724_v34 = vsel %vm1876_vm6, %v9692_v52, %v18449_v47  ;;  %v9693_v15 = vsel %vm1843_vm5, %v9661_v6, %v9245_v48  ;;  %v18460_v47 = vld [vmem:[#allocation13_spill] sm:$0xff] }
 0xcd4   : > { %v9756_v40 = vsel %vm1909_vm7, %v9724_v34, %v9499_v61  ;;  %v9373_v39 = vpop.permute.xlu1 %9372 }
 0xcd5   : > { %10075 = vmatmul.mubr.f32.gmra.mrb[152].mxu0 %v9756_v40  ;;  %v9725_v62 = vsel %vm1876_vm6, %v9693_v15, %v9373_v39 }
 0xcd6   : > { %v9501_v33 = vpop.permute.xlu0 %9500  ;;  %10428 = vmatprep.mubr.msk.f32.mxu0 %vm387_vm0, %v8637_v13 }
 0xcd7   : > { %v9757_v12 = vsel %vm1909_vm7, %v9725_v62, %v9501_v33  ;;  %v18461_v33 = vld [vmem:[#allocation14_spill] sm:$0xff] }
 0xcd9   : > { %10080 = vmatmul.mubr.f32.gmra.mrb[154].mxu0 %v9757_v12 }
 0xced   : > { %v9926_v0 = vpop.f32.mrb[92].mxu0 }
 0xcee   : > { %v9927_v3 = vadd.f32 %v18097_v50, %v9926_v0  ;;  %v9928_v24 = vpop.f32.mrb[93].mxu0  ;;  %v18462_v0 = vld [vmem:[#allocation15_spill] sm:$0xff] }
 0xcf0   : > { %v10085_v19 = vadd.f32 %v9927_v3, %v18450_v58 }
 0xcf1   : > { %v9931_v31 = vpop.f32.mrb[94].mxu0 }
 0xcf2   : > { %10117 = vst.msk [vmem:[%s18105_s24] sm:$0xff] %vm387_vm0, %v10085_v19  ;;  %v9932_v41 = vadd.f32 %v18097_v50, %v9931_v31  ;;  %v9933_v30 = vpop.f32.mrb[95].mxu0  ;;  %v18463_v31 = vld [vmem:[#allocation16_spill] sm:$0xff] }
 0xcf4   : > { %v10086_v51 = vadd.f32 %v9932_v41, %v18451_v10 }
 0xcf6   : > { %10118 = vst.msk [vmem:[%s18105_s24 + $0x8] sm:$0xff] %vm387_vm0, %v10086_v51 }
 0xcf9   : > { %v9936_v46 = vpop.f32.mrb[96].mxu0 }
 0xcfa   : > { %v9937_v18 = vadd.f32 %v18097_v50, %v9936_v46  ;;  %v9938_v8 = vpop.f32.mrb[97].mxu0  ;;  %v18464_v46 = vld [vmem:[#allocation17_spill] sm:$0xff] }
 0xcfc   : > { %v10087_v57 = vadd.f32 %v9937_v18, %v18452_v43 }
 0xcfd   : > { %v9941_v29 = vpop.f32.mrb[98].mxu0 }
 0xcfe   : > { %10119 = vst.msk [vmem:[%s18105_s24 + $0x10] sm:$0xff] %vm387_vm0, %v10087_v57  ;;  %v9942_v26 = vadd.f32 %v18097_v50, %v9941_v29  ;;  %v9943_v49 = vpop.f32.mrb[99].mxu0  ;;  %v18465_v29 = vld [vmem:[#allocation18_spill] sm:$0xff] }
 0xd00   : > { %v10088_v44 = vadd.f32 %v9942_v26, %v18453_v2 }
 0xd02   : > { %10120 = vst.msk [vmem:[%s18105_s24 + $0x18] sm:$0xff] %vm387_vm0, %v10088_v44 }
 0xd05   : > { %v9946_v5 = vpop.f32.mrb[100].mxu0 }
 0xd06   : > { %v9947_v11 = vadd.f32 %v18097_v50, %v9946_v5  ;;  %v9948_v38 = vpop.f32.mrb[101].mxu0  ;;  %v18466_v5 = vld [vmem:[#allocation19_spill] sm:$0xff] }
 0xd08   : > { %v10089_v32 = vadd.f32 %v9947_v11, %v18454_v45 }
 0xd09   : > { %v9951_v9 = vpop.f32.mrb[102].mxu0 }
 0xd0a   : > { %10121 = vst.msk [vmem:[%s18105_s24 + $0x20] sm:$0xff] %vm387_vm0, %v10089_v32  ;;  %v9952_v53 = vadd.f32 %v18097_v50, %v9951_v9  ;;  %v9953_v23 = vpop.f32.mrb[103].mxu0  ;;  %v18467_v9 = vld [vmem:[#allocation20_spill] sm:$0xff] }
 0xd0c   : > { %v10090_v35 = vadd.f32 %v9952_v53, %v18455_v36 }
 0xd0e   : > { %10122 = vst.msk [vmem:[%s18105_s24 + $0x28] sm:$0xff] %vm387_vm0, %v10090_v35 }
 0xd11   : > { %v9956_v37 = vpop.f32.mrb[104].mxu0 }
 0xd12   : > { %v9957_v63 = vadd.f32 %v18097_v50, %v9956_v37  ;;  %v9958_v7 = vpop.f32.mrb[105].mxu0  ;;  %v18468_v37 = vld [vmem:[#allocation21_spill] sm:$0xff] }
 0xd14   : > { %v10091_v14 = vadd.f32 %v9957_v63, %v18456_v60 }
 0xd15   : > { %v9961_v21 = vpop.f32.mrb[106].mxu0 }
 0xd16   : > { %10123 = vst.msk [vmem:[%s18105_s24 + $0x30] sm:$0xff] %vm387_vm0, %v10091_v14  ;;  %v9962_v55 = vadd.f32 %v18097_v50, %v9961_v21  ;;  %v9963_v20 = vpop.f32.mrb[107].mxu0  ;;  %v18469_v21 = vld [vmem:[#allocation22_spill] sm:$0xff] }
 0xd18   : > { %v10092_v27 = vadd.f32 %v9962_v55, %v18457_v59 }
 0xd1a   : > { %10124 = vst.msk [vmem:[%s18105_s24 + $0x38] sm:$0xff] %vm387_vm0, %v10092_v27 }
 0xd1d   : > { %v9966_v16 = vpop.f32.mrb[108].mxu0 }
 0xd1e   : > { %v9967_v4 = vadd.f32 %v18097_v50, %v9966_v16  ;;  %v9968_v25 = vpop.f32.mrb[109].mxu0  ;;  %v18470_v16 = vld [vmem:[#allocation23_spill] sm:$0xff] }
 0xd20   : > { %v10093_v42 = vadd.f32 %v9967_v4, %v18458_v56 }
 0xd21   : > { %v9971_v28 = vpop.f32.mrb[110].mxu0 }
 0xd22   : > { %10125 = vst.msk [vmem:[%s18105_s24 + $0x40] sm:$0xff] %vm387_vm0, %v10093_v42  ;;  %v9972_v17 = vadd.f32 %v18097_v50, %v9971_v28  ;;  %v9973_v1 = vpop.f32.mrb[111].mxu0  ;;  %v18471_v28 = vld [vmem:[#allocation24_spill] sm:$0xff] }
 0xd24   : > { %v10094_v52 = vadd.f32 %v9972_v17, %v18459_v22 }
 0xd26   : > { %10126 = vst.msk [vmem:[%s18105_s24 + $0x48] sm:$0xff] %vm387_vm0, %v10094_v52 }
 0xd29   : > { %v9976_v48 = vpop.f32.mrb[112].mxu0 }
 0xd2a   : > { %v9977_v54 = vadd.f32 %v18097_v50, %v9976_v48  ;;  %v9978_v61 = vpop.f32.mrb[113].mxu0  ;;  %v18472_v48 = vld [vmem:[#allocation25_spill] sm:$0xff] }
 0xd2c   : > { %v10095_v34 = vadd.f32 %v9977_v54, %v18460_v47 }
 0xd2d   : > { %v9981_v13 = vpop.f32.mrb[114].mxu0 }
 0xd2e   : > { %10127 = vst.msk [vmem:[%s18105_s24 + $0x50] sm:$0xff] %vm387_vm0, %v10095_v34  ;;  %v9982_v6 = vadd.f32 %v18097_v50, %v9981_v13  ;;  %v9983_v40 = vpop.f32.mrb[115].mxu0  ;;  %v18473_v13 = vld [vmem:[#allocation26_spill] sm:$0xff] }
 0xd30   : > { %v10096_v15 = vadd.f32 %v9982_v6, %v18461_v33 }
 0xd32   : > { %10128 = vst.msk [vmem:[%s18105_s24 + $0x58] sm:$0xff] %vm387_vm0, %v10096_v15 }
 0xd35   : > { %v9986_v39 = vpop.f32.mrb[116].mxu0 }
 0xd36   : > { %v9987_v62 = vadd.f32 %v18097_v50, %v9986_v39  ;;  %v9988_v12 = vpop.f32.mrb[117].mxu0  ;;  %v18474_v39 = vld [vmem:[#allocation27_spill] sm:$0xff] }
 0xd38   : > { %v10097_v3 = vadd.f32 %v9987_v62, %v18462_v0 }
 0xd39   : > { %v9991_v24 = vpop.f32.mrb[118].mxu0 }
 0xd3a   : > { %10129 = vst.msk [vmem:[%s18105_s24 + $0x60] sm:$0xff] %vm387_vm0, %v10097_v3  ;;  %v9992_v58 = vadd.f32 %v18097_v50, %v9991_v24  ;;  %v9993_v19 = vpop.f32.mrb[119].mxu0  ;;  %v18475_v24 = vld [vmem:[#allocation28_spill] sm:$0xff] }
 0xd3c   : > { %v10098_v41 = vadd.f32 %v9992_v58, %v18463_v31 }
 0xd3e   : > { %10130 = vst.msk [vmem:[%s18105_s24 + $0x68] sm:$0xff] %vm387_vm0, %v10098_v41 }
 0xd41   : > { %v9996_v30 = vpop.f32.mrb[120].mxu0 }
 0xd42   : > { %v9997_v10 = vadd.f32 %v18097_v50, %v9996_v30  ;;  %v9998_v51 = vpop.f32.mrb[121].mxu0  ;;  %v18476_v30 = vld [vmem:[#allocation29_spill] sm:$0xff] }
 0xd44   : > { %v10099_v18 = vadd.f32 %v9997_v10, %v18464_v46 }
 0xd45   : > { %v10001_v8 = vpop.f32.mrb[122].mxu0 }
 0xd46   : > { %10131 = vst.msk [vmem:[%s18105_s24 + $0x70] sm:$0xff] %vm387_vm0, %v10099_v18  ;;  %v10002_v43 = vadd.f32 %v18097_v50, %v10001_v8  ;;  %v10003_v57 = vpop.f32.mrb[123].mxu0  ;;  %v18477_v8 = vld [vmem:[#allocation30_spill] sm:$0xff] }
 0xd48   : > { %v10100_v26 = vadd.f32 %v10002_v43, %v18465_v29 }
 0xd4a   : > { %10132 = vst.msk [vmem:[%s18105_s24 + $0x78] sm:$0xff] %vm387_vm0, %v10100_v26 }
 0xd4d   : > { %v10006_v49 = vpop.f32.mrb[124].mxu0 }
 0xd4e   : > { %v10007_v2 = vadd.f32 %v18097_v50, %v10006_v49  ;;  %v10008_v44 = vpop.f32.mrb[125].mxu0  ;;  %v18478_v49 = vld [vmem:[#allocation31_spill] sm:$0xff] }
 0xd50   : > { %v10101_v11 = vadd.f32 %v10007_v2, %v18466_v5 }
 0xd51   : > { %v10011_v38 = vpop.f32.mrb[126].mxu0 }
 0xd52   : > { %10133 = vst.msk [vmem:[%s18105_s24 + $0x80] sm:$0xff] %vm387_vm0, %v10101_v11  ;;  %v10012_v45 = vadd.f32 %v18097_v50, %v10011_v38  ;;  %v10013_v32 = vpop.f32.mrb[127].mxu0  ;;  %v18479_v38 = vld [vmem:[#allocation32_spill] sm:$0xff] }
 0xd54   : > { %v10102_v53 = vadd.f32 %v10012_v45, %v18467_v9 }
 0xd56   : > { %10134 = vst.msk [vmem:[%s18105_s24 + $0x88] sm:$0xff] %vm387_vm0, %v10102_v53 }
 0xd59   : > { %v10016_v23 = vpop.f32.mrb[128].mxu0 }
 0xd5a   : > { %v10017_v36 = vadd.f32 %v18097_v50, %v10016_v23  ;;  %v10018_v35 = vpop.f32.mrb[129].mxu0  ;;  %v18480_v23 = vld [vmem:[#allocation33_spill] sm:$0xff] }
 0xd5c   : > { %v10103_v63 = vadd.f32 %v10017_v36, %v18468_v37 }
 0xd5d   : > { %v10021_v7 = vpop.f32.mrb[130].mxu0 }
 0xd5e   : > { %10135 = vst.msk [vmem:[%s18105_s24 + $0x90] sm:$0xff] %vm387_vm0, %v10103_v63  ;;  %v10022_v60 = vadd.f32 %v18097_v50, %v10021_v7  ;;  %v10023_v14 = vpop.f32.mrb[131].mxu0  ;;  %v18481_v7 = vld [vmem:[#allocation34_spill] sm:$0xff] }
 0xd60   : > { %v10104_v55 = vadd.f32 %v10022_v60, %v18469_v21 }
 0xd62   : > { %10136 = vst.msk [vmem:[%s18105_s24 + $0x98] sm:$0xff] %vm387_vm0, %v10104_v55 }
 0xd65   : > { %v10026_v20 = vpop.f32.mrb[132].mxu0 }
 0xd66   : > { %v10027_v59 = vadd.f32 %v18097_v50, %v10026_v20  ;;  %v10028_v27 = vpop.f32.mrb[133].mxu0 }
 0xd68   : > { %v10105_v4 = vadd.f32 %v10027_v59, %v18470_v16 }
 0xd69   : > { %v10031_v25 = vpop.f32.mrb[134].mxu0 }
 0xd6a   : > { %10137 = vst.msk [vmem:[%s18105_s24 + $0xa0] sm:$0xff] %vm387_vm0, %v10105_v4  ;;  %v10032_v56 = vadd.f32 %v18097_v50, %v10031_v25  ;;  %v10033_v42 = vpop.f32.mrb[135].mxu0 }
 0xd6c   : > { %v10106_v17 = vadd.f32 %v10032_v56, %v18471_v28 }
 0xd6e   : > { %10138 = vst.msk [vmem:[%s18105_s24 + $0xa8] sm:$0xff] %vm387_vm0, %v10106_v17 }
 0xd72   : > { %v10036_v1 = vpop.f32.mrb[136].mxu0 }
 0xd73   : > { %v10037_v22 = vadd.f32 %v18097_v50, %v10036_v1  ;;  %v10038_v52 = vpop.f32.mrb[137].mxu0 }
 0xd75   : > { %v10107_v54 = vadd.f32 %v10037_v22, %v18472_v48 }
 0xd76   : > { %v10041_v61 = vpop.f32.mrb[138].mxu0 }
 0xd77   : > { %10139 = vst.msk [vmem:[%s18105_s24 + $0xb0] sm:$0xff] %vm387_vm0, %v10107_v54  ;;  %v10042_v47 = vadd.f32 %v18097_v50, %v10041_v61  ;;  %v10043_v34 = vpop.f32.mrb[139].mxu0 }
 0xd79   : > { %v10108_v6 = vadd.f32 %v10042_v47, %v18473_v13 }
 0xd7b   : > { %10140 = vst.msk [vmem:[%s18105_s24 + $0xb8] sm:$0xff] %vm387_vm0, %v10108_v6 }
 0xd81   : > { %v10046_v40 = vpop.f32.mrb[140].mxu0 }
 0xd82   : > { %v10047_v33 = vadd.f32 %v18097_v50, %v10046_v40  ;;  %v10048_v15 = vpop.f32.mrb[141].mxu0 }
 0xd84   : > { %v10109_v62 = vadd.f32 %v10047_v33, %v18474_v39 }
 0xd85   : > { %v10051_v12 = vpop.f32.mrb[142].mxu0 }
 0xd86   : > { %10141 = vst.msk [vmem:[%s18105_s24 + $0xc0] sm:$0xff] %vm387_vm0, %v10109_v62  ;;  %v10052_v0 = vadd.f32 %v18097_v50, %v10051_v12  ;;  %v10053_v3 = vpop.f32.mrb[143].mxu0 }
 0xd88   : > { %v10110_v58 = vadd.f32 %v10052_v0, %v18475_v24 }
 0xd8a   : > { %10142 = vst.msk [vmem:[%s18105_s24 + $0xc8] sm:$0xff] %vm387_vm0, %v10110_v58 }
 0xd8e   : > { %v10056_v19 = vpop.f32.mrb[144].mxu0 }
 0xd8f   : > { %v10057_v31 = vadd.f32 %v18097_v50, %v10056_v19  ;;  %v10058_v41 = vpop.f32.mrb[145].mxu0 }
 0xd91   : > { %v10111_v10 = vadd.f32 %v10057_v31, %v18476_v30 }
 0xd92   : > { %v10061_v51 = vpop.f32.mrb[146].mxu0 }
 0xd93   : > { %10143 = vst.msk [vmem:[%s18105_s24 + $0xd0] sm:$0xff] %vm387_vm0, %v10111_v10  ;;  %v10062_v46 = vadd.f32 %v18097_v50, %v10061_v51  ;;  %v10063_v18 = vpop.f32.mrb[147].mxu0 }
 0xd95   : > { %v10112_v43 = vadd.f32 %v10062_v46, %v18477_v8 }
 0xd97   : > { %10144 = vst.msk [vmem:[%s18105_s24 + $0xd8] sm:$0xff] %vm387_vm0, %v10112_v43 }
 0xd9d   : > { %v10066_v57 = vpop.f32.mrb[148].mxu0 }
 0xd9e   : > { %v10067_v29 = vadd.f32 %v18097_v50, %v10066_v57  ;;  %v10068_v26 = vpop.f32.mrb[149].mxu0 }
 0xda0   : > { %v10113_v2 = vadd.f32 %v10067_v29, %v18478_v49 }
 0xda1   : > { %v10071_v44 = vpop.f32.mrb[150].mxu0 }
 0xda2   : > { %10145 = vst.msk [vmem:[%s18105_s24 + $0xe0] sm:$0xff] %vm387_vm0, %v10113_v2  ;;  %v10072_v5 = vadd.f32 %v18097_v50, %v10071_v44  ;;  %v10073_v11 = vpop.f32.mrb[151].mxu0 }
 0xda4   : > { %v10114_v45 = vadd.f32 %v10072_v5, %v18479_v38 }
 0xda6   : > { %10146 = vst.msk [vmem:[%s18105_s24 + $0xe8] sm:$0xff] %vm387_vm0, %v10114_v45 }
 0xda8   : > { %v10076_v32 = vpop.f32.mrb[152].mxu0 }
 0xda9   : > { %v10077_v9 = vadd.f32 %v18097_v50, %v10076_v32  ;;  %v10078_v53 = vpop.f32.mrb[153].mxu0 }
 0xdab   : > { %v10115_v36 = vadd.f32 %v10077_v9, %v18480_v23 }
 0xdac   : > { %v10081_v35 = vpop.f32.mrb[154].mxu0 }
 0xdad   : > { %10147 = vst.msk [vmem:[%s18105_s24 + $0xf0] sm:$0xff] %vm387_vm0, %v10115_v36  ;;  %v10082_v37 = vadd.f32 %v18097_v50, %v10081_v35  ;;  %v10083_v63 = vpop.f32.mrb[155].mxu0 }
 0xdaf   : > { %v10116_v60 = vadd.f32 %v10082_v37, %v18481_v7 }
 0xdb1   : > { %10148 = vst.msk [vmem:[%s18105_s24 + $0xf8] sm:$0xff] %vm387_vm0, %v10116_v60 }
 0xdb2 PF: > { %s21_s17 = sadd.s32 1, %s13430_s17  }
 0xdb3   : > { %p18_p4 = scmp.ge.s32.totalorder %s21_s17, 4  }
 0xdb5   :  { %20 = sbr.rel (!%p18_p4) target bundleno = 1 (0x1), region = 104 }

</bundles_post_ra>
